<compile_context>
chip_gen: v5e
topology: v5e:2x2
jax: 0.10.0
libtpu: 0.0.40
codegen_flags: <defaults>
</compile_context>

<pallas_src>
import functools

import jax
import jax.numpy as jnp
from jax.experimental import pallas as pl
from jax.experimental.pallas import tpu as pltpu


# ----------------------------------------------------------------------------
# Kernels
# ----------------------------------------------------------------------------
def conv3x3_fused_kernel(x_ref, scale_ref, shift_ref, w_ref, b_ref,
                         o_ref, psum_ref, pssq_ref, *, apply_input_act):
    """Fused (prev-layer BN affine + ReLU) -> 3x3 'same' conv + bias,
    plus per-batch-step partial channel stats of the conv output.

    x_ref:     (1, H, W, Cin)   input tile (NHWC)
    scale_ref: (1, Cin)         prev-layer BN scale (ignored when not fused)
    shift_ref: (1, Cin)         prev-layer BN shift
    w_ref:     (Cin, 9*Cout)    weights, taps packed along the output axis
    b_ref:     (1, Cout)        bias
    o_ref:     (1, H, W, Cout)  conv output (pre-BN)
    psum_ref:  (1, 1, Cout)     per-step channel sum of the conv output
    pssq_ref:  (1, 1, Cout)     per-step channel sum of squares
    """
    H, W, Cout = o_ref.shape[1], o_ref.shape[2], o_ref.shape[3]
    Cin = x_ref.shape[3]
    HW = H * W

    x = x_ref[0].astype(jnp.float32)                          # (H, W, Cin)
    if apply_input_act:
        # Fused BatchNorm affine + ReLU of the previous layer, applied to the
        # VMEM tile right after load (scale/shift precomputed per channel).
        x = jnp.maximum(
            x * scale_ref[0][None, None, :] + shift_ref[0][None, None, :], 0.0)

    xf = x.reshape(HW, Cin)
    # One MXU call covering all nine taps: (HW, Cin) @ (Cin, 9*Cout).
    prod = jnp.dot(xf, w_ref[...], preferred_element_type=jnp.float32)

    # Flattened output-pixel coordinates, used to zero contributions whose
    # source pixel falls in the (conceptual) 1-pixel zero padding.
    hh = jax.lax.broadcasted_iota(jnp.int32, (H, W, 1), 0).reshape(HW, 1)
    ww = jax.lax.broadcasted_iota(jnp.int32, (H, W, 1), 1).reshape(HW, 1)

    # Center tap (dy=1, dx=1): no shift, no mask; fold the bias in here.
    acc = prod[:, 4 * Cout:5 * Cout] + b_ref[...]

    for t in range(9):
        if t == 4:
            continue
        dy, dx = divmod(t, 3)
        sh, sw = dy - 1, dx - 1                     # source offset of this tap
        tap = prod[:, t * Cout:(t + 1) * Cout]      # (HW, Cout)
        # out[h, w] += tap[h+sh, w+sw] (zero outside the image). In row-major
        # flattened form this is a roll by sh*W + sw plus a validity mask;
        # the roll runs on the XLU so it does not compete with the VPU adds.
        off = sh * W + sw
        tap = pltpu.roll(tap, shift=(-off) % HW, axis=0)
        conds = []
        if sh > 0:
            conds.append(hh < H - sh)
        if sh < 0:
            conds.append(hh >= -sh)
        if sw > 0:
            conds.append(ww < W - sw)
        if sw < 0:
            conds.append(ww >= -sw)
        valid = conds[0]
        for c in conds[1:]:
            valid = valid & c
        acc = acc + jnp.where(valid, tap, 0.0)

    # Per-channel partial stats of the conv output (pre-BN) for this batch
    # step; the tiny (N, 1, C) partials are reduced to mean/var in plain JAX,
    # so BatchNorm needs no second pass over the activation.
    psum_ref[...] = jnp.sum(acc, axis=0)[None, None, :]
    pssq_ref[...] = jnp.sum(acc * acc, axis=0)[None, None, :]

    o_ref[0] = acc.reshape(H, W, Cout).astype(o_ref.dtype)


def bn_relu_kernel(y_ref, scale_ref, shift_ref, o_ref):
    """Fused BatchNorm affine (precomputed scale/shift) + ReLU (final layer)."""
    y = y_ref[...].astype(jnp.float32)                       # (1, H, W, C)
    z = y * scale_ref[0][None, None, None, :] + shift_ref[0][None, None, None, :]
    o_ref[...] = jnp.maximum(z, 0.0).astype(o_ref.dtype)


# ----------------------------------------------------------------------------
# Pallas wrappers
# ----------------------------------------------------------------------------
def conv3x3_stats_pallas(x_nhwc, w_hwio, bias, in_scale=None, in_shift=None):
    """3x3 same-conv (+ optional fused input BN-affine+ReLU) + per-step stats.

    Returns (y, psum, pssq) with y: (N,H,W,Cout), psum/pssq: (N,1,Cout).
    """
    N, H, W, Cin = x_nhwc.shape
    Cout = w_hwio.shape[-1]
    apply_input_act = in_scale is not None
    if not apply_input_act:
        in_scale = jnp.ones((Cin,), jnp.float32)
        in_shift = jnp.zeros((Cin,), jnp.float32)

    # Host-side weight packing (free, tiny): taps along the output axis so the
    # kernel issues one deep-output MXU matmul instead of nine K=Cin dots.
    w_packed = jnp.transpose(w_hwio.reshape(9, Cin, Cout), (1, 0, 2))
    w_packed = w_packed.reshape(Cin, 9 * Cout)

    kernel = functools.partial(conv3x3_fused_kernel,
                               apply_input_act=apply_input_act)

    return pl.pallas_call(
        kernel,
        out_shape=(
            jax.ShapeDtypeStruct((N, H, W, Cout), jnp.float32),
            jax.ShapeDtypeStruct((N, 1, Cout), jnp.float32),
            jax.ShapeDtypeStruct((N, 1, Cout), jnp.float32),
        ),
        grid=(N,),
        in_specs=[
            pl.BlockSpec((1, H, W, Cin), lambda n: (n, 0, 0, 0)),
            pl.BlockSpec((1, Cin), lambda n: (0, 0)),
            pl.BlockSpec((1, Cin), lambda n: (0, 0)),
            pl.BlockSpec((Cin, 9 * Cout), lambda n: (0, 0)),
            pl.BlockSpec((1, Cout), lambda n: (0, 0)),
        ],
        out_specs=(
            pl.BlockSpec((1, H, W, Cout), lambda n: (n, 0, 0, 0)),
            pl.BlockSpec((1, 1, Cout), lambda n: (n, 0, 0)),
            pl.BlockSpec((1, 1, Cout), lambda n: (n, 0, 0)),
        ),
        compiler_params=pltpu.CompilerParams(
            dimension_semantics=("parallel",)),
    )(x_nhwc, in_scale.reshape(1, Cin), in_shift.reshape(1, Cin), w_packed,
      bias.reshape(1, Cout))


def bn_relu_pallas(y_nhwc, scale, shift):
    N, H, W, C = y_nhwc.shape
    return pl.pallas_call(
        bn_relu_kernel,
        out_shape=jax.ShapeDtypeStruct((N, H, W, C), jnp.float32),
        grid=(N,),
        in_specs=[
            pl.BlockSpec((1, H, W, C), lambda n: (n, 0, 0, 0)),
            pl.BlockSpec((1, C), lambda n: (0, 0)),
            pl.BlockSpec((1, C), lambda n: (0, 0)),
        ],
        out_specs=pl.BlockSpec((1, H, W, C), lambda n: (n, 0, 0, 0)),
        compiler_params=pltpu.CompilerParams(
            dimension_semantics=("parallel",)),
    )(y_nhwc, scale.reshape(1, C), shift.reshape(1, C))


def bn_scale_shift(psum, pssq, count, gamma, beta, eps=1e-5):
    """Turn per-step partial (sum, sumsq) into BatchNorm (scale, shift)."""
    s = jnp.sum(psum, axis=(0, 1))
    ss = jnp.sum(pssq, axis=(0, 1))
    mean = s / count
    var = jnp.maximum(ss / count - mean * mean, 0.0)   # guard tiny cancellation
    scale = gamma * jax.lax.rsqrt(var + eps)
    shift = beta - mean * scale
    return scale, shift


@jax.jit
def conv_block_forward(x_nchw, params):
    """Equivalent of Conv.forward. Input/output layout: NCHW (PyTorch)."""
    x = jnp.transpose(x_nchw, (0, 2, 3, 1))                  # NCHW -> NHWC
    N, H, W, _ = x.shape
    count = float(N * H * W)

    # Layer 1: conv + fused per-step channel stats (no separate stats pass).
    y1, s1, ss1 = conv3x3_stats_pallas(x, params["w1"], params["b1"])
    scale1, shift1 = bn_scale_shift(s1, ss1, count,
                                    params["gamma1"], params["beta1"])

    # Layer 2: BN1 + ReLU fused into the conv input; stats fused again.
    y2, s2, ss2 = conv3x3_stats_pallas(y1, params["w2"], params["b2"],
                                       in_scale=scale1, in_shift=shift1)
    scale2, shift2 = bn_scale_shift(s2, ss2, count,
                                    params["gamma2"], params["beta2"])

    # Final BN2 + ReLU (the only standalone elementwise pass left).
    a2 = bn_relu_pallas(y2, scale2, shift2)
    return jnp.transpose(a2, (0, 3, 1, 2))                   # NHWC -> NCHW


# ----------------------------------------------------------------------------
# Pure-JAX reference (for correctness check)
# ----------------------------------------------------------------------------
def reference_forward(x_nchw, params, eps=1e-5):
    def conv(x, w_hwio, b):
        y = jax.lax.conv_general_dilated(
            x, w_hwio, window_strides=(1, 1), padding="SAME",
            dimension_numbers=("NCHW", "HWIO", "NCHW"))
        return y + b[None, :, None, None]

    def bn_relu(y, g, b):
        mean = jnp.mean(y, axis=(0, 2, 3))
        var = jnp.mean((y - mean[None, :, None, None]) ** 2, axis=(0, 2, 3))
        z = (y - mean[None, :, None, None]) * \
            jax.lax.rsqrt(var + eps)[None, :, None, None]
        z = z * g[None, :, None, None] + b[None, :, None, None]
        return jnp.maximum(z, 0.0)

    y = conv(x_nchw, params["w1"], params["b1"])
    y = bn_relu(y, params["gamma1"], params["beta1"])
    y = conv(y, params["w2"], params["b2"])
    return bn_relu(y, params["gamma2"], params["beta2"])


# ----------------------------------------------------------------------------
# Main
# ----------------------------------------------------------------------------
if __name__ == "__main__":
    N, Cin, Cout, H, W = 2, 4, 8, 16, 16

    key = jax.random.PRNGKey(0)
    k1, k2, k3, k4, kx = jax.random.split(key, 5)

    # Weights in HWIO (equivalent to torch's (Cout, Cin, 3, 3) transposed).
    params = {
        "w1": jax.random.normal(k1, (3, 3, Cin, Cout), jnp.float32) * 0.1,
        "b1": jax.random.normal(k2, (Cout,), jnp.float32) * 0.1,
        "gamma1": jnp.ones((Cout,), jnp.float32),   # BatchNorm2d default weight
        "beta1": jnp.zeros((Cout,), jnp.float32),   # BatchNorm2d default bias
        "w2": jax.random.normal(k3, (3, 3, Cout, Cout), jnp.float32) * 0.1,
        "b2": jax.random.normal(k4, (Cout,), jnp.float32) * 0.1,
        "gamma2": jnp.ones((Cout,), jnp.float32),
        "beta2": jnp.zeros((Cout,), jnp.float32),
    }

    x = jax.random.normal(kx, (N, Cin, H, W), jnp.float32)   # NCHW like PyTorch

    out = conv_block_forward(x, params)
    out = jax.block_until_ready(out)

    ref = reference_forward(x, params)
    assert out.shape == (N, Cout, H, W)
    assert jnp.allclose(out, ref, atol=1e-4, rtol=1e-4), \
        f"max abs err {jnp.max(jnp.abs(out - ref))}"

    print("KERNEL_OK")
</pallas_src>

<mosaic_0001>
module attributes {stable_mosaic.version = 11 : i64} {
  func.func @conv3x3_fused_kernel(%arg0: i32, %arg1: memref<1x16x16x4xf32, #tpu.memory_space<vmem>>, %arg2: memref<1x4xf32, #tpu.memory_space<vmem>>, %arg3: memref<1x4xf32, #tpu.memory_space<vmem>>, %arg4: memref<4x72xf32, #tpu.memory_space<vmem>>, %arg5: memref<1x8xf32, #tpu.memory_space<vmem>>, %arg6: memref<1x16x16x8xf32, #tpu.memory_space<vmem>>, %arg7: memref<1x1x8xf32, #tpu.memory_space<vmem>>, %arg8: memref<1x1x8xf32, #tpu.memory_space<vmem>>) attributes {dimension_semantics = [#tpu.dimension_semantics<parallel>], iteration_bounds = array<i64: 2>, scalar_prefetch = 0 : i64, scratch_operands = 0 : i64, tpu.core_type = #tpu.core_type<tc>, window_params = [{transform_indices = @transform_0, window_bounds = array<i64: 1, 16, 16, 4>}, {pipeline_mode = #tpu.pipeline_mode<synchronous>, transform_indices = @transform_1, window_bounds = array<i64: 1, 4>}, {pipeline_mode = #tpu.pipeline_mode<synchronous>, transform_indices = @transform_2, window_bounds = array<i64: 1, 4>}, {pipeline_mode = #tpu.pipeline_mode<synchronous>, transform_indices = @transform_3, window_bounds = array<i64: 4, 72>}, {pipeline_mode = #tpu.pipeline_mode<synchronous>, transform_indices = @transform_4, window_bounds = array<i64: 1, 8>}, {transform_indices = @transform_5, window_bounds = array<i64: 1, 16, 16, 8>}, {transform_indices = @transform_6, window_bounds = array<i64: 1, 1, 8>}, {transform_indices = @transform_7, window_bounds = array<i64: 1, 1, 8>}]} {
    %c0 = arith.constant 0 : index
    %c0_0 = arith.constant 0 : index
    %c0_1 = arith.constant 0 : index
    %c0_2 = arith.constant 0 : index
    %0 = vector.load %arg1[%c0, %c0_0, %c0_1, %c0_2] : memref<1x16x16x4xf32, #tpu.memory_space<vmem>>, vector<1x16x16x4xf32>
    %1 = vector.shape_cast %0 : vector<1x16x16x4xf32> to vector<16x16x4xf32>
    %2 = vector.shape_cast %1 : vector<16x16x4xf32> to vector<256x4xf32>
    %c0_3 = arith.constant 0 : index
    %c0_4 = arith.constant 0 : index
    %3 = vector.load %arg4[%c0_3, %c0_4] : memref<4x72xf32, #tpu.memory_space<vmem>>, vector<4x72xf32>
    %cst = arith.constant dense<0.000000e+00> : vector<256x72xf32>
    %4 = tpu.matmul %2, %3, %cst {dimension_numbers = #tpu.dot_dimension_numbers<[1], [0], [0], [1], [0, 0, 1, 1], [], []>} : vector<256x4xf32>, vector<4x72xf32>, vector<256x72xf32> -> vector<256x72xf32>
    %5 = tpu.iota {dimensions = array<i32: 0>} : vector<16x16x1xi32>
    %6 = vector.shape_cast %5 : vector<16x16x1xi32> to vector<256x1xi32>
    %7 = tpu.iota {dimensions = array<i32: 1>} : vector<16x16x1xi32>
    %8 = vector.shape_cast %7 : vector<16x16x1xi32> to vector<256x1xi32>
    %9 = vector.extract_strided_slice %4 {offsets = [0, 32], sizes = [256, 8], strides = [1, 1]} : vector<256x72xf32> to vector<256x8xf32>
    %c0_5 = arith.constant 0 : index
    %c0_6 = arith.constant 0 : index
    %10 = vector.load %arg5[%c0_5, %c0_6] : memref<1x8xf32, #tpu.memory_space<vmem>>, vector<1x8xf32>
    %11 = vector.broadcast %10 : vector<1x8xf32> to vector<256x8xf32>
    %12 = arith.addf %9, %11 : vector<256x8xf32>
    %13 = vector.extract_strided_slice %4 {offsets = [0, 0], sizes = [256, 8], strides = [1, 1]} : vector<256x72xf32> to vector<256x8xf32>
    %c17_i32 = arith.constant 17 : i32
    %14 = tpu.dynamic_rotate %13 by %c17_i32 dim 0 : vector<256x8xf32>, i32 -> vector<256x8xf32>
    %c1_i32 = arith.constant 1 : i32
    %15 = vector.broadcast %c1_i32 : i32 to vector<256x1xi32>
    %16 = arith.cmpi sge, %6, %15 : vector<256x1xi32>
    %c1_i32_7 = arith.constant 1 : i32
    %17 = vector.broadcast %c1_i32_7 : i32 to vector<256x1xi32>
    %18 = arith.cmpi sge, %8, %17 : vector<256x1xi32>
    %19 = arith.andi %16, %18 : vector<256x1xi1>
    %cst_8 = arith.constant 0.000000e+00 : f32
    %20 = vector.shape_cast %19 : vector<256x1xi1> to vector<256x1xi1>
    %21 = vector.broadcast %20 : vector<256x1xi1> to vector<256x8xi1>
    %22 = vector.broadcast %cst_8 : f32 to vector<256x8xf32>
    %23 = arith.select %21, %14, %22 : vector<256x8xi1>, vector<256x8xf32>
    %24 = arith.addf %12, %23 : vector<256x8xf32>
    %25 = vector.extract_strided_slice %4 {offsets = [0, 8], sizes = [256, 8], strides = [1, 1]} : vector<256x72xf32> to vector<256x8xf32>
    %c16_i32 = arith.constant 16 : i32
    %26 = tpu.dynamic_rotate %25 by %c16_i32 dim 0 : vector<256x8xf32>, i32 -> vector<256x8xf32>
    %c1_i32_9 = arith.constant 1 : i32
    %27 = vector.broadcast %c1_i32_9 : i32 to vector<256x1xi32>
    %28 = arith.cmpi sge, %6, %27 : vector<256x1xi32>
    %cst_10 = arith.constant 0.000000e+00 : f32
    %29 = vector.shape_cast %28 : vector<256x1xi1> to vector<256x1xi1>
    %30 = vector.broadcast %29 : vector<256x1xi1> to vector<256x8xi1>
    %31 = vector.broadcast %cst_10 : f32 to vector<256x8xf32>
    %32 = arith.select %30, %26, %31 : vector<256x8xi1>, vector<256x8xf32>
    %33 = arith.addf %24, %32 : vector<256x8xf32>
    %34 = vector.extract_strided_slice %4 {offsets = [0, 16], sizes = [256, 8], strides = [1, 1]} : vector<256x72xf32> to vector<256x8xf32>
    %c15_i32 = arith.constant 15 : i32
    %35 = tpu.dynamic_rotate %34 by %c15_i32 dim 0 : vector<256x8xf32>, i32 -> vector<256x8xf32>
    %c1_i32_11 = arith.constant 1 : i32
    %36 = vector.broadcast %c1_i32_11 : i32 to vector<256x1xi32>
    %37 = arith.cmpi sge, %6, %36 : vector<256x1xi32>
    %c15_i32_12 = arith.constant 15 : i32
    %38 = vector.broadcast %c15_i32_12 : i32 to vector<256x1xi32>
    %39 = arith.cmpi slt, %8, %38 : vector<256x1xi32>
    %40 = arith.andi %37, %39 : vector<256x1xi1>
    %cst_13 = arith.constant 0.000000e+00 : f32
    %41 = vector.shape_cast %40 : vector<256x1xi1> to vector<256x1xi1>
    %42 = vector.broadcast %41 : vector<256x1xi1> to vector<256x8xi1>
    %43 = vector.broadcast %cst_13 : f32 to vector<256x8xf32>
    %44 = arith.select %42, %35, %43 : vector<256x8xi1>, vector<256x8xf32>
    %45 = arith.addf %33, %44 : vector<256x8xf32>
    %46 = vector.extract_strided_slice %4 {offsets = [0, 24], sizes = [256, 8], strides = [1, 1]} : vector<256x72xf32> to vector<256x8xf32>
    %c1_i32_14 = arith.constant 1 : i32
    %47 = tpu.dynamic_rotate %46 by %c1_i32_14 dim 0 : vector<256x8xf32>, i32 -> vector<256x8xf32>
    %c1_i32_15 = arith.constant 1 : i32
    %48 = vector.broadcast %c1_i32_15 : i32 to vector<256x1xi32>
    %49 = arith.cmpi sge, %8, %48 : vector<256x1xi32>
    %cst_16 = arith.constant 0.000000e+00 : f32
    %50 = vector.shape_cast %49 : vector<256x1xi1> to vector<256x1xi1>
    %51 = vector.broadcast %50 : vector<256x1xi1> to vector<256x8xi1>
    %52 = vector.broadcast %cst_16 : f32 to vector<256x8xf32>
    %53 = arith.select %51, %47, %52 : vector<256x8xi1>, vector<256x8xf32>
    %54 = arith.addf %45, %53 : vector<256x8xf32>
    %55 = vector.extract_strided_slice %4 {offsets = [0, 40], sizes = [256, 8], strides = [1, 1]} : vector<256x72xf32> to vector<256x8xf32>
    %c255_i32 = arith.constant 255 : i32
    %56 = tpu.dynamic_rotate %55 by %c255_i32 dim 0 : vector<256x8xf32>, i32 -> vector<256x8xf32>
    %c15_i32_17 = arith.constant 15 : i32
    %57 = vector.broadcast %c15_i32_17 : i32 to vector<256x1xi32>
    %58 = arith.cmpi slt, %8, %57 : vector<256x1xi32>
    %cst_18 = arith.constant 0.000000e+00 : f32
    %59 = vector.shape_cast %58 : vector<256x1xi1> to vector<256x1xi1>
    %60 = vector.broadcast %59 : vector<256x1xi1> to vector<256x8xi1>
    %61 = vector.broadcast %cst_18 : f32 to vector<256x8xf32>
    %62 = arith.select %60, %56, %61 : vector<256x8xi1>, vector<256x8xf32>
    %63 = arith.addf %54, %62 : vector<256x8xf32>
    %64 = vector.extract_strided_slice %4 {offsets = [0, 48], sizes = [256, 8], strides = [1, 1]} : vector<256x72xf32> to vector<256x8xf32>
    %c241_i32 = arith.constant 241 : i32
    %65 = tpu.dynamic_rotate %64 by %c241_i32 dim 0 : vector<256x8xf32>, i32 -> vector<256x8xf32>
    %c15_i32_19 = arith.constant 15 : i32
    %66 = vector.broadcast %c15_i32_19 : i32 to vector<256x1xi32>
    %67 = arith.cmpi slt, %6, %66 : vector<256x1xi32>
    %c1_i32_20 = arith.constant 1 : i32
    %68 = vector.broadcast %c1_i32_20 : i32 to vector<256x1xi32>
    %69 = arith.cmpi sge, %8, %68 : vector<256x1xi32>
    %70 = arith.andi %67, %69 : vector<256x1xi1>
    %cst_21 = arith.constant 0.000000e+00 : f32
    %71 = vector.shape_cast %70 : vector<256x1xi1> to vector<256x1xi1>
    %72 = vector.broadcast %71 : vector<256x1xi1> to vector<256x8xi1>
    %73 = vector.broadcast %cst_21 : f32 to vector<256x8xf32>
    %74 = arith.select %72, %65, %73 : vector<256x8xi1>, vector<256x8xf32>
    %75 = arith.addf %63, %74 : vector<256x8xf32>
    %76 = vector.extract_strided_slice %4 {offsets = [0, 56], sizes = [256, 8], strides = [1, 1]} : vector<256x72xf32> to vector<256x8xf32>
    %c240_i32 = arith.constant 240 : i32
    %77 = tpu.dynamic_rotate %76 by %c240_i32 dim 0 : vector<256x8xf32>, i32 -> vector<256x8xf32>
    %c15_i32_22 = arith.constant 15 : i32
    %78 = vector.broadcast %c15_i32_22 : i32 to vector<256x1xi32>
    %79 = arith.cmpi slt, %6, %78 : vector<256x1xi32>
    %cst_23 = arith.constant 0.000000e+00 : f32
    %80 = vector.shape_cast %79 : vector<256x1xi1> to vector<256x1xi1>
    %81 = vector.broadcast %80 : vector<256x1xi1> to vector<256x8xi1>
    %82 = vector.broadcast %cst_23 : f32 to vector<256x8xf32>
    %83 = arith.select %81, %77, %82 : vector<256x8xi1>, vector<256x8xf32>
    %84 = arith.addf %75, %83 : vector<256x8xf32>
    %85 = vector.extract_strided_slice %4 {offsets = [0, 64], sizes = [256, 8], strides = [1, 1]} : vector<256x72xf32> to vector<256x8xf32>
    %c239_i32 = arith.constant 239 : i32
    %86 = tpu.dynamic_rotate %85 by %c239_i32 dim 0 : vector<256x8xf32>, i32 -> vector<256x8xf32>
    %c15_i32_24 = arith.constant 15 : i32
    %87 = vector.broadcast %c15_i32_24 : i32 to vector<256x1xi32>
    %88 = arith.cmpi slt, %6, %87 : vector<256x1xi32>
    %c15_i32_25 = arith.constant 15 : i32
    %89 = vector.broadcast %c15_i32_25 : i32 to vector<256x1xi32>
    %90 = arith.cmpi slt, %8, %89 : vector<256x1xi32>
    %91 = arith.andi %88, %90 : vector<256x1xi1>
    %cst_26 = arith.constant 0.000000e+00 : f32
    %92 = vector.shape_cast %91 : vector<256x1xi1> to vector<256x1xi1>
    %93 = vector.broadcast %92 : vector<256x1xi1> to vector<256x8xi1>
    %94 = vector.broadcast %cst_26 : f32 to vector<256x8xf32>
    %95 = arith.select %93, %86, %94 : vector<256x8xi1>, vector<256x8xf32>
    %96 = arith.addf %84, %95 : vector<256x8xf32>
    %cst_27 = arith.constant dense<0.000000e+00> : vector<8xf32>
    %97 = vector.multi_reduction <add>, %96, %cst_27 [0] : vector<256x8xf32> to vector<8xf32>
    %98 = vector.shape_cast %97 : vector<8xf32> to vector<1x1x8xf32>
    %c0_28 = arith.constant 0 : index
    %c0_29 = arith.constant 0 : index
    %c0_30 = arith.constant 0 : index
    %99 = vector.load %arg7[%c0_28, %c0_29, %c0_30] : memref<1x1x8xf32, #tpu.memory_space<vmem>>, vector<1x1x8xf32>
    tpu.vector_store %arg7[%c0_28, %c0_29, %c0_30], %98 {strides = array<i32>} : memref<1x1x8xf32, #tpu.memory_space<vmem>>, vector<1x1x8xf32>,
    %100 = arith.mulf %96, %96 : vector<256x8xf32>
    %cst_31 = arith.constant dense<0.000000e+00> : vector<8xf32>
    %101 = vector.multi_reduction <add>, %100, %cst_31 [0] : vector<256x8xf32> to vector<8xf32>
    %102 = vector.shape_cast %101 : vector<8xf32> to vector<1x1x8xf32>
    %c0_32 = arith.constant 0 : index
    %c0_33 = arith.constant 0 : index
    %c0_34 = arith.constant 0 : index
    %103 = vector.load %arg8[%c0_32, %c0_33, %c0_34] : memref<1x1x8xf32, #tpu.memory_space<vmem>>, vector<1x1x8xf32>
    tpu.vector_store %arg8[%c0_32, %c0_33, %c0_34], %102 {strides = array<i32>} : memref<1x1x8xf32, #tpu.memory_space<vmem>>, vector<1x1x8xf32>,
    %104 = vector.shape_cast %96 : vector<256x8xf32> to vector<16x16x8xf32>
    %c0_35 = arith.constant 0 : index
    %c0_36 = arith.constant 0 : index
    %c0_37 = arith.constant 0 : index
    %c0_38 = arith.constant 0 : index
    %105 = vector.load %arg6[%c0_35, %c0_36, %c0_37, %c0_38] : memref<1x16x16x8xf32, #tpu.memory_space<vmem>>, vector<1x16x16x8xf32>
    %106 = vector.shape_cast %105 : vector<1x16x16x8xf32> to vector<16x16x8xf32>
    %107 = vector.shape_cast %104 : vector<16x16x8xf32> to vector<1x16x16x8xf32>
    tpu.vector_store %arg6[%c0_35, %c0_36, %c0_37, %c0_38], %107 {strides = array<i32>} : memref<1x16x16x8xf32, #tpu.memory_space<vmem>>, vector<1x16x16x8xf32>,
    return
  }
  func.func @transform_0(%arg0: i32) -> (i32, i32, i32, i32) {
    %c0_i32 = arith.constant 0 : i32
    %c0_i32_0 = arith.constant 0 : i32
    %c0_i32_1 = arith.constant 0 : i32
    %c0_i32_2 = arith.constant 0 : i32
    return %arg0, %c0_i32, %c0_i32_0, %c0_i32_1 : i32, i32, i32, i32
  }
  func.func @transform_1(%arg0: i32) -> (i32, i32) {
    %c0_i32 = arith.constant 0 : i32
    %c0_i32_0 = arith.constant 0 : i32
    %c0_i32_1 = arith.constant 0 : i32
    return %c0_i32, %c0_i32_0 : i32, i32
  }
  func.func @transform_2(%arg0: i32) -> (i32, i32) {
    %c0_i32 = arith.constant 0 : i32
    %c0_i32_0 = arith.constant 0 : i32
    %c0_i32_1 = arith.constant 0 : i32
    return %c0_i32, %c0_i32_0 : i32, i32
  }
  func.func @transform_3(%arg0: i32) -> (i32, i32) {
    %c0_i32 = arith.constant 0 : i32
    %c0_i32_0 = arith.constant 0 : i32
    %c0_i32_1 = arith.constant 0 : i32
    return %c0_i32, %c0_i32_0 : i32, i32
  }
  func.func @transform_4(%arg0: i32) -> (i32, i32) {
    %c0_i32 = arith.constant 0 : i32
    %c0_i32_0 = arith.constant 0 : i32
    %c0_i32_1 = arith.constant 0 : i32
    return %c0_i32, %c0_i32_0 : i32, i32
  }
  func.func @transform_5(%arg0: i32) -> (i32, i32, i32, i32) {
    %c0_i32 = arith.constant 0 : i32
    %c0_i32_0 = arith.constant 0 : i32
    %c0_i32_1 = arith.constant 0 : i32
    %c0_i32_2 = arith.constant 0 : i32
    return %arg0, %c0_i32, %c0_i32_0, %c0_i32_1 : i32, i32, i32, i32
  }
  func.func @transform_6(%arg0: i32) -> (i32, i32, i32) {
    %c0_i32 = arith.constant 0 : i32
    %c0_i32_0 = arith.constant 0 : i32
    %c0_i32_1 = arith.constant 0 : i32
    return %arg0, %c0_i32, %c0_i32_0 : i32, i32, i32
  }
  func.func @transform_7(%arg0: i32) -> (i32, i32, i32) {
    %c0_i32 = arith.constant 0 : i32
    %c0_i32_0 = arith.constant 0 : i32
    %c0_i32_1 = arith.constant 0 : i32
    return %arg0, %c0_i32, %c0_i32_0 : i32, i32, i32
  }
}

module attributes {stable_mosaic.version = 11 : i64} {
  func.func @bn_relu_kernel(%arg0: i32, %arg1: memref<1x16x16x8xf32, #tpu.memory_space<vmem>>, %arg2: memref<1x8xf32, #tpu.memory_space<vmem>>, %arg3: memref<1x8xf32, #tpu.memory_space<vmem>>, %arg4: memref<1x16x16x8xf32, #tpu.memory_space<vmem>>) attributes {dimension_semantics = [#tpu.dimension_semantics<parallel>], iteration_bounds = array<i64: 2>, scalar_prefetch = 0 : i64, scratch_operands = 0 : i64, tpu.core_type = #tpu.core_type<tc>, window_params = [{transform_indices = @transform_0, window_bounds = array<i64: 1, 16, 16, 8>}, {pipeline_mode = #tpu.pipeline_mode<synchronous>, transform_indices = @transform_1, window_bounds = array<i64: 1, 8>}, {pipeline_mode = #tpu.pipeline_mode<synchronous>, transform_indices = @transform_2, window_bounds = array<i64: 1, 8>}, {transform_indices = @transform_3, window_bounds = array<i64: 1, 16, 16, 8>}]} {
    %c0 = arith.constant 0 : index
    %c0_0 = arith.constant 0 : index
    %c0_1 = arith.constant 0 : index
    %c0_2 = arith.constant 0 : index
    %0 = vector.load %arg1[%c0, %c0_0, %c0_1, %c0_2] : memref<1x16x16x8xf32, #tpu.memory_space<vmem>>, vector<1x16x16x8xf32>
    %c0_3 = arith.constant 0 : index
    %c0_4 = arith.constant 0 : index
    %1 = vector.load %arg2[%c0_3, %c0_4] : memref<1x8xf32, #tpu.memory_space<vmem>>, vector<1x8xf32>
    %2 = vector.shape_cast %1 : vector<1x8xf32> to vector<8xf32>
    %3 = vector.shape_cast %2 : vector<8xf32> to vector<1x1x1x8xf32>
    %4 = vector.broadcast %3 : vector<1x1x1x8xf32> to vector<1x16x16x8xf32>
    %5 = arith.mulf %0, %4 : vector<1x16x16x8xf32>
    %c0_5 = arith.constant 0 : index
    %c0_6 = arith.constant 0 : index
    %6 = vector.load %arg3[%c0_5, %c0_6] : memref<1x8xf32, #tpu.memory_space<vmem>>, vector<1x8xf32>
    %7 = vector.shape_cast %6 : vector<1x8xf32> to vector<8xf32>
    %8 = vector.shape_cast %7 : vector<8xf32> to vector<1x1x1x8xf32>
    %9 = vector.broadcast %8 : vector<1x1x1x8xf32> to vector<1x16x16x8xf32>
    %10 = arith.addf %5, %9 : vector<1x16x16x8xf32>
    %cst = arith.constant 0.000000e+00 : f32
    %11 = vector.broadcast %cst : f32 to vector<1x16x16x8xf32>
    %12 = arith.maximumf %10, %11 : vector<1x16x16x8xf32>
    %c0_7 = arith.constant 0 : index
    %c0_8 = arith.constant 0 : index
    %c0_9 = arith.constant 0 : index
    %c0_10 = arith.constant 0 : index
    %13 = vector.load %arg4[%c0_7, %c0_8, %c0_9, %c0_10] : memref<1x16x16x8xf32, #tpu.memory_space<vmem>>, vector<1x16x16x8xf32>
    tpu.vector_store %arg4[%c0_7, %c0_8, %c0_9, %c0_10], %12 {strides = array<i32>} : memref<1x16x16x8xf32, #tpu.memory_space<vmem>>, vector<1x16x16x8xf32>,
    return
  }
  func.func @transform_0(%arg0: i32) -> (i32, i32, i32, i32) {
    %c0_i32 = arith.constant 0 : i32
    %c0_i32_0 = arith.constant 0 : i32
    %c0_i32_1 = arith.constant 0 : i32
    %c0_i32_2 = arith.constant 0 : i32
    return %arg0, %c0_i32, %c0_i32_0, %c0_i32_1 : i32, i32, i32, i32
  }
  func.func @transform_1(%arg0: i32) -> (i32, i32) {
    %c0_i32 = arith.constant 0 : i32
    %c0_i32_0 = arith.constant 0 : i32
    %c0_i32_1 = arith.constant 0 : i32
    return %c0_i32, %c0_i32_0 : i32, i32
  }
  func.func @transform_2(%arg0: i32) -> (i32, i32) {
    %c0_i32 = arith.constant 0 : i32
    %c0_i32_0 = arith.constant 0 : i32
    %c0_i32_1 = arith.constant 0 : i32
    return %c0_i32, %c0_i32_0 : i32, i32
  }
  func.func @transform_3(%arg0: i32) -> (i32, i32, i32, i32) {
    %c0_i32 = arith.constant 0 : i32
    %c0_i32_0 = arith.constant 0 : i32
    %c0_i32_1 = arith.constant 0 : i32
    %c0_i32_2 = arith.constant 0 : i32
    return %arg0, %c0_i32, %c0_i32_0, %c0_i32_1 : i32, i32, i32, i32
  }
}

module attributes {stable_mosaic.version = 11 : i64} {
  func.func @conv3x3_fused_kernel(%arg0: i32, %arg1: memref<1x16x16x8xf32, #tpu.memory_space<vmem>>, %arg2: memref<1x8xf32, #tpu.memory_space<vmem>>, %arg3: memref<1x8xf32, #tpu.memory_space<vmem>>, %arg4: memref<8x72xf32, #tpu.memory_space<vmem>>, %arg5: memref<1x8xf32, #tpu.memory_space<vmem>>, %arg6: memref<1x16x16x8xf32, #tpu.memory_space<vmem>>, %arg7: memref<1x1x8xf32, #tpu.memory_space<vmem>>, %arg8: memref<1x1x8xf32, #tpu.memory_space<vmem>>) attributes {dimension_semantics = [#tpu.dimension_semantics<parallel>], iteration_bounds = array<i64: 2>, scalar_prefetch = 0 : i64, scratch_operands = 0 : i64, tpu.core_type = #tpu.core_type<tc>, window_params = [{transform_indices = @transform_0, window_bounds = array<i64: 1, 16, 16, 8>}, {pipeline_mode = #tpu.pipeline_mode<synchronous>, transform_indices = @transform_1, window_bounds = array<i64: 1, 8>}, {pipeline_mode = #tpu.pipeline_mode<synchronous>, transform_indices = @transform_2, window_bounds = array<i64: 1, 8>}, {pipeline_mode = #tpu.pipeline_mode<synchronous>, transform_indices = @transform_3, window_bounds = array<i64: 8, 72>}, {pipeline_mode = #tpu.pipeline_mode<synchronous>, transform_indices = @transform_4, window_bounds = array<i64: 1, 8>}, {transform_indices = @transform_5, window_bounds = array<i64: 1, 16, 16, 8>}, {transform_indices = @transform_6, window_bounds = array<i64: 1, 1, 8>}, {transform_indices = @transform_7, window_bounds = array<i64: 1, 1, 8>}]} {
    %c0 = arith.constant 0 : index
    %c0_0 = arith.constant 0 : index
    %c0_1 = arith.constant 0 : index
    %c0_2 = arith.constant 0 : index
    %0 = vector.load %arg1[%c0, %c0_0, %c0_1, %c0_2] : memref<1x16x16x8xf32, #tpu.memory_space<vmem>>, vector<1x16x16x8xf32>
    %1 = vector.shape_cast %0 : vector<1x16x16x8xf32> to vector<16x16x8xf32>
    %c0_3 = arith.constant 0 : index
    %c0_4 = arith.constant 0 : index
    %2 = vector.load %arg2[%c0_3, %c0_4] : memref<1x8xf32, #tpu.memory_space<vmem>>, vector<1x8xf32>
    %3 = vector.shape_cast %2 : vector<1x8xf32> to vector<8xf32>
    %4 = vector.shape_cast %3 : vector<8xf32> to vector<1x1x8xf32>
    %5 = vector.broadcast %4 : vector<1x1x8xf32> to vector<16x16x8xf32>
    %6 = arith.mulf %1, %5 : vector<16x16x8xf32>
    %c0_5 = arith.constant 0 : index
    %c0_6 = arith.constant 0 : index
    %7 = vector.load %arg3[%c0_5, %c0_6] : memref<1x8xf32, #tpu.memory_space<vmem>>, vector<1x8xf32>
    %8 = vector.shape_cast %7 : vector<1x8xf32> to vector<8xf32>
    %9 = vector.shape_cast %8 : vector<8xf32> to vector<1x1x8xf32>
    %10 = vector.broadcast %9 : vector<1x1x8xf32> to vector<16x16x8xf32>
    %11 = arith.addf %6, %10 : vector<16x16x8xf32>
    %cst = arith.constant 0.000000e+00 : f32
    %12 = vector.broadcast %cst : f32 to vector<16x16x8xf32>
    %13 = arith.maximumf %11, %12 : vector<16x16x8xf32>
    %14 = vector.shape_cast %13 : vector<16x16x8xf32> to vector<256x8xf32>
    %c0_7 = arith.constant 0 : index
    %c0_8 = arith.constant 0 : index
    %15 = vector.load %arg4[%c0_7, %c0_8] : memref<8x72xf32, #tpu.memory_space<vmem>>, vector<8x72xf32>
    %cst_9 = arith.constant dense<0.000000e+00> : vector<256x72xf32>
    %16 = tpu.matmul %14, %15, %cst_9 {dimension_numbers = #tpu.dot_dimension_numbers<[1], [0], [0], [1], [0, 0, 1, 1], [], []>} : vector<256x8xf32>, vector<8x72xf32>, vector<256x72xf32> -> vector<256x72xf32>
    %17 = tpu.iota {dimensions = array<i32: 0>} : vector<16x16x1xi32>
    %18 = vector.shape_cast %17 : vector<16x16x1xi32> to vector<256x1xi32>
    %19 = tpu.iota {dimensions = array<i32: 1>} : vector<16x16x1xi32>
    %20 = vector.shape_cast %19 : vector<16x16x1xi32> to vector<256x1xi32>
    %21 = vector.extract_strided_slice %16 {offsets = [0, 32], sizes = [256, 8], strides = [1, 1]} : vector<256x72xf32> to vector<256x8xf32>
    %c0_10 = arith.constant 0 : index
    %c0_11 = arith.constant 0 : index
    %22 = vector.load %arg5[%c0_10, %c0_11] : memref<1x8xf32, #tpu.memory_space<vmem>>, vector<1x8xf32>
    %23 = vector.broadcast %22 : vector<1x8xf32> to vector<256x8xf32>
    %24 = arith.addf %21, %23 : vector<256x8xf32>
    %25 = vector.extract_strided_slice %16 {offsets = [0, 0], sizes = [256, 8], strides = [1, 1]} : vector<256x72xf32> to vector<256x8xf32>
    %c17_i32 = arith.constant 17 : i32
    %26 = tpu.dynamic_rotate %25 by %c17_i32 dim 0 : vector<256x8xf32>, i32 -> vector<256x8xf32>
    %c1_i32 = arith.constant 1 : i32
    %27 = vector.broadcast %c1_i32 : i32 to vector<256x1xi32>
    %28 = arith.cmpi sge, %18, %27 : vector<256x1xi32>
    %c1_i32_12 = arith.constant 1 : i32
    %29 = vector.broadcast %c1_i32_12 : i32 to vector<256x1xi32>
    %30 = arith.cmpi sge, %20, %29 : vector<256x1xi32>
    %31 = arith.andi %28, %30 : vector<256x1xi1>
    %cst_13 = arith.constant 0.000000e+00 : f32
    %32 = vector.shape_cast %31 : vector<256x1xi1> to vector<256x1xi1>
    %33 = vector.broadcast %32 : vector<256x1xi1> to vector<256x8xi1>
    %34 = vector.broadcast %cst_13 : f32 to vector<256x8xf32>
    %35 = arith.select %33, %26, %34 : vector<256x8xi1>, vector<256x8xf32>
    %36 = arith.addf %24, %35 : vector<256x8xf32>
    %37 = vector.extract_strided_slice %16 {offsets = [0, 8], sizes = [256, 8], strides = [1, 1]} : vector<256x72xf32> to vector<256x8xf32>
    %c16_i32 = arith.constant 16 : i32
    %38 = tpu.dynamic_rotate %37 by %c16_i32 dim 0 : vector<256x8xf32>, i32 -> vector<256x8xf32>
    %c1_i32_14 = arith.constant 1 : i32
    %39 = vector.broadcast %c1_i32_14 : i32 to vector<256x1xi32>
    %40 = arith.cmpi sge, %18, %39 : vector<256x1xi32>
    %cst_15 = arith.constant 0.000000e+00 : f32
    %41 = vector.shape_cast %40 : vector<256x1xi1> to vector<256x1xi1>
    %42 = vector.broadcast %41 : vector<256x1xi1> to vector<256x8xi1>
    %43 = vector.broadcast %cst_15 : f32 to vector<256x8xf32>
    %44 = arith.select %42, %38, %43 : vector<256x8xi1>, vector<256x8xf32>
    %45 = arith.addf %36, %44 : vector<256x8xf32>
    %46 = vector.extract_strided_slice %16 {offsets = [0, 16], sizes = [256, 8], strides = [1, 1]} : vector<256x72xf32> to vector<256x8xf32>
    %c15_i32 = arith.constant 15 : i32
    %47 = tpu.dynamic_rotate %46 by %c15_i32 dim 0 : vector<256x8xf32>, i32 -> vector<256x8xf32>
    %c1_i32_16 = arith.constant 1 : i32
    %48 = vector.broadcast %c1_i32_16 : i32 to vector<256x1xi32>
    %49 = arith.cmpi sge, %18, %48 : vector<256x1xi32>
    %c15_i32_17 = arith.constant 15 : i32
    %50 = vector.broadcast %c15_i32_17 : i32 to vector<256x1xi32>
    %51 = arith.cmpi slt, %20, %50 : vector<256x1xi32>
    %52 = arith.andi %49, %51 : vector<256x1xi1>
    %cst_18 = arith.constant 0.000000e+00 : f32
    %53 = vector.shape_cast %52 : vector<256x1xi1> to vector<256x1xi1>
    %54 = vector.broadcast %53 : vector<256x1xi1> to vector<256x8xi1>
    %55 = vector.broadcast %cst_18 : f32 to vector<256x8xf32>
    %56 = arith.select %54, %47, %55 : vector<256x8xi1>, vector<256x8xf32>
    %57 = arith.addf %45, %56 : vector<256x8xf32>
    %58 = vector.extract_strided_slice %16 {offsets = [0, 24], sizes = [256, 8], strides = [1, 1]} : vector<256x72xf32> to vector<256x8xf32>
    %c1_i32_19 = arith.constant 1 : i32
    %59 = tpu.dynamic_rotate %58 by %c1_i32_19 dim 0 : vector<256x8xf32>, i32 -> vector<256x8xf32>
    %c1_i32_20 = arith.constant 1 : i32
    %60 = vector.broadcast %c1_i32_20 : i32 to vector<256x1xi32>
    %61 = arith.cmpi sge, %20, %60 : vector<256x1xi32>
    %cst_21 = arith.constant 0.000000e+00 : f32
    %62 = vector.shape_cast %61 : vector<256x1xi1> to vector<256x1xi1>
    %63 = vector.broadcast %62 : vector<256x1xi1> to vector<256x8xi1>
    %64 = vector.broadcast %cst_21 : f32 to vector<256x8xf32>
    %65 = arith.select %63, %59, %64 : vector<256x8xi1>, vector<256x8xf32>
    %66 = arith.addf %57, %65 : vector<256x8xf32>
    %67 = vector.extract_strided_slice %16 {offsets = [0, 40], sizes = [256, 8], strides = [1, 1]} : vector<256x72xf32> to vector<256x8xf32>
    %c255_i32 = arith.constant 255 : i32
    %68 = tpu.dynamic_rotate %67 by %c255_i32 dim 0 : vector<256x8xf32>, i32 -> vector<256x8xf32>
    %c15_i32_22 = arith.constant 15 : i32
    %69 = vector.broadcast %c15_i32_22 : i32 to vector<256x1xi32>
    %70 = arith.cmpi slt, %20, %69 : vector<256x1xi32>
    %cst_23 = arith.constant 0.000000e+00 : f32
    %71 = vector.shape_cast %70 : vector<256x1xi1> to vector<256x1xi1>
    %72 = vector.broadcast %71 : vector<256x1xi1> to vector<256x8xi1>
    %73 = vector.broadcast %cst_23 : f32 to vector<256x8xf32>
    %74 = arith.select %72, %68, %73 : vector<256x8xi1>, vector<256x8xf32>
    %75 = arith.addf %66, %74 : vector<256x8xf32>
    %76 = vector.extract_strided_slice %16 {offsets = [0, 48], sizes = [256, 8], strides = [1, 1]} : vector<256x72xf32> to vector<256x8xf32>
    %c241_i32 = arith.constant 241 : i32
    %77 = tpu.dynamic_rotate %76 by %c241_i32 dim 0 : vector<256x8xf32>, i32 -> vector<256x8xf32>
    %c15_i32_24 = arith.constant 15 : i32
    %78 = vector.broadcast %c15_i32_24 : i32 to vector<256x1xi32>
    %79 = arith.cmpi slt, %18, %78 : vector<256x1xi32>
    %c1_i32_25 = arith.constant 1 : i32
    %80 = vector.broadcast %c1_i32_25 : i32 to vector<256x1xi32>
    %81 = arith.cmpi sge, %20, %80 : vector<256x1xi32>
    %82 = arith.andi %79, %81 : vector<256x1xi1>
    %cst_26 = arith.constant 0.000000e+00 : f32
    %83 = vector.shape_cast %82 : vector<256x1xi1> to vector<256x1xi1>
    %84 = vector.broadcast %83 : vector<256x1xi1> to vector<256x8xi1>
    %85 = vector.broadcast %cst_26 : f32 to vector<256x8xf32>
    %86 = arith.select %84, %77, %85 : vector<256x8xi1>, vector<256x8xf32>
    %87 = arith.addf %75, %86 : vector<256x8xf32>
    %88 = vector.extract_strided_slice %16 {offsets = [0, 56], sizes = [256, 8], strides = [1, 1]} : vector<256x72xf32> to vector<256x8xf32>
    %c240_i32 = arith.constant 240 : i32
    %89 = tpu.dynamic_rotate %88 by %c240_i32 dim 0 : vector<256x8xf32>, i32 -> vector<256x8xf32>
    %c15_i32_27 = arith.constant 15 : i32
    %90 = vector.broadcast %c15_i32_27 : i32 to vector<256x1xi32>
    %91 = arith.cmpi slt, %18, %90 : vector<256x1xi32>
    %cst_28 = arith.constant 0.000000e+00 : f32
    %92 = vector.shape_cast %91 : vector<256x1xi1> to vector<256x1xi1>
    %93 = vector.broadcast %92 : vector<256x1xi1> to vector<256x8xi1>
    %94 = vector.broadcast %cst_28 : f32 to vector<256x8xf32>
    %95 = arith.select %93, %89, %94 : vector<256x8xi1>, vector<256x8xf32>
    %96 = arith.addf %87, %95 : vector<256x8xf32>
    %97 = vector.extract_strided_slice %16 {offsets = [0, 64], sizes = [256, 8], strides = [1, 1]} : vector<256x72xf32> to vector<256x8xf32>
    %c239_i32 = arith.constant 239 : i32
    %98 = tpu.dynamic_rotate %97 by %c239_i32 dim 0 : vector<256x8xf32>, i32 -> vector<256x8xf32>
    %c15_i32_29 = arith.constant 15 : i32
    %99 = vector.broadcast %c15_i32_29 : i32 to vector<256x1xi32>
    %100 = arith.cmpi slt, %18, %99 : vector<256x1xi32>
    %c15_i32_30 = arith.constant 15 : i32
    %101 = vector.broadcast %c15_i32_30 : i32 to vector<256x1xi32>
    %102 = arith.cmpi slt, %20, %101 : vector<256x1xi32>
    %103 = arith.andi %100, %102 : vector<256x1xi1>
    %cst_31 = arith.constant 0.000000e+00 : f32
    %104 = vector.shape_cast %103 : vector<256x1xi1> to vector<256x1xi1>
    %105 = vector.broadcast %104 : vector<256x1xi1> to vector<256x8xi1>
    %106 = vector.broadcast %cst_31 : f32 to vector<256x8xf32>
    %107 = arith.select %105, %98, %106 : vector<256x8xi1>, vector<256x8xf32>
    %108 = arith.addf %96, %107 : vector<256x8xf32>
    %cst_32 = arith.constant dense<0.000000e+00> : vector<8xf32>
    %109 = vector.multi_reduction <add>, %108, %cst_32 [0] : vector<256x8xf32> to vector<8xf32>
    %110 = vector.shape_cast %109 : vector<8xf32> to vector<1x1x8xf32>
    %c0_33 = arith.constant 0 : index
    %c0_34 = arith.constant 0 : index
    %c0_35 = arith.constant 0 : index
    %111 = vector.load %arg7[%c0_33, %c0_34, %c0_35] : memref<1x1x8xf32, #tpu.memory_space<vmem>>, vector<1x1x8xf32>
    tpu.vector_store %arg7[%c0_33, %c0_34, %c0_35], %110 {strides = array<i32>} : memref<1x1x8xf32, #tpu.memory_space<vmem>>, vector<1x1x8xf32>,
    %112 = arith.mulf %108, %108 : vector<256x8xf32>
    %cst_36 = arith.constant dense<0.000000e+00> : vector<8xf32>
    %113 = vector.multi_reduction <add>, %112, %cst_36 [0] : vector<256x8xf32> to vector<8xf32>
    %114 = vector.shape_cast %113 : vector<8xf32> to vector<1x1x8xf32>
    %c0_37 = arith.constant 0 : index
    %c0_38 = arith.constant 0 : index
    %c0_39 = arith.constant 0 : index
    %115 = vector.load %arg8[%c0_37, %c0_38, %c0_39] : memref<1x1x8xf32, #tpu.memory_space<vmem>>, vector<1x1x8xf32>
    tpu.vector_store %arg8[%c0_37, %c0_38, %c0_39], %114 {strides = array<i32>} : memref<1x1x8xf32, #tpu.memory_space<vmem>>, vector<1x1x8xf32>,
    %116 = vector.shape_cast %108 : vector<256x8xf32> to vector<16x16x8xf32>
    %c0_40 = arith.constant 0 : index
    %c0_41 = arith.constant 0 : index
    %c0_42 = arith.constant 0 : index
    %c0_43 = arith.constant 0 : index
    %117 = vector.load %arg6[%c0_40, %c0_41, %c0_42, %c0_43] : memref<1x16x16x8xf32, #tpu.memory_space<vmem>>, vector<1x16x16x8xf32>
    %118 = vector.shape_cast %117 : vector<1x16x16x8xf32> to vector<16x16x8xf32>
    %119 = vector.shape_cast %116 : vector<16x16x8xf32> to vector<1x16x16x8xf32>
    tpu.vector_store %arg6[%c0_40, %c0_41, %c0_42, %c0_43], %119 {strides = array<i32>} : memref<1x16x16x8xf32, #tpu.memory_space<vmem>>, vector<1x16x16x8xf32>,
    return
  }
  func.func @transform_0(%arg0: i32) -> (i32, i32, i32, i32) {
    %c0_i32 = arith.constant 0 : i32
    %c0_i32_0 = arith.constant 0 : i32
    %c0_i32_1 = arith.constant 0 : i32
    %c0_i32_2 = arith.constant 0 : i32
    return %arg0, %c0_i32, %c0_i32_0, %c0_i32_1 : i32, i32, i32, i32
  }
  func.func @transform_1(%arg0: i32) -> (i32, i32) {
    %c0_i32 = arith.constant 0 : i32
    %c0_i32_0 = arith.constant 0 : i32
    %c0_i32_1 = arith.constant 0 : i32
    return %c0_i32, %c0_i32_0 : i32, i32
  }
  func.func @transform_2(%arg0: i32) -> (i32, i32) {
    %c0_i32 = arith.constant 0 : i32
    %c0_i32_0 = arith.constant 0 : i32
    %c0_i32_1 = arith.constant 0 : i32
    return %c0_i32, %c0_i32_0 : i32, i32
  }
  func.func @transform_3(%arg0: i32) -> (i32, i32) {
    %c0_i32 = arith.constant 0 : i32
    %c0_i32_0 = arith.constant 0 : i32
    %c0_i32_1 = arith.constant 0 : i32
    return %c0_i32, %c0_i32_0 : i32, i32
  }
  func.func @transform_4(%arg0: i32) -> (i32, i32) {
    %c0_i32 = arith.constant 0 : i32
    %c0_i32_0 = arith.constant 0 : i32
    %c0_i32_1 = arith.constant 0 : i32
    return %c0_i32, %c0_i32_0 : i32, i32
  }
  func.func @transform_5(%arg0: i32) -> (i32, i32, i32, i32) {
    %c0_i32 = arith.constant 0 : i32
    %c0_i32_0 = arith.constant 0 : i32
    %c0_i32_1 = arith.constant 0 : i32
    %c0_i32_2 = arith.constant 0 : i32
    return %arg0, %c0_i32, %c0_i32_0, %c0_i32_1 : i32, i32, i32, i32
  }
  func.func @transform_6(%arg0: i32) -> (i32, i32, i32) {
    %c0_i32 = arith.constant 0 : i32
    %c0_i32_0 = arith.constant 0 : i32
    %c0_i32_1 = arith.constant 0 : i32
    return %arg0, %c0_i32, %c0_i32_0 : i32, i32, i32
  }
  func.func @transform_7(%arg0: i32) -> (i32, i32, i32) {
    %c0_i32 = arith.constant 0 : i32
    %c0_i32_0 = arith.constant 0 : i32
    %c0_i32_1 = arith.constant 0 : i32
    return %arg0, %c0_i32, %c0_i32_0 : i32, i32, i32
  }
}

</mosaic_0001>

<bundles_post_ra>
// kernel: conv_block_forward.5
= control target key start
LH: loop header
LB: loop body
LE: loop exit
PB: predicated region body
PF: predicated region fallthrough
CT: control target
= control target key end

     0   :  { %s446_s12 = smov 0   ;;  %s637_s0 = inlined_call_operand.vmem [shape: f32[2,16,16,8], index: 0, kind: input, shape index: {}]   ;;  %s638_s1 = inlined_call_operand.vmem [shape: f32[1,8], index: 1, kind: input, shape index: {}]   ;;  %s639_s2 = inlined_call_operand.vmem [shape: f32[1,8], index: 2, kind: input, shape index: {}]   ;;  %s640_s3 = inlined_call_operand.vmem [shape: f32[2,16,16,8], index: 3, kind: output, shape index: {}]  }
   0x1 LB: > { %s395_s13 = sadd.s32 4294967295, %s424_s12   ;;  %p399_p0 = scmp.ge.s32.totalorder %s424_s12, 1  ;;  %s424_s12 = sphi %s446_s12, %s13_s12  }
   0x2   : > { %p137_p1 = scmp.lt.s32.totalorder %s424_s12, 3 }
   0x4   : > { %p138_p2 = pnand %p399_p0, %p137_p1 }
   0x5   : > { %p161_p3 = scmp.lt.s32.totalorder (!%p138_p2), %s395_s13, 1 }
   0x6   : > { %141 = sbr.rel (%p138_p2) target bundleno = 53 (0x35), region = 32 }
   0xb   : > { %s642_s13 = smov (!%p161_p3, %s395_s13), 1  ;;  %v457_v0 = vld [vmem:[%s638_s1] ss:$0 sm:$0xff]  ;;  %vm307_vm0 = vcmask 64512  }
   0xc   : > { %s406_s16 = sshll.u32 %s642_s13, 8  ;;  %v467_v1 = vld [vmem:[%s639_s2] ss:$0 sm:$0xff] }
   0xd   : > { %s462_s19 = scalar_lea.vmem %s637_s0, %s406_s16  ;;  %s490_s24 = scalar_lea.vmem %s640_s3, %s406_s16 }
   0xe   : > { %v171_v2 = vld [vmem:[%s462_s19] sm:$0xff]  ;;  %v172_v3 = vld [vmem:[%s462_s19 + $0x8] sm:$0xff]  ;;  %v173_v4 = vld [vmem:[%s462_s19 + $0x10] sm:$0xff] }
   0xf   : > { %v207_v5 = vmul.f32 %v457_v0, %v171_v2  ;;  %v208_v6 = vmul.f32 %v457_v0, %v172_v3  ;;  %v209_v7 = vmul.f32 %v457_v0, %v173_v4  ;;  %v174_v8 = vld [vmem:[%s462_s19 + $0x18] sm:$0xff]  ;;  %v175_v9 = vld [vmem:[%s462_s19 + $0x20] sm:$0xff]  ;;  %v176_v10 = vld [vmem:[%s462_s19 + $0x28] sm:$0xff] }
  0x10   : > { %v210_v11 = vmul.f32 %v457_v0, %v174_v8  ;;  %v211_v12 = vmul.f32 %v457_v0, %v175_v9  ;;  %v212_v13 = vmul.f32 %v457_v0, %v176_v10  ;;  %v177_v14 = vld [vmem:[%s462_s19 + $0x30] sm:$0xff]  ;;  %v178_v15 = vld [vmem:[%s462_s19 + $0x38] sm:$0xff]  ;;  %v179_v24 = vld [vmem:[%s462_s19 + $0x40] sm:$0xff] }
  0x11   : > { %v243_v16 = vadd.f32 %v467_v1, %v207_v5  ;;  %v244_v17 = vadd.f32 %v467_v1, %v208_v6  ;;  %v245_v18 = vadd.f32 %v467_v1, %v209_v7  ;;  %v213_v19 = vmul.f32 %v457_v0, %v177_v14  ;;  %v180_v25 = vld [vmem:[%s462_s19 + $0x48] sm:$0xff]  ;;  %v181_v26 = vld [vmem:[%s462_s19 + $0x50] sm:$0xff]  ;;  %v182_v31 = vld [vmem:[%s462_s19 + $0x58] sm:$0xff] }
  0x12   : > { %v246_v20 = vadd.f32 %v467_v1, %v210_v11  ;;  %v247_v21 = vadd.f32 %v467_v1, %v211_v12  ;;  %v248_v22 = vadd.f32 %v467_v1, %v212_v13  ;;  %v214_v23 = vmul.f32 %v457_v0, %v178_v15  ;;  %v183_v32 = vld [vmem:[%s462_s19 + $0x60] sm:$0xff]  ;;  %v184_v33 = vld [vmem:[%s462_s19 + $0x68] sm:$0xff]  ;;  %v185_v37 = vld [vmem:[%s462_s19 + $0x70] sm:$0xff] }
  0x13   : > { %v275_v27 = vmax.f32 %v243_v16, 0.0  ;;  %v276_v28 = vmax.f32 %v244_v17, 0.0  ;;  %v277_v29 = vmax.f32 %v245_v18, 0.0  ;;  %v249_v30 = vadd.f32 %v467_v1, %v213_v19  ;;  %v186_v42 = vld [vmem:[%s462_s19 + $0x78] sm:$0xff]  ;;  %v187_v54 = vld [vmem:[%s462_s19 + $0x80] sm:$0xff]  ;;  %v188_v55 = vld [vmem:[%s462_s19 + $0x88] sm:$0xff] }
  0x14   : > { %v278_v34 = vmax.f32 %v246_v20, 0.0  ;;  %v279_v35 = vmax.f32 %v247_v21, 0.0  ;;  %v250_v36 = vadd.f32 %v467_v1, %v214_v23  ;;  %v280_v38 = vmax.f32 %v248_v22, 0.0  ;;  %v189_v56 = vld [vmem:[%s462_s19 + $0x90] sm:$0xff]  ;;  %v190_v59 = vld [vmem:[%s462_s19 + $0x98] sm:$0xff]  ;;  %v191_v63 = vld [vmem:[%s462_s19 + $0xa0] sm:$0xff] }
  0x15   : > { %308 = vst.msk [vmem:[%s490_s24] sm:$0xff] %vm307_vm0, %v275_v27  ;;  %v215_v39 = vmul.f32 %v457_v0, %v179_v24  ;;  %v216_v40 = vmul.f32 %v457_v0, %v180_v25  ;;  %v217_v41 = vmul.f32 %v457_v0, %v181_v26  ;;  %v281_v43 = vmax.f32 %v249_v30, 0.0  ;;  %v192_v6 = vld [vmem:[%s462_s19 + $0xa8] sm:$0xff]  ;;  %v193_v10 = vld [vmem:[%s462_s19 + $0xb0] sm:$0xff]  ;;  %v194_v14 = vld [vmem:[%s462_s19 + $0xb8] sm:$0xff] }
  0x16   : > { %309 = vst.msk [vmem:[%s490_s24 + $0x8] sm:$0xff] %vm307_vm0, %v276_v28  ;;  %v218_v44 = vmul.f32 %v457_v0, %v182_v31  ;;  %v219_v45 = vmul.f32 %v457_v0, %v183_v32  ;;  %v220_v46 = vmul.f32 %v457_v0, %v184_v33  ;;  %v221_v50 = vmul.f32 %v457_v0, %v185_v37  ;;  %v195_v18 = vld [vmem:[%s462_s19 + $0xc0] sm:$0xff]  ;;  %v196_v22 = vld [vmem:[%s462_s19 + $0xc8] sm:$0xff]  ;;  %v197_v26 = vld [vmem:[%s462_s19 + $0xd0] sm:$0xff] }
  0x17   : > { %310 = vst.msk [vmem:[%s490_s24 + $0x10] sm:$0xff] %vm307_vm0, %v277_v29  ;;  %v251_v47 = vadd.f32 %v467_v1, %v215_v39  ;;  %v252_v48 = vadd.f32 %v467_v1, %v216_v40  ;;  %v253_v49 = vadd.f32 %v467_v1, %v217_v41  ;;  %v282_v51 = vmax.f32 %v250_v36, 0.0  ;;  %v198_v30 = vld [vmem:[%s462_s19 + $0xd8] sm:$0xff] }
  0x18   : > { %311 = vst.msk [vmem:[%s490_s24 + $0x18] sm:$0xff] %vm307_vm0, %v278_v34  ;;  %v254_v52 = vadd.f32 %v467_v1, %v218_v44  ;;  %v222_v53 = vmul.f32 %v457_v0, %v186_v42  ;;  %v255_v58 = vadd.f32 %v467_v1, %v219_v45  ;;  %v256_v62 = vadd.f32 %v467_v1, %v220_v46  ;;  %v199_v34 = vld [vmem:[%s462_s19 + $0xe0] sm:$0xff]  ;;  %v201_v42 = vld [vmem:[%s462_s19 + $0xf0] sm:$0xff]  ;;  %v202_v46 = vld [vmem:[%s462_s19 + $0xf8] sm:$0xff] }
  0x19   : > { %312 = vst.msk [vmem:[%s490_s24 + $0x20] sm:$0xff] %vm307_vm0, %v279_v35  ;;  %v283_v57 = vmax.f32 %v251_v47, 0.0  ;;  %v284_v60 = vmax.f32 %v252_v48, 0.0  ;;  %v285_v61 = vmax.f32 %v253_v49, 0.0  ;;  %v257_v2 = vadd.f32 %v467_v1, %v221_v50 }
  0x1a   : > { %313 = vst.msk [vmem:[%s490_s24 + $0x28] sm:$0xff] %vm307_vm0, %v280_v38  ;;  %v223_v3 = vmul.f32 %v457_v0, %v187_v54  ;;  %v224_v4 = vmul.f32 %v457_v0, %v188_v55  ;;  %v225_v5 = vmul.f32 %v457_v0, %v189_v56  ;;  %v286_v7 = vmax.f32 %v254_v52, 0.0  ;;  %v200_v38 = vld [vmem:[%s462_s19 + $0xe8] sm:$0xff] }
  0x1b   : > { %314 = vst.msk [vmem:[%s490_s24 + $0x30] sm:$0xff] %vm307_vm0, %v281_v43  ;;  %v258_v8 = vadd.f32 %v467_v1, %v222_v53  ;;  %v226_v9 = vmul.f32 %v457_v0, %v190_v59  ;;  %v287_v11 = vmax.f32 %v255_v58, 0.0  ;;  %v227_v13 = vmul.f32 %v457_v0, %v191_v63 }
  0x1c   : > { %315 = vst.msk [vmem:[%s490_s24 + $0x38] sm:$0xff] %vm307_vm0, %v282_v51  ;;  %v259_v12 = vadd.f32 %v467_v1, %v223_v3  ;;  %v288_v15 = vmax.f32 %v256_v62, 0.0  ;;  %v260_v16 = vadd.f32 %v467_v1, %v224_v4  ;;  %v228_v17 = vmul.f32 %v457_v0, %v192_v6 }
  0x1d   : > { %316 = vst.msk [vmem:[%s490_s24 + $0x40] sm:$0xff] %vm307_vm0, %v283_v57  ;;  %v289_v19 = vmax.f32 %v257_v2, 0.0  ;;  %v261_v20 = vadd.f32 %v467_v1, %v225_v5  ;;  %v229_v21 = vmul.f32 %v457_v0, %v193_v10  ;;  %v290_v23 = vmax.f32 %v258_v8, 0.0 }
  0x1e   : > { %317 = vst.msk [vmem:[%s490_s24 + $0x48] sm:$0xff] %vm307_vm0, %v284_v60  ;;  %v262_v24 = vadd.f32 %v467_v1, %v226_v9  ;;  %v230_v25 = vmul.f32 %v457_v0, %v194_v14  ;;  %v291_v27 = vmax.f32 %v259_v12, 0.0  ;;  %v263_v28 = vadd.f32 %v467_v1, %v227_v13 }
  0x1f   : > { %318 = vst.msk [vmem:[%s490_s24 + $0x50] sm:$0xff] %vm307_vm0, %v285_v61  ;;  %v231_v29 = vmul.f32 %v457_v0, %v195_v18  ;;  %v292_v31 = vmax.f32 %v260_v16, 0.0  ;;  %v264_v32 = vadd.f32 %v467_v1, %v228_v17  ;;  %v232_v33 = vmul.f32 %v457_v0, %v196_v22 }
  0x20   : > { %319 = vst.msk [vmem:[%s490_s24 + $0x58] sm:$0xff] %vm307_vm0, %v286_v7  ;;  %v293_v35 = vmax.f32 %v261_v20, 0.0  ;;  %v265_v36 = vadd.f32 %v467_v1, %v229_v21  ;;  %v233_v37 = vmul.f32 %v457_v0, %v197_v26  ;;  %v294_v39 = vmax.f32 %v262_v24, 0.0 }
  0x21   : > { %320 = vst.msk [vmem:[%s490_s24 + $0x60] sm:$0xff] %vm307_vm0, %v287_v11  ;;  %v266_v40 = vadd.f32 %v467_v1, %v230_v25  ;;  %v234_v41 = vmul.f32 %v457_v0, %v198_v30  ;;  %v295_v43 = vmax.f32 %v263_v28, 0.0  ;;  %v267_v44 = vadd.f32 %v467_v1, %v231_v29 }
  0x22   : > { %321 = vst.msk [vmem:[%s490_s24 + $0x68] sm:$0xff] %vm307_vm0, %v288_v15  ;;  %v235_v45 = vmul.f32 %v457_v0, %v199_v34  ;;  %v296_v47 = vmax.f32 %v264_v32, 0.0  ;;  %v268_v48 = vadd.f32 %v467_v1, %v232_v33  ;;  %v236_v49 = vmul.f32 %v457_v0, %v200_v38 }
  0x23   : > { %322 = vst.msk [vmem:[%s490_s24 + $0x70] sm:$0xff] %vm307_vm0, %v289_v19  ;;  %v297_v50 = vmax.f32 %v265_v36, 0.0  ;;  %v269_v51 = vadd.f32 %v467_v1, %v233_v37  ;;  %v237_v52 = vmul.f32 %v457_v0, %v201_v42  ;;  %v298_v53 = vmax.f32 %v266_v40, 0.0 }
  0x24   : > { %323 = vst.msk [vmem:[%s490_s24 + $0x78] sm:$0xff] %vm307_vm0, %v290_v23  ;;  %v270_v54 = vadd.f32 %v467_v1, %v234_v41  ;;  %v238_v55 = vmul.f32 %v457_v0, %v202_v46  ;;  %v299_v56 = vmax.f32 %v267_v44, 0.0  ;;  %v271_v57 = vadd.f32 %v467_v1, %v235_v45 }
  0x25   : > { %324 = vst.msk [vmem:[%s490_s24 + $0x80] sm:$0xff] %vm307_vm0, %v291_v27  ;;  %v300_v58 = vmax.f32 %v268_v48, 0.0  ;;  %v272_v59 = vadd.f32 %v467_v1, %v236_v49  ;;  %v301_v60 = vmax.f32 %v269_v51, 0.0  ;;  %v273_v0 = vadd.f32 %v467_v1, %v237_v52 }
  0x26   : > { %325 = vst.msk [vmem:[%s490_s24 + $0x88] sm:$0xff] %vm307_vm0, %v292_v31  ;;  %v302_v61 = vmax.f32 %v270_v54, 0.0  ;;  %v274_v62 = vadd.f32 %v467_v1, %v238_v55  ;;  %v303_v63 = vmax.f32 %v271_v57, 0.0 }
  0x27   : > { %326 = vst.msk [vmem:[%s490_s24 + $0x90] sm:$0xff] %vm307_vm0, %v293_v35  ;;  %v304_v2 = vmax.f32 %v272_v59, 0.0  ;;  %v305_v3 = vmax.f32 %v273_v0, 0.0 }
  0x28   : > { %327 = vst.msk [vmem:[%s490_s24 + $0x98] sm:$0xff] %vm307_vm0, %v294_v39  ;;  %v306_v4 = vmax.f32 %v274_v62, 0.0 }
  0x29   : > { %328 = vst.msk [vmem:[%s490_s24 + $0xa0] sm:$0xff] %vm307_vm0, %v295_v43 }
  0x2a   : > { %329 = vst.msk [vmem:[%s490_s24 + $0xa8] sm:$0xff] %vm307_vm0, %v296_v47 }
  0x2b   : > { %330 = vst.msk [vmem:[%s490_s24 + $0xb0] sm:$0xff] %vm307_vm0, %v297_v50 }
  0x2c   : > { %331 = vst.msk [vmem:[%s490_s24 + $0xb8] sm:$0xff] %vm307_vm0, %v298_v53 }
  0x2d   : > { %332 = vst.msk [vmem:[%s490_s24 + $0xc0] sm:$0xff] %vm307_vm0, %v299_v56 }
  0x2e   : > { %333 = vst.msk [vmem:[%s490_s24 + $0xc8] sm:$0xff] %vm307_vm0, %v300_v58 }
  0x2f   : > { %334 = vst.msk [vmem:[%s490_s24 + $0xd0] sm:$0xff] %vm307_vm0, %v301_v60 }
  0x30   : > { %335 = vst.msk [vmem:[%s490_s24 + $0xd8] sm:$0xff] %vm307_vm0, %v302_v61 }
  0x31   : > { %336 = vst.msk [vmem:[%s490_s24 + $0xe0] sm:$0xff] %vm307_vm0, %v303_v63 }
  0x32   : > { %337 = vst.msk [vmem:[%s490_s24 + $0xe8] sm:$0xff] %vm307_vm0, %v304_v2 }
  0x33   : > { %338 = vst.msk [vmem:[%s490_s24 + $0xf0] sm:$0xff] %vm307_vm0, %v305_v3 }
  0x34   : > { %339 = vst.msk [vmem:[%s490_s24 + $0xf8] sm:$0xff] %vm307_vm0, %v306_v4 }
  0x35 PF: > { %s13_s12 = sadd.s32 1, %s424_s12  }
  0x36   : > { %p10_p4 = scmp.ge.s32.totalorder %s13_s12, 4  }
  0x38   :  { %12 = sbr.rel (!%p10_p4) target bundleno = 1 (0x1), region = 62 }

// kernel: conv_block_forward.3
= control target key start
LH: loop header
LB: loop body
LE: loop exit
PB: predicated region body
PF: predicated region fallthrough
CT: control target
= control target key end

     0   :  { %s3527_s24 = smov 0   ;;  %s6286_s0 = inlined_call_operand.vmem [shape: f32[2,16,16,4], index: 0, kind: input, shape index: {}]   ;;  %s6287_s1 = inlined_call_operand.vmem [shape: f32[1,4], index: 1, kind: input, shape index: {}]   ;;  %s6288_s2 = inlined_call_operand.vmem [shape: f32[1,4], index: 2, kind: input, shape index: {}]   ;;  %s6289_s3 = inlined_call_operand.vmem [shape: f32[4,72], index: 3, kind: input, shape index: {}]   ;;  %s6290_s4 = inlined_call_operand.vmem [shape: f32[1,8], index: 4, kind: input, shape index: {}]   ;;  %s6291_s5 = inlined_call_operand.vmem [shape: f32[2,16,16,8], index: 5, kind: output, shape index: {0}]   ;;  %s6292_s6 = inlined_call_operand.vmem [shape: f32[2,1,8], index: 6, kind: output, shape index: {1}]   ;;  %s6293_s7 = inlined_call_operand.vmem [shape: f32[2,1,8], index: 7, kind: output, shape index: {2}]  }
   0x1 LB: > { %s3401_s1 = sadd.s32 4294967295, %s3475_s24   ;;  %p3405_p0 = scmp.ge.s32.totalorder %s3475_s24, 1  ;;  %s3475_s24 = sphi %s3527_s24, %s18_s24  }
   0x2   : > { %p242_p1 = scmp.lt.s32.totalorder %s3475_s24, 3 }
   0x4   : > { %p243_p2 = pnand %p3405_p0, %p242_p1 }
   0x6   : > { %246 = sbr.rel (%p243_p2) target bundleno = 1994 (0x7ca), region = 40 }
   0xb   : > { %v328_v0 = vld [vmem:[%s6289_s3] sm:$0xf]  ;;  %vm426_vm0 = vcmask 1043456   ;;  %p280_p3 = scmp.lt.s32.totalorder %s3401_s1, 1  ;;  %s3477_s28 = smov 32   ;;  %vm329_vm1 = vcmask 31744   ;;  %v543_v37 = vlaneseq }
   0xc   : > { %3410 = vmatpush.msk.msra.mxu0 %vm426_vm0, %v328_v0  ;;  %3447 = vmatpush.msk.msra.mxu1 %vm426_vm0, %v328_v0  ;;  %v3468_v1 = vld [vmem:[%s6290_s4] ss:$0 sm:$0xff]  ;;  %v3478_v6 = vmov 0.0   ;;  %s3479_s10 = smov 120   ;;  %s3480_s11 = smov 112   ;;  %vm2953_vm6 = vcmask 326912  }
   0xd   : > { %3448 = vmatpush.msk.msra.mxu2 %vm426_vm0, %v328_v0  ;;  %3449 = vmatpush.msk.msra.mxu3 %vm426_vm0, %v328_v0  ;;  %s6739_s1 = smov (!%p280_p3, %s3401_s1), 1  ;;  %v3635_v40 = vshrl.u32 %v543_v37, 7  ;;  %s3481_s12 = smov 104   ;;  %vm3263_vm7 = vcmask 64512   ;;  %vm3027_vm8 = vcmask 57344  }
   0xe   : > { %549 = vrot.lane.b32.xlu0 %v3468_v1, %s3477_s28  ;;  %s3445_s29 = sshll.u32 %s6739_s1, 8  ;;  %s3482_s13 = smov 88  }
   0xf   : > { %s3550_s9 = scalar_lea.vmem %s6286_s0, %s3445_s29  ;;  %vm615_vm2 = vcmp.lt.s32.totalorder %v3635_v40, 1  ;;  %vm646_vm3 = vcmp.ge.s32.totalorder %v3635_v40, 1  ;;  %vm1175_vm4 = vcmp.lt.s32.totalorder %v3635_v40, 7  ;;  %s3483_s14 = smov 80  }
  0x10   : > { %v296_v2 = vld [vmem:[%s3550_s9] sm:$0xff]  ;;  %v297_v7 = vld [vmem:[%s3550_s9 + $0x8] sm:$0xff]  ;;  %v298_v11 = vld [vmem:[%s3550_s9 + $0x10] sm:$0xff]  ;;  %s3484_s15 = smov 72   ;;  %s3485_s16 = smov 64  }
  0x11   : > { %v304_v3 = vld [vmem:[%s3550_s9 + $0x40] sm:$0xff]  ;;  %3411 = vmatmul.msk.f32.vlgmr.msra.gmra.mxu0 %vm329_vm1, %v296_v2  ;;  %v305_v8 = vld [vmem:[%s3550_s9 + $0x48] sm:$0xff]  ;;  %v306_v12 = vld [vmem:[%s3550_s9 + $0x50] sm:$0xff]  ;;  %s3486_s17 = smov 96   ;;  %s6171_s20 = scalar_lea.vmem %s6291_s5, %s3445_s29 }
  0x12   : > { %v312_v4 = vld [vmem:[%s3550_s9 + $0x80] sm:$0xff]  ;;  %3419 = vmatmul.msk.f32.vlgmr.msra.gmra.mxu1 %vm329_vm1, %v304_v3  ;;  %v313_v9 = vld [vmem:[%s3550_s9 + $0x88] sm:$0xff]  ;;  %v314_v13 = vld [vmem:[%s3550_s9 + $0x90] sm:$0xff]  ;;  %s295_s23 = scalar_lea.vmem %s6293_s7, %s6739_s1  ;;  %s292_s26 = scalar_lea.vmem %s6292_s6, %s6739_s1 }
  0x13   : > { %v320_v5 = vld [vmem:[%s3550_s9 + $0xc0] sm:$0xff]  ;;  %3427 = vmatmul.msk.f32.vlgmr.msra.gmra.mxu2 %vm329_vm1, %v312_v4  ;;  %v321_v10 = vld [vmem:[%s3550_s9 + $0xc8] sm:$0xff]  ;;  %v322_v14 = vld [vmem:[%s3550_s9 + $0xd0] sm:$0xff] }
  0x14   : > { %3435 = vmatmul.msk.f32.vlgmr.msra.gmra.mxu3 %vm329_vm1, %v320_v5  ;;  %v299_v15 = vld [vmem:[%s3550_s9 + $0x18] sm:$0xff]  ;;  %v300_v19 = vld [vmem:[%s3550_s9 + $0x20] sm:$0xff]  ;;  %v301_v23 = vld [vmem:[%s3550_s9 + $0x28] sm:$0xff] }
  0x15   : > { %v307_v16 = vld [vmem:[%s3550_s9 + $0x58] sm:$0xff]  ;;  %v308_v20 = vld [vmem:[%s3550_s9 + $0x60] sm:$0xff]  ;;  %v309_v24 = vld [vmem:[%s3550_s9 + $0x68] sm:$0xff] }
  0x16   : > { %713 = vrot.lane.b32.xlu0 %v3478_v6, %s3477_s28  ;;  %v315_v17 = vld [vmem:[%s3550_s9 + $0x98] sm:$0xff]  ;;  %v316_v21 = vld [vmem:[%s3550_s9 + $0xa0] sm:$0xff]  ;;  %v317_v25 = vld [vmem:[%s3550_s9 + $0xa8] sm:$0xff] }
  0x17   : > { %v323_v18 = vld [vmem:[%s3550_s9 + $0xd8] sm:$0xff]  ;;  %v324_v22 = vld [vmem:[%s3550_s9 + $0xe0] sm:$0xff]  ;;  %v325_v26 = vld [vmem:[%s3550_s9 + $0xe8] sm:$0xff] }
  0x18   : > { %v302_v27 = vld [vmem:[%s3550_s9 + $0x30] sm:$0xff]  ;;  %v303_v31 = vld [vmem:[%s3550_s9 + $0x38] sm:$0xff] }
  0x19   : > { %3412 = vmatmul.msk.f32.gmra.mxu0 %vm329_vm1, %v297_v7  ;;  %v310_v28 = vld [vmem:[%s3550_s9 + $0x70] sm:$0xff]  ;;  %v311_v32 = vld [vmem:[%s3550_s9 + $0x78] sm:$0xff] }
  0x1a   : > { %3420 = vmatmul.msk.f32.gmra.mxu1 %vm329_vm1, %v305_v8  ;;  %v318_v29 = vld [vmem:[%s3550_s9 + $0xb0] sm:$0xff]  ;;  %v319_v33 = vld [vmem:[%s3550_s9 + $0xb8] sm:$0xff] }
  0x1b   : > { %3428 = vmatmul.msk.f32.gmra.mxu2 %vm329_vm1, %v313_v9  ;;  %v326_v30 = vld [vmem:[%s3550_s9 + $0xf0] sm:$0xff]  ;;  %v327_v34 = vld [vmem:[%s3550_s9 + $0xf8] sm:$0xff] }
  0x1c   : > { %3436 = vmatmul.msk.f32.gmra.mxu3 %vm329_vm1, %v321_v10 }
  0x21   : > { %3413 = vmatmul.msk.f32.gmra.mxu0 %vm329_vm1, %v298_v11 }
  0x22   : > { %3421 = vmatmul.msk.f32.gmra.mxu1 %vm329_vm1, %v306_v12 }
  0x23   : > { %3429 = vmatmul.msk.f32.gmra.mxu2 %vm329_vm1, %v314_v13 }
  0x24   : > { %3437 = vmatmul.msk.f32.gmra.mxu3 %vm329_vm1, %v322_v14 }
  0x29   : > { %3414 = vmatmul.msk.f32.gmra.mxu0 %vm329_vm1, %v299_v15 }
  0x2a   : > { %3422 = vmatmul.msk.f32.gmra.mxu1 %vm329_vm1, %v307_v16 }
  0x2b   : > { %3430 = vmatmul.msk.f32.gmra.mxu2 %vm329_vm1, %v315_v17 }
  0x2c   : > { %3438 = vmatmul.msk.f32.gmra.mxu3 %vm329_vm1, %v323_v18 }
  0x31   : > { %3415 = vmatmul.msk.f32.gmra.mxu0 %vm329_vm1, %v300_v19 }
  0x32   : > { %3423 = vmatmul.msk.f32.gmra.mxu1 %vm329_vm1, %v308_v20 }
  0x33   : > { %3431 = vmatmul.msk.f32.gmra.mxu2 %vm329_vm1, %v316_v21 }
  0x34   : > { %3439 = vmatmul.msk.f32.gmra.mxu3 %vm329_vm1, %v324_v22 }
  0x39   : > { %3416 = vmatmul.msk.f32.gmra.mxu0 %vm329_vm1, %v301_v23 }
  0x3a   : > { %3424 = vmatmul.msk.f32.gmra.mxu1 %vm329_vm1, %v309_v24 }
  0x3b   : > { %3432 = vmatmul.msk.f32.gmra.mxu2 %vm329_vm1, %v317_v25 }
  0x3c   : > { %3440 = vmatmul.msk.f32.gmra.mxu3 %vm329_vm1, %v325_v26 }
  0x41   : > { %3417 = vmatmul.msk.f32.gmra.mxu0 %vm329_vm1, %v302_v27 }
  0x42   : > { %3425 = vmatmul.msk.f32.gmra.mxu1 %vm329_vm1, %v310_v28 }
  0x43   : > { %3433 = vmatmul.msk.f32.gmra.mxu2 %vm329_vm1, %v318_v29 }
  0x44   : > { %3441 = vmatmul.msk.f32.gmra.mxu3 %vm329_vm1, %v326_v30 }
  0x49   : > { %3418 = vmatmul.msk.f32.gmra.mxu0 %vm329_vm1, %v303_v31 }
  0x4a   : > { %3426 = vmatmul.msk.f32.gmra.mxu1 %vm329_vm1, %v311_v32 }
  0x4b   : > { %3434 = vmatmul.msk.f32.gmra.mxu2 %vm329_vm1, %v319_v33 }
  0x4c   : > { %3442 = vmatmul.msk.f32.gmra.mxu3 %vm329_vm1, %v327_v34 }
  0x80   : > { %v3782_v25 = vpop.permute.xlu0 %549 }
  0x81   : > { %6315 = vst [vmem:[#allocation4_spill] sm:$0xff] %v3782_v25 }
  0x88   : > { %v3806_v32 = vpop.permute.xlu0 %713 }
  0x89   : > { %6316 = vst [vmem:[#allocation5_spill] sm:$0xff] %v3806_v32 }
  0x8e   : > { %v3617_v35 = vpop.f32.mrf.mxu0 }
  0x8f   : > { %v3619_v36 = vpop.f32.mrf.mxu1  ;;  %868 = vrot.lane.b32.xlu2 %v3617_v35, %s3479_s10  ;;  %v6294_v42 = vrot.slane %v3617_v35, 7 }
  0x90   : > { %884 = vrot.lane.b32.xlu1 %v3619_v36, %s3479_s10  ;;  %v6297_v50 = vrot.slane %v3619_v36, 7 }
  0x96   : > { %v3625_v38 = vpop.f32.mrf.mxu2  ;;  %v3629_v39 = vpop.f32.mrf.mxu0 }
  0x97   : > { %900 = vrot.lane.b32.xlu0 %v3625_v38, %s3479_s10  ;;  %1051 = vrot.lane.b32.xlu2 %v3617_v35, %s3480_s11  ;;  %v585_v41 = vrot.slane %v3629_v39, 7  ;;  %v3640_v43 = vpop.f32.mrf.mxu3  ;;  %v3651_v45 = vpop.f32.mrf.mxu1  ;;  %v6296_v54 = vrot.slane %v3625_v38, 7 }
  0x98   : > { %1067 = vrot.lane.b32.xlu1 %v3619_v36, %s3480_s11  ;;  %v593_v49 = vrot.slane %v3651_v45, 7  ;;  %v6295_v59 = vrot.slane %v3640_v43, 7 }
  0x99   : > { %v644_v44 = vsel %vm615_vm2, %v6294_v42, %v585_v41 }
  0x9a   : > { %v636_v52 = vsel %vm615_vm2, %v6297_v50, %v593_v49 }
  0x9e   : > { %v3653_v46 = vpop.f32.mrf.mxu2  ;;  %v3663_v48 = vpop.f32.mrf.mxu0 }
  0x9f   : > { %870 = vrot.lane.b32.xlu0 %v3629_v39, %s3479_s10  ;;  %916 = vrot.lane.b32.xlu2 %v3640_v43, %s3479_s10  ;;  %v3661_v47 = vpop.f32.mrf.mxu3  ;;  %v3673_v51 = vpop.f32.mrf.mxu1  ;;  %v586_v53 = vrot.slane %v3663_v48, 7  ;;  %v601_v55 = vrot.slane %v3653_v46, 7 }
  0xa0   : > { %717 = vrot.lane.b32.xlu1 %v644_v44, %s3477_s28  ;;  %6313 = vst [vmem:[#allocation2_spill] sm:$0xff] %v3673_v51  ;;  %v609_v60 = vrot.slane %v3661_v47, 7  ;;  %v594_v0 = vrot.slane %v3673_v51, 7 }
  0xa1   : > { %v643_v56 = vsel %vm615_vm2, %v585_v41, %v586_v53  ;;  %v628_v57 = vsel %vm615_vm2, %v6296_v54, %v601_v55 }
  0xa2   : > { %v654_v58 = vsel %vm646_vm3, %v643_v56, 0.0  ;;  %v620_v61 = vsel %vm615_vm2, %v6295_v59, %v609_v60  ;;  %v635_v1 = vsel %vm615_vm2, %v593_v49, %v594_v0 }
  0xa3   : > { %v662_v2 = vsel %vm646_vm3, %v635_v1, 0.0 }
  0xa6   : > { %v3706_v62 = vpop.f32.mrf.mxu2  ;;  %v3720_v3 = vpop.f32.mrf.mxu0 }
  0xa7   : > { %1053 = vrot.lane.b32.xlu0 %v3629_v39, %s3480_s11  ;;  %886 = vrot.lane.b32.xlu2 %v3651_v45, %s3479_s10  ;;  %v3708_v63 = vpop.f32.mrf.mxu3  ;;  %v3722_v4 = vpop.f32.mrf.mxu1  ;;  %v602_v7 = vrot.slane %v3706_v62, 7  ;;  %v587_v14 = vrot.slane %v3720_v3, 7 }
  0xa8   : > { %902 = vrot.lane.b32.xlu1 %v3653_v46, %s3479_s10  ;;  %6314 = vst [vmem:[#allocation3_spill] sm:$0xff] %v3722_v4  ;;  %v610_v6 = vrot.slane %v3708_v63, 7  ;;  %v595_v13 = vrot.slane %v3722_v4, 7 }
  0xa9   : > { %v627_v9 = vsel %vm615_vm2, %v601_v55, %v602_v7  ;;  %v642_v16 = vsel %vm615_vm2, %v586_v53, %v587_v14 }
  0xaa   : > { %v619_v8 = vsel %vm615_vm2, %v609_v60, %v610_v6  ;;  %v670_v12 = vsel %vm646_vm3, %v627_v9, 0.0  ;;  %v634_v15 = vsel %vm615_vm2, %v594_v0, %v595_v13 }
  0xab   : > { %v678_v11 = vsel %vm646_vm3, %v619_v8, 0.0 }
  0xae   : > { %v3729_v5 = vpop.f32.mrf.mxu2  ;;  %v3743_v10 = vpop.f32.mrf.mxu0 }
  0xaf   : > { %918 = vrot.lane.b32.xlu0 %v3661_v47, %s3479_s10  ;;  %1069 = vrot.lane.b32.xlu2 %v3651_v45, %s3480_s11  ;;  %v603_v18 = vrot.slane %v3729_v5, 7  ;;  %v3768_v20 = vpop.f32.mrf.mxu3  ;;  %v588_v22 = vrot.slane %v3743_v10, 7  ;;  %v3786_v27 = vpop.f32.mrf.mxu1 }
  0xb0   : > { %872 = vrot.lane.b32.xlu1 %v3663_v48, %s3479_s10  ;;  %v611_v37 = vrot.slane %v3768_v20, 7  ;;  %v596_v55 = vrot.slane %v3786_v27, 7 }
  0xb1   : > { %v626_v19 = vsel %vm615_vm2, %v602_v7, %v603_v18  ;;  %v641_v24 = vsel %vm615_vm2, %v587_v14, %v588_v22 }
  0xb2   : > { %v656_v26 = vsel %vm646_vm3, %v641_v24, 0.0  ;;  %v618_v49 = vsel %vm615_vm2, %v610_v6, %v611_v37  ;;  %v633_v0 = vsel %vm615_vm2, %v595_v13, %v596_v55 }
  0xb6   : > { %v3770_v21 = vpop.f32.mrf.mxu2  ;;  %v3788_v28 = vpop.f32.mrf.mxu0 }
  0xb7   : > { %888 = vrot.lane.b32.xlu0 %v3673_v51, %s3479_s10  ;;  %733 = vrot.lane.b32.xlu2 %v636_v52, %s3477_s28  ;;  %v3797_v30 = vpop.f32.mrf.mxu3  ;;  %v604_v31 = vrot.slane %v3770_v21, 7  ;;  %v3817_v44 = vpop.f32.mrf.mxu1 }
  0xb8   : > { %1055 = vrot.lane.b32.xlu1 %v3663_v48, %s3480_s11  ;;  %v612_v53 = vrot.slane %v3797_v30, 7 }
  0xb9   : > { %v625_v41 = vsel %vm615_vm2, %v603_v18, %v604_v31 }
  0xba   : > { %v672_v52 = vsel %vm646_vm3, %v625_v41, 0.0  ;;  %v617_v60 = vsel %vm615_vm2, %v611_v37, %v612_v53 }
  0xbb   : > { %v680_v1 = vsel %vm646_vm3, %v617_v60, 0.0 }
  0xbf   : > { %1071 = vrot.lane.b32.xlu0 %v3673_v51, %s3480_s11  ;;  %719 = vrot.lane.b32.xlu2 %v654_v58, %s3477_s28  ;;  %v3860_v14 = vpop.f32.mrf.mxu3  ;;  %v3877_v24 = vpop.f32.mrf.mxu1 }
  0xc0   : > { %749 = vrot.lane.b32.xlu1 %v628_v57, %s3477_s28  ;;  %v598_v60 = vrot.slane %v3877_v24, 7 }
  0xc7   : > { %765 = vrot.lane.b32.xlu0 %v620_v61, %s3477_s28  ;;  %904 = vrot.lane.b32.xlu2 %v3706_v62, %s3479_s10  ;;  %v589_v61 = vrot.slane %v3788_v28, 7 }
  0xc8   : > { %920 = vrot.lane.b32.xlu1 %v3708_v63, %s3479_s10 }
  0xc9   : > { %v640_v6 = vsel %vm615_vm2, %v588_v22, %v589_v61 }
  0xcf   : > { %735 = vrot.lane.b32.xlu0 %v662_v2, %s3477_s28  ;;  %874 = vrot.lane.b32.xlu2 %v3720_v3, %s3479_s10  ;;  %v664_v2 = vsel %vm646_vm3, %v633_v0, 0.0 }
  0xd0   : > { %890 = vrot.lane.b32.xlu1 %v3722_v4, %s3479_s10 }
  0xd7   : > { %906 = vrot.lane.b32.xlu0 %v3729_v5, %s3479_s10  ;;  %1057 = vrot.lane.b32.xlu2 %v3720_v3, %s3480_s11 }
  0xd8   : > { %1073 = vrot.lane.b32.xlu1 %v3722_v4, %s3480_s11 }
  0xdf   : > { %876 = vrot.lane.b32.xlu0 %v3743_v10, %s3479_s10  ;;  %751 = vrot.lane.b32.xlu2 %v670_v12, %s3477_s28  ;;  %v3856_v12 = vpop.f32.mrf.mxu2 }
  0xe0   : > { %767 = vrot.lane.b32.xlu1 %v678_v11, %s3477_s28  ;;  %v597_v11 = vrot.slane %v3817_v44, 7 }
  0xe2   : > { %v632_v13 = vsel %vm615_vm2, %v596_v55, %v597_v11 }
  0xe7   : > { %1059 = vrot.lane.b32.xlu0 %v3743_v10, %s3480_s11  ;;  %721 = vrot.lane.b32.xlu2 %v642_v16, %s3477_s28  ;;  %v3875_v22 = vpop.f32.mrf.mxu2 }
  0xe8   : > { %737 = vrot.lane.b32.xlu1 %v634_v15, %s3477_s28  ;;  %6320 = vst [vmem:[#allocation9_spill] sm:$0xff] %v3875_v22 }
  0xe9   : > { %v3763_v17 = vpop.permute.xlu2 %868 }
  0xef   : > { %753 = vrot.lane.b32.xlu0 %v626_v19, %s3477_s28  ;;  %922 = vrot.lane.b32.xlu2 %v3768_v20, %s3479_s10  ;;  %v3873_v19 = vpop.f32.mrf.mxu0 }
  0xf0   : > { %908 = vrot.lane.b32.xlu1 %v3770_v21, %s3479_s10  ;;  %v590_v42 = vrot.slane %v3873_v19, 7 }
  0xf1   : > { %v3778_v23 = vpop.permute.xlu2 %1051 }
  0xf7   : > { %723 = vrot.lane.b32.xlu0 %v656_v26, %s3477_s28  ;;  %892 = vrot.lane.b32.xlu2 %v3786_v27, %s3479_s10 }
  0xf8   : > { %878 = vrot.lane.b32.xlu1 %v3788_v28, %s3479_s10 }
  0xf9   : > { %v3795_v29 = vpop.permute.xlu2 %916 }
  0xff   : > { %924 = vrot.lane.b32.xlu0 %v3797_v30, %s3479_s10  ;;  %1075 = vrot.lane.b32.xlu2 %v3786_v27, %s3480_s11 }
 0x100   : > { %1061 = vrot.lane.b32.xlu1 %v3788_v28, %s3480_s11 }
 0x101   : > { %v3810_v34 = vpop.permute.xlu2 %886 }
 0x102   : > { %v3808_v33 = vpop.permute.xlu1 %884 }
 0x107   : > { %894 = vrot.lane.b32.xlu0 %v3817_v44, %s3479_s10  ;;  %769 = vrot.lane.b32.xlu2 %v618_v49, %s3477_s28  ;;  %v613_v49 = vrot.slane %v3860_v14, 7 }
 0x108   : > { %755 = vrot.lane.b32.xlu1 %v672_v52, %s3477_s28  ;;  %v3892_v52 = vpop.f32.mrf.mxu0 }
 0x109   : > { %v3829_v56 = vpop.permute.xlu0 %900  ;;  %v3833_v58 = vpop.permute.xlu2 %1069  ;;  %v616_v55 = vsel %vm615_vm2, %v612_v53, %v613_v49 }
 0x10a   : > { %v3831_v57 = vpop.permute.xlu1 %1067 }
 0x10f   : > { %771 = vrot.lane.b32.xlu0 %v680_v1, %s3477_s28  ;;  %739 = vrot.lane.b32.xlu2 %v664_v2, %s3477_s28 }
 0x110   : > { %725 = vrot.lane.b32.xlu1 %v640_v6, %s3477_s28  ;;  %v605_v6 = vrot.slane %v3856_v12, 7 }
 0x111   : > { %v3849_v7 = vpop.permute.xlu0 %870  ;;  %v3851_v8 = vpop.permute.xlu2 %733 }
 0x112   : > { %6317 = vst [vmem:[#allocation6_spill] sm:$0xff] %v3851_v8  ;;  %v3853_v9 = vpop.permute.xlu1 %717  ;;  %v624_v49 = vsel %vm615_vm2, %v604_v31, %v605_v6  ;;  %v639_v31 = vsel %vm615_vm2, %v589_v61, %v590_v42  ;;  %v3953_v8 = vpop.f32.mrf.mxu3 }
 0x113   : > { %6318 = vst [vmem:[#allocation7_spill] sm:$0xff] %v3853_v9 }
 0x117   : > { %741 = vrot.lane.b32.xlu0 %v632_v13, %s3477_s28  ;;  %910 = vrot.lane.b32.xlu2 %v3856_v12, %s3479_s10  ;;  %v631_v13 = vsel %vm615_vm2, %v597_v11, %v598_v60  ;;  %v591_v11 = vrot.slane %v3892_v52, 7 }
 0x118   : > { %926 = vrot.lane.b32.xlu1 %v3860_v14, %s3479_s10  ;;  %v666_v53 = vsel %vm646_vm3, %v631_v13, 0.0 }
 0x119   : > { %v3867_v15 = vpop.permute.xlu0 %1053  ;;  %v3871_v18 = vpop.permute.xlu2 %719 }
 0x11a   : > { %v3869_v16 = vpop.permute.xlu1 %902  ;;  %6319 = vst [vmem:[#allocation8_spill] sm:$0xff] %v3871_v18 }
 0x11f   : > { %912 = vrot.lane.b32.xlu0 %v3875_v22, %s3479_s10  ;;  %880 = vrot.lane.b32.xlu2 %v3873_v19, %s3479_s10 }
 0x120   : > { %896 = vrot.lane.b32.xlu1 %v3877_v24, %s3479_s10 }
 0x121   : > { %v3885_v26 = vpop.permute.xlu0 %918  ;;  %v3889_v41 = vpop.permute.xlu2 %904 }
 0x122   : > { %v3887_v37 = vpop.permute.xlu1 %872 }
 0x127   : > { %882 = vrot.lane.b32.xlu0 %v3892_v52, %s3479_s10  ;;  %1063 = vrot.lane.b32.xlu2 %v3873_v19, %s3480_s11 }
 0x128   : > { %773 = vrot.lane.b32.xlu1 %v616_v55, %s3477_s28  ;;  %v606_v55 = vrot.slane %v3875_v22, 7 }
 0x129   : > { %v3902_v0 = vpop.permute.xlu0 %888  ;;  %v3906_v2 = vpop.permute.xlu2 %874 }
 0x12a   : > { %v3904_v1 = vpop.permute.xlu1 %1055  ;;  %v623_v50 = vsel %vm615_vm2, %v605_v6, %v606_v55 }
 0x12b   : > { %v674_v18 = vsel %vm646_vm3, %v623_v50, 0.0  ;;  %v3955_v50 = vpop.f32.mrf.mxu1 }
 0x12f   : > { %1065 = vrot.lane.b32.xlu0 %v3892_v52, %s3480_s11  ;;  %757 = vrot.lane.b32.xlu2 %v624_v49, %s3477_s28 }
 0x130   : > { %743 = vrot.lane.b32.xlu1 %v666_v53, %s3477_s28  ;;  %v6322_v53 = vrot.slane %v3619_v36, 7 }
 0x131   : > { %v3924_v59 = vpop.permute.xlu0 %1071  ;;  %v3928_v13 = vpop.permute.xlu2 %1057 }
 0x132   : > { %v3926_v54 = vpop.permute.xlu1 %749  ;;  %v637_v49 = vsel %vm615_vm2, %v591_v11, %v6322_v53 }
 0x133   : > { %6321 = vst [vmem:[#allocation10_spill] sm:$0xff] %v3926_v54  ;;  %v658_v54 = vsel %vm646_vm3, %v639_v31, 0.0  ;;  %v660_v9 = vsel %vm646_vm3, %v637_v49, 0.0  ;;  %v3959_v31 = vpop.f32.mrf.mxu2 }
 0x134   : > { %6325 = vst [vmem:[#allocation13_spill] sm:$0xff] %v3959_v31 }
 0x137   : > { %759 = vrot.lane.b32.xlu0 %v674_v18, %s3477_s28  ;;  %727 = vrot.lane.b32.xlu2 %v658_v54, %s3477_s28  ;;  %v638_v18 = vsel %vm615_vm2, %v590_v42, %v591_v11  ;;  %v599_v54 = vrot.slane %v3955_v50, 7  ;;  %v6328_v42 = vrot.slane %v3625_v38, 7 }
 0x138   : > { %731 = vrot.lane.b32.xlu1 %v660_v9, %s3477_s28 }
 0x139   : > { %v3947_v61 = vpop.permute.xlu0 %765  ;;  %v3951_v53 = vpop.permute.xlu2 %751  ;;  %v629_v11 = vsel %vm615_vm2, %v599_v54, %v6328_v42 }
 0x13a   : > { %6323 = vst [vmem:[#allocation11_spill] sm:$0xff] %v3947_v61  ;;  %v3949_v6 = vpop.permute.xlu1 %920  ;;  %v607_v61 = vrot.slane %v3959_v31, 7  ;;  %v668_v32 = vsel %vm646_vm3, %v629_v11, 0.0  ;;  %v6330_v11 = vrot.slane %v3640_v43, 7 }
 0x13b   : > { %6324 = vst [vmem:[#allocation12_spill] sm:$0xff] %v3951_v53 }
 0x13f   : > { %729 = vrot.lane.b32.xlu0 %v638_v18, %s3477_s28  ;;  %898 = vrot.lane.b32.xlu2 %v3955_v50, %s3479_s10  ;;  %v3977_v18 = vpop.f32.mrf.mxu3 }
 0x140   : > { %914 = vrot.lane.b32.xlu1 %v3959_v31, %s3479_s10  ;;  %6329 = vst [vmem:[#allocation16_spill] sm:$0xff] %v3977_v18  ;;  %v614_v42 = vrot.slane %v3977_v18, 7 }
 0x141   : > { %v3967_v9 = vpop.permute.xlu0 %735  ;;  %v3971_v53 = vpop.permute.xlu2 %721 }
 0x142   : > { %6326 = vst [vmem:[#allocation14_spill] sm:$0xff] %v3967_v9  ;;  %v3969_v49 = vpop.permute.xlu1 %890  ;;  %v630_v9 = vsel %vm615_vm2, %v598_v60, %v599_v54  ;;  %v6331_v60 = vrot.slane %v3617_v35, 7 }
 0x143   : > { %6327 = vst [vmem:[#allocation15_spill] sm:$0xff] %v3971_v53  ;;  %v622_v53 = vsel %vm615_vm2, %v606_v55, %v607_v61 }
 0x144   : > { %v645_v55 = vsel %vm615_vm2, %v614_v42, %v6331_v60 }
 0x145   : > { %v652_v54 = vsel %vm646_vm3, %v645_v55, 0.0 }
 0x147   : > { %747 = vrot.lane.b32.xlu0 %v668_v32, %s3477_s28  ;;  %745 = vrot.lane.b32.xlu2 %v630_v9, %s3477_s28  ;;  %v621_v32 = vsel %vm615_vm2, %v607_v61, %v6330_v11 }
 0x148   : > { %761 = vrot.lane.b32.xlu1 %v622_v53, %s3477_s28  ;;  %v676_v53 = vsel %vm646_vm3, %v621_v32, 0.0 }
 0x149   : > { %v907_v25 = vpop.permute.xlu0 %906  ;;  %v3992_v51 = vpop.permute.xlu2 %922 }
 0x14a   : > { %v3990_v4 = vpop.permute.xlu1 %1073 }
 0x14f   : > { %1077 = vrot.lane.b32.xlu0 %v3817_v44, %s3480_s11  ;;  %763 = vrot.lane.b32.xlu2 %v676_v53, %s3477_s28 }
 0x150   : > { %715 = vrot.lane.b32.xlu1 %v652_v54, %s3477_s28 }
 0x151   : > { %v877_v9 = vpop.permute.xlu0 %876  ;;  %v893_v11 = vpop.permute.xlu2 %892 }
 0x152   : > { %v4010_v61 = vpop.permute.xlu1 %767 }
 0x153   : > { %6332 = vst [vmem:[#allocation17_spill] sm:$0xff] %v4010_v61 }
 0x157   : > { %1083 = vrot.lane.b32.xlu0 %v3625_v38, %s3480_s11  ;;  %1081 = vrot.lane.b32.xlu2 %v3955_v50, %s3480_s11 }
 0x158   : > { %1079 = vrot.lane.b32.xlu1 %v3877_v24, %s3480_s11 }
 0x159   : > { %v4018_v42 = vpop.permute.xlu0 %1059  ;;  %v4022_v60 = vpop.permute.xlu2 %1075 }
 0x15a   : > { %v4020_v32 = vpop.permute.xlu1 %737 }
 0x15b   : > { %6333 = vst [vmem:[#allocation18_spill] sm:$0xff] %v4020_v32 }
 0x15f   : > { %1089 = vrot.lane.b32.xlu0 %v3729_v5, %s3480_s11  ;;  %1087 = vrot.lane.b32.xlu2 %v3706_v62, %s3480_s11 }
 0x160   : > { %1085 = vrot.lane.b32.xlu1 %v3653_v46, %s3480_s11 }
 0x161   : > { %v4030_v55 = vpop.permute.xlu0 %753  ;;  %v4032_v54 = vpop.permute.xlu2 %769 }
 0x162   : > { %6334 = vst [vmem:[#allocation19_spill] sm:$0xff] %v4030_v55  ;;  %v909_v53 = vpop.permute.xlu1 %908 }
 0x163   : > { %6335 = vst [vmem:[#allocation20_spill] sm:$0xff] %v4032_v54 }
 0x167   : > { %1095 = vrot.lane.b32.xlu0 %v3875_v22, %s3480_s11  ;;  %1093 = vrot.lane.b32.xlu2 %v3856_v12, %s3480_s11 }
 0x168   : > { %1091 = vrot.lane.b32.xlu1 %v3770_v21, %s3480_s11 }
 0x169   : > { %v4040_v32 = vpop.permute.xlu0 %723  ;;  %v4042_v61 = vpop.permute.xlu2 %739 }
 0x16a   : > { %6336 = vst [vmem:[#allocation21_spill] sm:$0xff] %v4040_v32  ;;  %v879_v18 = vpop.permute.xlu1 %878 }
 0x16b   : > { %6337 = vst [vmem:[#allocation22_spill] sm:$0xff] %v4042_v61 }
 0x16f   : > { %960 = vrot.lane.b32.xlu0 %v3829_v56, %s3477_s28  ;;  %1099 = vrot.lane.b32.xlu2 %v3640_v43, %s3480_s11 }
 0x170   : > { %1097 = vrot.lane.b32.xlu1 %v3959_v31, %s3480_s11 }
 0x171   : > { %v925_v54 = vpop.permute.xlu0 %924  ;;  %v911_v55 = vpop.permute.xlu2 %910 }
 0x172   : > { %v4050_v22 = vpop.permute.xlu1 %1061 }
 0x177   : > { %930 = vrot.lane.b32.xlu0 %v3849_v7, %s3477_s28  ;;  %928 = vrot.lane.b32.xlu2 %v3763_v17, %s3477_s28 }
 0x178   : > { %944 = vrot.lane.b32.xlu1 %v3808_v33, %s3477_s28 }
 0x179   : > { %v895_v56 = vpop.permute.xlu0 %894  ;;  %v881_v32 = vpop.permute.xlu2 %880 }
 0x17a   : > { %v4058_v61 = vpop.permute.xlu1 %755 }
 0x17f   : > { %978 = vrot.lane.b32.xlu0 %v3885_v26, %s3477_s28  ;;  %976 = vrot.lane.b32.xlu2 %v3795_v29, %s3477_s28 }
 0x180   : > { %962 = vrot.lane.b32.xlu1 %v3869_v16, %s3477_s28 }
 0x181   : > { %v4066_v7 = vpop.permute.xlu0 %771  ;;  %v4070_v17 = vpop.permute.xlu2 %1063 }
 0x182   : > { %v4068_v31 = vpop.permute.xlu1 %725 }
 0x183   : > { %6338 = vst [vmem:[#allocation23_spill] sm:$0xff] %v4068_v31 }
 0x187   : > { %948 = vrot.lane.b32.xlu0 %v3902_v0, %s3477_s28  ;;  %946 = vrot.lane.b32.xlu2 %v3810_v34, %s3477_s28 }
 0x188   : > { %932 = vrot.lane.b32.xlu1 %v3887_v37, %s3477_s28 }
 0x189   : > { %v4078_v33 = vpop.permute.xlu0 %741  ;;  %v4080_v26 = vpop.permute.xlu2 %757 }
 0x18a   : > { %v927_v29 = vpop.permute.xlu1 %926 }
 0x18f   : > { %966 = vrot.lane.b32.xlu0 %v907_v25, %s3477_s28  ;;  %964 = vrot.lane.b32.xlu2 %v3889_v41, %s3477_s28 }
 0x190   : > { %980 = vrot.lane.b32.xlu1 %v3949_v6, %s3477_s28 }
 0x191   : > { %v913_v16 = vpop.permute.xlu0 %912  ;;  %v4087_v31 = vpop.permute.xlu2 %727 }
 0x192   : > { %v897_v0 = vpop.permute.xlu1 %896 }
 0x197   : > { %936 = vrot.lane.b32.xlu0 %v877_v9, %s3477_s28  ;;  %934 = vrot.lane.b32.xlu2 %v3906_v2, %s3477_s28 }
 0x198   : > { %950 = vrot.lane.b32.xlu1 %v3969_v49, %s3477_s28 }
 0x199   : > { %v883_v34 = vpop.permute.xlu0 %882  ;;  %v899_v37 = vpop.permute.xlu2 %898 }
 0x19a   : > { %v4094_v25 = vpop.permute.xlu1 %773 }
 0x19f   : > { %984 = vrot.lane.b32.xlu0 %v925_v54, %s3477_s28  ;;  %982 = vrot.lane.b32.xlu2 %v3992_v51, %s3477_s28 }
 0x1a0   : > { %968 = vrot.lane.b32.xlu1 %v909_v53, %s3477_s28 }
 0x1a1   : > { %v4100_v41 = vpop.permute.xlu0 %1065  ;;  %v4104_v9 = vpop.permute.xlu2 %745 }
 0x1a2   : > { %v4102_v6 = vpop.permute.xlu1 %743  ;;  %6340 = vst [vmem:[#allocation25_spill] sm:$0xff] %v4104_v9  ;;  %v1150_v9 = vrot.slane %v4070_v17, 1 }
 0x1a3   : > { %6339 = vst [vmem:[#allocation24_spill] sm:$0xff] %v4102_v6 }
 0x1a7   : > { %954 = vrot.lane.b32.xlu0 %v895_v56, %s3477_s28  ;;  %952 = vrot.lane.b32.xlu2 %v893_v11, %s3477_s28 }
 0x1a8   : > { %938 = vrot.lane.b32.xlu1 %v879_v18, %s3477_s28 }
 0x1a9   : > { %v4109_v2 = vpop.permute.xlu0 %759  ;;  %v4111_v49 = vpop.permute.xlu2 %763 }
 0x1aa   : > { %6341 = vst [vmem:[#allocation26_spill] sm:$0xff] %v4109_v2  ;;  %v4113_v54 = vpop.permute.xlu1 %731 }
 0x1ab   : > { %6342 = vst [vmem:[#allocation27_spill] sm:$0xff] %v4111_v49 }
 0x1ac   : > { %6343 = vst [vmem:[#allocation28_spill] sm:$0xff] %v4113_v54  ;;  %v1148_v54 = vrot.slane %v4018_v42, 1 }
 0x1af   : > { %972 = vrot.lane.b32.xlu0 %v913_v16, %s3477_s28  ;;  %970 = vrot.lane.b32.xlu2 %v911_v55, %s3477_s28 }
 0x1b0   : > { %986 = vrot.lane.b32.xlu1 %v927_v29, %s3477_s28 }
 0x1b1   : > { %v4118_v51 = vpop.permute.xlu0 %729  ;;  %v4120_v53 = vpop.permute.xlu2 %1081 }
 0x1b2   : > { %6344 = vst [vmem:[#allocation29_spill] sm:$0xff] %v4118_v51  ;;  %v915_v56 = vpop.permute.xlu1 %914 }
 0x1b7   : > { %942 = vrot.lane.b32.xlu0 %v883_v34, %s3477_s28  ;;  %940 = vrot.lane.b32.xlu2 %v881_v32, %s3477_s28  ;;  %v1145_v34 = vrot.slane %v3867_v15, 1  ;;  %v4166_v15 = vadd.s32 8, %v3635_v40 }
 0x1b8   : > { %956 = vrot.lane.b32.xlu1 %v897_v0, %s3477_s28 }
 0x1b9   : > { %v4125_v18 = vpop.permute.xlu0 %747  ;;  %v4127_v11 = vpop.permute.xlu2 %1087  ;;  %vm1207_vm5 = vcmp.lt.s32.totalorder %v4166_v15, 15 }
 0x1ba   : > { %6345 = vst [vmem:[#allocation30_spill] sm:$0xff] %v4125_v18  ;;  %v4129_v16 = vpop.permute.xlu1 %761  ;;  %v1146_v18 = vrot.slane %v3904_v1, 1 }
 0x1bb   : > { %6346 = vst [vmem:[#allocation31_spill] sm:$0xff] %v4129_v16  ;;  %v1144_v16 = vrot.slane %v3778_v23, 1  ;;  %v1147_v23 = vrot.slane %v3928_v13, 1 }
 0x1bd   : > { %v1205_v51 = vsel %vm1175_vm4, %v1144_v16, %v1145_v34  ;;  %v1202_v1 = vsel %vm1175_vm4, %v1147_v23, %v1148_v54  ;;  %v1203_v13 = vsel %vm1175_vm4, %v1146_v18, %v1147_v23  ;;  %v1154_v23 = vrot.slane %v3924_v59, 1 }
 0x1be   : > { %v1215_v2 = vsel %vm1207_vm5, %v1202_v1, 0.0  ;;  %v1151_v1 = vrot.slane %v4100_v41, 1  ;;  %v1153_v41 = vrot.slane %v3833_v58, 1 }
 0x1bf   : > { %1101 = vrot.lane.b32.xlu0 %v3661_v47, %s3480_s11  ;;  %958 = vrot.lane.b32.xlu2 %v899_v37, %s3477_s28 }
 0x1c0   : > { %974 = vrot.lane.b32.xlu1 %v915_v56, %s3477_s28  ;;  %v1199_v17 = vsel %vm1175_vm4, %v1150_v9, %v1151_v1  ;;  %v1196_v59 = vsel %vm1175_vm4, %v1153_v41, %v1154_v23 }
 0x1c1   : > { %v4135_v55 = vpop.permute.xlu0 %1077  ;;  %v4137_v29 = vpop.permute.xlu2 %1093 }
 0x1c2   : > { %v4139_v32 = vpop.permute.xlu1 %715 }
 0x1c3   : > { %6347 = vst [vmem:[#allocation32_spill] sm:$0xff] %v4139_v32 }
 0x1c7   : > { %1107 = vrot.lane.b32.xlu0 %v3797_v30, %s3480_s11  ;;  %1105 = vrot.lane.b32.xlu2 %v3768_v20, %s3480_s11 }
 0x1c8   : > { %1103 = vrot.lane.b32.xlu1 %v3708_v63, %s3480_s11 }
 0x1c9   : > { %v4147_v0 = vpop.permute.xlu0 %1083  ;;  %v4150_v37 = vpop.permute.xlu2 %1099 }
 0x1ca   : > { %v4152_v56 = vpop.permute.xlu1 %1079 }
 0x1cf   : > { %1272 = vrot.lane.b32.xlu0 %v1205_v51, %s3477_s28  ;;  %1111 = vrot.lane.b32.xlu2 %v3953_v8, %s3480_s11  ;;  %v1204_v51 = vsel %vm1175_vm4, %v1145_v34, %v1146_v18  ;;  %v1149_v34 = vrot.slane %v4050_v22, 1 }
 0x1d0   : > { %1109 = vrot.lane.b32.xlu1 %v3860_v14, %s3480_s11 }
 0x1d1   : > { %v4169_v49 = vpop.permute.xlu0 %1089  ;;  %v4171_v16 = vpop.permute.xlu2 %928  ;;  %v1200_v18 = vsel %vm1175_vm4, %v1149_v34, %v1150_v9  ;;  %v1201_v22 = vsel %vm1175_vm4, %v1148_v54, %v1149_v34  ;;  %v1152_v9 = vrot.slane %v3831_v57, 1  ;;  %v1221_v54 = vsel %vm1207_vm5, %v1196_v59, 0.0 }
 0x1d2   : > { %6348 = vst [vmem:[#allocation33_spill] sm:$0xff] %v4171_v16  ;;  %v4173_v42 = vpop.permute.xlu1 %1085  ;;  %v1213_v16 = vsel %vm1207_vm5, %v1204_v51, 0.0  ;;  %v1156_v34 = vrot.slane %v4022_v60, 1  ;;  %v1160_v60 = vrot.slane %v4147_v0, 1 }
 0x1d3   : > { %v1197_v58 = vsel %vm1175_vm4, %v1152_v9, %v1153_v41 }
 0x1d7   : > { %1278 = vrot.lane.b32.xlu0 %v1215_v2, %s3477_s28  ;;  %1276 = vrot.lane.b32.xlu2 %v1203_v13, %s3477_s28 }
 0x1d8   : > { %1274 = vrot.lane.b32.xlu1 %v1213_v16, %s3477_s28  ;;  %v1217_v16 = vsel %vm1207_vm5, %v1200_v18, 0.0  ;;  %v1198_v18 = vsel %vm1175_vm4, %v1151_v1, %v1152_v9 }
 0x1d9   : > { %v4190_v32 = vpop.permute.xlu0 %1095  ;;  %v4196_v2 = vpop.permute.xlu2 %976  ;;  %v1219_v57 = vsel %vm1207_vm5, %v1198_v18, 0.0 }
 0x1da   : > { %v4194_v6 = vpop.permute.xlu1 %1091  ;;  %6349 = vst [vmem:[#allocation34_spill] sm:$0xff] %v4196_v2 }
 0x1df   : > { %1284 = vrot.lane.b32.xlu0 %v1199_v17, %s3477_s28  ;;  %1282 = vrot.lane.b32.xlu2 %v1217_v16, %s3477_s28  ;;  %v1155_v16 = vrot.slane %v3990_v4, 1 }
 0x1e0   : > { %1280 = vrot.lane.b32.xlu1 %v1201_v22, %s3477_s28  ;;  %v1157_v22 = vrot.slane %v4135_v55, 1  ;;  %v1158_v55 = vrot.slane %v4152_v56, 1 }
 0x1e1   : > { %v4211_v51 = vpop.permute.xlu0 %960  ;;  %v4220_v17 = vpop.permute.xlu2 %946  ;;  %v1194_v41 = vsel %vm1175_vm4, %v1155_v16, %v1156_v34  ;;  %v1195_v4 = vsel %vm1175_vm4, %v1154_v23, %v1155_v16 }
 0x1e2   : > { %6350 = vst [vmem:[#allocation35_spill] sm:$0xff] %v4211_v51  ;;  %v4214_v13 = vpop.permute.xlu1 %1097  ;;  %v1193_v9 = vsel %vm1175_vm4, %v1156_v34, %v1157_v22  ;;  %v1223_v18 = vsel %vm1207_vm5, %v1194_v41, 0.0  ;;  %v1192_v23 = vsel %vm1175_vm4, %v1157_v22, %v1158_v55  ;;  %v1161_v41 = vrot.slane %v4173_v42, 1 }
 0x1e3   : > { %6351 = vst [vmem:[#allocation36_spill] sm:$0xff] %v4220_v17  ;;  %v1225_v16 = vsel %vm1207_vm5, %v1192_v23, 0.0  ;;  %v1162_v22 = vrot.slane %v4127_v11, 1  ;;  %v1164_v11 = vrot.slane %v4194_v6, 1 }
 0x1e5   : > { %v1188_v23 = vsel %vm1175_vm4, %v1161_v41, %v1162_v22 }
 0x1e7   : > { %1290 = vrot.lane.b32.xlu0 %v1221_v54, %s3477_s28  ;;  %1288 = vrot.lane.b32.xlu2 %v1197_v58, %s3477_s28  ;;  %v1159_v58 = vrot.slane %v4120_v53, 1 }
 0x1e8   : > { %1286 = vrot.lane.b32.xlu1 %v1219_v57, %s3477_s28 }
 0x1e9   : > { %v4232_v1 = vpop.permute.xlu0 %930  ;;  %v4249_v54 = vpop.permute.xlu2 %964  ;;  %v1190_v34 = vsel %vm1175_vm4, %v1159_v58, %v1160_v60  ;;  %v1191_v53 = vsel %vm1175_vm4, %v1158_v55, %v1159_v58  ;;  %v1166_v55 = vrot.slane %v4190_v32, 1  ;;  %v1189_v58 = vsel %vm1175_vm4, %v1160_v60, %v1161_v41 }
 0x1ea   : > { %6352 = vst [vmem:[#allocation37_spill] sm:$0xff] %v4232_v1  ;;  %v4236_v59 = vpop.permute.xlu1 %944  ;;  %v1227_v56 = vsel %vm1207_vm5, %v1190_v34, 0.0 }
 0x1eb   : > { %6353 = vst [vmem:[#allocation38_spill] sm:$0xff] %v4236_v59 }
 0x1ec   : > { %6354 = vst [vmem:[#allocation39_spill] sm:$0xff] %v4249_v54 }
 0x1ef   : > { %1296 = vrot.lane.b32.xlu0 %v1193_v9, %s3477_s28  ;;  %1294 = vrot.lane.b32.xlu2 %v1223_v18, %s3477_s28  ;;  %v1163_v18 = vrot.slane %v4169_v49, 1  ;;  %v1229_v49 = vsel %vm1207_vm5, %v1188_v23, 0.0  ;;  %v1167_v23 = vrot.slane %v4214_v13, 1 }
 0x1f0   : > { %1292 = vrot.lane.b32.xlu1 %v1195_v4, %s3477_s28 }
 0x1f1   : > { %v4254_v57 = vpop.permute.xlu0 %978  ;;  %v4276_v4 = vpop.permute.xlu2 %934  ;;  %v1187_v42 = vsel %vm1175_vm4, %v1162_v22, %v1163_v18  ;;  %v1186_v60 = vsel %vm1175_vm4, %v1163_v18, %v1164_v11  ;;  %v1168_v18 = vrot.slane %v4150_v37, 1 }
 0x1f2   : > { %6355 = vst [vmem:[#allocation40_spill] sm:$0xff] %v4254_v57  ;;  %v4256_v0 = vpop.permute.xlu1 %962 }
 0x1f3   : > { %6356 = vst [vmem:[#allocation41_spill] sm:$0xff] %v4256_v0 }
 0x1f4   : > { %6358 = vst [vmem:[#allocation43_spill] sm:$0xff] %v4276_v4 }
 0x1f7   : > { %1302 = vrot.lane.b32.xlu0 %v1227_v56, %s3477_s28  ;;  %1300 = vrot.lane.b32.xlu2 %v1191_v53, %s3477_s28  ;;  %v1165_v56 = vrot.slane %v4137_v29, 1  ;;  %v1231_v29 = vsel %vm1207_vm5, %v1186_v60, 0.0 }
 0x1f8   : > { %1298 = vrot.lane.b32.xlu1 %v1225_v16, %s3477_s28 }
 0x1f9   : > { %v4272_v9 = vpop.permute.xlu0 %948  ;;  %v1184_v32 = vsel %vm1175_vm4, %v1165_v56, %v1166_v55  ;;  %v4300_v22 = vpop.permute.xlu2 %982  ;;  %v1185_v41 = vsel %vm1175_vm4, %v1164_v11, %v1165_v56  ;;  %v1183_v11 = vsel %vm1175_vm4, %v1166_v55, %v1167_v23 }
 0x1fa   : > { %6357 = vst [vmem:[#allocation42_spill] sm:$0xff] %v4272_v9  ;;  %v4278_v34 = vpop.permute.xlu1 %932  ;;  %v1233_v6 = vsel %vm1207_vm5, %v1184_v32, 0.0 }
 0x1fb   : > { %6359 = vst [vmem:[#allocation44_spill] sm:$0xff] %v4278_v34 }
 0x1fc   : > { %6362 = vst [vmem:[#allocation47_spill] sm:$0xff] %v4300_v22 }
 0x1ff   : > { %1308 = vrot.lane.b32.xlu0 %v1187_v42, %s3477_s28  ;;  %1306 = vrot.lane.b32.xlu2 %v1229_v49, %s3477_s28  ;;  %v1182_v49 = vsel %vm1175_vm4, %v1167_v23, %v1168_v18 }
 0x200   : > { %1304 = vrot.lane.b32.xlu1 %v1189_v58, %s3477_s28  ;;  %v1235_v13 = vsel %vm1207_vm5, %v1182_v49, 0.0 }
 0x201   : > { %v4294_v16 = vpop.permute.xlu0 %966  ;;  %v4321_v32 = vpop.permute.xlu2 %952 }
 0x202   : > { %6360 = vst [vmem:[#allocation45_spill] sm:$0xff] %v4294_v16  ;;  %v4296_v53 = vpop.permute.xlu1 %980 }
 0x203   : > { %6361 = vst [vmem:[#allocation46_spill] sm:$0xff] %v4296_v53 }
 0x204   : > { %6365 = vst [vmem:[#allocation50_spill] sm:$0xff] %v4321_v32 }
 0x207   : > { %1314 = vrot.lane.b32.xlu0 %v1233_v6, %s3477_s28  ;;  %1312 = vrot.lane.b32.xlu2 %v1185_v41, %s3477_s28 }
 0x208   : > { %1310 = vrot.lane.b32.xlu1 %v1231_v29, %s3477_s28 }
 0x209   : > { %v4314_v42 = vpop.permute.xlu0 %936  ;;  %v4333_v60 = vpop.permute.xlu2 %970 }
 0x20a   : > { %6363 = vst [vmem:[#allocation48_spill] sm:$0xff] %v4314_v42  ;;  %v4317_v58 = vpop.permute.xlu1 %950 }
 0x20b   : > { %6364 = vst [vmem:[#allocation49_spill] sm:$0xff] %v4317_v58 }
 0x20c   : > { %6368 = vst [vmem:[#allocation53_spill] sm:$0xff] %v4333_v60 }
 0x20f   : > { %1318 = vrot.lane.b32.xlu2 %v1235_v13, %s3477_s28 }
 0x210   : > { %1316 = vrot.lane.b32.xlu1 %v1183_v11, %s3477_s28 }
 0x211   : > { %v4329_v56 = vpop.permute.xlu0 %984  ;;  %v4341_v55 = vpop.permute.xlu2 %940 }
 0x212   : > { %6366 = vst [vmem:[#allocation51_spill] sm:$0xff] %v4329_v56  ;;  %v4331_v37 = vpop.permute.xlu1 %968 }
 0x213   : > { %6367 = vst [vmem:[#allocation52_spill] sm:$0xff] %v4331_v37 }
 0x214   : > { %6372 = vst [vmem:[#allocation57_spill] sm:$0xff] %v4341_v55 }
 0x219   : > { %v4335_v6 = vpop.permute.xlu0 %954  ;;  %v4349_v13 = vpop.permute.xlu2 %958 }
 0x21a   : > { %6369 = vst [vmem:[#allocation54_spill] sm:$0xff] %v4335_v6  ;;  %v4337_v29 = vpop.permute.xlu1 %938 }
 0x21b   : > { %6370 = vst [vmem:[#allocation55_spill] sm:$0xff] %v4337_v29 }
 0x21c   : > { %6376 = vst [vmem:[#allocation61_spill] sm:$0xff] %v4349_v13 }
 0x221   : > { %v4339_v41 = vpop.permute.xlu0 %972 }
 0x222   : > { %6371 = vst [vmem:[#allocation56_spill] sm:$0xff] %v4339_v41  ;;  %v4343_v23 = vpop.permute.xlu1 %986  ;;  %v1106_v41 = vpop.permute.xlu2 %1105 }
 0x223   : > { %6373 = vst [vmem:[#allocation58_spill] sm:$0xff] %v4343_v23  ;;  %v1171_v55 = vrot.slane %v1106_v41, 1 }
 0x229   : > { %v4345_v49 = vpop.permute.xlu0 %942 }
 0x22a   : > { %6374 = vst [vmem:[#allocation59_spill] sm:$0xff] %v4345_v49  ;;  %v4347_v11 = vpop.permute.xlu1 %956 }
 0x22b   : > { %6375 = vst [vmem:[#allocation60_spill] sm:$0xff] %v4347_v11 }
 0x231   : > { %v1102_v56 = vpop.permute.xlu0 %1101 }
 0x232   : > { %v1169_v37 = vrot.slane %v1102_v56, 1  ;;  %v4351_v58 = vpop.permute.xlu1 %974 }
 0x233   : > { %6377 = vst [vmem:[#allocation62_spill] sm:$0xff] %v4351_v58 }
 0x234   : > { %v1181_v6 = vsel %vm1175_vm4, %v1168_v18, %v1169_v37 }
 0x235   : > { %1320 = vrot.lane.b32.xlu0 %v1181_v6, %s3477_s28 }
 0x239   : > { %v1108_v29 = vpop.permute.xlu0 %1107 }
 0x23a   : > { %v1172_v60 = vrot.slane %v1108_v29, 1  ;;  %v1104_v23 = vpop.permute.xlu1 %1103  ;;  %v1112_v29 = vpop.permute.xlu2 %1111 }
 0x23b   : > { %v1170_v42 = vrot.slane %v1104_v23, 1  ;;  %v1174_v23 = vrot.slane %v1112_v29, 1  ;;  %v6385_v29 = vld [vmem:[#allocation3_spill] sm:$0xff] }
 0x23c   : > { %v1178_v11 = vsel %vm1175_vm4, %v1171_v55, %v1172_v60 }
 0x23d   : > { %v1239_v49 = vsel %vm1207_vm5, %v1178_v11, 0.0  ;;  %v1179_v56 = vsel %vm1175_vm4, %v1170_v42, %v1171_v55  ;;  %v1180_v18 = vsel %vm1175_vm4, %v1169_v37, %v1170_v42 }
 0x23e   : > { %1326 = vrot.lane.b32.xlu0 %v1239_v49, %s3477_s28  ;;  %1324 = vrot.lane.b32.xlu2 %v1179_v56, %s3477_s28  ;;  %v1237_v6 = vsel %vm1207_vm5, %v1180_v18, 0.0 }
 0x23f   : > { %1322 = vrot.lane.b32.xlu1 %v1237_v6, %s3477_s28  ;;  %v6384_v6 = vld [vmem:[#allocation2_spill] sm:$0xff] }
 0x242   : > { %v1110_v41 = vpop.permute.xlu1 %1109  ;;  %v4379_v37 = vpop.permute.xlu2 %1276 }
 0x243   : > { %v1173_v58 = vrot.slane %v1110_v41, 1  ;;  %6378 = vst [vmem:[#allocation63_spill] sm:$0xff] %v4379_v37 }
 0x245   : > { %v1177_v11 = vsel %vm1175_vm4, %v1172_v60, %v1173_v58  ;;  %v1176_v55 = vsel %vm1175_vm4, %v1173_v58, %v1174_v23  ;;  %v4395_v60 = vpop.permute.xlu0 %1272 }
 0x246   : > { %1395 = vrot.lane.b32.xlu0 %v3617_v35, %s3481_s12  ;;  %v1241_v42 = vsel %vm1207_vm5, %v1176_v55, 0.0  ;;  %6380 = vst [vmem:[#allocation65_spill] sm:$0xff] %v4395_v60 }
 0x247   : > { %1328 = vrot.lane.b32.xlu1 %v1177_v11, %s3477_s28  ;;  %1330 = vrot.lane.b32.xlu2 %v1241_v42, %s3477_s28 }
 0x24a   : > { %v4387_v58 = vpop.permute.xlu2 %1282  ;;  %v4407_v18 = vpop.permute.xlu1 %1274 }
 0x24b   : > { %6379 = vst [vmem:[#allocation64_spill] sm:$0xff] %v4387_v58 }
 0x24c   : > { %6383 = vst [vmem:[#allocation68_spill] sm:$0xff] %v4407_v18 }
 0x24d   : > { %v4405_v56 = vpop.permute.xlu0 %1278 }
 0x24e   : > { %1401 = vrot.lane.b32.xlu0 %v3720_v3, %s3481_s12  ;;  %6382 = vst [vmem:[#allocation67_spill] sm:$0xff] %v4405_v56 }
 0x24f   : > { %1397 = vrot.lane.b32.xlu1 %v3629_v39, %s3481_s12  ;;  %1399 = vrot.lane.b32.xlu2 %v3663_v48, %s3481_s12 }
 0x252   : > { %v4397_v49 = vpop.permute.xlu2 %1288  ;;  %v4419_v11 = vpop.permute.xlu1 %1280 }
 0x253   : > { %6381 = vst [vmem:[#allocation66_spill] sm:$0xff] %v4397_v49 }
 0x254   : > { %6388 = vst [vmem:[#allocation69_spill] sm:$0xff] %v4419_v11 }
 0x255   : > { %v4417_v23 = vpop.permute.xlu0 %1284 }
 0x256   : > { %1407 = vrot.lane.b32.xlu0 %v3873_v19, %s3481_s12  ;;  %6387 = vst [vmem:[#allocation3_spill] sm:$0xff] %v4417_v23  ;;  %v6397_v23 = vld [vmem:[#allocation13_spill] sm:$0xff] }
 0x257   : > { %1403 = vrot.lane.b32.xlu1 %v3743_v10, %s3481_s12  ;;  %1405 = vrot.lane.b32.xlu2 %v3788_v28, %s3481_s12 }
 0x25a   : > { %v4415_v41 = vpop.permute.xlu2 %1294 }
 0x25b   : > { %6386 = vst [vmem:[#allocation2_spill] sm:$0xff] %v4415_v41  ;;  %v4433_v41 = vpop.permute.xlu1 %1286 }
 0x25c   : > { %6391 = vst [vmem:[#allocation72_spill] sm:$0xff] %v4433_v41 }
 0x25d   : > { %v4431_v42 = vpop.permute.xlu0 %1290 }
 0x25e   : > { %1413 = vrot.lane.b32.xlu0 %v3651_v45, %s3481_s12  ;;  %6390 = vst [vmem:[#allocation71_spill] sm:$0xff] %v4431_v42 }
 0x25f   : > { %1409 = vrot.lane.b32.xlu1 %v3892_v52, %s3481_s12  ;;  %1411 = vrot.lane.b32.xlu2 %v3619_v36, %s3481_s12 }
 0x262   : > { %v4427_v55 = vpop.permute.xlu2 %1300 }
 0x263   : > { %6389 = vst [vmem:[#allocation70_spill] sm:$0xff] %v4427_v55  ;;  %v4449_v41 = vpop.permute.xlu1 %1292 }
 0x264   : > { %6394 = vst [vmem:[#allocation75_spill] sm:$0xff] %v4449_v41 }
 0x265   : > { %v4447_v42 = vpop.permute.xlu0 %1296 }
 0x266   : > { %1419 = vrot.lane.b32.xlu0 %v3786_v27, %s3481_s12  ;;  %6393 = vst [vmem:[#allocation74_spill] sm:$0xff] %v4447_v42 }
 0x267   : > { %1415 = vrot.lane.b32.xlu1 %v6384_v6, %s3481_s12  ;;  %1417 = vrot.lane.b32.xlu2 %v6385_v29, %s3481_s12 }
 0x26a   : > { %v4439_v11 = vpop.permute.xlu2 %1306 }
 0x26b   : > { %6392 = vst [vmem:[#allocation73_spill] sm:$0xff] %v4439_v11  ;;  %v6396_v11 = vld [vmem:[#allocation9_spill] sm:$0xff]  ;;  %v4461_v49 = vpop.permute.xlu1 %1298 }
 0x26c   : > { %6399 = vst [vmem:[#allocation13_spill] sm:$0xff] %v4461_v49 }
 0x26d   : > { %v4459_v56 = vpop.permute.xlu0 %1302 }
 0x26e   : > { %1425 = vrot.lane.b32.xlu0 %v3955_v50, %s3481_s12  ;;  %6398 = vst [vmem:[#allocation9_spill] sm:$0xff] %v4459_v56 }
 0x26f   : > { %1421 = vrot.lane.b32.xlu1 %v3817_v44, %s3481_s12  ;;  %1423 = vrot.lane.b32.xlu2 %v3877_v24, %s3481_s12 }
 0x272   : > { %v4451_v55 = vpop.permute.xlu2 %1312 }
 0x273   : > { %6395 = vst [vmem:[#allocation76_spill] sm:$0xff] %v4451_v55  ;;  %v4473_v42 = vpop.permute.xlu1 %1304 }
 0x274   : > { %6402 = vst [vmem:[#allocation79_spill] sm:$0xff] %v4473_v42 }
 0x275   : > { %v4471_v55 = vpop.permute.xlu0 %1308 }
 0x276   : > { %1431 = vrot.lane.b32.xlu0 %v3706_v62, %s3481_s12  ;;  %6401 = vst [vmem:[#allocation78_spill] sm:$0xff] %v4471_v55 }
 0x277   : > { %1427 = vrot.lane.b32.xlu1 %v3625_v38, %s3481_s12  ;;  %1429 = vrot.lane.b32.xlu2 %v3653_v46, %s3481_s12 }
 0x27a   : > { %v4469_v41 = vpop.permute.xlu2 %1318 }
 0x27b   : > { %6400 = vst [vmem:[#allocation77_spill] sm:$0xff] %v4469_v41  ;;  %v4485_v18 = vpop.permute.xlu1 %1310  ;;  %v6406_v41 = vld [vmem:[#allocation16_spill] sm:$0xff] }
 0x27c   : > { %6405 = vst [vmem:[#allocation82_spill] sm:$0xff] %v4485_v18 }
 0x27d   : > { %v4483_v56 = vpop.permute.xlu0 %1314 }
 0x27e   : > { %1437 = vrot.lane.b32.xlu0 %v3856_v12, %s3481_s12  ;;  %6404 = vst [vmem:[#allocation81_spill] sm:$0xff] %v4483_v56 }
 0x27f   : > { %1433 = vrot.lane.b32.xlu1 %v3729_v5, %s3481_s12  ;;  %1435 = vrot.lane.b32.xlu2 %v3770_v21, %s3481_s12 }
 0x283   : > { %v4493_v58 = vpop.permute.xlu1 %1316 }
 0x284   : > { %6409 = vst [vmem:[#allocation84_spill] sm:$0xff] %v4493_v58 }
 0x286   : > { %1443 = vrot.lane.b32.xlu0 %v3640_v43, %s3481_s12 }
 0x287   : > { %1439 = vrot.lane.b32.xlu1 %v6396_v11, %s3481_s12  ;;  %1441 = vrot.lane.b32.xlu2 %v6397_v23, %s3481_s12 }
 0x28e   : > { %1449 = vrot.lane.b32.xlu0 %v3768_v20, %s3481_s12 }
 0x28f   : > { %1445 = vrot.lane.b32.xlu1 %v3661_v47, %s3481_s12  ;;  %1447 = vrot.lane.b32.xlu2 %v3708_v63, %s3481_s12 }
 0x296   : > { %1455 = vrot.lane.b32.xlu0 %v3953_v8, %s3481_s12 }
 0x297   : > { %1451 = vrot.lane.b32.xlu1 %v3797_v30, %s3481_s12  ;;  %1453 = vrot.lane.b32.xlu2 %v3860_v14, %s3481_s12 }
 0x298   : > { %v4481_v49 = vpop.permute.xlu2 %1324 }
 0x299   : > { %6403 = vst [vmem:[#allocation80_spill] sm:$0xff] %v4481_v49 }
 0x29f   : > { %1457 = vrot.lane.b32.xlu1 %v6406_v41, %s3481_s12 }
 0x2a1   : > { %v4489_v55 = vpop.permute.xlu2 %1330 }
 0x2a2   : > { %6407 = vst [vmem:[#allocation16_spill] sm:$0xff] %v4489_v55 }
 0x2a7   : > { %v4491_v42 = vpop.permute.xlu0 %1320 }
 0x2a8   : > { %6408 = vst [vmem:[#allocation83_spill] sm:$0xff] %v4491_v42 }
 0x2a9   : > { %v1400_v37 = vpop.permute.xlu2 %1399 }
 0x2aa   : > { %v1493_v16 = vrot.slane %v1400_v37, 7 }
 0x2b0   : > { %v4495_v60 = vpop.permute.xlu0 %1326 }
 0x2b1   : > { %6410 = vst [vmem:[#allocation85_spill] sm:$0xff] %v4495_v60  ;;  %v4497_v13 = vpop.permute.xlu1 %1322  ;;  %v1406_v53 = vpop.permute.xlu2 %1405 }
 0x2b2   : > { %6411 = vst [vmem:[#allocation86_spill] sm:$0xff] %v4497_v13  ;;  %v1496_v37 = vrot.slane %v1406_v53, 7 }
 0x2b8   : > { %v4499_v49 = vpop.permute.xlu0 %1395 }
 0x2b9   : > { %v4501_v56 = vpop.permute.xlu1 %1328  ;;  %v1412_v18 = vpop.permute.xlu2 %1411  ;;  %v6310_v55 = vrot.slane %v4499_v49, 7 }
 0x2ba   : > { %6412 = vst [vmem:[#allocation87_spill] sm:$0xff] %v4501_v56 }
 0x2c0   : > { %v1402_v32 = vpop.permute.xlu0 %1401 }
 0x2c1   : > { %v1494_v34 = vrot.slane %v1402_v32, 7  ;;  %v1398_v22 = vpop.permute.xlu1 %1397  ;;  %v1418_v0 = vpop.permute.xlu2 %1417 }
 0x2c2   : > { %v1492_v42 = vrot.slane %v1398_v22, 7 }
 0x2c3   : > { %v4506_v58 = vsel %vm615_vm2, %v1493_v16, %v1494_v34 }
 0x2c4   : > { %v1553_v13 = vsel %vm615_vm2, %v6310_v55, %v1492_v42  ;;  %v1552_v56 = vsel %vm615_vm2, %v1492_v42, %v1493_v16  ;;  %v1499_v42 = vrot.slane %v1412_v18, 7 }
 0x2c5   : > { %1621 = vrot.lane.b32.xlu0 %v1553_v13, %s3477_s28  ;;  %v1557_v32 = vsel %vm646_vm3, %v1552_v56, 0.0 }
 0x2c6   : > { %1623 = vrot.lane.b32.xlu1 %v1557_v32, %s3477_s28 }
 0x2c8   : > { %v1408_v22 = vpop.permute.xlu0 %1407 }
 0x2c9   : > { %v1497_v60 = vrot.slane %v1408_v22, 7  ;;  %v1404_v9 = vpop.permute.xlu1 %1403 }
 0x2ca   : > { %v1495_v4 = vrot.slane %v1404_v9, 7 }
 0x2cb   : > { %v4520_v57 = vsel %vm615_vm2, %v1496_v37, %v1497_v60 }
 0x2cc   : > { %v1550_v16 = vsel %vm615_vm2, %v1494_v34, %v1495_v4  ;;  %v1549_v13 = vsel %vm615_vm2, %v1495_v4, %v1496_v37  ;;  %v1424_v34 = vpop.permute.xlu2 %1423 }
 0x2cd   : > { %v1559_v56 = vsel %vm646_vm3, %v1550_v16, 0.0 }
 0x2ce   : > { %1627 = vrot.lane.b32.xlu0 %v1559_v56, %s3477_s28  ;;  %1629 = vrot.lane.b32.xlu1 %v1549_v13, %s3477_s28  ;;  %v1502_v13 = vrot.slane %v1418_v0, 7 }
 0x2d0   : > { %v1414_v53 = vpop.permute.xlu0 %1413 }
 0x2d1   : > { %v1500_v9 = vrot.slane %v1414_v53, 7  ;;  %v1410_v32 = vpop.permute.xlu1 %1409 }
 0x2d2   : > { %v1498_v22 = vrot.slane %v1410_v32, 7 }
 0x2d3   : > { %v4532_v55 = vsel %vm615_vm2, %v1499_v42, %v1500_v9 }
 0x2d4   : > { %v1547_v4 = vsel %vm615_vm2, %v1497_v60, %v1498_v22  ;;  %v1546_v37 = vsel %vm615_vm2, %v1498_v22, %v1499_v42 }
 0x2d5   : > { %v1563_v16 = vsel %vm646_vm3, %v1546_v37, 0.0  ;;  %v1505_v37 = vrot.slane %v1424_v34, 7 }
 0x2d6   : > { %1633 = vrot.lane.b32.xlu0 %v1547_v4, %s3477_s28  ;;  %1635 = vrot.lane.b32.xlu1 %v1563_v16, %s3477_s28  ;;  %v1430_v4 = vpop.permute.xlu2 %1429 }
 0x2d8   : > { %v1420_v18 = vpop.permute.xlu0 %1419 }
 0x2d9   : > { %v1503_v56 = vrot.slane %v1420_v18, 7  ;;  %v1416_v53 = vpop.permute.xlu1 %1415 }
 0x2da   : > { %v1501_v32 = vrot.slane %v1416_v53, 7 }
 0x2db   : > { %v4544_v59 = vsel %vm615_vm2, %v1502_v13, %v1503_v56 }
 0x2dc   : > { %v1544_v60 = vsel %vm615_vm2, %v1500_v9, %v1501_v32  ;;  %v1543_v42 = vsel %vm615_vm2, %v1501_v32, %v1502_v13 }
 0x2dd   : > { %v1565_v22 = vsel %vm646_vm3, %v1544_v60, 0.0 }
 0x2de   : > { %1639 = vrot.lane.b32.xlu0 %v1565_v22, %s3477_s28  ;;  %1641 = vrot.lane.b32.xlu1 %v1543_v42, %s3477_s28  ;;  %v1436_v34 = vpop.permute.xlu2 %1435  ;;  %v1508_v42 = vrot.slane %v1430_v4, 7 }
 0x2e0   : > { %v1426_v0 = vpop.permute.xlu0 %1425 }
 0x2e1   : > { %v1506_v16 = vrot.slane %v1426_v0, 7  ;;  %v1422_v18 = vpop.permute.xlu1 %1421 }
 0x2e2   : > { %v1504_v53 = vrot.slane %v1422_v18, 7 }
 0x2e3   : > { %v4556_v54 = vsel %vm615_vm2, %v1505_v37, %v1506_v16 }
 0x2e4   : > { %v1541_v9 = vsel %vm615_vm2, %v1503_v56, %v1504_v53  ;;  %v1540_v13 = vsel %vm615_vm2, %v1504_v53, %v1505_v37 }
 0x2e5   : > { %v1569_v32 = vsel %vm646_vm3, %v1540_v13, 0.0 }
 0x2e6   : > { %1645 = vrot.lane.b32.xlu0 %v1541_v9, %s3477_s28  ;;  %1647 = vrot.lane.b32.xlu1 %v1569_v32, %s3477_s28  ;;  %v1511_v9 = vrot.slane %v1436_v34, 7 }
 0x2e8   : > { %v1432_v60 = vpop.permute.xlu0 %1431 }
 0x2e9   : > { %v1509_v22 = vrot.slane %v1432_v60, 7  ;;  %v1428_v0 = vpop.permute.xlu1 %1427  ;;  %v1442_v60 = vpop.permute.xlu2 %1441 }
 0x2ea   : > { %v1507_v18 = vrot.slane %v1428_v0, 7 }
 0x2eb   : > { %v4568_v1 = vsel %vm615_vm2, %v1508_v42, %v1509_v22 }
 0x2ec   : > { %v1538_v56 = vsel %vm615_vm2, %v1506_v16, %v1507_v18  ;;  %v1537_v37 = vsel %vm615_vm2, %v1507_v18, %v1508_v42 }
 0x2ed   : > { %v1571_v53 = vsel %vm646_vm3, %v1538_v56, 0.0  ;;  %v1514_v56 = vrot.slane %v1442_v60, 7 }
 0x2ee   : > { %1651 = vrot.lane.b32.xlu0 %v1571_v53, %s3477_s28  ;;  %1653 = vrot.lane.b32.xlu1 %v1537_v37, %s3477_s28 }
 0x2f0   : > { %v1438_v4 = vpop.permute.xlu0 %1437 }
 0x2f1   : > { %v1512_v13 = vrot.slane %v1438_v4, 7  ;;  %v1434_v32 = vpop.permute.xlu1 %1433 }
 0x2f2   : > { %v1510_v0 = vrot.slane %v1434_v32, 7 }
 0x2f3   : > { %v4580_v17 = vsel %vm615_vm2, %v1511_v9, %v1512_v13 }
 0x2f4   : > { %v1535_v16 = vsel %vm615_vm2, %v1509_v22, %v1510_v0  ;;  %v1534_v42 = vsel %vm615_vm2, %v1510_v0, %v1511_v9  ;;  %v1448_v22 = vpop.permute.xlu2 %1447 }
 0x2f5   : > { %v1575_v18 = vsel %vm646_vm3, %v1534_v42, 0.0  ;;  %v1517_v42 = vrot.slane %v1448_v22, 7 }
 0x2f6   : > { %1657 = vrot.lane.b32.xlu0 %v1535_v16, %s3477_s28  ;;  %1659 = vrot.lane.b32.xlu1 %v1575_v18, %s3477_s28 }
 0x2f8   : > { %v1444_v34 = vpop.permute.xlu0 %1443 }
 0x2f9   : > { %v1515_v37 = vrot.slane %v1444_v34, 7  ;;  %v1440_v53 = vpop.permute.xlu1 %1439 }
 0x2fa   : > { %v1513_v4 = vrot.slane %v1440_v53, 7 }
 0x2fb   : > { %v4592_v32 = vsel %vm615_vm2, %v1514_v56, %v1515_v37 }
 0x2fc   : > { %v1532_v9 = vsel %vm615_vm2, %v1512_v13, %v1513_v4  ;;  %v1531_v0 = vsel %vm615_vm2, %v1513_v4, %v1514_v56 }
 0x2fd   : > { %v1577_v16 = vsel %vm646_vm3, %v1532_v9, 0.0  ;;  %v1454_v9 = vpop.permute.xlu2 %1453 }
 0x2fe   : > { %1663 = vrot.lane.b32.xlu0 %v1577_v16, %s3477_s28  ;;  %1665 = vrot.lane.b32.xlu1 %v1531_v0, %s3477_s28  ;;  %v1520_v0 = vrot.slane %v1454_v9, 7 }
 0x300   : > { %v1450_v60 = vpop.permute.xlu0 %1449 }
 0x301   : > { %v1518_v18 = vrot.slane %v1450_v60, 7  ;;  %v1446_v34 = vpop.permute.xlu1 %1445 }
 0x302   : > { %v1516_v53 = vrot.slane %v1446_v34, 7 }
 0x303   : > { %v4604_v51 = vsel %vm615_vm2, %v1517_v42, %v1518_v18 }
 0x304   : > { %v1529_v13 = vsel %vm615_vm2, %v1515_v37, %v1516_v53  ;;  %v1528_v56 = vsel %vm615_vm2, %v1516_v53, %v1517_v42 }
 0x305   : > { %v1581_v4 = vsel %vm646_vm3, %v1528_v56, 0.0 }
 0x306   : > { %1669 = vrot.lane.b32.xlu0 %v1529_v13, %s3477_s28  ;;  %1671 = vrot.lane.b32.xlu1 %v1581_v4, %s3477_s28  ;;  %v6413_v4 = vrot.slane %v4499_v49, 7  ;;  %v1561_v49 = vsel %vm646_vm3, %v4520_v57, 0.0  ;;  %v1567_v57 = vsel %vm646_vm3, %v4544_v59, 0.0 }
 0x308   : > { %v1456_v22 = vpop.permute.xlu0 %1455 }
 0x309   : > { %v1521_v16 = vrot.slane %v1456_v22, 7  ;;  %v1452_v60 = vpop.permute.xlu1 %1451 }
 0x30a   : > { %v1519_v34 = vrot.slane %v1452_v60, 7 }
 0x30b   : > { %v1524_v2 = vsel %vm615_vm2, %v1520_v0, %v1521_v16 }
 0x30c   : > { %v1526_v37 = vsel %vm615_vm2, %v1518_v18, %v1519_v34  ;;  %v1525_v42 = vsel %vm615_vm2, %v1519_v34, %v1520_v0 }
 0x30d   : > { %v1583_v53 = vsel %vm646_vm3, %v1526_v37, 0.0 }
 0x30e   : > { %1675 = vrot.lane.b32.xlu0 %v1583_v53, %s3477_s28  ;;  %1677 = vrot.lane.b32.xlu1 %v1525_v42, %s3477_s28  ;;  %v1585_v42 = vsel %vm646_vm3, %v1524_v2, 0.0 }
 0x311   : > { %v1458_v13 = vpop.permute.xlu1 %1457 }
 0x312   : > { %v1522_v56 = vrot.slane %v1458_v13, 7 }
 0x314   : > { %v1554_v9 = vsel %vm615_vm2, %v1522_v56, %v6413_v4  ;;  %v1523_v18 = vsel %vm615_vm2, %v1521_v16, %v1522_v56  ;;  %v1573_v16 = vsel %vm646_vm3, %v4568_v1, 0.0  ;;  %v1579_v1 = vsel %vm646_vm3, %v4592_v32, 0.0 }
 0x315   : > { %v1555_v22 = vsel %vm646_vm3, %v1554_v9, 0.0 }
 0x316   : > { %1747 = vrot.lane.b32.xlu1 %v3617_v35, %s3482_s13  ;;  %1619 = vrot.lane.b32.xlu2 %v1555_v22, %s3477_s28 }
 0x317   : > { %1681 = vrot.lane.b32.xlu0 %v1523_v18, %s3477_s28 }
 0x31e   : > { %1753 = vrot.lane.b32.xlu1 %v3720_v3, %s3482_s13  ;;  %1625 = vrot.lane.b32.xlu2 %v4506_v58, %s3477_s28 }
 0x31f   : > { %1751 = vrot.lane.b32.xlu0 %v3663_v48, %s3482_s13 }
 0x326   : > { %1759 = vrot.lane.b32.xlu1 %v3873_v19, %s3482_s13  ;;  %1631 = vrot.lane.b32.xlu2 %v1561_v49, %s3477_s28 }
 0x327   : > { %1757 = vrot.lane.b32.xlu0 %v3788_v28, %s3482_s13 }
 0x32e   : > { %1765 = vrot.lane.b32.xlu1 %v3651_v45, %s3482_s13  ;;  %1637 = vrot.lane.b32.xlu2 %v4532_v55, %s3477_s28 }
 0x32f   : > { %1763 = vrot.lane.b32.xlu0 %v3619_v36, %s3482_s13 }
 0x336   : > { %1771 = vrot.lane.b32.xlu1 %v3786_v27, %s3482_s13  ;;  %1643 = vrot.lane.b32.xlu2 %v1567_v57, %s3477_s28 }
 0x337   : > { %1769 = vrot.lane.b32.xlu0 %v6385_v29, %s3482_s13  ;;  %v4664_v58 = vpop.permute.xlu0 %1621 }
 0x338   : > { %v4666_v0 = vpop.permute.xlu1 %1623 }
 0x339   : > { %6414 = vst [vmem:[#allocation88_spill] sm:$0xff] %v4666_v0 }
 0x33e   : > { %1777 = vrot.lane.b32.xlu1 %v3955_v50, %s3482_s13  ;;  %1649 = vrot.lane.b32.xlu2 %v4556_v54, %s3477_s28 }
 0x33f   : > { %1775 = vrot.lane.b32.xlu0 %v3877_v24, %s3482_s13 }
 0x340   : > { %v4674_v59 = vpop.permute.xlu0 %1627  ;;  %v4676_v55 = vpop.permute.xlu1 %1629 }
 0x341   : > { %6415 = vst [vmem:[#allocation89_spill] sm:$0xff] %v4674_v59 }
 0x342   : > { %6416 = vst [vmem:[#allocation90_spill] sm:$0xff] %v4676_v55 }
 0x346   : > { %1783 = vrot.lane.b32.xlu1 %v3706_v62, %s3482_s13  ;;  %1655 = vrot.lane.b32.xlu2 %v1573_v16, %s3477_s28 }
 0x347   : > { %1781 = vrot.lane.b32.xlu0 %v3653_v46, %s3482_s13 }
 0x348   : > { %v4690_v54 = vpop.permute.xlu0 %1633  ;;  %v4692_v60 = vpop.permute.xlu1 %1635 }
 0x349   : > { %6417 = vst [vmem:[#allocation91_spill] sm:$0xff] %v4690_v54 }
 0x34a   : > { %6418 = vst [vmem:[#allocation92_spill] sm:$0xff] %v4692_v60 }
 0x34e   : > { %1789 = vrot.lane.b32.xlu1 %v3856_v12, %s3482_s13  ;;  %1661 = vrot.lane.b32.xlu2 %v4580_v17, %s3477_s28 }
 0x34f   : > { %1787 = vrot.lane.b32.xlu0 %v3770_v21, %s3482_s13 }
 0x350   : > { %v4704_v17 = vpop.permute.xlu0 %1639  ;;  %v4706_v34 = vpop.permute.xlu1 %1641 }
 0x351   : > { %6419 = vst [vmem:[#allocation93_spill] sm:$0xff] %v4704_v17 }
 0x352   : > { %6420 = vst [vmem:[#allocation94_spill] sm:$0xff] %v4706_v34 }
 0x356   : > { %1795 = vrot.lane.b32.xlu1 %v3640_v43, %s3482_s13  ;;  %1667 = vrot.lane.b32.xlu2 %v1579_v1, %s3477_s28 }
 0x357   : > { %1793 = vrot.lane.b32.xlu0 %v6397_v23, %s3482_s13 }
 0x358   : > { %v4714_v32 = vpop.permute.xlu0 %1645  ;;  %v4716_v37 = vpop.permute.xlu1 %1647 }
 0x359   : > { %6421 = vst [vmem:[#allocation95_spill] sm:$0xff] %v4714_v32 }
 0x35a   : > { %6422 = vst [vmem:[#allocation96_spill] sm:$0xff] %v4716_v37 }
 0x35e   : > { %1801 = vrot.lane.b32.xlu1 %v3768_v20, %s3482_s13  ;;  %1673 = vrot.lane.b32.xlu2 %v4604_v51, %s3477_s28 }
 0x35f   : > { %1799 = vrot.lane.b32.xlu0 %v3708_v63, %s3482_s13 }
 0x360   : > { %v4725_v53 = vpop.permute.xlu0 %1651  ;;  %v4727_v51 = vpop.permute.xlu1 %1653 }
 0x361   : > { %6423 = vst [vmem:[#allocation97_spill] sm:$0xff] %v4725_v53 }
 0x362   : > { %6424 = vst [vmem:[#allocation98_spill] sm:$0xff] %v4727_v51 }
 0x366   : > { %1807 = vrot.lane.b32.xlu1 %v3953_v8, %s3482_s13  ;;  %1679 = vrot.lane.b32.xlu2 %v1585_v42, %s3477_s28 }
 0x367   : > { %1805 = vrot.lane.b32.xlu0 %v3860_v14, %s3482_s13 }
 0x368   : > { %v4735_v2 = vpop.permute.xlu0 %1657  ;;  %v4737_v56 = vpop.permute.xlu1 %1659 }
 0x369   : > { %6425 = vst [vmem:[#allocation99_spill] sm:$0xff] %v4735_v2 }
 0x36a   : > { %6426 = vst [vmem:[#allocation100_spill] sm:$0xff] %v4737_v56 }
 0x36e   : > { %1749 = vrot.lane.b32.xlu2 %v3629_v39, %s3482_s13 }
 0x370   : > { %v4731_v13 = vpop.permute.xlu2 %1619  ;;  %v4745_v18 = vpop.permute.xlu0 %1663 }
 0x371   : > { %6429 = vst [vmem:[#allocation103_spill] sm:$0xff] %v4745_v18  ;;  %v4747_v22 = vpop.permute.xlu1 %1665 }
 0x372   : > { %6430 = vst [vmem:[#allocation104_spill] sm:$0xff] %v4747_v22 }
 0x376   : > { %1755 = vrot.lane.b32.xlu2 %v3743_v10, %s3482_s13 }
 0x378   : > { %v4739_v4 = vpop.permute.xlu2 %1625  ;;  %v4753_v57 = vpop.permute.xlu0 %1669 }
 0x379   : > { %6427 = vst [vmem:[#allocation101_spill] sm:$0xff] %v4739_v4  ;;  %v4755_v16 = vpop.permute.xlu1 %1671 }
 0x37a   : > { %6432 = vst [vmem:[#allocation106_spill] sm:$0xff] %v4753_v57 }
 0x37b   : > { %6433 = vst [vmem:[#allocation107_spill] sm:$0xff] %v4755_v16 }
 0x37e   : > { %1761 = vrot.lane.b32.xlu2 %v3892_v52, %s3482_s13 }
 0x380   : > { %v4743_v9 = vpop.permute.xlu2 %1631  ;;  %v4761_v42 = vpop.permute.xlu0 %1675 }
 0x381   : > { %6428 = vst [vmem:[#allocation102_spill] sm:$0xff] %v4743_v9  ;;  %v4763_v56 = vpop.permute.xlu1 %1677 }
 0x382   : > { %6435 = vst [vmem:[#allocation109_spill] sm:$0xff] %v4761_v42 }
 0x383   : > { %6436 = vst [vmem:[#allocation110_spill] sm:$0xff] %v4763_v56 }
 0x386   : > { %1767 = vrot.lane.b32.xlu2 %v6384_v6, %s3482_s13 }
 0x388   : > { %v4751_v49 = vpop.permute.xlu2 %1637 }
 0x389   : > { %6431 = vst [vmem:[#allocation105_spill] sm:$0xff] %v4751_v49  ;;  %v4771_v57 = vpop.permute.xlu0 %1681  ;;  %v4773_v16 = vpop.permute.xlu1 %1747 }
 0x38a   : > { %6438 = vst [vmem:[#allocation112_spill] sm:$0xff] %v4771_v57 }
 0x38e   : > { %1773 = vrot.lane.b32.xlu2 %v3817_v44, %s3482_s13 }
 0x390   : > { %v4759_v1 = vpop.permute.xlu2 %1643 }
 0x391   : > { %6434 = vst [vmem:[#allocation108_spill] sm:$0xff] %v4759_v1  ;;  %v1752_v56 = vpop.permute.xlu0 %1751  ;;  %v1754_v2 = vpop.permute.xlu1 %1753 }
 0x392   : > { %v1845_v1 = vrot.slane %v1752_v56, 1  ;;  %v1846_v32 = vrot.slane %v1754_v2, 1 }
 0x394   : > { %v1903_v34 = vsel %vm1175_vm4, %v1845_v1, %v1846_v32 }
 0x396   : > { %1779 = vrot.lane.b32.xlu2 %v3625_v38, %s3482_s13 }
 0x398   : > { %v4767_v22 = vpop.permute.xlu2 %1649 }
 0x399   : > { %6437 = vst [vmem:[#allocation111_spill] sm:$0xff] %v4767_v22  ;;  %v1758_v22 = vpop.permute.xlu0 %1757  ;;  %v1760_v53 = vpop.permute.xlu1 %1759 }
 0x39a   : > { %v1849_v49 = vrot.slane %v1760_v53, 1 }
 0x39e   : > { %1785 = vrot.lane.b32.xlu2 %v3729_v5, %s3482_s13 }
 0x3a0   : > { %v4775_v18 = vpop.permute.xlu2 %1655 }
 0x3a1   : > { %6439 = vst [vmem:[#allocation113_spill] sm:$0xff] %v4775_v18  ;;  %v1764_v18 = vpop.permute.xlu0 %1763  ;;  %v1766_v37 = vpop.permute.xlu1 %1765 }
 0x3a6   : > { %1791 = vrot.lane.b32.xlu2 %v6396_v11, %s3482_s13 }
 0x3a8   : > { %v4779_v42 = vpop.permute.xlu2 %1661 }
 0x3a9   : > { %6440 = vst [vmem:[#allocation114_spill] sm:$0xff] %v4779_v42  ;;  %v1770_v17 = vpop.permute.xlu0 %1769  ;;  %v1772_v60 = vpop.permute.xlu1 %1771 }
 0x3ae   : > { %1797 = vrot.lane.b32.xlu2 %v3661_v47, %s3482_s13 }
 0x3b0   : > { %v4783_v51 = vpop.permute.xlu2 %1667 }
 0x3b1   : > { %6441 = vst [vmem:[#allocation115_spill] sm:$0xff] %v4783_v51  ;;  %v1848_v51 = vrot.slane %v1758_v22, 1  ;;  %v1851_v22 = vrot.slane %v1764_v18, 1  ;;  %v1776_v59 = vpop.permute.xlu0 %1775  ;;  %v1855_v18 = vrot.slane %v1772_v60, 1 }
 0x3b3   : > { %v1900_v55 = vsel %vm1175_vm4, %v1848_v51, %v1849_v49 }
 0x3b4   : > { %v1912_v53 = vsel %vm1207_vm5, %v1900_v55, 0.0 }
 0x3b6   : > { %1803 = vrot.lane.b32.xlu2 %v3797_v30, %s3482_s13 }
 0x3b8   : > { %v4787_v57 = vpop.permute.xlu2 %1673 }
 0x3b9   : > { %6442 = vst [vmem:[#allocation116_spill] sm:$0xff] %v4787_v57  ;;  %v6311_v57 = vrot.slane %v4773_v16, 1 }
 0x3be   : > { %1809 = vrot.lane.b32.xlu2 %v6406_v41, %s3482_s13 }
 0x3c0   : > { %v4791_v42 = vpop.permute.xlu2 %1679 }
 0x3c1   : > { %6443 = vst [vmem:[#allocation117_spill] sm:$0xff] %v4791_v42  ;;  %v1852_v42 = vrot.slane %v1766_v37, 1  ;;  %v1854_v37 = vrot.slane %v1770_v17, 1 }
 0x3c3   : > { %v1897_v55 = vsel %vm1175_vm4, %v1851_v22, %v1852_v42 }
 0x3c6   : > { %1975 = vrot.lane.b32.xlu2 %v1903_v34, %s3477_s28 }
 0x3c8   : > { %v1750_v9 = vpop.permute.xlu2 %1749 }
 0x3c9   : > { %v1844_v54 = vrot.slane %v1750_v9, 1 }
 0x3cb   : > { %v1905_v2 = vsel %vm1175_vm4, %v6311_v57, %v1844_v54  ;;  %v1904_v56 = vsel %vm1175_vm4, %v1844_v54, %v1845_v1  ;;  %v1778_v57 = vpop.permute.xlu1 %1777 }
 0x3cc   : > { %1971 = vrot.lane.b32.xlu0 %v1905_v2, %s3477_s28  ;;  %v1908_v34 = vsel %vm1207_vm5, %v1904_v56, 0.0 }
 0x3cd   : > { %1973 = vrot.lane.b32.xlu1 %v1908_v34, %s3477_s28 }
 0x3ce   : > { %1981 = vrot.lane.b32.xlu2 %v1912_v53, %s3477_s28 }
 0x3d0   : > { %v1756_v9 = vpop.permute.xlu2 %1755 }
 0x3d1   : > { %v1847_v4 = vrot.slane %v1756_v9, 1 }
 0x3d3   : > { %v1901_v54 = vsel %vm1175_vm4, %v1847_v4, %v1848_v51  ;;  %v1902_v1 = vsel %vm1175_vm4, %v1846_v32, %v1847_v4  ;;  %v1894_v51 = vsel %vm1175_vm4, %v1854_v37, %v1855_v18  ;;  %v1782_v32 = vpop.permute.xlu0 %1781  ;;  %v1784_v4 = vpop.permute.xlu1 %1783 }
 0x3d4   : > { %v1910_v2 = vsel %vm1207_vm5, %v1902_v1, 0.0  ;;  %v1918_v60 = vsel %vm1207_vm5, %v1894_v51, 0.0  ;;  %v1857_v1 = vrot.slane %v1776_v59, 1  ;;  %v1861_v51 = vrot.slane %v1784_v4, 1 }
 0x3d5   : > { %1979 = vrot.lane.b32.xlu1 %v1901_v54, %s3477_s28  ;;  %1977 = vrot.lane.b32.xlu0 %v1910_v2, %s3477_s28  ;;  %v1858_v2 = vrot.slane %v1778_v57, 1  ;;  %v1860_v57 = vrot.slane %v1782_v32, 1 }
 0x3d6   : > { %1987 = vrot.lane.b32.xlu2 %v1897_v55, %s3477_s28 }
 0x3d7   : > { %v1891_v59 = vsel %vm1175_vm4, %v1857_v1, %v1858_v2 }
 0x3d8   : > { %v1762_v56 = vpop.permute.xlu2 %1761 }
 0x3d9   : > { %v1850_v34 = vrot.slane %v1762_v56, 1 }
 0x3db   : > { %v1898_v53 = vsel %vm1175_vm4, %v1850_v34, %v1851_v22  ;;  %v1899_v9 = vsel %vm1175_vm4, %v1849_v49, %v1850_v34  ;;  %v1788_v34 = vpop.permute.xlu0 %1787 }
 0x3dc   : > { %v1914_v54 = vsel %vm1207_vm5, %v1898_v53, 0.0  ;;  %v1790_v53 = vpop.permute.xlu1 %1789 }
 0x3dd   : > { %1985 = vrot.lane.b32.xlu1 %v1914_v54, %s3477_s28  ;;  %1983 = vrot.lane.b32.xlu0 %v1899_v9, %s3477_s28 }
 0x3de   : > { %1993 = vrot.lane.b32.xlu2 %v1918_v60, %s3477_s28 }
 0x3e0   : > { %v1768_v17 = vpop.permute.xlu2 %1767 }
 0x3e1   : > { %v1853_v55 = vrot.slane %v1768_v17, 1 }
 0x3e3   : > { %v1895_v22 = vsel %vm1175_vm4, %v1853_v55, %v1854_v37  ;;  %v1896_v49 = vsel %vm1175_vm4, %v1852_v42, %v1853_v55  ;;  %v1888_v42 = vsel %vm1175_vm4, %v1860_v57, %v1861_v51  ;;  %v1794_v4 = vpop.permute.xlu0 %1793 }
 0x3e4   : > { %v1916_v56 = vsel %vm1207_vm5, %v1896_v49, 0.0  ;;  %v1924_v32 = vsel %vm1207_vm5, %v1888_v42, 0.0  ;;  %v1796_v55 = vpop.permute.xlu1 %1795  ;;  %v1863_v49 = vrot.slane %v1788_v34, 1  ;;  %v1866_v42 = vrot.slane %v1794_v4, 1 }
 0x3e5   : > { %1991 = vrot.lane.b32.xlu1 %v1895_v22, %s3477_s28  ;;  %1989 = vrot.lane.b32.xlu0 %v1916_v56, %s3477_s28  ;;  %v1867_v34 = vrot.slane %v1796_v55, 1 }
 0x3e6   : > { %1999 = vrot.lane.b32.xlu2 %v1891_v59, %s3477_s28 }
 0x3e8   : > { %v1774_v37 = vpop.permute.xlu2 %1773 }
 0x3e9   : > { %v1856_v9 = vrot.slane %v1774_v37, 1 }
 0x3eb   : > { %v1892_v54 = vsel %vm1175_vm4, %v1856_v9, %v1857_v1  ;;  %v1893_v60 = vsel %vm1175_vm4, %v1855_v18, %v1856_v9  ;;  %v1864_v1 = vrot.slane %v1790_v53, 1 }
 0x3ec   : > { %v1920_v17 = vsel %vm1207_vm5, %v1892_v54, 0.0  ;;  %v1800_v54 = vpop.permute.xlu0 %1799 }
 0x3ed   : > { %1997 = vrot.lane.b32.xlu1 %v1920_v17, %s3477_s28  ;;  %1995 = vrot.lane.b32.xlu0 %v1893_v60, %s3477_s28  ;;  %v1885_v9 = vsel %vm1175_vm4, %v1863_v49, %v1864_v1 }
 0x3ee   : > { %2005 = vrot.lane.b32.xlu2 %v1924_v32, %s3477_s28 }
 0x3f0   : > { %v1780_v22 = vpop.permute.xlu2 %1779 }
 0x3f1   : > { %v1859_v56 = vrot.slane %v1780_v22, 1 }
 0x3f3   : > { %v1889_v18 = vsel %vm1175_vm4, %v1859_v56, %v1860_v57  ;;  %v1890_v59 = vsel %vm1175_vm4, %v1858_v2, %v1859_v56  ;;  %v1802_v57 = vpop.permute.xlu1 %1801  ;;  %v1882_v2 = vsel %vm1175_vm4, %v1866_v42, %v1867_v34  ;;  %v1869_v56 = vrot.slane %v1800_v54, 1 }
 0x3f4   : > { %v1922_v37 = vsel %vm1207_vm5, %v1890_v59, 0.0  ;;  %v1930_v4 = vsel %vm1207_vm5, %v1882_v2, 0.0 }
 0x3f5   : > { %2003 = vrot.lane.b32.xlu1 %v1889_v18, %s3477_s28  ;;  %2001 = vrot.lane.b32.xlu0 %v1922_v37, %s3477_s28  ;;  %v1870_v18 = vrot.slane %v1802_v57, 1 }
 0x3f6   : > { %2011 = vrot.lane.b32.xlu2 %v1885_v9, %s3477_s28 }
 0x3f7   : > { %v1879_v54 = vsel %vm1175_vm4, %v1869_v56, %v1870_v18 }
 0x3f8   : > { %v1786_v53 = vpop.permute.xlu2 %1785 }
 0x3f9   : > { %v1862_v60 = vrot.slane %v1786_v53, 1 }
 0x3fb   : > { %v1886_v17 = vsel %vm1175_vm4, %v1862_v60, %v1863_v49  ;;  %v1887_v32 = vsel %vm1175_vm4, %v1861_v51, %v1862_v60  ;;  %v1806_v49 = vpop.permute.xlu0 %1805  ;;  %v1808_v37 = vpop.permute.xlu1 %1807 }
 0x3fc   : > { %v1926_v22 = vsel %vm1207_vm5, %v1886_v17, 0.0  ;;  %v1872_v57 = vrot.slane %v1806_v49, 1  ;;  %v1873_v60 = vrot.slane %v1808_v37, 1 }
 0x3fd   : > { %2009 = vrot.lane.b32.xlu1 %v1926_v22, %s3477_s28  ;;  %2007 = vrot.lane.b32.xlu0 %v1887_v32, %s3477_s28 }
 0x3fe   : > { %2017 = vrot.lane.b32.xlu2 %v1930_v4, %s3477_s28 }
 0x400   : > { %v1792_v55 = vpop.permute.xlu2 %1791 }
 0x401   : > { %v1865_v59 = vrot.slane %v1792_v55, 1 }
 0x403   : > { %v1883_v51 = vsel %vm1175_vm4, %v1865_v59, %v1866_v42  ;;  %v1884_v9 = vsel %vm1175_vm4, %v1864_v1, %v1865_v59  ;;  %v1876_v42 = vsel %vm1175_vm4, %v1872_v57, %v1873_v60 }
 0x404   : > { %v1928_v53 = vsel %vm1207_vm5, %v1884_v9, 0.0  ;;  %v1936_v4 = vsel %vm1207_vm5, %v1876_v42, 0.0  ;;  %v6444_v9 = vrot.slane %v4773_v16, 1 }
 0x405   : > { %2015 = vrot.lane.b32.xlu1 %v1883_v51, %s3477_s28  ;;  %2013 = vrot.lane.b32.xlu0 %v1928_v53, %s3477_s28 }
 0x406   : > { %2023 = vrot.lane.b32.xlu2 %v1879_v54, %s3477_s28 }
 0x408   : > { %v1798_v2 = vpop.permute.xlu2 %1797 }
 0x409   : > { %v1868_v17 = vrot.slane %v1798_v2, 1 }
 0x40b   : > { %v1880_v1 = vsel %vm1175_vm4, %v1868_v17, %v1869_v56  ;;  %v1881_v32 = vsel %vm1175_vm4, %v1867_v34, %v1868_v17 }
 0x40c   : > { %v1932_v22 = vsel %vm1207_vm5, %v1880_v1, 0.0 }
 0x40d   : > { %2021 = vrot.lane.b32.xlu1 %v1932_v22, %s3477_s28  ;;  %2019 = vrot.lane.b32.xlu0 %v1881_v32, %s3477_s28 }
 0x40e   : > { %2029 = vrot.lane.b32.xlu2 %v1936_v4, %s3477_s28 }
 0x410   : > { %v1804_v55 = vpop.permute.xlu2 %1803 }
 0x411   : > { %v1871_v59 = vrot.slane %v1804_v55, 1 }
 0x413   : > { %v1877_v56 = vsel %vm1175_vm4, %v1871_v59, %v1872_v57  ;;  %v1878_v34 = vsel %vm1175_vm4, %v1870_v18, %v1871_v59 }
 0x414   : > { %v1934_v49 = vsel %vm1207_vm5, %v1878_v34, 0.0 }
 0x415   : > { %2027 = vrot.lane.b32.xlu1 %v1877_v56, %s3477_s28  ;;  %2025 = vrot.lane.b32.xlu0 %v1934_v49, %s3477_s28 }
 0x416   : > { %2099 = vrot.lane.b32.xlu2 %v3629_v39, %s3483_s14 }
 0x418   : > { %v1810_v37 = vpop.permute.xlu2 %1809 }
 0x419   : > { %v1874_v51 = vrot.slane %v1810_v37, 1 }
 0x41b   : > { %v1906_v53 = vsel %vm1175_vm4, %v1874_v51, %v6444_v9  ;;  %v1875_v18 = vsel %vm1175_vm4, %v1873_v60, %v1874_v51 }
 0x41c   : > { %v1938_v54 = vsel %vm1207_vm5, %v1906_v53, 0.0 }
 0x41d   : > { %2033 = vrot.lane.b32.xlu1 %v1938_v54, %s3477_s28  ;;  %2031 = vrot.lane.b32.xlu0 %v1875_v18, %s3477_s28 }
 0x41e   : > { %2105 = vrot.lane.b32.xlu2 %v3743_v10, %s3483_s14 }
 0x420   : > { %v4930_v57 = vpop.permute.xlu2 %1975 }
 0x421   : > { %6445 = vst [vmem:[#allocation118_spill] sm:$0xff] %v4930_v57 }
 0x425   : > { %2103 = vrot.lane.b32.xlu1 %v3720_v3, %s3483_s14  ;;  %2101 = vrot.lane.b32.xlu0 %v3663_v48, %s3483_s14 }
 0x426   : > { %2111 = vrot.lane.b32.xlu2 %v3892_v52, %s3483_s14 }
 0x428   : > { %v4938_v16 = vpop.permute.xlu2 %1981 }
 0x429   : > { %6446 = vst [vmem:[#allocation119_spill] sm:$0xff] %v4938_v16 }
 0x42d   : > { %2109 = vrot.lane.b32.xlu1 %v3873_v19, %s3483_s14  ;;  %2107 = vrot.lane.b32.xlu0 %v3788_v28, %s3483_s14 }
 0x42e   : > { %2117 = vrot.lane.b32.xlu2 %v6384_v6, %s3483_s14 }
 0x430   : > { %v4946_v60 = vpop.permute.xlu2 %1987 }
 0x431   : > { %6447 = vst [vmem:[#allocation120_spill] sm:$0xff] %v4946_v60 }
 0x435   : > { %2115 = vrot.lane.b32.xlu1 %v3651_v45, %s3483_s14  ;;  %2113 = vrot.lane.b32.xlu0 %v3619_v36, %s3483_s14 }
 0x436   : > { %2123 = vrot.lane.b32.xlu2 %v3817_v44, %s3483_s14 }
 0x438   : > { %v4954_v2 = vpop.permute.xlu2 %1993 }
 0x439   : > { %6448 = vst [vmem:[#allocation121_spill] sm:$0xff] %v4954_v2 }
 0x43d   : > { %2121 = vrot.lane.b32.xlu1 %v3786_v27, %s3483_s14  ;;  %2119 = vrot.lane.b32.xlu0 %v6385_v29, %s3483_s14 }
 0x43e   : > { %v4960_v17 = vpop.permute.xlu0 %1971  ;;  %2129 = vrot.lane.b32.xlu2 %v3625_v38, %s3483_s14 }
 0x43f   : > { %v4964_v42 = vpop.permute.xlu1 %1973 }
 0x440   : > { %v4966_v1 = vpop.permute.xlu2 %1999 }
 0x441   : > { %6449 = vst [vmem:[#allocation122_spill] sm:$0xff] %v4966_v1 }
 0x445   : > { %2127 = vrot.lane.b32.xlu1 %v3955_v50, %s3483_s14  ;;  %2125 = vrot.lane.b32.xlu0 %v3877_v24, %s3483_s14 }
 0x446   : > { %2135 = vrot.lane.b32.xlu2 %v3729_v5, %s3483_s14 }
 0x447   : > { %v4974_v32 = vpop.permute.xlu0 %1977  ;;  %v4976_v22 = vpop.permute.xlu1 %1979 }
 0x448   : > { %6450 = vst [vmem:[#allocation123_spill] sm:$0xff] %v4974_v32  ;;  %v4978_v4 = vpop.permute.xlu2 %2005 }
 0x449   : > { %6451 = vst [vmem:[#allocation124_spill] sm:$0xff] %v4976_v22 }
 0x44a   : > { %6452 = vst [vmem:[#allocation125_spill] sm:$0xff] %v4978_v4 }
 0x44d   : > { %2133 = vrot.lane.b32.xlu1 %v3706_v62, %s3483_s14  ;;  %2131 = vrot.lane.b32.xlu0 %v3653_v46, %s3483_s14 }
 0x44e   : > { %2141 = vrot.lane.b32.xlu2 %v6396_v11, %s3483_s14 }
 0x44f   : > { %v4986_v55 = vpop.permute.xlu0 %1983  ;;  %v4988_v59 = vpop.permute.xlu1 %1985 }
 0x450   : > { %6453 = vst [vmem:[#allocation126_spill] sm:$0xff] %v4986_v55  ;;  %v4990_v56 = vpop.permute.xlu2 %2011 }
 0x451   : > { %6454 = vst [vmem:[#allocation127_spill] sm:$0xff] %v4988_v59 }
 0x452   : > { %6455 = vst [vmem:[#allocation128_spill] sm:$0xff] %v4990_v56 }
 0x455   : > { %2139 = vrot.lane.b32.xlu1 %v3856_v12, %s3483_s14  ;;  %2137 = vrot.lane.b32.xlu0 %v3770_v21, %s3483_s14 }
 0x456   : > { %2147 = vrot.lane.b32.xlu2 %v3661_v47, %s3483_s14 }
 0x457   : > { %v4998_v34 = vpop.permute.xlu0 %1989  ;;  %v5000_v49 = vpop.permute.xlu1 %1991 }
 0x458   : > { %6456 = vst [vmem:[#allocation129_spill] sm:$0xff] %v4998_v34  ;;  %v5002_v37 = vpop.permute.xlu2 %2017 }
 0x459   : > { %6457 = vst [vmem:[#allocation130_spill] sm:$0xff] %v5000_v49 }
 0x45a   : > { %6458 = vst [vmem:[#allocation131_spill] sm:$0xff] %v5002_v37 }
 0x45d   : > { %2145 = vrot.lane.b32.xlu1 %v3640_v43, %s3483_s14  ;;  %2143 = vrot.lane.b32.xlu0 %v6397_v23, %s3483_s14 }
 0x45e   : > { %2153 = vrot.lane.b32.xlu2 %v3797_v30, %s3483_s14 }
 0x45f   : > { %v5010_v51 = vpop.permute.xlu0 %1995  ;;  %v5012_v9 = vpop.permute.xlu1 %1997 }
 0x460   : > { %6459 = vst [vmem:[#allocation132_spill] sm:$0xff] %v5010_v51  ;;  %v5014_v53 = vpop.permute.xlu2 %2023 }
 0x461   : > { %6460 = vst [vmem:[#allocation133_spill] sm:$0xff] %v5012_v9 }
 0x462   : > { %6461 = vst [vmem:[#allocation134_spill] sm:$0xff] %v5014_v53 }
 0x465   : > { %2151 = vrot.lane.b32.xlu1 %v3768_v20, %s3483_s14  ;;  %2149 = vrot.lane.b32.xlu0 %v3708_v63, %s3483_s14 }
 0x466   : > { %2159 = vrot.lane.b32.xlu2 %v6406_v41, %s3483_s14 }
 0x467   : > { %v5022_v18 = vpop.permute.xlu0 %2001  ;;  %v5024_v54 = vpop.permute.xlu1 %2003 }
 0x468   : > { %6462 = vst [vmem:[#allocation135_spill] sm:$0xff] %v5022_v18  ;;  %v5030_v53 = vpop.permute.xlu2 %2029 }
 0x469   : > { %6463 = vst [vmem:[#allocation136_spill] sm:$0xff] %v5024_v54 }
 0x46a   : > { %6464 = vst [vmem:[#allocation137_spill] sm:$0xff] %v5030_v53 }
 0x46d   : > { %2157 = vrot.lane.b32.xlu1 %v3953_v8, %s3483_s14  ;;  %2155 = vrot.lane.b32.xlu0 %v3860_v14, %s3483_s14 }
 0x46f   : > { %v5032_v37 = vpop.permute.xlu0 %2007  ;;  %v5034_v56 = vpop.permute.xlu1 %2009 }
 0x470   : > { %6465 = vst [vmem:[#allocation138_spill] sm:$0xff] %v5032_v37  ;;  %v2100_v9 = vpop.permute.xlu2 %2099 }
 0x471   : > { %6466 = vst [vmem:[#allocation139_spill] sm:$0xff] %v5034_v56  ;;  %v2192_v59 = vrot.slane %v2100_v9, 7 }
 0x477   : > { %v5036_v4 = vpop.permute.xlu0 %2013  ;;  %v5038_v1 = vpop.permute.xlu1 %2015 }
 0x478   : > { %6467 = vst [vmem:[#allocation140_spill] sm:$0xff] %v5036_v4  ;;  %v2106_v51 = vpop.permute.xlu2 %2105 }
 0x479   : > { %6468 = vst [vmem:[#allocation141_spill] sm:$0xff] %v5038_v1  ;;  %v2195_v1 = vrot.slane %v2106_v51, 7 }
 0x47f   : > { %v5040_v18 = vpop.permute.xlu0 %2019  ;;  %v5042_v54 = vpop.permute.xlu1 %2021 }
 0x480   : > { %6469 = vst [vmem:[#allocation142_spill] sm:$0xff] %v5040_v18  ;;  %v2112_v34 = vpop.permute.xlu2 %2111 }
 0x481   : > { %6470 = vst [vmem:[#allocation143_spill] sm:$0xff] %v5042_v54  ;;  %v2198_v51 = vrot.slane %v2112_v34, 7 }
 0x487   : > { %v5044_v2 = vpop.permute.xlu0 %2025  ;;  %v5046_v49 = vpop.permute.xlu1 %2027 }
 0x488   : > { %6471 = vst [vmem:[#allocation144_spill] sm:$0xff] %v5044_v2  ;;  %v2118_v56 = vpop.permute.xlu2 %2117 }
 0x489   : > { %6472 = vst [vmem:[#allocation145_spill] sm:$0xff] %v5046_v49 }
 0x48f   : > { %v5048_v53 = vpop.permute.xlu0 %2031  ;;  %v5050_v37 = vpop.permute.xlu1 %2033 }
 0x490   : > { %6473 = vst [vmem:[#allocation146_spill] sm:$0xff] %v5048_v53  ;;  %v2124_v53 = vpop.permute.xlu2 %2123 }
 0x491   : > { %6474 = vst [vmem:[#allocation147_spill] sm:$0xff] %v5050_v37 }
 0x497   : > { %v2102_v60 = vpop.permute.xlu0 %2101  ;;  %v2104_v4 = vpop.permute.xlu1 %2103 }
 0x498   : > { %v2193_v55 = vrot.slane %v2102_v60, 7  ;;  %v2194_v16 = vrot.slane %v2104_v4, 7 }
 0x49a   : > { %v2251_v54 = vsel %vm615_vm2, %v2193_v55, %v2194_v16  ;;  %v2252_v2 = vsel %vm615_vm2, %v2192_v59, %v2193_v55  ;;  %v2250_v49 = vsel %vm615_vm2, %v2194_v16, %v2195_v1 }
 0x49b   : > { %2315 = vrot.lane.b32.xlu1 %v2251_v54, %s3477_s28  ;;  %v2253_v37 = vsel %vm646_vm3, %v2252_v2, 0.0  ;;  %v2255_v9 = vsel %vm646_vm3, %v2250_v49, 0.0 }
 0x49c   : > { %2313 = vrot.lane.b32.xlu0 %v2253_v37, %s3477_s28  ;;  %2317 = vrot.lane.b32.xlu2 %v2255_v9, %s3477_s28  ;;  %v2201_v9 = vrot.slane %v2118_v56, 7 }
 0x49f   : > { %v2108_v60 = vpop.permute.xlu0 %2107  ;;  %v2110_v4 = vpop.permute.xlu1 %2109 }
 0x4a0   : > { %v2196_v55 = vrot.slane %v2108_v60, 7  ;;  %v2197_v59 = vrot.slane %v2110_v4, 7  ;;  %v2130_v4 = vpop.permute.xlu2 %2129 }
 0x4a2   : > { %v2249_v16 = vsel %vm615_vm2, %v2195_v1, %v2196_v55  ;;  %v2248_v54 = vsel %vm615_vm2, %v2196_v55, %v2197_v59  ;;  %v2247_v2 = vsel %vm615_vm2, %v2197_v59, %v2198_v51 }
 0x4a3   : > { %v2257_v49 = vsel %vm646_vm3, %v2248_v54, 0.0 }
 0x4a4   : > { %2319 = vrot.lane.b32.xlu0 %v2249_v16, %s3477_s28  ;;  %2321 = vrot.lane.b32.xlu1 %v2257_v49, %s3477_s28  ;;  %v2204_v49 = vrot.slane %v2124_v53, 7 }
 0x4a5   : > { %2323 = vrot.lane.b32.xlu2 %v2247_v2, %s3477_s28 }
 0x4a7   : > { %v2114_v34 = vpop.permute.xlu0 %2113  ;;  %v2116_v37 = vpop.permute.xlu1 %2115 }
 0x4a8   : > { %v2199_v60 = vrot.slane %v2114_v34, 7  ;;  %v2200_v1 = vrot.slane %v2116_v37, 7 }
 0x4aa   : > { %v2246_v55 = vsel %vm615_vm2, %v2198_v51, %v2199_v60  ;;  %v2245_v59 = vsel %vm615_vm2, %v2199_v60, %v2200_v1  ;;  %v2244_v54 = vsel %vm615_vm2, %v2200_v1, %v2201_v9 }
 0x4ab   : > { %v2259_v16 = vsel %vm646_vm3, %v2246_v55, 0.0  ;;  %v2261_v2 = vsel %vm646_vm3, %v2244_v54, 0.0 }
 0x4ac   : > { %2325 = vrot.lane.b32.xlu0 %v2259_v16, %s3477_s28  ;;  %2327 = vrot.lane.b32.xlu1 %v2245_v59, %s3477_s28  ;;  %v2136_v59 = vpop.permute.xlu2 %2135 }
 0x4ad   : > { %2329 = vrot.lane.b32.xlu2 %v2261_v2, %s3477_s28  ;;  %v2207_v2 = vrot.slane %v2130_v4, 7 }
 0x4af   : > { %v2120_v56 = vpop.permute.xlu0 %2119  ;;  %v2122_v51 = vpop.permute.xlu1 %2121 }
 0x4b0   : > { %v2202_v34 = vrot.slane %v2120_v56, 7  ;;  %v2203_v37 = vrot.slane %v2122_v51, 7 }
 0x4b2   : > { %v2243_v60 = vsel %vm615_vm2, %v2201_v9, %v2202_v34  ;;  %v2242_v1 = vsel %vm615_vm2, %v2202_v34, %v2203_v37  ;;  %v2241_v55 = vsel %vm615_vm2, %v2203_v37, %v2204_v49 }
 0x4b3   : > { %v2263_v54 = vsel %vm646_vm3, %v2242_v1, 0.0 }
 0x4b4   : > { %2331 = vrot.lane.b32.xlu0 %v2243_v60, %s3477_s28  ;;  %2333 = vrot.lane.b32.xlu1 %v2263_v54, %s3477_s28  ;;  %v2142_v4 = vpop.permute.xlu2 %2141  ;;  %v2210_v54 = vrot.slane %v2136_v59, 7 }
 0x4b5   : > { %2335 = vrot.lane.b32.xlu2 %v2241_v55, %s3477_s28 }
 0x4b7   : > { %v2126_v53 = vpop.permute.xlu0 %2125  ;;  %v2128_v16 = vpop.permute.xlu1 %2127 }
 0x4b8   : > { %v2205_v9 = vrot.slane %v2126_v53, 7  ;;  %v2206_v56 = vrot.slane %v2128_v16, 7 }
 0x4ba   : > { %v2240_v51 = vsel %vm615_vm2, %v2204_v49, %v2205_v9  ;;  %v2239_v34 = vsel %vm615_vm2, %v2205_v9, %v2206_v56  ;;  %v2238_v37 = vsel %vm615_vm2, %v2206_v56, %v2207_v2 }
 0x4bb   : > { %v2265_v60 = vsel %vm646_vm3, %v2240_v51, 0.0  ;;  %v2267_v1 = vsel %vm646_vm3, %v2238_v37, 0.0 }
 0x4bc   : > { %2337 = vrot.lane.b32.xlu0 %v2265_v60, %s3477_s28  ;;  %2339 = vrot.lane.b32.xlu1 %v2239_v34, %s3477_s28  ;;  %v2213_v60 = vrot.slane %v2142_v4, 7 }
 0x4bd   : > { %2341 = vrot.lane.b32.xlu2 %v2267_v1, %s3477_s28 }
 0x4bf   : > { %v2132_v49 = vpop.permute.xlu0 %2131  ;;  %v2134_v55 = vpop.permute.xlu1 %2133 }
 0x4c0   : > { %v2208_v53 = vrot.slane %v2132_v49, 7  ;;  %v2209_v16 = vrot.slane %v2134_v55, 7  ;;  %v2148_v49 = vpop.permute.xlu2 %2147 }
 0x4c2   : > { %v2237_v9 = vsel %vm615_vm2, %v2207_v2, %v2208_v53  ;;  %v2236_v56 = vsel %vm615_vm2, %v2208_v53, %v2209_v16  ;;  %v2235_v51 = vsel %vm615_vm2, %v2209_v16, %v2210_v54 }
 0x4c3   : > { %v2269_v34 = vsel %vm646_vm3, %v2236_v56, 0.0 }
 0x4c4   : > { %2343 = vrot.lane.b32.xlu0 %v2237_v9, %s3477_s28  ;;  %2345 = vrot.lane.b32.xlu1 %v2269_v34, %s3477_s28 }
 0x4c5   : > { %2347 = vrot.lane.b32.xlu2 %v2235_v51, %s3477_s28  ;;  %v2216_v51 = vrot.slane %v2148_v49, 7 }
 0x4c7   : > { %v2138_v59 = vpop.permute.xlu0 %2137  ;;  %v2140_v37 = vpop.permute.xlu1 %2139 }
 0x4c8   : > { %v2211_v1 = vrot.slane %v2138_v59, 7  ;;  %v2212_v2 = vrot.slane %v2140_v37, 7 }
 0x4ca   : > { %v2234_v55 = vsel %vm615_vm2, %v2210_v54, %v2211_v1  ;;  %v2233_v53 = vsel %vm615_vm2, %v2211_v1, %v2212_v2  ;;  %v2232_v16 = vsel %vm615_vm2, %v2212_v2, %v2213_v60 }
 0x4cb   : > { %v2271_v9 = vsel %vm646_vm3, %v2234_v55, 0.0  ;;  %v2273_v56 = vsel %vm646_vm3, %v2232_v16, 0.0  ;;  %v2154_v55 = vpop.permute.xlu2 %2153 }
 0x4cc   : > { %2349 = vrot.lane.b32.xlu0 %v2271_v9, %s3477_s28  ;;  %2351 = vrot.lane.b32.xlu1 %v2233_v53, %s3477_s28  ;;  %v2219_v9 = vrot.slane %v2154_v55, 7 }
 0x4cd   : > { %2353 = vrot.lane.b32.xlu2 %v2273_v56, %s3477_s28 }
 0x4cf   : > { %v2144_v4 = vpop.permute.xlu0 %2143  ;;  %v2146_v54 = vpop.permute.xlu1 %2145 }
 0x4d0   : > { %v2214_v34 = vrot.slane %v2144_v4, 7  ;;  %v2215_v59 = vrot.slane %v2146_v54, 7 }
 0x4d2   : > { %v2231_v37 = vsel %vm615_vm2, %v2213_v60, %v2214_v34  ;;  %v2230_v1 = vsel %vm615_vm2, %v2214_v34, %v2215_v59  ;;  %v2229_v2 = vsel %vm615_vm2, %v2215_v59, %v2216_v51 }
 0x4d3   : > { %v2275_v53 = vsel %vm646_vm3, %v2230_v1, 0.0  ;;  %v2160_v1 = vpop.permute.xlu2 %2159 }
 0x4d4   : > { %2355 = vrot.lane.b32.xlu0 %v2231_v37, %s3477_s28  ;;  %2357 = vrot.lane.b32.xlu1 %v2275_v53, %s3477_s28  ;;  %v2222_v55 = vrot.slane %v2160_v1, 7 }
 0x4d5   : > { %2359 = vrot.lane.b32.xlu2 %v2229_v2, %s3477_s28 }
 0x4d7   : > { %v2150_v49 = vpop.permute.xlu0 %2149  ;;  %v2152_v16 = vpop.permute.xlu1 %2151 }
 0x4d8   : > { %v2217_v60 = vrot.slane %v2150_v49, 7  ;;  %v2218_v56 = vrot.slane %v2152_v16, 7 }
 0x4da   : > { %v2228_v4 = vsel %vm615_vm2, %v2216_v51, %v2217_v60  ;;  %v2227_v54 = vsel %vm615_vm2, %v2217_v60, %v2218_v56  ;;  %v2226_v34 = vsel %vm615_vm2, %v2218_v56, %v2219_v9 }
 0x4db   : > { %v2277_v59 = vsel %vm646_vm3, %v2228_v4, 0.0  ;;  %v2279_v37 = vsel %vm646_vm3, %v2226_v34, 0.0 }
 0x4dc   : > { %2361 = vrot.lane.b32.xlu0 %v2277_v59, %s3477_s28  ;;  %2363 = vrot.lane.b32.xlu1 %v2227_v54, %s3477_s28 }
 0x4dd   : > { %2365 = vrot.lane.b32.xlu2 %v2279_v37, %s3477_s28 }
 0x4df   : > { %v2156_v51 = vpop.permute.xlu0 %2155  ;;  %v2158_v2 = vpop.permute.xlu1 %2157 }
 0x4e0   : > { %v2220_v53 = vrot.slane %v2156_v51, 7  ;;  %v2221_v49 = vrot.slane %v2158_v2, 7 }
 0x4e2   : > { %v2225_v16 = vsel %vm615_vm2, %v2219_v9, %v2220_v53  ;;  %v2224_v60 = vsel %vm615_vm2, %v2220_v53, %v2221_v49  ;;  %v2223_v56 = vsel %vm615_vm2, %v2221_v49, %v2222_v55 }
 0x4e3   : > { %v2281_v4 = vsel %vm646_vm3, %v2224_v60, 0.0 }
 0x4e4   : > { %2367 = vrot.lane.b32.xlu0 %v2225_v16, %s3477_s28  ;;  %2369 = vrot.lane.b32.xlu1 %v2281_v4, %s3477_s28 }
 0x4e5   : > { %2371 = vrot.lane.b32.xlu2 %v2223_v56, %s3477_s28 }
 0x4ec   : > { %2435 = vrot.lane.b32.xlu0 %v3663_v48, %s3484_s15  ;;  %2437 = vrot.lane.b32.xlu1 %v3720_v3, %s3484_s15 }
 0x4ed   : > { %2439 = vrot.lane.b32.xlu2 %v3743_v10, %s3484_s15 }
 0x4f4   : > { %2441 = vrot.lane.b32.xlu0 %v3788_v28, %s3484_s15  ;;  %2443 = vrot.lane.b32.xlu1 %v3873_v19, %s3484_s15 }
 0x4f5   : > { %2445 = vrot.lane.b32.xlu2 %v3892_v52, %s3484_s15 }
 0x4f6   : > { %v5184_v9 = vpop.permute.xlu2 %2317 }
 0x4f7   : > { %6475 = vst [vmem:[#allocation148_spill] sm:$0xff] %v5184_v9 }
 0x4fc   : > { %2447 = vrot.lane.b32.xlu0 %v3619_v36, %s3484_s15  ;;  %2449 = vrot.lane.b32.xlu1 %v3651_v45, %s3484_s15 }
 0x4fd   : > { %2451 = vrot.lane.b32.xlu2 %v6384_v6, %s3484_s15 }
 0x4ff   : > { %v5192_v54 = vpop.permute.xlu2 %2323 }
 0x500   : > { %6476 = vst [vmem:[#allocation149_spill] sm:$0xff] %v5192_v54 }
 0x504   : > { %2453 = vrot.lane.b32.xlu0 %v6385_v29, %s3484_s15  ;;  %2455 = vrot.lane.b32.xlu1 %v3786_v27, %s3484_s15 }
 0x505   : > { %2457 = vrot.lane.b32.xlu2 %v3817_v44, %s3484_s15 }
 0x507   : > { %v5200_v34 = vpop.permute.xlu2 %2329 }
 0x508   : > { %6477 = vst [vmem:[#allocation150_spill] sm:$0xff] %v5200_v34 }
 0x50c   : > { %2459 = vrot.lane.b32.xlu0 %v3877_v24, %s3484_s15  ;;  %2461 = vrot.lane.b32.xlu1 %v3955_v50, %s3484_s15 }
 0x50d   : > { %2463 = vrot.lane.b32.xlu2 %v3625_v38, %s3484_s15  ;;  %v5208_v59 = vpop.permute.xlu1 %2315 }
 0x50e   : > { %v5210_v37 = vpop.permute.xlu0 %2313 }
 0x50f   : > { %v5212_v1 = vpop.permute.xlu2 %2335 }
 0x510   : > { %6478 = vst [vmem:[#allocation151_spill] sm:$0xff] %v5212_v1 }
 0x514   : > { %2465 = vrot.lane.b32.xlu0 %v3653_v46, %s3484_s15  ;;  %2467 = vrot.lane.b32.xlu1 %v3706_v62, %s3484_s15 }
 0x515   : > { %2469 = vrot.lane.b32.xlu2 %v3729_v5, %s3484_s15 }
 0x516   : > { %v5220_v51 = vpop.permute.xlu0 %2319  ;;  %v5222_v2 = vpop.permute.xlu1 %2321 }
 0x517   : > { %6479 = vst [vmem:[#allocation152_spill] sm:$0xff] %v5220_v51  ;;  %v5224_v55 = vpop.permute.xlu2 %2341 }
 0x518   : > { %6480 = vst [vmem:[#allocation153_spill] sm:$0xff] %v5222_v2 }
 0x519   : > { %6481 = vst [vmem:[#allocation154_spill] sm:$0xff] %v5224_v55 }
 0x51c   : > { %2471 = vrot.lane.b32.xlu0 %v3770_v21, %s3484_s15  ;;  %2473 = vrot.lane.b32.xlu1 %v3856_v12, %s3484_s15 }
 0x51d   : > { %2475 = vrot.lane.b32.xlu2 %v6396_v11, %s3484_s15 }
 0x51e   : > { %v5232_v53 = vpop.permute.xlu0 %2325  ;;  %v5234_v49 = vpop.permute.xlu1 %2327 }
 0x51f   : > { %6482 = vst [vmem:[#allocation155_spill] sm:$0xff] %v5232_v53  ;;  %v5236_v16 = vpop.permute.xlu2 %2347 }
 0x520   : > { %6483 = vst [vmem:[#allocation156_spill] sm:$0xff] %v5234_v49 }
 0x521   : > { %6484 = vst [vmem:[#allocation157_spill] sm:$0xff] %v5236_v16 }
 0x524   : > { %2477 = vrot.lane.b32.xlu0 %v6397_v23, %s3484_s15  ;;  %2479 = vrot.lane.b32.xlu1 %v3640_v43, %s3484_s15 }
 0x525   : > { %2481 = vrot.lane.b32.xlu2 %v3661_v47, %s3484_s15 }
 0x526   : > { %v5244_v60 = vpop.permute.xlu0 %2331  ;;  %v5246_v56 = vpop.permute.xlu1 %2333 }
 0x527   : > { %6485 = vst [vmem:[#allocation158_spill] sm:$0xff] %v5244_v60  ;;  %v5248_v4 = vpop.permute.xlu2 %2353 }
 0x528   : > { %6486 = vst [vmem:[#allocation159_spill] sm:$0xff] %v5246_v56 }
 0x529   : > { %6487 = vst [vmem:[#allocation160_spill] sm:$0xff] %v5248_v4 }
 0x52c   : > { %2483 = vrot.lane.b32.xlu0 %v3708_v63, %s3484_s15  ;;  %2485 = vrot.lane.b32.xlu1 %v3768_v20, %s3484_s15 }
 0x52d   : > { %2487 = vrot.lane.b32.xlu2 %v3797_v30, %s3484_s15 }
 0x52e   : > { %v5256_v18 = vpop.permute.xlu0 %2337  ;;  %v5258_v16 = vpop.permute.xlu1 %2339 }
 0x52f   : > { %6488 = vst [vmem:[#allocation161_spill] sm:$0xff] %v5256_v18  ;;  %v5260_v55 = vpop.permute.xlu2 %2359 }
 0x530   : > { %6489 = vst [vmem:[#allocation162_spill] sm:$0xff] %v5258_v16 }
 0x531   : > { %6490 = vst [vmem:[#allocation163_spill] sm:$0xff] %v5260_v55 }
 0x534   : > { %2489 = vrot.lane.b32.xlu0 %v3860_v14, %s3484_s15  ;;  %2491 = vrot.lane.b32.xlu1 %v3953_v8, %s3484_s15 }
 0x535   : > { %2493 = vrot.lane.b32.xlu2 %v6406_v41, %s3484_s15 }
 0x536   : > { %v5268_v4 = vpop.permute.xlu0 %2343  ;;  %v5270_v1 = vpop.permute.xlu1 %2345 }
 0x537   : > { %6491 = vst [vmem:[#allocation164_spill] sm:$0xff] %v5268_v4  ;;  %v5272_v56 = vpop.permute.xlu2 %2365 }
 0x538   : > { %6492 = vst [vmem:[#allocation165_spill] sm:$0xff] %v5270_v1 }
 0x539   : > { %6493 = vst [vmem:[#allocation166_spill] sm:$0xff] %v5272_v56 }
 0x53e   : > { %v5274_v18 = vpop.permute.xlu0 %2349  ;;  %v5276_v16 = vpop.permute.xlu1 %2351 }
 0x53f   : > { %6494 = vst [vmem:[#allocation167_spill] sm:$0xff] %v5274_v18  ;;  %v5278_v55 = vpop.permute.xlu2 %2371 }
 0x540   : > { %6495 = vst [vmem:[#allocation168_spill] sm:$0xff] %v5276_v16 }
 0x541   : > { %6496 = vst [vmem:[#allocation169_spill] sm:$0xff] %v5278_v55 }
 0x546   : > { %v5280_v60 = vpop.permute.xlu0 %2355  ;;  %v5282_v34 = vpop.permute.xlu1 %2357 }
 0x547   : > { %6497 = vst [vmem:[#allocation170_spill] sm:$0xff] %v5280_v60  ;;  %v2440_v49 = vpop.permute.xlu2 %2439 }
 0x548   : > { %6498 = vst [vmem:[#allocation171_spill] sm:$0xff] %v5282_v34  ;;  %2499 = vrot.lane.b32.xlu2 %v2440_v49, %s3477_s28 }
 0x54e   : > { %v5285_v53 = vpop.permute.xlu0 %2361  ;;  %v5287_v4 = vpop.permute.xlu1 %2363 }
 0x54f   : > { %6499 = vst [vmem:[#allocation172_spill] sm:$0xff] %v5285_v53  ;;  %v2446_v1 = vpop.permute.xlu2 %2445 }
 0x550   : > { %6500 = vst [vmem:[#allocation173_spill] sm:$0xff] %v5287_v4  ;;  %2505 = vrot.lane.b32.xlu2 %v2446_v1, %s3477_s28 }
 0x556   : > { %v5290_v56 = vpop.permute.xlu0 %2367  ;;  %v5292_v18 = vpop.permute.xlu1 %2369 }
 0x557   : > { %6501 = vst [vmem:[#allocation174_spill] sm:$0xff] %v5290_v56  ;;  %v2452_v16 = vpop.permute.xlu2 %2451 }
 0x558   : > { %6502 = vst [vmem:[#allocation175_spill] sm:$0xff] %v5292_v18  ;;  %2511 = vrot.lane.b32.xlu2 %v2452_v16, %s3477_s28 }
 0x55e   : > { %v2436_v55 = vpop.permute.xlu0 %2435  ;;  %v2438_v60 = vpop.permute.xlu1 %2437 }
 0x55f   : > { %v2458_v34 = vpop.permute.xlu2 %2457  ;;  %2495 = vrot.lane.b32.xlu0 %v2436_v55, %s3477_s28  ;;  %2497 = vrot.lane.b32.xlu1 %v2438_v60, %s3477_s28 }
 0x560   : > { %2517 = vrot.lane.b32.xlu2 %v2458_v34, %s3477_s28 }
 0x566   : > { %v2442_v49 = vpop.permute.xlu0 %2441  ;;  %v2444_v4 = vpop.permute.xlu1 %2443 }
 0x567   : > { %v2464_v53 = vpop.permute.xlu2 %2463  ;;  %2501 = vrot.lane.b32.xlu0 %v2442_v49, %s3477_s28  ;;  %2503 = vrot.lane.b32.xlu1 %v2444_v4, %s3477_s28 }
 0x568   : > { %2523 = vrot.lane.b32.xlu2 %v2464_v53, %s3477_s28 }
 0x56e   : > { %v2448_v1 = vpop.permute.xlu0 %2447  ;;  %v2450_v16 = vpop.permute.xlu1 %2449 }
 0x56f   : > { %v2470_v18 = vpop.permute.xlu2 %2469  ;;  %2507 = vrot.lane.b32.xlu0 %v2448_v1, %s3477_s28  ;;  %2509 = vrot.lane.b32.xlu1 %v2450_v16, %s3477_s28 }
 0x570   : > { %2529 = vrot.lane.b32.xlu2 %v2470_v18, %s3477_s28 }
 0x576   : > { %v2454_v55 = vpop.permute.xlu0 %2453  ;;  %v2456_v34 = vpop.permute.xlu1 %2455 }
 0x577   : > { %v2476_v60 = vpop.permute.xlu2 %2475  ;;  %2513 = vrot.lane.b32.xlu0 %v2454_v55, %s3477_s28  ;;  %2515 = vrot.lane.b32.xlu1 %v2456_v34, %s3477_s28 }
 0x578   : > { %2535 = vrot.lane.b32.xlu2 %v2476_v60, %s3477_s28 }
 0x57e   : > { %v2460_v4 = vpop.permute.xlu0 %2459  ;;  %v2462_v53 = vpop.permute.xlu1 %2461 }
 0x57f   : > { %v2482_v49 = vpop.permute.xlu2 %2481  ;;  %2519 = vrot.lane.b32.xlu0 %v2460_v4, %s3477_s28  ;;  %2521 = vrot.lane.b32.xlu1 %v2462_v53, %s3477_s28 }
 0x580   : > { %2541 = vrot.lane.b32.xlu2 %v2482_v49, %s3477_s28 }
 0x586   : > { %v2466_v1 = vpop.permute.xlu0 %2465  ;;  %v2468_v18 = vpop.permute.xlu1 %2467 }
 0x587   : > { %v2488_v16 = vpop.permute.xlu2 %2487  ;;  %2525 = vrot.lane.b32.xlu0 %v2466_v1, %s3477_s28  ;;  %2527 = vrot.lane.b32.xlu1 %v2468_v18, %s3477_s28 }
 0x588   : > { %2547 = vrot.lane.b32.xlu2 %v2488_v16, %s3477_s28 }
 0x58e   : > { %v2472_v55 = vpop.permute.xlu0 %2471  ;;  %v2474_v34 = vpop.permute.xlu1 %2473 }
 0x58f   : > { %v2494_v60 = vpop.permute.xlu2 %2493  ;;  %2531 = vrot.lane.b32.xlu0 %v2472_v55, %s3477_s28  ;;  %2533 = vrot.lane.b32.xlu1 %v2474_v34, %s3477_s28 }
 0x590   : > { %2553 = vrot.lane.b32.xlu2 %v2494_v60, %s3477_s28 }
 0x596   : > { %v2478_v4 = vpop.permute.xlu0 %2477  ;;  %v2480_v53 = vpop.permute.xlu1 %2479 }
 0x597   : > { %2537 = vrot.lane.b32.xlu0 %v2478_v4, %s3477_s28  ;;  %2539 = vrot.lane.b32.xlu1 %v2480_v53, %s3477_s28 }
 0x598   : > { %2621 = vrot.lane.b32.xlu2 %v3720_v3, %s3485_s16 }
 0x59e   : > { %v2484_v49 = vpop.permute.xlu0 %2483  ;;  %v2486_v1 = vpop.permute.xlu1 %2485 }
 0x59f   : > { %2543 = vrot.lane.b32.xlu0 %v2484_v49, %s3477_s28  ;;  %2545 = vrot.lane.b32.xlu1 %v2486_v1, %s3477_s28 }
 0x5a0   : > { %2627 = vrot.lane.b32.xlu2 %v3873_v19, %s3485_s16 }
 0x5a2   : > { %v5326_v55 = vpop.permute.xlu2 %2499 }
 0x5a3   : > { %6503 = vst [vmem:[#allocation176_spill] sm:$0xff] %v5326_v55 }
 0x5a6   : > { %v2490_v18 = vpop.permute.xlu0 %2489  ;;  %v2492_v16 = vpop.permute.xlu1 %2491 }
 0x5a7   : > { %2549 = vrot.lane.b32.xlu0 %v2490_v18, %s3477_s28  ;;  %2551 = vrot.lane.b32.xlu1 %v2492_v16, %s3477_s28 }
 0x5a8   : > { %2633 = vrot.lane.b32.xlu2 %v3651_v45, %s3485_s16 }
 0x5aa   : > { %v5336_v34 = vpop.permute.xlu2 %2505 }
 0x5ab   : > { %6504 = vst [vmem:[#allocation177_spill] sm:$0xff] %v5336_v34 }
 0x5af   : > { %2617 = vrot.lane.b32.xlu0 %v3617_v35, %s3485_s16  ;;  %2619 = vrot.lane.b32.xlu1 %v3663_v48, %s3485_s16 }
 0x5b0   : > { %2639 = vrot.lane.b32.xlu2 %v3786_v27, %s3485_s16 }
 0x5b2   : > { %v5344_v60 = vpop.permute.xlu2 %2511 }
 0x5b3   : > { %6505 = vst [vmem:[#allocation178_spill] sm:$0xff] %v5344_v60 }
 0x5b7   : > { %2623 = vrot.lane.b32.xlu0 %v3743_v10, %s3485_s16  ;;  %2625 = vrot.lane.b32.xlu1 %v3788_v28, %s3485_s16 }
 0x5b8   : > { %2645 = vrot.lane.b32.xlu2 %v3955_v50, %s3485_s16 }
 0x5ba   : > { %v5352_v4 = vpop.permute.xlu2 %2517 }
 0x5bb   : > { %6506 = vst [vmem:[#allocation179_spill] sm:$0xff] %v5352_v4 }
 0x5bf   : > { %2629 = vrot.lane.b32.xlu0 %v3892_v52, %s3485_s16  ;;  %2631 = vrot.lane.b32.xlu1 %v3619_v36, %s3485_s16 }
 0x5c0   : > { %2651 = vrot.lane.b32.xlu2 %v3706_v62, %s3485_s16 }
 0x5c2   : > { %v5364_v53 = vpop.permute.xlu2 %2523 }
 0x5c3   : > { %6507 = vst [vmem:[#allocation180_spill] sm:$0xff] %v5364_v53 }
 0x5c7   : > { %2635 = vrot.lane.b32.xlu0 %v6384_v6, %s3485_s16  ;;  %2637 = vrot.lane.b32.xlu1 %v6385_v29, %s3485_s16 }
 0x5c8   : > { %2657 = vrot.lane.b32.xlu2 %v3856_v12, %s3485_s16 }
 0x5ca   : > { %v5382_v56 = vpop.permute.xlu2 %2529 }
 0x5cb   : > { %6512 = vst [vmem:[#allocation185_spill] sm:$0xff] %v5382_v56 }
 0x5cf   : > { %2641 = vrot.lane.b32.xlu0 %v3817_v44, %s3485_s16  ;;  %2643 = vrot.lane.b32.xlu1 %v3877_v24, %s3485_s16 }
 0x5d0   : > { %2663 = vrot.lane.b32.xlu2 %v3640_v43, %s3485_s16 }
 0x5d1   : > { %v5368_v49 = vpop.permute.xlu0 %2495  ;;  %v5370_v1 = vpop.permute.xlu1 %2497 }
 0x5d2   : > { %6508 = vst [vmem:[#allocation181_spill] sm:$0xff] %v5368_v49  ;;  %v5394_v60 = vpop.permute.xlu2 %2535 }
 0x5d3   : > { %6509 = vst [vmem:[#allocation182_spill] sm:$0xff] %v5370_v1 }
 0x5d4   : > { %6515 = vst [vmem:[#allocation188_spill] sm:$0xff] %v5394_v60 }
 0x5d7   : > { %2647 = vrot.lane.b32.xlu0 %v3625_v38, %s3485_s16  ;;  %2649 = vrot.lane.b32.xlu1 %v3653_v46, %s3485_s16 }
 0x5d8   : > { %2669 = vrot.lane.b32.xlu2 %v3768_v20, %s3485_s16 }
 0x5d9   : > { %v5378_v18 = vpop.permute.xlu0 %2501  ;;  %v5380_v16 = vpop.permute.xlu1 %2503 }
 0x5da   : > { %6510 = vst [vmem:[#allocation183_spill] sm:$0xff] %v5378_v18  ;;  %v5404_v54 = vpop.permute.xlu2 %2541 }
 0x5db   : > { %6511 = vst [vmem:[#allocation184_spill] sm:$0xff] %v5380_v16 }
 0x5dc   : > { %6518 = vst [vmem:[#allocation191_spill] sm:$0xff] %v5404_v54 }
 0x5df   : > { %2653 = vrot.lane.b32.xlu0 %v3729_v5, %s3485_s16  ;;  %2655 = vrot.lane.b32.xlu1 %v3770_v21, %s3485_s16 }
 0x5e0   : > { %2675 = vrot.lane.b32.xlu2 %v3953_v8, %s3485_s16 }
 0x5e1   : > { %v5390_v53 = vpop.permute.xlu0 %2507  ;;  %v5392_v4 = vpop.permute.xlu1 %2509 }
 0x5e2   : > { %6513 = vst [vmem:[#allocation186_spill] sm:$0xff] %v5390_v53 }
 0x5e3   : > { %6514 = vst [vmem:[#allocation187_spill] sm:$0xff] %v5392_v4 }
 0x5e7   : > { %2659 = vrot.lane.b32.xlu0 %v6396_v11, %s3485_s16  ;;  %2661 = vrot.lane.b32.xlu1 %v6397_v23, %s3485_s16 }
 0x5e9   : > { %v5400_v56 = vpop.permute.xlu0 %2513  ;;  %v5402_v34 = vpop.permute.xlu1 %2515 }
 0x5ea   : > { %6516 = vst [vmem:[#allocation189_spill] sm:$0xff] %v5400_v56  ;;  %v5418_v56 = vpop.permute.xlu2 %2547 }
 0x5eb   : > { %6517 = vst [vmem:[#allocation190_spill] sm:$0xff] %v5402_v34 }
 0x5ec   : > { %6521 = vst [vmem:[#allocation194_spill] sm:$0xff] %v5418_v56 }
 0x5ef   : > { %2665 = vrot.lane.b32.xlu0 %v3661_v47, %s3485_s16  ;;  %2667 = vrot.lane.b32.xlu1 %v3708_v63, %s3485_s16 }
 0x5f1   : > { %v5410_v4 = vpop.permute.xlu0 %2519  ;;  %v5412_v60 = vpop.permute.xlu1 %2521 }
 0x5f2   : > { %6519 = vst [vmem:[#allocation192_spill] sm:$0xff] %v5410_v4 }
 0x5f3   : > { %6520 = vst [vmem:[#allocation193_spill] sm:$0xff] %v5412_v60  ;;  %v5430_v60 = vpop.permute.xlu2 %2553 }
 0x5f4   : > { %6526 = vst [vmem:[#allocation199_spill] sm:$0xff] %v5430_v60 }
 0x5f7   : > { %2671 = vrot.lane.b32.xlu0 %v3797_v30, %s3485_s16  ;;  %2673 = vrot.lane.b32.xlu1 %v3860_v14, %s3485_s16 }
 0x5f9   : > { %v5420_v34 = vpop.permute.xlu0 %2525  ;;  %v5422_v54 = vpop.permute.xlu1 %2527 }
 0x5fa   : > { %6522 = vst [vmem:[#allocation195_spill] sm:$0xff] %v5420_v34 }
 0x5fb   : > { %6523 = vst [vmem:[#allocation196_spill] sm:$0xff] %v5422_v54  ;;  %v2622_v2 = vpop.permute.xlu2 %2621 }
 0x5fc   : > { %v2712_v9 = vrot.slane %v2622_v2, 1 }
 0x5ff   : > { %2677 = vrot.lane.b32.xlu0 %v6406_v41, %s3485_s16 }
 0x601   : > { %v5426_v53 = vpop.permute.xlu0 %2531  ;;  %v5428_v4 = vpop.permute.xlu1 %2533 }
 0x602   : > { %6524 = vst [vmem:[#allocation197_spill] sm:$0xff] %v5426_v53 }
 0x603   : > { %6525 = vst [vmem:[#allocation198_spill] sm:$0xff] %v5428_v4  ;;  %v2628_v34 = vpop.permute.xlu2 %2627 }
 0x604   : > { %v2715_v32 = vrot.slane %v2628_v34, 1 }
 0x609   : > { %v5432_v16 = vpop.permute.xlu0 %2537  ;;  %v5434_v18 = vpop.permute.xlu1 %2539 }
 0x60a   : > { %6527 = vst [vmem:[#allocation200_spill] sm:$0xff] %v5432_v16 }
 0x60b   : > { %6528 = vst [vmem:[#allocation201_spill] sm:$0xff] %v5434_v18  ;;  %v2634_v22 = vpop.permute.xlu2 %2633 }
 0x611   : > { %v5436_v55 = vpop.permute.xlu0 %2543  ;;  %v5438_v56 = vpop.permute.xlu1 %2545 }
 0x612   : > { %6529 = vst [vmem:[#allocation202_spill] sm:$0xff] %v5436_v55 }
 0x613   : > { %6530 = vst [vmem:[#allocation203_spill] sm:$0xff] %v5438_v56  ;;  %v2640_v56 = vpop.permute.xlu2 %2639 }
 0x619   : > { %v5440_v54 = vpop.permute.xlu0 %2549  ;;  %v5442_v51 = vpop.permute.xlu1 %2551 }
 0x61a   : > { %6531 = vst [vmem:[#allocation204_spill] sm:$0xff] %v5440_v54 }
 0x61b   : > { %6532 = vst [vmem:[#allocation205_spill] sm:$0xff] %v5442_v51 }
 0x621   : > { %v5444_v53 = vpop.permute.xlu0 %2617  ;;  %v2620_v4 = vpop.permute.xlu1 %2619 }
 0x622   : > { %v2711_v60 = vrot.slane %v2620_v4, 1 }
 0x624   : > { %v2769_v16 = vsel %vm1175_vm4, %v2711_v60, %v2712_v9 }
 0x625   : > { %2831 = vrot.lane.b32.xlu1 %v2769_v16, %s3477_s28 }
 0x629   : > { %v2624_v18 = vpop.permute.xlu0 %2623  ;;  %v2626_v55 = vpop.permute.xlu1 %2625 }
 0x62a   : > { %v2713_v57 = vrot.slane %v2624_v18, 1  ;;  %v2714_v1 = vrot.slane %v2626_v55, 1  ;;  %v2718_v18 = vrot.slane %v2634_v22, 1 }
 0x62c   : > { %v2767_v51 = vsel %vm1175_vm4, %v2713_v57, %v2714_v1  ;;  %v2768_v54 = vsel %vm1175_vm4, %v2712_v9, %v2713_v57  ;;  %v2766_v2 = vsel %vm1175_vm4, %v2714_v1, %v2715_v32  ;;  %v2646_v9 = vpop.permute.xlu2 %2645 }
 0x62d   : > { %2835 = vrot.lane.b32.xlu0 %v2767_v51, %s3477_s28  ;;  %v2772_v60 = vsel %vm1207_vm5, %v2768_v54, 0.0  ;;  %v2774_v34 = vsel %vm1207_vm5, %v2766_v2, 0.0 }
 0x62e   : > { %2833 = vrot.lane.b32.xlu2 %v2772_v60, %s3477_s28  ;;  %2837 = vrot.lane.b32.xlu1 %v2774_v34, %s3477_s28  ;;  %v2721_v34 = vrot.slane %v2640_v56, 1 }
 0x631   : > { %v2630_v55 = vpop.permute.xlu0 %2629  ;;  %v2632_v4 = vpop.permute.xlu1 %2631 }
 0x632   : > { %v2716_v16 = vrot.slane %v2630_v55, 1  ;;  %v2717_v57 = vrot.slane %v2632_v4, 1 }
 0x634   : > { %v2765_v1 = vsel %vm1175_vm4, %v2715_v32, %v2716_v16  ;;  %v2764_v51 = vsel %vm1175_vm4, %v2716_v16, %v2717_v57  ;;  %v2763_v54 = vsel %vm1175_vm4, %v2717_v57, %v2718_v18 }
 0x635   : > { %v2776_v2 = vsel %vm1207_vm5, %v2764_v51, 0.0 }
 0x636   : > { %2839 = vrot.lane.b32.xlu2 %v2765_v1, %s3477_s28  ;;  %2841 = vrot.lane.b32.xlu0 %v2776_v2, %s3477_s28  ;;  %v2724_v2 = vrot.slane %v2646_v9, 1 }
 0x637   : > { %2843 = vrot.lane.b32.xlu1 %v2763_v54, %s3477_s28  ;;  %v2652_v54 = vpop.permute.xlu2 %2651 }
 0x639   : > { %v2636_v22 = vpop.permute.xlu0 %2635  ;;  %v2638_v60 = vpop.permute.xlu1 %2637 }
 0x63a   : > { %v2719_v55 = vrot.slane %v2636_v22, 1  ;;  %v2720_v32 = vrot.slane %v2638_v60, 1 }
 0x63c   : > { %v2762_v4 = vsel %vm1175_vm4, %v2718_v18, %v2719_v55  ;;  %v2761_v16 = vsel %vm1175_vm4, %v2719_v55, %v2720_v32  ;;  %v2760_v57 = vsel %vm1175_vm4, %v2720_v32, %v2721_v34 }
 0x63d   : > { %v2778_v1 = vsel %vm1207_vm5, %v2762_v4, 0.0  ;;  %v2780_v51 = vsel %vm1207_vm5, %v2760_v57, 0.0 }
 0x63e   : > { %2845 = vrot.lane.b32.xlu2 %v2778_v1, %s3477_s28  ;;  %2847 = vrot.lane.b32.xlu0 %v2761_v16, %s3477_s28 }
 0x63f   : > { %2849 = vrot.lane.b32.xlu1 %v2780_v51, %s3477_s28  ;;  %v2658_v9 = vpop.permute.xlu2 %2657  ;;  %v2727_v51 = vrot.slane %v2652_v54, 1 }
 0x641   : > { %v2642_v56 = vpop.permute.xlu0 %2641  ;;  %v2644_v18 = vpop.permute.xlu1 %2643 }
 0x642   : > { %v2722_v22 = vrot.slane %v2642_v56, 1  ;;  %v2723_v60 = vrot.slane %v2644_v18, 1 }
 0x644   : > { %v2759_v55 = vsel %vm1175_vm4, %v2721_v34, %v2722_v22  ;;  %v2758_v32 = vsel %vm1175_vm4, %v2722_v22, %v2723_v60  ;;  %v2757_v4 = vsel %vm1175_vm4, %v2723_v60, %v2724_v2 }
 0x645   : > { %v2782_v57 = vsel %vm1207_vm5, %v2758_v32, 0.0 }
 0x646   : > { %2851 = vrot.lane.b32.xlu2 %v2759_v55, %s3477_s28  ;;  %2853 = vrot.lane.b32.xlu0 %v2782_v57, %s3477_s28 }
 0x647   : > { %2855 = vrot.lane.b32.xlu1 %v2757_v4, %s3477_s28  ;;  %v2730_v4 = vrot.slane %v2658_v9, 1 }
 0x649   : > { %v2648_v16 = vpop.permute.xlu0 %2647  ;;  %v2650_v1 = vpop.permute.xlu1 %2649 }
 0x64a   : > { %v2725_v34 = vrot.slane %v2648_v16, 1  ;;  %v2726_v56 = vrot.slane %v2650_v1, 1  ;;  %v2664_v1 = vpop.permute.xlu2 %2663 }
 0x64c   : > { %v2756_v18 = vsel %vm1175_vm4, %v2724_v2, %v2725_v34  ;;  %v2755_v22 = vsel %vm1175_vm4, %v2725_v34, %v2726_v56  ;;  %v2754_v60 = vsel %vm1175_vm4, %v2726_v56, %v2727_v51 }
 0x64d   : > { %v2784_v55 = vsel %vm1207_vm5, %v2756_v18, 0.0  ;;  %v2786_v32 = vsel %vm1207_vm5, %v2754_v60, 0.0 }
 0x64e   : > { %2857 = vrot.lane.b32.xlu2 %v2784_v55, %s3477_s28  ;;  %2859 = vrot.lane.b32.xlu0 %v2755_v22, %s3477_s28  ;;  %v2733_v55 = vrot.slane %v2664_v1, 1 }
 0x64f   : > { %2861 = vrot.lane.b32.xlu1 %v2786_v32, %s3477_s28 }
 0x651   : > { %v2654_v54 = vpop.permute.xlu0 %2653  ;;  %v2656_v2 = vpop.permute.xlu1 %2655 }
 0x652   : > { %v2728_v57 = vrot.slane %v2654_v54, 1  ;;  %v2729_v16 = vrot.slane %v2656_v2, 1 }
 0x654   : > { %v2753_v34 = vsel %vm1175_vm4, %v2727_v51, %v2728_v57  ;;  %v2752_v56 = vsel %vm1175_vm4, %v2728_v57, %v2729_v16  ;;  %v2751_v18 = vsel %vm1175_vm4, %v2729_v16, %v2730_v4  ;;  %v2670_v16 = vpop.permute.xlu2 %2669 }
 0x655   : > { %v2788_v22 = vsel %vm1207_vm5, %v2752_v56, 0.0 }
 0x656   : > { %2863 = vrot.lane.b32.xlu2 %v2753_v34, %s3477_s28  ;;  %2865 = vrot.lane.b32.xlu0 %v2788_v22, %s3477_s28 }
 0x657   : > { %2867 = vrot.lane.b32.xlu1 %v2751_v18, %s3477_s28  ;;  %v2736_v18 = vrot.slane %v2670_v16, 1 }
 0x659   : > { %v2660_v9 = vpop.permute.xlu0 %2659  ;;  %v2662_v60 = vpop.permute.xlu1 %2661 }
 0x65a   : > { %v2731_v32 = vrot.slane %v2660_v9, 1  ;;  %v2732_v51 = vrot.slane %v2662_v60, 1 }
 0x65c   : > { %v2750_v54 = vsel %vm1175_vm4, %v2730_v4, %v2731_v32  ;;  %v2749_v2 = vsel %vm1175_vm4, %v2731_v32, %v2732_v51  ;;  %v2748_v57 = vsel %vm1175_vm4, %v2732_v51, %v2733_v55 }
 0x65d   : > { %v2790_v34 = vsel %vm1207_vm5, %v2750_v54, 0.0  ;;  %v2792_v56 = vsel %vm1207_vm5, %v2748_v57, 0.0 }
 0x65e   : > { %2869 = vrot.lane.b32.xlu2 %v2790_v34, %s3477_s28  ;;  %2871 = vrot.lane.b32.xlu0 %v2749_v2, %s3477_s28  ;;  %v2676_v2 = vpop.permute.xlu2 %2675 }
 0x65f   : > { %2873 = vrot.lane.b32.xlu1 %v2792_v56, %s3477_s28  ;;  %v2739_v34 = vrot.slane %v2676_v2, 1 }
 0x661   : > { %v2666_v4 = vpop.permute.xlu0 %2665  ;;  %v2668_v1 = vpop.permute.xlu1 %2667 }
 0x662   : > { %v2734_v22 = vrot.slane %v2666_v4, 1  ;;  %v2735_v9 = vrot.slane %v2668_v1, 1 }
 0x664   : > { %v2747_v60 = vsel %vm1175_vm4, %v2733_v55, %v2734_v22  ;;  %v2746_v32 = vsel %vm1175_vm4, %v2734_v22, %v2735_v9  ;;  %v2745_v51 = vsel %vm1175_vm4, %v2735_v9, %v2736_v18 }
 0x665   : > { %v2794_v54 = vsel %vm1207_vm5, %v2746_v32, 0.0 }
 0x666   : > { %2875 = vrot.lane.b32.xlu2 %v2747_v60, %s3477_s28  ;;  %2877 = vrot.lane.b32.xlu0 %v2794_v54, %s3477_s28  ;;  %v2710_v54 = vrot.slane %v5444_v53, 1 }
 0x667   : > { %2879 = vrot.lane.b32.xlu1 %v2745_v51, %s3477_s28 }
 0x669   : > { %v2672_v57 = vpop.permute.xlu0 %2671  ;;  %v2674_v16 = vpop.permute.xlu1 %2673 }
 0x66a   : > { %v2737_v55 = vrot.slane %v2672_v57, 1  ;;  %v2738_v56 = vrot.slane %v2674_v16, 1 }
 0x66c   : > { %v2744_v4 = vsel %vm1175_vm4, %v2736_v18, %v2737_v55  ;;  %v2743_v1 = vsel %vm1175_vm4, %v2737_v55, %v2738_v56  ;;  %v2742_v22 = vsel %vm1175_vm4, %v2738_v56, %v2739_v34  ;;  %v6533_v18 = vld [vmem:[#allocation4_spill] sm:$0xff] }
 0x66d   : > { %v2796_v9 = vsel %vm1207_vm5, %v2744_v4, 0.0  ;;  %v2798_v60 = vsel %vm1207_vm5, %v2742_v22, 0.0  ;;  %v552_v51 = vadd.f32 %v6533_v18, %v3617_v35  ;;  %v553_v57 = vadd.f32 %v6533_v18, %v3629_v39  ;;  %v6534_v4 = vld [vmem:[#allocation5_spill] sm:$0xff] }
 0x66e   : > { %2881 = vrot.lane.b32.xlu2 %v2796_v9, %s3477_s28  ;;  %2883 = vrot.lane.b32.xlu0 %v2743_v1, %s3477_s28  ;;  %v568_v40 = vadd.f32 %v6533_v18, %v3625_v38  ;;  %v569_v22 = vadd.f32 %v6533_v18, %v3653_v46  ;;  %v576_v9 = vadd.f32 %v6533_v18, %v3640_v43 }
 0x66f   : > { %2885 = vrot.lane.b32.xlu1 %v2798_v60, %s3477_s28  ;;  %v806_v1 = vadd.f32 %v6534_v4, %v552_v51  ;;  %v807_v35 = vadd.f32 %v6534_v4, %v553_v57  ;;  %v561_v60 = vadd.f32 %v6533_v18, %v3651_v45  ;;  %v562_v38 = vadd.f32 %v6533_v18, %v6384_v6  ;;  %v6536_v57 = vld [vmem:[#allocation7_spill] sm:$0xff] }
 0x670   : > { %v577_v51 = vadd.f32 %v6533_v18, %v3661_v47  ;;  %v554_v46 = vadd.f32 %v6533_v18, %v3663_v48  ;;  %v563_v43 = vadd.f32 %v6533_v18, %v6385_v29  ;;  %v555_v45 = vadd.f32 %v6533_v18, %v3720_v3 }
 0x671   : > { %v2678_v32 = vpop.permute.xlu0 %2677  ;;  %v1018_v53 = vadd.f32 %v806_v1, %v6534_v4  ;;  %v1019_v39 = vadd.f32 %v807_v35, %v6534_v4  ;;  %v556_v6 = vadd.f32 %v6533_v18, %v3743_v10  ;;  %v579_v47 = vadd.f32 %v6533_v18, %v3768_v20  ;;  %v6539_v1 = vld [vmem:[#allocation11_spill] sm:$0xff] }
 0x672   : > { %v2740_v2 = vrot.slane %v2678_v32, 1  ;;  %v572_v48 = vadd.f32 %v6533_v18, %v3770_v21  ;;  %v557_v29 = vadd.f32 %v6533_v18, %v3788_v28  ;;  %v564_v3 = vadd.f32 %v6533_v18, %v3786_v27 }
 0x673   : > { %v5580_v15 = vadd.f32 %v1018_v53, %v6534_v4  ;;  %v5589_v32 = vadd.f32 %v1019_v39, %v6534_v4  ;;  %v573_v10 = vadd.f32 %v6533_v18, %v3856_v12  ;;  %v581_v20 = vadd.f32 %v6533_v18, %v3860_v14  ;;  %v6541_v39 = vld [vmem:[#allocation14_spill] sm:$0xff]  ;;  %v6542_v4 = vld [vmem:[#allocation15_spill] sm:$0xff] }
 0x674   : > { %v2741_v16 = vsel %vm1175_vm4, %v2739_v34, %v2740_v2  ;;  %v2770_v55 = vsel %vm1175_vm4, %v2740_v2, %v2710_v54  ;;  %v560_v34 = vadd.f32 %v6533_v18, %v3619_v36  ;;  %v578_v36 = vadd.f32 %v6533_v18, %v3708_v63  ;;  %v6535_v2 = vld [vmem:[#allocation6_spill] sm:$0xff] }
 0x675   : > { %v2800_v56 = vsel %vm1207_vm5, %v2770_v55, 0.0  ;;  %v571_v54 = vadd.f32 %v6533_v18, %v3729_v5  ;;  %v570_v63 = vadd.f32 %v6533_v18, %v3706_v62  ;;  %v580_v5 = vadd.f32 %v6533_v18, %v3797_v30 }
 0x676   : > { %2887 = vrot.lane.b32.xlu2 %v2741_v16, %s3477_s28  ;;  %2889 = vrot.lane.b32.xlu0 %v2800_v56, %s3477_s28  ;;  %v565_v62 = vadd.f32 %v6533_v18, %v3817_v44  ;;  %v558_v21 = vadd.f32 %v6533_v18, %v3873_v19  ;;  %v566_v28 = vadd.f32 %v6533_v18, %v3877_v24  ;;  %v6537_v24 = vld [vmem:[#allocation8_spill] sm:$0xff]  ;;  %v6538_v56 = vld [vmem:[#allocation10_spill] sm:$0xff] }
 0x677   : > { %v574_v27 = vadd.f32 %v6533_v18, %v6396_v11  ;;  %v582_v30 = vadd.f32 %v6533_v18, %v3953_v8  ;;  %v559_v44 = vadd.f32 %v6533_v18, %v3892_v52  ;;  %v567_v12 = vadd.f32 %v6533_v18, %v3955_v50  ;;  %v6540_v52 = vld [vmem:[#allocation12_spill] sm:$0xff] }
 0x678   : > { %v575_v14 = vadd.f32 %v6533_v18, %v6397_v23  ;;  %v817_v19 = vadd.f32 %v6535_v2, %v563_v43  ;;  %v809_v16 = vadd.f32 %v6536_v57, %v555_v45  ;;  %v810_v55 = vadd.f32 %v6537_v24, %v556_v6  ;;  %v6543_v23 = vld [vmem:[#allocation17_spill] sm:$0xff]  ;;  %v6544_v43 = vld [vmem:[#allocation18_spill] sm:$0xff]  ;;  %v6545_v45 = vld [vmem:[#allocation19_spill] sm:$0xff] }
 0x679   : > { %v583_v11 = vadd.f32 %v6533_v18, %v6406_v41  ;;  %v825_v8 = vadd.f32 %v6538_v56, %v571_v54  ;;  %v833_v35 = vadd.f32 %v6539_v1, %v579_v47  ;;  %v826_v53 = vadd.f32 %v6540_v52, %v572_v48  ;;  %v6546_v24 = vld [vmem:[#allocation20_spill] sm:$0xff]  ;;  %v6547_v18 = vld [vmem:[#allocation21_spill] sm:$0xff]  ;;  %v6548_v56 = vld [vmem:[#allocation22_spill] sm:$0xff] }
 0x67a   : > { %v818_v50 = vadd.f32 %v6541_v39, %v564_v3  ;;  %v811_v0 = vadd.f32 %v6542_v4, %v557_v29  ;;  %v834_v49 = vadd.f32 %v6543_v23, %v580_v5  ;;  %v819_v2 = vadd.f32 %v6544_v43, %v565_v62  ;;  %v6549_v1 = vld [vmem:[#allocation23_spill] sm:$0xff]  ;;  %v6550_v52 = vld [vmem:[#allocation24_spill] sm:$0xff]  ;;  %v6552_v23 = vld [vmem:[#allocation25_spill] sm:$0xff] }
 0x67b   : > { %v827_v57 = vadd.f32 %v6545_v45, %v573_v10  ;;  %v835_v41 = vadd.f32 %v6546_v24, %v581_v20  ;;  %v812_v54 = vadd.f32 %v6547_v18, %v558_v21  ;;  %v820_v47 = vadd.f32 %v6548_v56, %v566_v28  ;;  %v6551_v39 = vld [vmem:[#allocation32_spill] sm:$0xff]  ;;  %v6553_v43 = vld [vmem:[#allocation26_spill] sm:$0xff]  ;;  %v6563_v18 = vld [vmem:[#allocation37_spill] sm:$0xff] }
 0x67c   : > { %v828_v48 = vadd.f32 %v4058_v61, %v574_v27  ;;  %v836_v3 = vadd.f32 %v4066_v7, %v582_v30  ;;  %v813_v4 = vadd.f32 %v6549_v1, %v559_v44  ;;  %v821_v29 = vadd.f32 %v4078_v33, %v567_v12  ;;  %v6554_v27 = vld [vmem:[#allocation27_spill] sm:$0xff]  ;;  %v6555_v30 = vld [vmem:[#allocation30_spill] sm:$0xff]  ;;  %v6556_v45 = vld [vmem:[#allocation28_spill] sm:$0xff] }
 0x67d   : > { %v829_v5 = vadd.f32 %v4080_v26, %v575_v14  ;;  %v814_v62 = vadd.f32 %v4087_v31, %v560_v34  ;;  %v837_v10 = vadd.f32 %v4094_v25, %v583_v11  ;;  %v822_v20 = vadd.f32 %v6550_v52, %v568_v40  ;;  %v6557_v12 = vld [vmem:[#allocation29_spill] sm:$0xff]  ;;  %v6558_v14 = vld [vmem:[#allocation31_spill] sm:$0xff]  ;;  %v6560_v11 = vld [vmem:[#allocation34_spill] sm:$0xff] }
 0x67e   : > { %v808_v21 = vadd.f32 %v6551_v39, %v554_v46  ;;  %v823_v28 = vadd.f32 %v6552_v23, %v569_v22  ;;  %v830_v61 = vadd.f32 %v6553_v43, %v576_v9  ;;  %v832_v7 = vadd.f32 %v6554_v27, %v578_v36  ;;  %v6559_v34 = vld [vmem:[#allocation33_spill] sm:$0xff]  ;;  %v6561_v46 = vld [vmem:[#allocation35_spill] sm:$0xff]  ;;  %v6562_v22 = vld [vmem:[#allocation36_spill] sm:$0xff] }
 0x67f   : > { %v824_v44 = vadd.f32 %v6555_v30, %v570_v63  ;;  %v816_v33 = vadd.f32 %v6556_v45, %v562_v38  ;;  %v815_v26 = vadd.f32 %v6557_v12, %v561_v60  ;;  %v831_v31 = vadd.f32 %v6558_v14, %v577_v51  ;;  %v6564_v56 = vld [vmem:[#allocation39_spill] sm:$0xff]  ;;  %v6565_v38 = vld [vmem:[#allocation38_spill] sm:$0xff]  ;;  %v6566_v60 = vld [vmem:[#allocation40_spill] sm:$0xff] }
 0x680   : > { %v1020_v25 = vadd.f32 %v6559_v34, %v808_v21  ;;  %v5675_v40 = vadd.f32 %v6560_v11, %v832_v7  ;;  %v1029_v9 = vadd.f32 %v6562_v22, %v817_v19  ;;  %v1021_v36 = vadd.f32 %v6563_v18, %v809_v16  ;;  %v6567_v51 = vld [vmem:[#allocation43_spill] sm:$0xff]  ;;  %v6568_v21 = vld [vmem:[#allocation41_spill] sm:$0xff]  ;;  %v6569_v43 = vld [vmem:[#allocation42_spill] sm:$0xff] }
 0x681   : > { %v5678_v24 = vadd.f32 %v6561_v46, %v824_v44  ;;  %v5683_v63 = vadd.f32 %v6564_v56, %v826_v53  ;;  %v1028_v1 = vadd.f32 %v6565_v38, %v816_v33  ;;  %v5687_v52 = vadd.f32 %v6566_v60, %v833_v35  ;;  %v6570_v7 = vld [vmem:[#allocation47_spill] sm:$0xff]  ;;  %v6571_v53 = vld [vmem:[#allocation44_spill] sm:$0xff]  ;;  %v6572_v45 = vld [vmem:[#allocation45_spill] sm:$0xff] }
 0x682   : > { %v1023_v39 = vadd.f32 %v6567_v51, %v811_v0  ;;  %v1037_v23 = vadd.f32 %v6568_v21, %v825_v8  ;;  %v1030_v27 = vadd.f32 %v6569_v43, %v818_v50  ;;  %v5693_v30 = vadd.f32 %v6570_v7, %v835_v41  ;;  %v6573_v35 = vld [vmem:[#allocation50_spill] sm:$0xff]  ;;  %v6575_v8 = vld [vmem:[#allocation48_spill] sm:$0xff]  ;;  %v6576_v34 = vld [vmem:[#allocation53_spill] sm:$0xff] }
 0x683   : > { %v1715_v19 = vadd.f32 %v4731_v13, %v5580_v15  ;;  %v1022_v44 = vadd.f32 %v6571_v53, %v810_v55  ;;  %v5701_v33 = vadd.f32 %v6572_v45, %v827_v57  ;;  %v1032_v12 = vadd.f32 %v6573_v35, %v820_v47  ;;  %v6574_v0 = vld [vmem:[#allocation46_spill] sm:$0xff]  ;;  %v6577_v11 = vld [vmem:[#allocation49_spill] sm:$0xff]  ;;  %v6578_v46 = vld [vmem:[#allocation51_spill] sm:$0xff] }
 0x684   : > { %v5705_v14 = vadd.f32 %v6574_v0, %v834_v49  ;;  %v1024_v50 = vadd.f32 %v6575_v8, %v812_v54  ;;  %v5709_v41 = vadd.f32 %v6576_v34, %v829_v5  ;;  %v1716_v13 = vadd.f32 %v4664_v58, %v5589_v32  ;;  %v6579_v22 = vld [vmem:[#allocation57_spill] sm:$0xff]  ;;  %v6580_v18 = vld [vmem:[#allocation52_spill] sm:$0xff]  ;;  %v6581_v56 = vld [vmem:[#allocation54_spill] sm:$0xff] }
 0x685   : > { %v2067_v15 = vadd.f32 %v4960_v17, %v1715_v19  ;;  %v1031_v55 = vadd.f32 %v6577_v11, %v819_v2  ;;  %v5716_v57 = vadd.f32 %v6578_v46, %v836_v3  ;;  %v1026_v47 = vadd.f32 %v6579_v22, %v814_v62  ;;  %v6582_v54 = vld [vmem:[#allocation61_spill] sm:$0xff]  ;;  %v6583_v32 = vld [vmem:[#allocation55_spill] sm:$0xff]  ;;  %v6584_v51 = vld [vmem:[#allocation56_spill] sm:$0xff] }
 0x686   : > { %v1040_v49 = vadd.f32 %v6580_v18, %v828_v48  ;;  %v5721_v38 = vadd.f32 %v6581_v56, %v821_v29  ;;  %v1035_v5 = vadd.f32 %v6582_v54, %v823_v28  ;;  %v2068_v60 = vadd.f32 %v4964_v42, %v1716_v13  ;;  %v6585_v3 = vld [vmem:[#allocation58_spill] sm:$0xff]  ;;  %v6586_v62 = vld [vmem:[#allocation59_spill] sm:$0xff]  ;;  %v6587_v48 = vld [vmem:[#allocation60_spill] sm:$0xff] }
 0x687   : > { %v2403_v58 = vadd.f32 %v5210_v37, %v2067_v15  ;;  %v1025_v17 = vadd.f32 %v6583_v32, %v813_v4  ;;  %v5728_v2 = vadd.f32 %v6584_v51, %v830_v61  ;;  %v5731_v21 = vadd.f32 %v6585_v3, %v837_v10  ;;  %v6588_v29 = vld [vmem:[#allocation65_spill] sm:$0xff]  ;;  %v6590_v45 = vld [vmem:[#allocation63_spill] sm:$0xff]  ;;  %v6591_v35 = vld [vmem:[#allocation62_spill] sm:$0xff] }
 0x688   : > { %v5652_v6 = vpop.permute.xlu2 %2833  ;;  %v1027_v43 = vadd.f32 %v6586_v62, %v815_v26  ;;  %v1034_v7 = vadd.f32 %v6587_v48, %v822_v20  ;;  %v1364_v19 = vadd.f32 %v6588_v29, %v1020_v25  ;;  %v2404_v28 = vadd.f32 %v5208_v59, %v2068_v60  ;;  %v6589_v53 = vld [vmem:[#allocation181_spill] sm:$0xff]  ;;  %v6592_v0 = vld [vmem:[#allocation64_spill] sm:$0xff]  ;;  %v6594_v13 = vld [vmem:[#allocation66_spill] sm:$0xff] }
 0x689   : > { %v2585_v42 = vadd.f32 %v6589_v53, %v2403_v58  ;;  %v1366_v37 = vadd.f32 %v6590_v45, %v1022_v44  ;;  %v1043_v4 = vadd.f32 %v6591_v35, %v831_v31  ;;  %v1369_v61 = vadd.f32 %v6592_v0, %v1025_v17  ;;  %v6593_v8 = vld [vmem:[#allocation68_spill] sm:$0xff]  ;;  %v6596_v11 = vld [vmem:[#allocation182_spill] sm:$0xff]  ;;  %v6597_v59 = vld [vmem:[#allocation67_spill] sm:$0xff] }
 0x68a   : > { %v1365_v34 = vadd.f32 %v6593_v8, %v1021_v36  ;;  %v5743_v15 = vadd.f32 %v6594_v13, %v1028_v1  ;;  %v6595_v26 = vld [vmem:[#allocation88_spill] sm:$0xff]  ;;  %v2586_v25 = vadd.f32 %v6596_v11, %v2404_v28  ;;  %v1367_v22 = vadd.f32 %v6597_v59, %v1023_v39  ;;  %v6598_v18 = vld [vmem:[#allocation2_spill] sm:$0xff]  ;;  %v6599_v44 = vld [vmem:[#allocation3_spill] sm:$0xff] }
 0x68b   : > { %v1717_v20 = vadd.f32 %v6595_v26, %v1364_v19  ;;  %v5749_v56 = vadd.f32 %v6598_v18, %v1031_v55  ;;  %v5752_v31 = vadd.f32 %v6599_v44, %v1026_v47  ;;  %v6600_v54 = vld [vmem:[#allocation101_spill] sm:$0xff]  ;;  %v6601_v36 = vld [vmem:[#allocation70_spill] sm:$0xff]  ;;  %v6604_v39 = vld [vmem:[#allocation71_spill] sm:$0xff] }
 0x68c   : > { %v1718_v60 = vadd.f32 %v6600_v54, %v1365_v34  ;;  %v5756_v58 = vadd.f32 %v6601_v36, %v1034_v7  ;;  %v6602_v1 = vld [vmem:[#allocation69_spill] sm:$0xff]  ;;  %v6603_v17 = vld [vmem:[#allocation118_spill] sm:$0xff]  ;;  %v5761_v3 = vadd.f32 %v5652_v6, %v2586_v25  ;;  %v5767_v55 = vadd.f32 %v6604_v39, %v1029_v9  ;;  %v6607_v19 = vld [vmem:[#allocation123_spill] sm:$0xff] }
 0x68d   : > { %v1368_v32 = vadd.f32 %v6602_v1, %v1024_v50  ;;  %v2069_v51 = vadd.f32 %v6603_v17, %v1717_v20  ;;  %v6605_v47 = vld [vmem:[#allocation73_spill] sm:$0xff]  ;;  %v6608_v28 = vld [vmem:[#allocation72_spill] sm:$0xff]  ;;  %v6614_v26 = vld [vmem:[#allocation75_spill] sm:$0xff] }
 0x68e   : > { %v5770_v48 = vadd.f32 %v6605_v47, %v1037_v23  ;;  %v6606_v7 = vld [vmem:[#allocation89_spill] sm:$0xff]  ;;  %v2070_v50 = vadd.f32 %v6607_v19, %v1718_v60  ;;  %v1371_v53 = vadd.f32 %v6608_v28, %v1027_v43  ;;  %v6610_v45 = vld [vmem:[#allocation148_spill] sm:$0xff]  ;;  %v6619_v60 = vld [vmem:[#allocation183_spill] sm:$0xff] }
 0x68f   : > { %v1719_v29 = vadd.f32 %v6606_v7, %v1366_v37  ;;  %v2405_v35 = vadd.f32 %v6610_v45, %v2069_v51  ;;  %v6611_v8 = vld [vmem:[#allocation76_spill] sm:$0xff]  ;;  %v5785_v37 = vadd.f32 %v6614_v26, %v1030_v27  ;;  %v6616_v25 = vld [vmem:[#allocation9_spill] sm:$0xff]  ;;  %v6620_v17 = vld [vmem:[#allocation91_spill] sm:$0xff]  ;;  %v2955_v51 = vsel %vm2953_vm6, %v5761_v3, 0.0 }
 0x690   : > { %v5697_v16 = vpop.permute.xlu2 %2839  ;;  %v5780_v34 = vadd.f32 %v6611_v8, %v1040_v49  ;;  %v6612_v9 = vld [vmem:[#allocation124_spill] sm:$0xff]  ;;  %v5792_v59 = vadd.f32 %v6616_v25, %v1035_v5  ;;  %v6617_v49 = vld [vmem:[#allocation90_spill] sm:$0xff]  ;;  %v6618_v44 = vld [vmem:[#allocation153_spill] sm:$0xff]  ;;  %v1722_v27 = vadd.f32 %v6620_v17, %v1369_v61 }
 0x691   : > { %v6613_v23 = vld [vmem:[#allocation152_spill] sm:$0xff]  ;;  %v1720_v18 = vadd.f32 %v6617_v49, %v1367_v22  ;;  %v6621_v7 = vld [vmem:[#allocation102_spill] sm:$0xff]  ;;  %v6623_v28 = vld [vmem:[#allocation119_spill] sm:$0xff] }
 0x692   : > { %v2406_v13 = vadd.f32 %v6613_v23, %v2070_v50  ;;  %v6615_v20 = vld [vmem:[#allocation176_spill] sm:$0xff]  ;;  %v1721_v5 = vadd.f32 %v6621_v7, %v1368_v32  ;;  %v6632_v7 = vld [vmem:[#allocation177_spill] sm:$0xff] }
 0x693   : > { %v2587_v11 = vadd.f32 %v6615_v20, %v2405_v35 }
 0x694   : > { %v2588_v36 = vadd.f32 %v6619_v60, %v2406_v13  ;;  %v6625_v13 = vld [vmem:[#allocation126_spill] sm:$0xff] }
 0x695   : > { %v2073_v26 = vadd.f32 %v6625_v13, %v1721_v5 }
 0x697   : > { %v2832_v10 = vpop.permute.xlu1 %2831 }
 0x698   : > { %v2921_v46 = vadd.f32 %v2832_v10, %v2585_v42  ;;  %v5763_v62 = vpop.permute.xlu2 %2845  ;;  %v6609_v42 = vld [vmem:[#allocation74_spill] sm:$0xff]  ;;  %v2071_v10 = vadd.f32 %v6612_v9, %v1719_v29  ;;  %v6622_v29 = vld [vmem:[#allocation184_spill] sm:$0xff] }
 0x699   : > { %v5776_v6 = vadd.f32 %v6609_v42, %v1032_v12  ;;  %v3030_v12 = vmul.f32 %v5761_v3, %v5761_v3  ;;  %v2072_v42 = vadd.f32 %v6623_v28, %v1720_v18 }
 0x69a   : > { %3167 = vrot.lane.b32.xlu0 %v2921_v46, %s3486_s17  ;;  %v3029_v0 = vmul.f32 %v2921_v46, %v2921_v46  ;;  %v2954_v43 = vsel %vm2953_vm6, %v2921_v46, 0.0  ;;  %v2407_v54 = vadd.f32 %v6618_v44, %v2071_v10  ;;  %v6624_v10 = vld [vmem:[#allocation77_spill] sm:$0xff] }
 0x69b   : > { %v2956_v22 = vadd.f32 %v2955_v51, %v2954_v43  ;;  %v3062_v45 = vsel %vm2953_vm6, %v3030_v12, 0.0  ;;  %v5817_v23 = vadd.f32 %v6624_v10, %v1043_v4  ;;  %v6626_v43 = vld [vmem:[#allocation127_spill] sm:$0xff]  ;;  %v6629_v4 = vld [vmem:[#allocation78_spill] sm:$0xff] }
 0x69c   : > { %v3061_v39 = vsel %vm2953_vm6, %v3029_v0, 0.0  ;;  %v2589_v19 = vadd.f32 %v6622_v29, %v2407_v54  ;;  %v2074_v25 = vadd.f32 %v6626_v43, %v1722_v27  ;;  %v6628_v54 = vld [vmem:[#allocation13_spill] sm:$0xff] }
 0x69d   : > { %v3063_v8 = vadd.f32 %v3062_v45, %v3061_v39  ;;  %v5827_v60 = vadd.f32 %v6628_v54, %v5721_v38  ;;  %v6631_v39 = vld [vmem:[#allocation156_spill] sm:$0xff] }
 0x69e   : > { %v5812_v0 = vadd.f32 %v5697_v16, %v2589_v19  ;;  %v6627_v16 = vld [vmem:[#allocation149_spill] sm:$0xff]  ;;  %v6633_v19 = vld [vmem:[#allocation79_spill] sm:$0xff] }
 0x69f   : > { %v2836_v1 = vpop.permute.xlu0 %2835  ;;  %v2408_v49 = vadd.f32 %v6627_v16, %v2072_v42  ;;  %v5841_v38 = vadd.f32 %v6633_v19, %v5678_v24  ;;  %v6636_v42 = vld [vmem:[#allocation186_spill] sm:$0xff] }
 0x6a0   : > { %v5801_v47 = vadd.f32 %v2836_v1, %v2587_v11  ;;  %v2838_v46 = vpop.permute.xlu1 %2837  ;;  %v5821_v11 = vpop.permute.xlu2 %2851  ;;  %v6630_v1 = vld [vmem:[#allocation155_spill] sm:$0xff]  ;;  %v3033_v5 = vmul.f32 %v5812_v0, %v5812_v0  ;;  %v2961_v10 = vsel %vm2953_vm6, %v5812_v0, 0.0 }
 0x6a1   : > { %v2924_v50 = vadd.f32 %v2838_v46, %v2588_v36  ;;  %v5831_v36 = vadd.f32 %v6629_v4, %v5683_v63  ;;  %v2409_v17 = vadd.f32 %v6630_v1, %v2073_v26  ;;  %v2410_v46 = vadd.f32 %v6631_v39, %v2074_v25  ;;  %v6639_v26 = vld [vmem:[#allocation105_spill] sm:$0xff] }
 0x6a2   : > { %v2957_v61 = vsel %vm2953_vm6, %v5801_v47, 0.0  ;;  %v3031_v35 = vmul.f32 %v5801_v47, %v5801_v47  ;;  %v2590_v27 = vadd.f32 %v6632_v7, %v2408_v49  ;;  %v3068_v25 = vsel %vm2953_vm6, %v3033_v5, 0.0  ;;  %v6644_v7 = vld [vmem:[#allocation82_spill] sm:$0xff] }
 0x6a3   : > { %v2958_v9 = vadd.f32 %v2957_v61, %v2956_v22  ;;  %v2959_v32 = vsel %vm2953_vm6, %v2924_v50, 0.0  ;;  %3173 = vrot.lane.b32.xlu0 %v2924_v50, %s3486_s17  ;;  %v3032_v12 = vmul.f32 %v2924_v50, %v2924_v50  ;;  %v6634_v22 = vld [vmem:[#allocation81_spill] sm:$0xff]  ;;  %v6635_v50 = vld [vmem:[#allocation92_spill] sm:$0xff]  ;;  %v2591_v45 = vadd.f32 %v6636_v42, %v2409_v17  ;;  %v6645_v5 = vld [vmem:[#allocation158_spill] sm:$0xff] }
 0x6a4   : > { %v3064_v20 = vsel %vm2953_vm6, %v3031_v35, 0.0  ;;  %v5845_v63 = vadd.f32 %v6634_v22, %v5709_v41  ;;  %v1723_v28 = vadd.f32 %v6635_v50, %v5752_v31  ;;  %v6637_v35 = vld [vmem:[#allocation93_spill] sm:$0xff]  ;;  %v1724_v41 = vadd.f32 %v6639_v26, %v1371_v53 }
 0x6a5   : > { %v3065_v18 = vadd.f32 %v3064_v20, %v3063_v8  ;;  %v2960_v44 = vadd.f32 %v2959_v32, %v2958_v9  ;;  %v3066_v51 = vsel %vm2953_vm6, %v3032_v12, 0.0  ;;  %v1725_v8 = vadd.f32 %v6637_v35, %v5743_v15  ;;  %v6638_v9 = vld [vmem:[#allocation187_spill] sm:$0xff]  ;;  %v6640_v20 = vld [vmem:[#allocation120_spill] sm:$0xff] }
 0x6a6   : > { %v2592_v32 = vadd.f32 %v6638_v9, %v2410_v46  ;;  %v2075_v12 = vadd.f32 %v6640_v20, %v1723_v28  ;;  %v6646_v28 = vld [vmem:[#allocation159_spill] sm:$0xff]  ;;  %v6648_v9 = vld [vmem:[#allocation84_spill] sm:$0xff] }
 0x6a7   : > { %v3067_v29 = vadd.f32 %v3066_v51, %v3065_v18  ;;  %v2962_v43 = vadd.f32 %v2961_v10, %v2960_v44  ;;  %v6641_v18 = vld [vmem:[#allocation129_spill] sm:$0xff]  ;;  %v6642_v44 = vld [vmem:[#allocation130_spill] sm:$0xff] }
 0x6a8   : > { %v2842_v61 = vpop.permute.xlu0 %2841  ;;  %v5861_v16 = vadd.f32 %v5763_v62, %v2592_v32  ;;  %v2076_v54 = vadd.f32 %v6641_v18, %v1724_v41  ;;  %v2077_v17 = vadd.f32 %v6642_v44, %v1725_v8  ;;  %v6643_v51 = vld [vmem:[#allocation150_spill] sm:$0xff]  ;;  %v2858_v22 = vpop.permute.xlu2 %2857  ;;  %v5885_v32 = vadd.f32 %v6648_v9, %v5728_v2  ;;  %v6653_v2 = vld [vmem:[#allocation108_spill] sm:$0xff] }
 0x6a9   : > { %v5855_v24 = vadd.f32 %v2842_v61, %v2590_v27  ;;  %v2844_v13 = vpop.permute.xlu1 %2843  ;;  %v3069_v1 = vadd.f32 %v3068_v25, %v3067_v29  ;;  %v2411_v39 = vadd.f32 %v6643_v51, %v2075_v12  ;;  %v5875_v27 = vadd.f32 %v6644_v7, %v5701_v33  ;;  %v6649_v33 = vld [vmem:[#allocation94_spill] sm:$0xff]  ;;  %v6651_v12 = vld [vmem:[#allocation95_spill] sm:$0xff] }
 0x6aa   : > { %v2927_v31 = vadd.f32 %v2844_v13, %v2591_v45  ;;  %v2412_v19 = vadd.f32 %v6645_v5, %v2076_v54  ;;  %v2413_v42 = vadd.f32 %v6646_v28, %v2077_v17  ;;  %v6647_v45 = vld [vmem:[#allocation178_spill] sm:$0xff]  ;;  %v3036_v35 = vmul.f32 %v5861_v16, %v5861_v16  ;;  %v6650_v13 = vld [vmem:[#allocation189_spill] sm:$0xff] }
 0x6ab   : > { %v2963_v15 = vsel %vm2953_vm6, %v5855_v24, 0.0  ;;  %v3034_v49 = vmul.f32 %v5855_v24, %v5855_v24  ;;  %v2593_v61 = vadd.f32 %v6647_v45, %v2411_v39  ;;  %v1726_v10 = vadd.f32 %v6649_v33, %v5767_v55  ;;  %v6655_v39 = vld [vmem:[#allocation132_spill] sm:$0xff]  ;;  %v6656_v5 = vld [vmem:[#allocation133_spill] sm:$0xff]  ;;  %v6660_v33 = vld [vmem:[#allocation162_spill] sm:$0xff] }
 0x6ac   : > { %v2964_v4 = vadd.f32 %v2963_v15, %v2962_v43  ;;  %v3035_v53 = vmul.f32 %v2927_v31, %v2927_v31  ;;  %3179 = vrot.lane.b32.xlu0 %v2927_v31, %s3486_s17  ;;  %v2965_v46 = vsel %vm2953_vm6, %v2927_v31, 0.0  ;;  %v2594_v26 = vadd.f32 %v6650_v13, %v2412_v19  ;;  %v6652_v31 = vld [vmem:[#allocation190_spill] sm:$0xff]  ;;  %v6661_v13 = vld [vmem:[#allocation179_spill] sm:$0xff] }
 0x6ad   : > { %v3070_v62 = vsel %vm2953_vm6, %v3034_v49, 0.0  ;;  %v1728_v43 = vadd.f32 %v6651_v12, %v5749_v56  ;;  %v2595_v25 = vadd.f32 %v6652_v31, %v2413_v42  ;;  %v2967_v15 = vsel %vm2953_vm6, %v5861_v16, 0.0  ;;  %v6658_v42 = vld [vmem:[#allocation80_spill] sm:$0xff] }
 0x6ae   : > { %v3071_v50 = vadd.f32 %v3070_v62, %v3069_v1  ;;  %v2966_v29 = vadd.f32 %v2965_v46, %v2964_v4  ;;  %v3072_v8 = vsel %vm2953_vm6, %v3035_v53, 0.0  ;;  %v1727_v54 = vadd.f32 %v6653_v2, %v5785_v37  ;;  %v6654_v4 = vld [vmem:[#allocation121_spill] sm:$0xff]  ;;  %v6662_v12 = vld [vmem:[#allocation16_spill] sm:$0xff] }
 0x6af   : > { %v2078_v55 = vadd.f32 %v6654_v4, %v1726_v10  ;;  %v3074_v44 = vsel %vm2953_vm6, %v3036_v35, 0.0  ;;  %v5902_v17 = vadd.f32 %v5821_v11, %v2595_v25  ;;  %v2080_v19 = vadd.f32 %v6656_v5, %v1728_v43  ;;  %v6664_v25 = vld [vmem:[#allocation192_spill] sm:$0xff]  ;;  %v6665_v4 = vld [vmem:[#allocation97_spill] sm:$0xff] }
 0x6b0   : > { %v3073_v41 = vadd.f32 %v3072_v8, %v3071_v50  ;;  %v2848_v20 = vpop.permute.xlu0 %2847  ;;  %v2968_v1 = vadd.f32 %v2967_v15, %v2966_v29  ;;  %v2079_v62 = vadd.f32 %v6655_v39, %v1727_v54  ;;  %v6657_v50 = vld [vmem:[#allocation151_spill] sm:$0xff]  ;;  %v5916_v45 = vadd.f32 %v6658_v42, %v5705_v14  ;;  %v6663_v14 = vld [vmem:[#allocation96_spill] sm:$0xff] }
 0x6b1   : > { %v5895_v49 = vadd.f32 %v2848_v20, %v2593_v61  ;;  %v2850_v18 = vpop.permute.xlu1 %2849  ;;  %v2414_v29 = vadd.f32 %v6657_v50, %v2078_v55  ;;  %v6659_v61 = vld [vmem:[#allocation161_spill] sm:$0xff]  ;;  %v2416_v10 = vadd.f32 %v6660_v33, %v2080_v19  ;;  %v5926_v43 = vadd.f32 %v6662_v12, %v5731_v21  ;;  %v6669_v50 = vld [vmem:[#allocation135_spill] sm:$0xff] }
 0x6b2   : > { %v2930_v53 = vadd.f32 %v2850_v18, %v2594_v26  ;;  %v3075_v7 = vadd.f32 %v3074_v44, %v3073_v41  ;;  %v2415_v35 = vadd.f32 %v6659_v61, %v2079_v62  ;;  %v3039_v41 = vmul.f32 %v5902_v17, %v5902_v17  ;;  %v2864_v18 = vpop.permute.xlu2 %2863  ;;  %v6672_v33 = vld [vmem:[#allocation83_spill] sm:$0xff]  ;;  %v6674_v12 = vld [vmem:[#allocation165_spill] sm:$0xff] }
 0x6b3   : > { %v2969_v56 = vsel %vm2953_vm6, %v5895_v49, 0.0  ;;  %v3037_v51 = vmul.f32 %v5895_v49, %v5895_v49  ;;  %v2596_v26 = vadd.f32 %v6661_v13, %v2414_v29  ;;  %v1729_v31 = vadd.f32 %v6663_v14, %v5776_v6  ;;  %v6668_v6 = vld [vmem:[#allocation122_spill] sm:$0xff]  ;;  %v6673_v13 = vld [vmem:[#allocation164_spill] sm:$0xff] }
 0x6b4   : > { %v2970_v46 = vadd.f32 %v2969_v56, %v2968_v1  ;;  %v3038_v37 = vmul.f32 %v2930_v53, %v2930_v53  ;;  %3185 = vrot.lane.b32.xlu0 %v2930_v53, %s3486_s17  ;;  %v2971_v28 = vsel %vm2953_vm6, %v2930_v53, 0.0  ;;  %v2597_v15 = vadd.f32 %v6664_v25, %v2415_v35  ;;  %v6666_v1 = vld [vmem:[#allocation193_spill] sm:$0xff]  ;;  %v6671_v35 = vld [vmem:[#allocation154_spill] sm:$0xff] }
 0x6b5   : > { %v3076_v11 = vsel %vm2953_vm6, %v3037_v51, 0.0  ;;  %v1731_v55 = vadd.f32 %v6665_v4, %v5756_v58  ;;  %v2598_v53 = vadd.f32 %v6666_v1, %v2416_v10  ;;  %v2973_v44 = vsel %vm2953_vm6, %v5902_v17, 0.0  ;;  %v6667_v51 = vld [vmem:[#allocation111_spill] sm:$0xff] }
 0x6b6   : > { %v3077_v8 = vadd.f32 %v3076_v11, %v3075_v7  ;;  %v2972_v9 = vadd.f32 %v2971_v28, %v2970_v46  ;;  %v3078_v20 = vsel %vm2953_vm6, %v3038_v37, 0.0  ;;  %v1730_v39 = vadd.f32 %v6667_v51, %v5827_v60  ;;  %v6670_v60 = vld [vmem:[#allocation136_spill] sm:$0xff]  ;;  %v6678_v1 = vld [vmem:[#allocation195_spill] sm:$0xff] }
 0x6b7   : > { %v2081_v62 = vadd.f32 %v6668_v6, %v1729_v31  ;;  %v3080_v37 = vsel %vm2953_vm6, %v3039_v41, 0.0  ;;  %v5942_v5 = vadd.f32 %v2858_v22, %v2598_v53  ;;  %v2083_v61 = vadd.f32 %v6670_v60, %v1731_v55  ;;  %v6675_v31 = vld [vmem:[#allocation180_spill] sm:$0xff]  ;;  %v6679_v51 = vld [vmem:[#allocation99_spill] sm:$0xff] }
 0x6b8   : > { %v3079_v2 = vadd.f32 %v3078_v20, %v3077_v8  ;;  %v2854_v54 = vpop.permute.xlu0 %2853  ;;  %v2974_v46 = vadd.f32 %v2973_v44, %v2972_v9  ;;  %v2082_v29 = vadd.f32 %v6669_v50, %v1730_v39  ;;  %v5956_v10 = vadd.f32 %v6672_v33, %v5675_v40  ;;  %v6677_v40 = vld [vmem:[#allocation98_spill] sm:$0xff]  ;;  %v6680_v6 = vld [vmem:[#allocation196_spill] sm:$0xff] }
 0x6b9   : > { %v5936_v56 = vadd.f32 %v2854_v54, %v2596_v26  ;;  %v2856_v21 = vpop.permute.xlu1 %2855  ;;  %v2417_v8 = vadd.f32 %v6671_v35, %v2081_v62  ;;  %v2419_v14 = vadd.f32 %v6674_v12, %v2083_v61  ;;  %v6676_v54 = vld [vmem:[#allocation85_spill] sm:$0xff]  ;;  %v1732_v55 = vadd.f32 %v6677_v40, %v5792_v59  ;;  %v6683_v61 = vld [vmem:[#allocation138_spill] sm:$0xff] }
 0x6ba   : > { %v2933_v7 = vadd.f32 %v2856_v21, %v2597_v15  ;;  %v3081_v28 = vadd.f32 %v3080_v37, %v3079_v2  ;;  %v2418_v26 = vadd.f32 %v6673_v13, %v2082_v29  ;;  %v3042_v15 = vmul.f32 %v5942_v5, %v5942_v5  ;;  %v2870_v50 = vpop.permute.xlu2 %2869  ;;  %v6685_v13 = vld [vmem:[#allocation157_spill] sm:$0xff] }
 0x6bb   : > { %v2975_v58 = vsel %vm2953_vm6, %v5936_v56, 0.0  ;;  %v3040_v19 = vmul.f32 %v5936_v56, %v5936_v56  ;;  %v2599_v25 = vadd.f32 %v6675_v31, %v2417_v8  ;;  %v5966_v4 = vadd.f32 %v6676_v54, %v5693_v30  ;;  %v6681_v30 = vld [vmem:[#allocation113_spill] sm:$0xff] }
 0x6bc   : > { %v2976_v11 = vadd.f32 %v2975_v58, %v2974_v46  ;;  %v3041_v42 = vmul.f32 %v2933_v7, %v2933_v7  ;;  %3191 = vrot.lane.b32.xlu0 %v2933_v7, %s3486_s17  ;;  %v2977_v9 = vsel %vm2953_vm6, %v2933_v7, 0.0  ;;  %v2600_v53 = vadd.f32 %v6678_v1, %v2418_v26  ;;  %v6689_v40 = vld [vmem:[#allocation185_spill] sm:$0xff] }
 0x6bd   : > { %v3082_v22 = vsel %vm2953_vm6, %v3040_v19, 0.0  ;;  %v1734_v39 = vadd.f32 %v6679_v51, %v5770_v48  ;;  %v2601_v62 = vadd.f32 %v6680_v6, %v2419_v14  ;;  %v2979_v46 = vsel %vm2953_vm6, %v5942_v5, 0.0  ;;  %v6682_v19 = vld [vmem:[#allocation125_spill] sm:$0xff]  ;;  %v6687_v14 = vld [vmem:[#allocation167_spill] sm:$0xff] }
 0x6be   : > { %v3083_v41 = vadd.f32 %v3082_v22, %v3081_v28  ;;  %v2978_v20 = vadd.f32 %v2977_v9, %v2976_v11  ;;  %v3084_v2 = vsel %vm2953_vm6, %v3041_v42, 0.0  ;;  %v1733_v58 = vadd.f32 %v6681_v30, %v5841_v38  ;;  %v6684_v9 = vld [vmem:[#allocation139_spill] sm:$0xff] }
 0x6bf   : > { %v2084_v59 = vadd.f32 %v6682_v19, %v1732_v55  ;;  %v3086_v28 = vsel %vm2953_vm6, %v3042_v15, 0.0  ;;  %v5982_v42 = vadd.f32 %v2864_v18, %v2601_v62  ;;  %v2086_v33 = vadd.f32 %v6684_v9, %v1734_v39  ;;  %v6692_v39 = vld [vmem:[#allocation197_spill] sm:$0xff] }
 0x6c0   : > { %v3085_v44 = vadd.f32 %v3084_v2, %v3083_v41  ;;  %v2860_v21 = vpop.permute.xlu0 %2859  ;;  %v2980_v29 = vadd.f32 %v2979_v46, %v2978_v20  ;;  %v2085_v35 = vadd.f32 %v6683_v61, %v1733_v58  ;;  %v6686_v20 = vld [vmem:[#allocation86_spill] sm:$0xff]  ;;  %v6688_v2 = vld [vmem:[#allocation168_spill] sm:$0xff] }
 0x6c1   : > { %v5976_v7 = vadd.f32 %v2860_v21, %v2599_v25  ;;  %v2862_v37 = vpop.permute.xlu1 %2861  ;;  %v2420_v26 = vadd.f32 %v6685_v13, %v2084_v59  ;;  %v5996_v12 = vadd.f32 %v6686_v20, %v5687_v52  ;;  %v2422_v54 = vadd.f32 %v6688_v2, %v2086_v33  ;;  %v6691_v52 = vld [vmem:[#allocation100_spill] sm:$0xff]  ;;  %v6694_v58 = vld [vmem:[#allocation198_spill] sm:$0xff] }
 0x6c2   : > { %v2936_v11 = vadd.f32 %v2862_v37, %v2600_v53  ;;  %v3087_v22 = vadd.f32 %v3086_v28, %v3085_v44  ;;  %v2421_v31 = vadd.f32 %v6687_v14, %v2085_v35  ;;  %v3045_v1 = vmul.f32 %v5982_v42, %v5982_v42  ;;  %v6690_v44 = vld [vmem:[#allocation87_spill] sm:$0xff]  ;;  %v2876_v33 = vpop.permute.xlu2 %2875  ;;  %v6699_v20 = vld [vmem:[#allocation160_spill] sm:$0xff]  ;;  %v6701_v2 = vld [vmem:[#allocation170_spill] sm:$0xff] }
 0x6c3   : > { %v2981_v48 = vsel %vm2953_vm6, %v5976_v7, 0.0  ;;  %v3043_v60 = vmul.f32 %v5976_v7, %v5976_v7  ;;  %v2602_v55 = vadd.f32 %v6689_v40, %v2420_v26  ;;  %v6006_v21 = vadd.f32 %v6690_v44, %v5716_v57  ;;  %v6693_v37 = vld [vmem:[#allocation103_spill] sm:$0xff]  ;;  %v6695_v57 = vld [vmem:[#allocation114_spill] sm:$0xff]  ;;  %v6703_v44 = vld [vmem:[#allocation188_spill] sm:$0xff] }
 0x6c4   : > { %v2982_v8 = vadd.f32 %v2981_v48, %v2980_v29  ;;  %v3044_v38 = vmul.f32 %v2936_v11, %v2936_v11  ;;  %3197 = vrot.lane.b32.xlu0 %v2936_v11, %s3486_s17  ;;  %v2983_v41 = vsel %vm2953_vm6, %v2936_v11, 0.0  ;;  %v1735_v51 = vadd.f32 %v6691_v52, %v5831_v36  ;;  %v6696_v48 = vld [vmem:[#allocation128_spill] sm:$0xff] }
 0x6c5   : > { %v3088_v18 = vsel %vm2953_vm6, %v3043_v60, 0.0  ;;  %v2603_v6 = vadd.f32 %v6692_v39, %v2421_v31  ;;  %v1737_v30 = vadd.f32 %v6693_v37, %v5780_v34  ;;  %v2604_v19 = vadd.f32 %v6694_v58, %v2422_v54 }
 0x6c6   : > { %v3089_v25 = vadd.f32 %v3088_v18, %v3087_v22  ;;  %v2984_v15 = vadd.f32 %v2983_v41, %v2982_v8  ;;  %v3090_v53 = vsel %vm2953_vm6, %v3044_v38, 0.0  ;;  %v2985_v59 = vsel %vm2953_vm6, %v5982_v42, 0.0  ;;  %v6697_v38 = vld [vmem:[#allocation140_spill] sm:$0xff]  ;;  %v6698_v18 = vld [vmem:[#allocation141_spill] sm:$0xff] }
 0x6c7   : > { %v1736_v28 = vadd.f32 %v6695_v57, %v5875_v27  ;;  %v2087_v36 = vadd.f32 %v6696_v48, %v1735_v51  ;;  %v3092_v35 = vsel %vm2953_vm6, %v3045_v1, 0.0  ;;  %v6022_v8 = vadd.f32 %v2870_v50, %v2604_v19  ;;  %v6702_v1 = vld [vmem:[#allocation171_spill] sm:$0xff]  ;;  %v6708_v57 = vld [vmem:[#allocation201_spill] sm:$0xff] }
 0x6c8   : > { %v3091_v62 = vadd.f32 %v3090_v53, %v3089_v25  ;;  %v2866_v46 = vpop.permute.xlu0 %2865  ;;  %v2986_v60 = vadd.f32 %v2985_v59, %v2984_v15  ;;  %v2089_v41 = vadd.f32 %v6698_v18, %v1737_v30  ;;  %v6700_v25 = vld [vmem:[#allocation104_spill] sm:$0xff]  ;;  %v6707_v59 = vld [vmem:[#allocation109_spill] sm:$0xff] }
 0x6c9   : > { %v6016_v29 = vadd.f32 %v2866_v46, %v2602_v55  ;;  %v2868_v11 = vpop.permute.xlu1 %2867  ;;  %v2088_v9 = vadd.f32 %v6697_v38, %v1736_v28  ;;  %v2423_v14 = vadd.f32 %v6699_v20, %v2087_v36  ;;  %v1738_v15 = vadd.f32 %v6700_v25, %v5845_v63  ;;  %v6705_v46 = vld [vmem:[#allocation107_spill] sm:$0xff]  ;;  %v6706_v63 = vld [vmem:[#allocation200_spill] sm:$0xff] }
 0x6ca   : > { %v2939_v61 = vadd.f32 %v2868_v11, %v2603_v6  ;;  %v3093_v26 = vadd.f32 %v3092_v35, %v3091_v62  ;;  %v2425_v53 = vadd.f32 %v6702_v1, %v2089_v41  ;;  %v3048_v51 = vmul.f32 %v6022_v8, %v6022_v8  ;;  %v6704_v6 = vld [vmem:[#allocation106_spill] sm:$0xff]  ;;  %v6710_v35 = vld [vmem:[#allocation131_spill] sm:$0xff] }
 0x6cb   : > { %v2987_v34 = vsel %vm2953_vm6, %v6016_v29, 0.0  ;;  %v3046_v22 = vmul.f32 %v6016_v29, %v6016_v29  ;;  %v2424_v54 = vadd.f32 %v6701_v2, %v2088_v9  ;;  %v2605_v52 = vadd.f32 %v6703_v44, %v2423_v14  ;;  %v6716_v44 = vld [vmem:[#allocation173_spill] sm:$0xff] }
 0x6cc   : > { %v2988_v13 = vadd.f32 %v2987_v34, %v2986_v60  ;;  %v3047_v27 = vmul.f32 %v2939_v61, %v2939_v61  ;;  %3203 = vrot.lane.b32.xlu0 %v2939_v61, %s3486_s17  ;;  %v2989_v31 = vsel %vm2953_vm6, %v2939_v61, 0.0  ;;  %v1740_v62 = vadd.f32 %v6704_v6, %v5817_v23  ;;  %v6709_v23 = vld [vmem:[#allocation115_spill] sm:$0xff] }
 0x6cd   : > { %v3094_v50 = vsel %vm2953_vm6, %v3046_v22, 0.0  ;;  %v1741_v37 = vadd.f32 %v6705_v46, %v5956_v10  ;;  %v2606_v30 = vadd.f32 %v6706_v63, %v2424_v54  ;;  %v1743_v11 = vadd.f32 %v6707_v59, %v5916_v45  ;;  %v6715_v54 = vld [vmem:[#allocation172_spill] sm:$0xff] }
 0x6ce   : > { %v3095_v40 = vadd.f32 %v3094_v50, %v3093_v26  ;;  %v2990_v55 = vadd.f32 %v2989_v31, %v2988_v13  ;;  %v3096_v39 = vsel %vm2953_vm6, %v3047_v27, 0.0  ;;  %v2607_v28 = vadd.f32 %v6708_v57, %v2425_v53  ;;  %v6711_v26 = vld [vmem:[#allocation142_spill] sm:$0xff]  ;;  %v6713_v50 = vld [vmem:[#allocation163_spill] sm:$0xff]  ;;  %v6718_v46 = vld [vmem:[#allocation116_spill] sm:$0xff] }
 0x6cf   : > { %v2991_v48 = vsel %vm2953_vm6, %v6022_v8, 0.0  ;;  %v1739_v61 = vadd.f32 %v6709_v23, %v5885_v32  ;;  %v2090_v10 = vadd.f32 %v6710_v35, %v1738_v15  ;;  %v3098_v38 = vsel %vm2953_vm6, %v3048_v51, 0.0  ;;  %v6712_v32 = vld [vmem:[#allocation143_spill] sm:$0xff]  ;;  %v6714_v15 = vld [vmem:[#allocation112_spill] sm:$0xff] }
 0x6d0   : > { %v3097_v58 = vadd.f32 %v3096_v39, %v3095_v40  ;;  %v2872_v19 = vpop.permute.xlu0 %2871  ;;  %v2992_v34 = vadd.f32 %v2991_v48, %v2990_v55  ;;  %v6058_v9 = vadd.f32 %v2876_v33, %v2607_v28  ;;  %v2092_v14 = vadd.f32 %v6712_v32, %v1740_v62  ;;  %v2882_v55 = vpop.permute.xlu2 %2881  ;;  %v6717_v51 = vld [vmem:[#allocation191_spill] sm:$0xff]  ;;  %v6721_v28 = vld [vmem:[#allocation134_spill] sm:$0xff] }
 0x6d1   : > { %v6052_v36 = vadd.f32 %v2872_v19, %v2605_v52  ;;  %v2874_v60 = vpop.permute.xlu1 %2873  ;;  %v2091_v27 = vadd.f32 %v6711_v26, %v1739_v61  ;;  %v2426_v31 = vadd.f32 %v6713_v50, %v2090_v10  ;;  %v1746_v2 = vadd.f32 %v6714_v15, %v5926_v43  ;;  %v6726_v50 = vld [vmem:[#allocation147_spill] sm:$0xff] }
 0x6d2   : > { %v2942_v22 = vadd.f32 %v2874_v60, %v2606_v30  ;;  %v3099_v41 = vadd.f32 %v3098_v38, %v3097_v58  ;;  %v2428_v52 = vadd.f32 %v6716_v44, %v2092_v14  ;;  %v3051_v6 = vmul.f32 %v6058_v9, %v6058_v9  ;;  %v6719_v30 = vld [vmem:[#allocation117_spill] sm:$0xff]  ;;  %v6720_v58 = vld [vmem:[#allocation202_spill] sm:$0xff]  ;;  %v6722_v60 = vld [vmem:[#allocation203_spill] sm:$0xff] }
 0x6d3   : > { %v2993_v45 = vsel %vm2953_vm6, %v6052_v36, 0.0  ;;  %v3049_v13 = vmul.f32 %v6052_v36, %v6052_v36  ;;  %v2427_v40 = vadd.f32 %v6715_v54, %v2091_v27  ;;  %v2608_v39 = vadd.f32 %v6717_v51, %v2426_v31 }
 0x6d4   : > { %v2994_v18 = vadd.f32 %v2993_v45, %v2992_v34  ;;  %v3050_v20 = vmul.f32 %v2942_v22, %v2942_v22  ;;  %3209 = vrot.lane.b32.xlu0 %v2942_v22, %s3486_s17  ;;  %v2995_v25 = vsel %vm2953_vm6, %v2942_v22, 0.0  ;;  %v1742_v63 = vadd.f32 %v6718_v46, %v5996_v12  ;;  %v6723_v34 = vld [vmem:[#allocation144_spill] sm:$0xff]  ;;  %v6724_v12 = vld [vmem:[#allocation146_spill] sm:$0xff] }
 0x6d5   : > { %v3100_v33 = vsel %vm2953_vm6, %v3049_v13, 0.0  ;;  %v1745_v43 = vadd.f32 %v6719_v30, %v6006_v21  ;;  %v2609_v19 = vadd.f32 %v6720_v58, %v2427_v40  ;;  %v2093_v48 = vadd.f32 %v6721_v28, %v1741_v37  ;;  %v6728_v40 = vld [vmem:[#allocation5_spill] sm:$0xff]  ;;  %v6732_v46 = vld [vmem:[#allocation110_spill] sm:$0xff]  ;;  %v6733_v30 = vld [vmem:[#allocation204_spill] sm:$0xff] }
 0x6d6   : > { %v3101_v1 = vadd.f32 %v3100_v33, %v3099_v41  ;;  %v2996_v53 = vadd.f32 %v2995_v25, %v2994_v18  ;;  %v3102_v62 = vsel %vm2953_vm6, %v3050_v20, 0.0  ;;  %v2610_v23 = vadd.f32 %v6722_v60, %v2428_v52  ;;  %v6725_v18 = vld [vmem:[#allocation145_spill] sm:$0xff]  ;;  %v6727_v33 = vld [vmem:[#allocation166_spill] sm:$0xff] }
 0x6d7   : > { %v2997_v61 = vsel %vm2953_vm6, %v6058_v9, 0.0  ;;  %v2094_v22 = vadd.f32 %v6723_v34, %v1742_v63  ;;  %v2097_v38 = vadd.f32 %v6724_v12, %v1745_v43  ;;  %v3104_v13 = vsel %vm2953_vm6, %v3051_v6, 0.0  ;;  %v6734_v28 = vld [vmem:[#allocation205_spill] sm:$0xff] }
 0x6d8   : > { %v3103_v59 = vadd.f32 %v3102_v62, %v3101_v1  ;;  %v2878_v57 = vpop.permute.xlu0 %2877  ;;  %v2998_v45 = vadd.f32 %v2997_v61, %v2996_v53  ;;  %v6092_v26 = vadd.f32 %v2882_v55, %v2610_v23  ;;  %v2095_v41 = vadd.f32 %v6725_v18, %v1743_v11  ;;  %v6729_v1 = vld [vmem:[#allocation174_spill] sm:$0xff]  ;;  %v6730_v11 = vld [vmem:[#allocation175_spill] sm:$0xff]  ;;  %v2888_v58 = vpop.permute.xlu2 %2887 }
 0x6d9   : > { %v6087_v35 = vadd.f32 %v2878_v57, %v2608_v39  ;;  %v2880_v10 = vpop.permute.xlu1 %2879  ;;  %v2098_v31 = vadd.f32 %v6726_v50, %v1746_v2  ;;  %v2429_v25 = vadd.f32 %v6727_v33, %v2093_v48  ;;  %v2433_v55 = vadd.f32 %v2097_v38, %v6728_v40  ;;  %v6731_v39 = vld [vmem:[#allocation194_spill] sm:$0xff] }
 0x6da   : > { %v2945_v21 = vadd.f32 %v2880_v10, %v2609_v19  ;;  %v3105_v32 = vadd.f32 %v3104_v13, %v3103_v59  ;;  %v2430_v53 = vadd.f32 %v6729_v1, %v2094_v22  ;;  %v2431_v51 = vadd.f32 %v6730_v11, %v2095_v41  ;;  %v6735_v10 = vld [vmem:[#allocation137_spill] sm:$0xff] }
 0x6db   : > { %v2999_v37 = vsel %vm2953_vm6, %v6087_v35, 0.0  ;;  %v3052_v27 = vmul.f32 %v6087_v35, %v6087_v35  ;;  %v2611_v6 = vadd.f32 %v6731_v39, %v2429_v25  ;;  %v3054_v62 = vmul.f32 %v6092_v26, %v6092_v26  ;;  %v6737_v25 = vld [vmem:[#allocation199_spill] sm:$0xff] }
 0x6dc   : > { %v3000_v20 = vadd.f32 %v2999_v37, %v2998_v45  ;;  %v3053_v14 = vmul.f32 %v2945_v21, %v2945_v21  ;;  %3215 = vrot.lane.b32.xlu0 %v2945_v21, %s3486_s17  ;;  %v3001_v54 = vsel %vm2953_vm6, %v2945_v21, 0.0  ;;  %v1744_v63 = vadd.f32 %v6732_v46, %v5966_v4 }
 0x6dd   : > { %v3106_v15 = vsel %vm2953_vm6, %v3052_v27, 0.0  ;;  %v2612_v43 = vadd.f32 %v6733_v30, %v2430_v53  ;;  %v2434_v57 = vadd.f32 %v2098_v31, %v6728_v40  ;;  %v2613_v48 = vadd.f32 %v6734_v28, %v2431_v51 }
 0x6de   : > { %v3107_v44 = vadd.f32 %v3106_v15, %v3105_v32  ;;  %v3002_v52 = vadd.f32 %v3001_v54, %v3000_v20  ;;  %v3108_v2 = vsel %vm2953_vm6, %v3053_v14, 0.0  ;;  %v3003_v60 = vsel %vm2953_vm6, %v6092_v26, 0.0  ;;  %v6736_v20 = vld [vmem:[#allocation169_spill] sm:$0xff] }
 0x6df   : > { %v2096_v34 = vadd.f32 %v6735_v10, %v1744_v63  ;;  %v2615_v22 = vadd.f32 %v2433_v55, %v6728_v40  ;;  %v3110_v38 = vsel %vm2953_vm6, %v3054_v62, 0.0  ;;  %v6123_v45 = vadd.f32 %v2888_v58, %v2613_v48 }
 0x6e0   : > { %v3109_v19 = vadd.f32 %v3108_v2, %v3107_v44  ;;  %v2884_v59 = vpop.permute.xlu0 %2883  ;;  %v3004_v4 = vadd.f32 %v3003_v60, %v3002_v52  ;;  %v2616_v41 = vadd.f32 %v2434_v57, %v6728_v40 }
 0x6e1   : > { %v6118_v23 = vadd.f32 %v2884_v59, %v2611_v6  ;;  %v2886_v61 = vpop.permute.xlu1 %2885  ;;  %v2432_v32 = vadd.f32 %v6736_v20, %v2096_v34  ;;  %v3057_v54 = vmul.f32 %v6123_v45, %v6123_v45  ;;  %v2951_v1 = vadd.f32 %v2615_v22, %v6728_v40 }
 0x6e2   : > { %v2948_v12 = vadd.f32 %v2886_v61, %v2612_v43  ;;  %v3111_v27 = vadd.f32 %v3110_v38, %v3109_v19  ;;  %v6140_v52 = vadd.f32 %v2616_v41, %v6728_v40  ;;  %v3009_v11 = vsel %vm2953_vm6, %v6123_v45, 0.0 }
 0x6e3   : > { %v3005_v21 = vsel %vm2953_vm6, %v6118_v23, 0.0  ;;  %v3055_v13 = vmul.f32 %v6118_v23, %v6118_v23  ;;  %v2614_v15 = vadd.f32 %v6737_v25, %v2432_v32  ;;  %v3116_v6 = vsel %vm2953_vm6, %v3057_v54, 0.0 }
 0x6e4   : > { %v3006_v37 = vadd.f32 %v3005_v21, %v3004_v4  ;;  %v3056_v18 = vmul.f32 %v2948_v12, %v2948_v12  ;;  %3221 = vrot.lane.b32.xlu0 %v2948_v12, %s3486_s17  ;;  %v3007_v50 = vsel %vm2953_vm6, %v2948_v12, 0.0  ;;  %v3059_v46 = vmul.f32 %v2951_v1, %v2951_v1 }
 0x6e5   : > { %v3112_v14 = vsel %vm2953_vm6, %v3055_v13, 0.0  ;;  %v3060_v40 = vmul.f32 %v6140_v52, %v6140_v52  ;;  %v3013_v58 = vsel %vm2953_vm6, %v2951_v1, 0.0  ;;  %v3015_v57 = vsel %vm2953_vm6, %v6140_v52, 0.0 }
 0x6e6   : > { %v3113_v31 = vadd.f32 %v3112_v14, %v3111_v27  ;;  %v3008_v33 = vadd.f32 %v3007_v50, %v3006_v37  ;;  %v3114_v55 = vsel %vm2953_vm6, %v3056_v18, 0.0  ;;  %v3120_v28 = vsel %vm2953_vm6, %v3059_v46, 0.0 }
 0x6e7   : > { %v3122_v61 = vsel %vm2953_vm6, %v3060_v40, 0.0 }
 0x6e8   : > { %v3115_v53 = vadd.f32 %v3114_v55, %v3113_v31  ;;  %v2890_v44 = vpop.permute.xlu0 %2889  ;;  %v3010_v39 = vadd.f32 %v3009_v11, %v3008_v33 }
 0x6e9   : > { %v6144_v51 = vadd.f32 %v2890_v44, %v2614_v15 }
 0x6ea   : > { %v3117_v30 = vadd.f32 %v3116_v6, %v3115_v53 }
 0x6eb   : > { %v3011_v62 = vsel %vm2953_vm6, %v6144_v51, 0.0  ;;  %v3058_v2 = vmul.f32 %v6144_v51, %v6144_v51 }
 0x6ec   : > { %v3012_v63 = vadd.f32 %v3011_v62, %v3010_v39  ;;  %3227 = vrot.lane.b32.xlu0 %v2951_v1, %s3486_s17 }
 0x6ed   : > { %v3118_v43 = vsel %vm2953_vm6, %v3058_v2, 0.0 }
 0x6ee   : > { %v3119_v19 = vadd.f32 %v3118_v43, %v3117_v30  ;;  %v3014_v59 = vadd.f32 %v3013_v58, %v3012_v63 }
 0x6f0   : > { %v3121_v48 = vadd.f32 %v3120_v28, %v3119_v19  ;;  %v3016_v60 = vadd.f32 %v3015_v57, %v3014_v59 }
 0x6f2   : > { %v3017_v10 = vrot.slane %v3016_v60, 4  ;;  %v3123_v34 = vadd.f32 %v3122_v61, %v3121_v48 }
 0x6f4   : > { %v3018_v22 = vadd.f32 %v3017_v10, %v3016_v60  ;;  %v3124_v4 = vrot.slane %v3123_v34, 4 }
 0x6f6   : > { %v3019_v12 = vrot.slane %v3018_v22, 2  ;;  %v3125_v38 = vadd.f32 %v3124_v4, %v3123_v34 }
 0x6f8   : > { %v3020_v21 = vadd.f32 %v3019_v12, %v3018_v22  ;;  %v3126_v13 = vrot.slane %v3125_v38, 2 }
 0x6fa   : > { %v3021_v37 = vrot.slane %v3020_v21, 1  ;;  %v3127_v27 = vadd.f32 %v3126_v13, %v3125_v38 }
 0x6fc   : > { %v3022_v18 = vadd.f32 %v3021_v37, %v3020_v21  ;;  %v3128_v41 = vrot.slane %v3127_v27, 1 }
 0x6fe   : > { %3024 = vrot.lane.b32.xlu1 %v3022_v18, %s3486_s17  ;;  %v3129_v20 = vadd.f32 %v3128_v41, %v3127_v27 }
 0x700   : > { %3131 = vrot.lane.b32.xlu2 %v3129_v20, %s3486_s17 }
 0x706   : > { %3169 = vrot.lane.b32.xlu1 %v5761_v3, %s3486_s17 }
 0x708   : > { %3171 = vrot.lane.b32.xlu2 %v5801_v47, %s3486_s17 }
 0x70c   : > { %v3168_v32 = vpop.permute.xlu0 %3167 }
 0x70d   : > { %3264 = vst.msk [vmem:[%s6171_s20] sm:$0xff] %vm3263_vm7, %v3168_v32 }
 0x70e   : > { %3175 = vrot.lane.b32.xlu1 %v5812_v0, %s3486_s17 }
 0x710   : > { %3177 = vrot.lane.b32.xlu2 %v5855_v24, %s3486_s17 }
 0x715   : > { %v3174_v3 = vpop.permute.xlu0 %3173 }
 0x716   : > { %3267 = vst.msk [vmem:[%s6171_s20 + $0x18] sm:$0xff] %vm3263_vm7, %v3174_v3  ;;  %3181 = vrot.lane.b32.xlu1 %v5861_v16, %s3486_s17 }
 0x718   : > { %3183 = vrot.lane.b32.xlu2 %v5895_v49, %s3486_s17 }
 0x71e   : > { %v3180_v47 = vpop.permute.xlu0 %3179  ;;  %3187 = vrot.lane.b32.xlu1 %v5902_v17, %s3486_s17 }
 0x71f   : > { %3270 = vst.msk [vmem:[%s6171_s20 + $0x30] sm:$0xff] %vm3263_vm7, %v3180_v47 }
 0x720   : > { %3189 = vrot.lane.b32.xlu2 %v5936_v56, %s3486_s17 }
 0x726   : > { %v3186_v0 = vpop.permute.xlu0 %3185  ;;  %3193 = vrot.lane.b32.xlu1 %v5942_v5, %s3486_s17 }
 0x727   : > { %3273 = vst.msk [vmem:[%s6171_s20 + $0x48] sm:$0xff] %vm3263_vm7, %v3186_v0 }
 0x728   : > { %3195 = vrot.lane.b32.xlu2 %v5976_v7, %s3486_s17 }
 0x72e   : > { %v3192_v24 = vpop.permute.xlu0 %3191  ;;  %3199 = vrot.lane.b32.xlu1 %v5982_v42, %s3486_s17 }
 0x72f   : > { %3276 = vst.msk [vmem:[%s6171_s20 + $0x60] sm:$0xff] %vm3263_vm7, %v3192_v24 }
 0x730   : > { %3201 = vrot.lane.b32.xlu2 %v6016_v29, %s3486_s17 }
 0x736   : > { %v3198_v16 = vpop.permute.xlu0 %3197  ;;  %3205 = vrot.lane.b32.xlu1 %v6022_v8, %s3486_s17 }
 0x737   : > { %3279 = vst.msk [vmem:[%s6171_s20 + $0x78] sm:$0xff] %vm3263_vm7, %v3198_v16 }
 0x738   : > { %3207 = vrot.lane.b32.xlu2 %v6052_v36, %s3486_s17 }
 0x73e   : > { %v3204_v49 = vpop.permute.xlu0 %3203  ;;  %3211 = vrot.lane.b32.xlu1 %v6058_v9, %s3486_s17 }
 0x73f   : > { %3282 = vst.msk [vmem:[%s6171_s20 + $0x90] sm:$0xff] %vm3263_vm7, %v3204_v49 }
 0x740   : > { %3213 = vrot.lane.b32.xlu2 %v6087_v35, %s3486_s17 }
 0x746   : > { %v3210_v17 = vpop.permute.xlu0 %3209  ;;  %3217 = vrot.lane.b32.xlu1 %v6092_v26, %s3486_s17 }
 0x747   : > { %3285 = vst.msk [vmem:[%s6171_s20 + $0xa8] sm:$0xff] %vm3263_vm7, %v3210_v17 }
 0x748   : > { %3219 = vrot.lane.b32.xlu2 %v6118_v23, %s3486_s17 }
 0x74e   : > { %v3216_v56 = vpop.permute.xlu0 %3215  ;;  %3223 = vrot.lane.b32.xlu1 %v6123_v45, %s3486_s17 }
 0x74f   : > { %3288 = vst.msk [vmem:[%s6171_s20 + $0xc0] sm:$0xff] %vm3263_vm7, %v3216_v56 }
 0x750   : > { %3225 = vrot.lane.b32.xlu2 %v6144_v51, %s3486_s17 }
 0x756   : > { %v3222_v5 = vpop.permute.xlu0 %3221  ;;  %3229 = vrot.lane.b32.xlu1 %v6140_v52, %s3486_s17 }
 0x757   : > { %3291 = vst.msk [vmem:[%s6171_s20 + $0xd8] sm:$0xff] %vm3263_vm7, %v3222_v5 }
 0x75a   : > { %v3132_v7 = vpop.permute.xlu2 %3131 }
 0x75b   : > { %3134 = vst.msk [vmem:[%s295_s23] sm:$0x1] %vm3027_vm8, %v3132_v7 }
 0x75e   : > { %v3228_v42 = vpop.permute.xlu0 %3227 }
 0x75f   : > { %3294 = vst.msk [vmem:[%s6171_s20 + $0xf0] sm:$0xff] %vm3263_vm7, %v3228_v42 }
 0x762   : > { %v3172_v29 = vpop.permute.xlu2 %3171 }
 0x763   : > { %3266 = vst.msk [vmem:[%s6171_s20 + $0x10] sm:$0xff] %vm3263_vm7, %v3172_v29 }
 0x76a   : > { %v3178_v8 = vpop.permute.xlu2 %3177 }
 0x76b   : > { %3269 = vst.msk [vmem:[%s6171_s20 + $0x28] sm:$0xff] %vm3263_vm7, %v3178_v8 }
 0x770   : > { %v3025_v36 = vpop.permute.xlu1 %3024 }
 0x771   : > { %3028 = vst.msk [vmem:[%s292_s26] sm:$0x1] %vm3027_vm8, %v3025_v36 }
 0x772   : > { %v3184_v9 = vpop.permute.xlu2 %3183 }
 0x773   : > { %3272 = vst.msk [vmem:[%s6171_s20 + $0x40] sm:$0xff] %vm3263_vm7, %v3184_v9 }
 0x778   : > { %v3170_v35 = vpop.permute.xlu1 %3169 }
 0x779   : > { %3265 = vst.msk [vmem:[%s6171_s20 + $0x8] sm:$0xff] %vm3263_vm7, %v3170_v35 }
 0x77a   : > { %v3190_v26 = vpop.permute.xlu2 %3189 }
 0x77b   : > { %3275 = vst.msk [vmem:[%s6171_s20 + $0x58] sm:$0xff] %vm3263_vm7, %v3190_v26 }
 0x780   : > { %v3176_v23 = vpop.permute.xlu1 %3175 }
 0x781   : > { %3268 = vst.msk [vmem:[%s6171_s20 + $0x20] sm:$0xff] %vm3263_vm7, %v3176_v23 }
 0x782   : > { %v3196_v45 = vpop.permute.xlu2 %3195 }
 0x783   : > { %3278 = vst.msk [vmem:[%s6171_s20 + $0x70] sm:$0xff] %vm3263_vm7, %v3196_v45 }
 0x788   : > { %v3182_v14 = vpop.permute.xlu1 %3181 }
 0x789   : > { %3271 = vst.msk [vmem:[%s6171_s20 + $0x38] sm:$0xff] %vm3263_vm7, %v3182_v14 }
 0x78a   : > { %v3202_v50 = vpop.permute.xlu2 %3201 }
 0x78b   : > { %3281 = vst.msk [vmem:[%s6171_s20 + $0x88] sm:$0xff] %vm3263_vm7, %v3202_v50 }
 0x790   : > { %v3188_v31 = vpop.permute.xlu1 %3187 }
 0x791   : > { %3274 = vst.msk [vmem:[%s6171_s20 + $0x50] sm:$0xff] %vm3263_vm7, %v3188_v31 }
 0x792   : > { %v3208_v33 = vpop.permute.xlu2 %3207 }
 0x793   : > { %3284 = vst.msk [vmem:[%s6171_s20 + $0xa0] sm:$0xff] %vm3263_vm7, %v3208_v33 }
 0x798   : > { %v3194_v25 = vpop.permute.xlu1 %3193 }
 0x799   : > { %3277 = vst.msk [vmem:[%s6171_s20 + $0x68] sm:$0xff] %vm3263_vm7, %v3194_v25 }
 0x79a   : > { %v3214_v15 = vpop.permute.xlu2 %3213 }
 0x79b   : > { %3287 = vst.msk [vmem:[%s6171_s20 + $0xb8] sm:$0xff] %vm3263_vm7, %v3214_v15 }
 0x7a0   : > { %v3200_v54 = vpop.permute.xlu1 %3199 }
 0x7a1   : > { %3280 = vst.msk [vmem:[%s6171_s20 + $0x80] sm:$0xff] %vm3263_vm7, %v3200_v54 }
 0x7a2   : > { %v3220_v55 = vpop.permute.xlu2 %3219 }
 0x7a3   : > { %3290 = vst.msk [vmem:[%s6171_s20 + $0xd0] sm:$0xff] %vm3263_vm7, %v3220_v55 }
 0x7a8   : > { %v3206_v1 = vpop.permute.xlu1 %3205 }
 0x7a9   : > { %3283 = vst.msk [vmem:[%s6171_s20 + $0x98] sm:$0xff] %vm3263_vm7, %v3206_v1 }
 0x7aa   : > { %v3226_v53 = vpop.permute.xlu2 %3225 }
 0x7ab   : > { %3293 = vst.msk [vmem:[%s6171_s20 + $0xe8] sm:$0xff] %vm3263_vm7, %v3226_v53 }
 0x7b0   : > { %v3212_v44 = vpop.permute.xlu1 %3211 }
 0x7b1   : > { %3286 = vst.msk [vmem:[%s6171_s20 + $0xb0] sm:$0xff] %vm3263_vm7, %v3212_v44 }
 0x7b8   : > { %v3218_v52 = vpop.permute.xlu1 %3217 }
 0x7b9   : > { %3289 = vst.msk [vmem:[%s6171_s20 + $0xc8] sm:$0xff] %vm3263_vm7, %v3218_v52 }
 0x7c0   : > { %v3224_v11 = vpop.permute.xlu1 %3223 }
 0x7c1   : > { %3292 = vst.msk [vmem:[%s6171_s20 + $0xe0] sm:$0xff] %vm3263_vm7, %v3224_v11 }
 0x7c8   : > { %v3230_v51 = vpop.permute.xlu1 %3229 }
 0x7c9   : > { %3295 = vst.msk [vmem:[%s6171_s20 + $0xf8] sm:$0xff] %vm3263_vm7, %v3230_v51 }
 0x7ca PF: > { %s18_s24 = sadd.s32 1, %s3475_s24  }
 0x7cb   : > { %p15_p4 = scmp.ge.s32.totalorder %s18_s24, 4  }
 0x7cd   :  { %17 = sbr.rel (!%p15_p4) target bundleno = 1 (0x1), region = 94 }

// kernel: conv_block_forward.4
= control target key start
LH: loop header
LB: loop body
LE: loop exit
PB: predicated region body
PF: predicated region fallthrough
CT: control target
= control target key end

     0   :  { %s3627_s24 = smov 0   ;;  %s6460_s0 = inlined_call_operand.vmem [shape: f32[2,16,16,8], index: 0, kind: input, shape index: {}]   ;;  %s6461_s1 = inlined_call_operand.vmem [shape: f32[1,8], index: 1, kind: input, shape index: {}]   ;;  %s6462_s2 = inlined_call_operand.vmem [shape: f32[1,8], index: 2, kind: input, shape index: {}]   ;;  %s6463_s3 = inlined_call_operand.vmem [shape: f32[8,72], index: 3, kind: input, shape index: {}]   ;;  %s6464_s4 = inlined_call_operand.vmem [shape: f32[1,8], index: 4, kind: input, shape index: {}]   ;;  %s6465_s5 = inlined_call_operand.vmem [shape: f32[2,16,16,8], index: 5, kind: output, shape index: {0}]   ;;  %s6466_s6 = inlined_call_operand.vmem [shape: f32[2,1,8], index: 6, kind: output, shape index: {1}]   ;;  %s6467_s7 = inlined_call_operand.vmem [shape: f32[2,1,8], index: 7, kind: output, shape index: {2}]  }
   0x1 LB: > { %s3500_s25 = sadd.s32 4294967295, %s3575_s24   ;;  %p3504_p0 = scmp.ge.s32.totalorder %s3575_s24, 1  ;;  %s3575_s24 = sphi %s3627_s24, %s18_s24  }
   0x2   : > { %p242_p1 = scmp.lt.s32.totalorder %s3575_s24, 3 }
   0x4   : > { %p243_p2 = pnand %p3504_p0, %p242_p1 }
   0x6   : > { %246 = sbr.rel (%p243_p2) target bundleno = 1999 (0x7cf), region = 40 }
   0xb   : > { %v432_v0 = vld [vmem:[%s6463_s3] sm:$0xff]  ;;  %p280_p3 = scmp.lt.s32.totalorder %s3500_s25, 1  ;;  %s3577_s10 = smov 32   ;;  %vm433_vm0 = vcmask 64512   ;;  %v3578_v28 = vmov 0.0   ;;  %vm3053_vm5 = vcmask 326912  }
   0xc   : > { %545 = vmatpush.msra.mxu0 %v432_v0  ;;  %3545 = vmatpush.msra.mxu1 %v432_v0  ;;  %v3568_v1 = vld [vmem:[%s6464_s4] ss:$0 sm:$0xff]  ;;  %s3579_s16 = smov 120   ;;  %s3580_s17 = smov 112   ;;  %vm3127_vm6 = vcmask 57344  }
   0xd   : > { %3546 = vmatpush.msra.mxu2 %v432_v0  ;;  %3547 = vmatpush.msra.mxu3 %v432_v0  ;;  %s6913_s25 = smov (!%p280_p3, %s3500_s25), 1  ;;  %v3646_v2 = vld [vmem:[%s6461_s1] ss:$0 sm:$0xff]  ;;  %s3581_s18 = smov 104  }
   0xe   : > { %s3543_s9 = sshll.u32 %s6913_s25, 8  ;;  %649 = vrot.lane.b32.xlu0 %v3568_v1, %s3577_s10  ;;  %v3660_v3 = vld [vmem:[%s6462_s2] ss:$0 sm:$0xff]  ;;  %s3582_s19 = smov 88  }
   0xf   : > { %s3655_s13 = scalar_lea.vmem %s6460_s0, %s3543_s9  ;;  %s3583_s20 = smov 80  }
  0x10   : > { %v296_v4 = vld [vmem:[%s3655_s13] sm:$0xff]  ;;  %v297_v11 = vld [vmem:[%s3655_s13 + $0x8] sm:$0xff]  ;;  %v298_v33 = vld [vmem:[%s3655_s13 + $0x10] sm:$0xff]  ;;  %s3584_s21 = smov 72   ;;  %s3585_s22 = smov 64  }
  0x11   : > { %v304_v5 = vld [vmem:[%s3655_s13 + $0x40] sm:$0xff]  ;;  %v332_v7 = vmul.f32 %v3646_v2, %v296_v4  ;;  %v305_v12 = vld [vmem:[%s3655_s13 + $0x48] sm:$0xff]  ;;  %v333_v14 = vmul.f32 %v3646_v2, %v297_v11  ;;  %v306_v34 = vld [vmem:[%s3655_s13 + $0x50] sm:$0xff]  ;;  %v334_v39 = vmul.f32 %v3646_v2, %v298_v33  ;;  %s3586_s23 = smov 96   ;;  %s6345_s28 = scalar_lea.vmem %s6465_s5, %s3543_s9 }
  0x12   : > { %v312_v6 = vld [vmem:[%s3655_s13 + $0x80] sm:$0xff]  ;;  %v340_v8 = vmul.f32 %v3646_v2, %v304_v5  ;;  %v313_v15 = vld [vmem:[%s3655_s13 + $0x88] sm:$0xff]  ;;  %v341_v20 = vmul.f32 %v3646_v2, %v305_v12  ;;  %v314_v35 = vld [vmem:[%s3655_s13 + $0x90] sm:$0xff]  ;;  %v342_v40 = vmul.f32 %v3646_v2, %v306_v34  ;;  %s295_s8 = scalar_lea.vmem %s6467_s7, %s6913_s25  ;;  %s292_s11 = scalar_lea.vmem %s6466_s6, %s6913_s25 }
  0x13   : > { %v348_v9 = vmul.f32 %v3646_v2, %v312_v6  ;;  %v320_v10 = vld [vmem:[%s3655_s13 + $0xc0] sm:$0xff]  ;;  %v321_v16 = vld [vmem:[%s3655_s13 + $0xc8] sm:$0xff]  ;;  %v368_v17 = vadd.f32 %v3660_v3, %v332_v7  ;;  %v349_v22 = vmul.f32 %v3646_v2, %v313_v15  ;;  %v369_v29 = vadd.f32 %v3660_v3, %v333_v14  ;;  %v322_v36 = vld [vmem:[%s3655_s13 + $0xd0] sm:$0xff] }
  0x14   : > { %v356_v13 = vmul.f32 %v3646_v2, %v320_v10  ;;  %v376_v18 = vadd.f32 %v3660_v3, %v340_v8  ;;  %v357_v23 = vmul.f32 %v3646_v2, %v321_v16  ;;  %v377_v30 = vadd.f32 %v3660_v3, %v341_v20  ;;  %v299_v49 = vld [vmem:[%s3655_s13 + $0x18] sm:$0xff]  ;;  %v300_v1 = vld [vmem:[%s3655_s13 + $0x20] sm:$0xff]  ;;  %v309_v20 = vld [vmem:[%s3655_s13 + $0x68] sm:$0xff] }
  0x15   : > { %v384_v19 = vadd.f32 %v3660_v3, %v348_v9  ;;  %v400_v24 = vmax.f32 %v368_v17, 0.0  ;;  %v385_v31 = vadd.f32 %v3660_v3, %v349_v22  ;;  %v401_v37 = vmax.f32 %v369_v29, 0.0  ;;  %v307_v50 = vld [vmem:[%s3655_s13 + $0x58] sm:$0xff]  ;;  %v308_v4 = vld [vmem:[%s3655_s13 + $0x60] sm:$0xff]  ;;  %v325_v22 = vld [vmem:[%s3655_s13 + $0xe8] sm:$0xff] }
  0x16   : > { %v392_v21 = vadd.f32 %v3660_v3, %v356_v13  ;;  %v408_v25 = vmax.f32 %v376_v18, 0.0  ;;  %813 = vrot.lane.b32.xlu0 %v3578_v28, %s3577_s10  ;;  %v393_v32 = vadd.f32 %v3660_v3, %v357_v23  ;;  %v409_v38 = vmax.f32 %v377_v30, 0.0  ;;  %v315_v51 = vld [vmem:[%s3655_s13 + $0x98] sm:$0xff]  ;;  %v316_v5 = vld [vmem:[%s3655_s13 + $0xa0] sm:$0xff] }
  0x17   : > { %v416_v26 = vmax.f32 %v384_v19, 0.0  ;;  %3509 = vmatmul.msk.f32.vlgmr.msra.gmra.mxu0 %vm433_vm0, %v400_v24  ;;  %v417_v41 = vmax.f32 %v385_v31, 0.0  ;;  %v350_v43 = vmul.f32 %v3646_v2, %v314_v35  ;;  %v358_v44 = vmul.f32 %v3646_v2, %v322_v36  ;;  %v323_v52 = vld [vmem:[%s3655_s13 + $0xd8] sm:$0xff]  ;;  %v324_v6 = vld [vmem:[%s3655_s13 + $0xe0] sm:$0xff]  ;;  %v301_v19 = vld [vmem:[%s3655_s13 + $0x28] sm:$0xff] }
  0x18   : > { %v424_v27 = vmax.f32 %v392_v21, 0.0  ;;  %3517 = vmatmul.msk.f32.vlgmr.msra.gmra.mxu1 %vm433_vm0, %v408_v25  ;;  %v425_v42 = vmax.f32 %v393_v32, 0.0  ;;  %v370_v45 = vadd.f32 %v3660_v3, %v334_v39  ;;  %v378_v46 = vadd.f32 %v3660_v3, %v342_v40  ;;  %v317_v21 = vld [vmem:[%s3655_s13 + $0xa8] sm:$0xff]  ;;  %v302_v35 = vld [vmem:[%s3655_s13 + $0x30] sm:$0xff] }
  0x19   : > { %3525 = vmatmul.msk.f32.vlgmr.msra.gmra.mxu2 %vm433_vm0, %v416_v26  ;;  %v386_v47 = vadd.f32 %v3660_v3, %v350_v43  ;;  %v394_v48 = vadd.f32 %v3660_v3, %v358_v44  ;;  %v335_v55 = vmul.f32 %v3646_v2, %v299_v49  ;;  %v343_v56 = vmul.f32 %v3646_v2, %v307_v50  ;;  %v310_v36 = vld [vmem:[%s3655_s13 + $0x70] sm:$0xff] }
  0x1a   : > { %3533 = vmatmul.msk.f32.vlgmr.msra.gmra.mxu3 %vm433_vm0, %v424_v27  ;;  %v402_v53 = vmax.f32 %v370_v45, 0.0  ;;  %v410_v54 = vmax.f32 %v378_v46, 0.0  ;;  %v351_v59 = vmul.f32 %v3646_v2, %v315_v51  ;;  %v359_v60 = vmul.f32 %v3646_v2, %v323_v52  ;;  %v303_v51 = vld [vmem:[%s3655_s13 + $0x38] sm:$0xff] }
  0x1b   : > { %v418_v57 = vmax.f32 %v386_v47, 0.0  ;;  %v426_v58 = vmax.f32 %v394_v48, 0.0  ;;  %v371_v61 = vadd.f32 %v3660_v3, %v335_v55  ;;  %v379_v62 = vadd.f32 %v3660_v3, %v343_v56  ;;  %v311_v52 = vld [vmem:[%s3655_s13 + $0x78] sm:$0xff] }
  0x1c   : > { %v387_v63 = vadd.f32 %v3660_v3, %v351_v59  ;;  %v395_v0 = vadd.f32 %v3660_v3, %v359_v60  ;;  %v336_v9 = vmul.f32 %v3646_v2, %v300_v1  ;;  %v344_v10 = vmul.f32 %v3646_v2, %v308_v4 }
  0x1d   : > { %v403_v7 = vmax.f32 %v371_v61, 0.0  ;;  %v411_v8 = vmax.f32 %v379_v62, 0.0  ;;  %v352_v13 = vmul.f32 %v3646_v2, %v316_v5  ;;  %v360_v14 = vmul.f32 %v3646_v2, %v324_v6 }
  0x1e   : > { %v419_v11 = vmax.f32 %v387_v63, 0.0  ;;  %v427_v12 = vmax.f32 %v395_v0, 0.0  ;;  %v372_v15 = vadd.f32 %v3660_v3, %v336_v9  ;;  %v380_v16 = vadd.f32 %v3660_v3, %v344_v10 }
  0x1f   : > { %3510 = vmatmul.msk.f32.gmra.mxu0 %vm433_vm0, %v401_v37  ;;  %v388_v17 = vadd.f32 %v3660_v3, %v352_v13  ;;  %v396_v18 = vadd.f32 %v3660_v3, %v360_v14  ;;  %v337_v25 = vmul.f32 %v3646_v2, %v301_v19  ;;  %v345_v26 = vmul.f32 %v3646_v2, %v309_v20  ;;  %v318_v37 = vld [vmem:[%s3655_s13 + $0xb0] sm:$0xff] }
  0x20   : > { %3518 = vmatmul.msk.f32.gmra.mxu1 %vm433_vm0, %v409_v38  ;;  %v404_v23 = vmax.f32 %v372_v15, 0.0  ;;  %v412_v24 = vmax.f32 %v380_v16, 0.0  ;;  %v353_v29 = vmul.f32 %v3646_v2, %v317_v21  ;;  %v361_v30 = vmul.f32 %v3646_v2, %v325_v22  ;;  %v326_v38 = vld [vmem:[%s3655_s13 + $0xf0] sm:$0xff] }
  0x21   : > { %3526 = vmatmul.msk.f32.gmra.mxu2 %vm433_vm0, %v417_v41  ;;  %v420_v27 = vmax.f32 %v388_v17, 0.0  ;;  %v428_v28 = vmax.f32 %v396_v18, 0.0  ;;  %v373_v31 = vadd.f32 %v3660_v3, %v337_v25  ;;  %v381_v32 = vadd.f32 %v3660_v3, %v345_v26 }
  0x22   : > { %3534 = vmatmul.msk.f32.gmra.mxu3 %vm433_vm0, %v425_v42  ;;  %v389_v33 = vadd.f32 %v3660_v3, %v353_v29  ;;  %v397_v34 = vadd.f32 %v3660_v3, %v361_v30  ;;  %v338_v41 = vmul.f32 %v3646_v2, %v302_v35  ;;  %v346_v42 = vmul.f32 %v3646_v2, %v310_v36 }
  0x23   : > { %v405_v39 = vmax.f32 %v373_v31, 0.0  ;;  %v413_v40 = vmax.f32 %v381_v32, 0.0  ;;  %v354_v45 = vmul.f32 %v3646_v2, %v318_v37  ;;  %v362_v46 = vmul.f32 %v3646_v2, %v326_v38 }
  0x24   : > { %v421_v43 = vmax.f32 %v389_v33, 0.0  ;;  %v429_v44 = vmax.f32 %v397_v34, 0.0  ;;  %v374_v47 = vadd.f32 %v3660_v3, %v338_v41  ;;  %v382_v48 = vadd.f32 %v3660_v3, %v346_v42 }
  0x25   : > { %v390_v49 = vadd.f32 %v3660_v3, %v354_v45  ;;  %v398_v50 = vadd.f32 %v3660_v3, %v362_v46 }
  0x26   : > { %v406_v55 = vmax.f32 %v374_v47, 0.0  ;;  %v414_v56 = vmax.f32 %v382_v48, 0.0 }
  0x27   : > { %3511 = vmatmul.msk.f32.gmra.mxu0 %vm433_vm0, %v402_v53  ;;  %v319_v53 = vld [vmem:[%s3655_s13 + $0xb8] sm:$0xff]  ;;  %v422_v59 = vmax.f32 %v390_v49, 0.0  ;;  %v430_v60 = vmax.f32 %v398_v50, 0.0 }
  0x28   : > { %3519 = vmatmul.msk.f32.gmra.mxu1 %vm433_vm0, %v410_v54  ;;  %v327_v54 = vld [vmem:[%s3655_s13 + $0xf8] sm:$0xff]  ;;  %v355_v61 = vmul.f32 %v3646_v2, %v319_v53 }
  0x29   : > { %3527 = vmatmul.msk.f32.gmra.mxu2 %vm433_vm0, %v418_v57  ;;  %v339_v57 = vmul.f32 %v3646_v2, %v303_v51  ;;  %v363_v62 = vmul.f32 %v3646_v2, %v327_v54 }
  0x2a   : > { %3535 = vmatmul.msk.f32.gmra.mxu3 %vm433_vm0, %v426_v58  ;;  %v347_v58 = vmul.f32 %v3646_v2, %v311_v52  ;;  %v391_v1 = vadd.f32 %v3660_v3, %v355_v61 }
  0x2b   : > { %v375_v63 = vadd.f32 %v3660_v3, %v339_v57  ;;  %v399_v4 = vadd.f32 %v3660_v3, %v363_v62 }
  0x2c   : > { %v383_v0 = vadd.f32 %v3660_v3, %v347_v58  ;;  %v643_v3 = vlaneseq }
  0x2d   : > { %v407_v5 = vmax.f32 %v375_v63, 0.0  ;;  %v431_v2 = vmax.f32 %v399_v4, 0.0 }
  0x2e   : > { %v415_v6 = vmax.f32 %v383_v0, 0.0 }
  0x2f   : > { %3512 = vmatmul.msk.f32.gmra.mxu0 %vm433_vm0, %v403_v7  ;;  %v423_v7 = vmax.f32 %v391_v1, 0.0 }
  0x30   : > { %3520 = vmatmul.msk.f32.gmra.mxu1 %vm433_vm0, %v411_v8 }
  0x31   : > { %3528 = vmatmul.msk.f32.gmra.mxu2 %vm433_vm0, %v419_v11 }
  0x32   : > { %3536 = vmatmul.msk.f32.gmra.mxu3 %vm433_vm0, %v427_v12  ;;  %v3809_v12 = vshrl.u32 %v643_v3, 7 }
  0x34   : > { %vm715_vm1 = vcmp.lt.s32.totalorder %v3809_v12, 1  ;;  %vm746_vm2 = vcmp.ge.s32.totalorder %v3809_v12, 1  ;;  %vm1275_vm3 = vcmp.lt.s32.totalorder %v3809_v12, 7 }
  0x37   : > { %3513 = vmatmul.msk.f32.gmra.mxu0 %vm433_vm0, %v404_v23 }
  0x38   : > { %3521 = vmatmul.msk.f32.gmra.mxu1 %vm433_vm0, %v412_v24 }
  0x39   : > { %3529 = vmatmul.msk.f32.gmra.mxu2 %vm433_vm0, %v420_v27 }
  0x3a   : > { %3537 = vmatmul.msk.f32.gmra.mxu3 %vm433_vm0, %v428_v28 }
  0x3f   : > { %3514 = vmatmul.msk.f32.gmra.mxu0 %vm433_vm0, %v405_v39 }
  0x40   : > { %3522 = vmatmul.msk.f32.gmra.mxu1 %vm433_vm0, %v413_v40 }
  0x41   : > { %3530 = vmatmul.msk.f32.gmra.mxu2 %vm433_vm0, %v421_v43 }
  0x42   : > { %3538 = vmatmul.msk.f32.gmra.mxu3 %vm433_vm0, %v429_v44 }
  0x47   : > { %3515 = vmatmul.msk.f32.gmra.mxu0 %vm433_vm0, %v406_v55 }
  0x48   : > { %3523 = vmatmul.msk.f32.gmra.mxu1 %vm433_vm0, %v414_v56 }
  0x49   : > { %3531 = vmatmul.msk.f32.gmra.mxu2 %vm433_vm0, %v422_v59 }
  0x4a   : > { %3539 = vmatmul.msk.f32.gmra.mxu3 %vm433_vm0, %v430_v60 }
  0x4f   : > { %3516 = vmatmul.msk.f32.gmra.mxu0 %vm433_vm0, %v407_v5 }
  0x50   : > { %3524 = vmatmul.msk.f32.gmra.mxu1 %vm433_vm0, %v415_v6 }
  0x51   : > { %3532 = vmatmul.msk.f32.gmra.mxu2 %vm433_vm0, %v423_v7 }
  0x52   : > { %3540 = vmatmul.msk.f32.gmra.mxu3 %vm433_vm0, %v431_v2 }
  0x80   : > { %v3956_v61 = vpop.permute.xlu0 %649 }
  0x81   : > { %6488 = vst [vmem:[#allocation3_spill] sm:$0xff] %v3956_v61 }
  0x88   : > { %v3980_v6 = vpop.permute.xlu0 %813 }
  0x89   : > { %6489 = vst [vmem:[#allocation4_spill] sm:$0xff] %v3980_v6 }
  0x94   : > { %v3791_v8 = vpop.f32.mrf.mxu0 }
  0x95   : > { %v3793_v9 = vpop.f32.mrf.mxu1  ;;  %968 = vrot.lane.b32.xlu2 %v3791_v8, %s3579_s16  ;;  %v6468_v14 = vrot.slane %v3791_v8, 7 }
  0x96   : > { %984 = vrot.lane.b32.xlu1 %v3793_v9, %s3579_s16  ;;  %v6471_v22 = vrot.slane %v3793_v9, 7 }
  0x9c   : > { %v3799_v10 = vpop.f32.mrf.mxu2  ;;  %v3803_v11 = vpop.f32.mrf.mxu0 }
  0x9d   : > { %1000 = vrot.lane.b32.xlu0 %v3799_v10, %s3579_s16  ;;  %1151 = vrot.lane.b32.xlu2 %v3791_v8, %s3580_s17  ;;  %v685_v13 = vrot.slane %v3803_v11, 7  ;;  %v3814_v15 = vpop.f32.mrf.mxu3  ;;  %v3825_v17 = vpop.f32.mrf.mxu1  ;;  %v6470_v26 = vrot.slane %v3799_v10, 7 }
  0x9e   : > { %1167 = vrot.lane.b32.xlu1 %v3793_v9, %s3580_s17  ;;  %v693_v21 = vrot.slane %v3825_v17, 7  ;;  %v6469_v31 = vrot.slane %v3814_v15, 7 }
  0x9f   : > { %v744_v16 = vsel %vm715_vm1, %v6468_v14, %v685_v13 }
  0xa0   : > { %v736_v24 = vsel %vm715_vm1, %v6471_v22, %v693_v21 }
  0xa4   : > { %v3827_v18 = vpop.f32.mrf.mxu2  ;;  %v3837_v20 = vpop.f32.mrf.mxu0 }
  0xa5   : > { %970 = vrot.lane.b32.xlu0 %v3803_v11, %s3579_s16  ;;  %1016 = vrot.lane.b32.xlu2 %v3814_v15, %s3579_s16  ;;  %v3835_v19 = vpop.f32.mrf.mxu3  ;;  %v3847_v23 = vpop.f32.mrf.mxu1  ;;  %v686_v25 = vrot.slane %v3837_v20, 7  ;;  %v701_v27 = vrot.slane %v3827_v18, 7 }
  0xa6   : > { %817 = vrot.lane.b32.xlu1 %v744_v16, %s3577_s10  ;;  %v709_v32 = vrot.slane %v3835_v19, 7  ;;  %v694_v36 = vrot.slane %v3847_v23, 7 }
  0xa7   : > { %v743_v28 = vsel %vm715_vm1, %v685_v13, %v686_v25  ;;  %v728_v29 = vsel %vm715_vm1, %v6470_v26, %v701_v27 }
  0xa8   : > { %v754_v30 = vsel %vm746_vm2, %v743_v28, 0.0  ;;  %v720_v33 = vsel %vm715_vm1, %v6469_v31, %v709_v32  ;;  %v735_v37 = vsel %vm715_vm1, %v693_v21, %v694_v36 }
  0xa9   : > { %v762_v38 = vsel %vm746_vm2, %v735_v37, 0.0 }
  0xac   : > { %v3880_v34 = vpop.f32.mrf.mxu2  ;;  %v3894_v39 = vpop.f32.mrf.mxu0 }
  0xad   : > { %1153 = vrot.lane.b32.xlu0 %v3803_v11, %s3580_s17  ;;  %986 = vrot.lane.b32.xlu2 %v3825_v17, %s3579_s16  ;;  %v3882_v35 = vpop.f32.mrf.mxu3  ;;  %v3896_v40 = vpop.f32.mrf.mxu1  ;;  %v702_v43 = vrot.slane %v3880_v34, 7  ;;  %v687_v50 = vrot.slane %v3894_v39, 7 }
  0xae   : > { %1002 = vrot.lane.b32.xlu1 %v3827_v18, %s3579_s16  ;;  %6487 = vst [vmem:[#allocation2_spill] sm:$0xff] %v3896_v40  ;;  %v710_v42 = vrot.slane %v3882_v35, 7  ;;  %v695_v49 = vrot.slane %v3896_v40, 7 }
  0xaf   : > { %v727_v45 = vsel %vm715_vm1, %v701_v27, %v702_v43  ;;  %v742_v52 = vsel %vm715_vm1, %v686_v25, %v687_v50 }
  0xb0   : > { %v719_v44 = vsel %vm715_vm1, %v709_v32, %v710_v42  ;;  %v770_v48 = vsel %vm746_vm2, %v727_v45, 0.0  ;;  %v734_v51 = vsel %vm715_vm1, %v694_v36, %v695_v49 }
  0xb1   : > { %v778_v47 = vsel %vm746_vm2, %v719_v44, 0.0 }
  0xb4   : > { %v3903_v41 = vpop.f32.mrf.mxu2  ;;  %v3917_v46 = vpop.f32.mrf.mxu0 }
  0xb5   : > { %1018 = vrot.lane.b32.xlu0 %v3835_v19, %s3579_s16  ;;  %1169 = vrot.lane.b32.xlu2 %v3825_v17, %s3580_s17  ;;  %v703_v54 = vrot.slane %v3903_v41, 7  ;;  %v3942_v56 = vpop.f32.mrf.mxu3  ;;  %v688_v58 = vrot.slane %v3917_v46, 7  ;;  %v3960_v63 = vpop.f32.mrf.mxu1 }
  0xb6   : > { %972 = vrot.lane.b32.xlu1 %v3837_v20, %s3579_s16  ;;  %v711_v3 = vrot.slane %v3942_v56, 7  ;;  %v696_v27 = vrot.slane %v3960_v63, 7 }
  0xb7   : > { %v726_v55 = vsel %vm715_vm1, %v702_v43, %v703_v54  ;;  %v741_v60 = vsel %vm715_vm1, %v687_v50, %v688_v58 }
  0xb8   : > { %v756_v62 = vsel %vm746_vm2, %v741_v60, 0.0  ;;  %v718_v21 = vsel %vm715_vm1, %v710_v42, %v711_v3  ;;  %v733_v36 = vsel %vm715_vm1, %v695_v49, %v696_v27 }
  0xbc   : > { %v3944_v57 = vpop.f32.mrf.mxu2  ;;  %v3962_v0 = vpop.f32.mrf.mxu0 }
  0xbd   : > { %988 = vrot.lane.b32.xlu0 %v3847_v23, %s3579_s16  ;;  %833 = vrot.lane.b32.xlu2 %v736_v24, %s3577_s10  ;;  %v3971_v4 = vpop.f32.mrf.mxu3  ;;  %v704_v5 = vrot.slane %v3944_v57, 7  ;;  %v3991_v16 = vpop.f32.mrf.mxu1 }
  0xbe   : > { %1155 = vrot.lane.b32.xlu1 %v3837_v20, %s3580_s17  ;;  %6490 = vst [vmem:[#allocation5_spill] sm:$0xff] %v3991_v16  ;;  %v712_v25 = vrot.slane %v3971_v4, 7 }
  0xbf   : > { %v725_v13 = vsel %vm715_vm1, %v703_v54, %v704_v5 }
  0xc0   : > { %v772_v24 = vsel %vm746_vm2, %v725_v13, 0.0  ;;  %v717_v32 = vsel %vm715_vm1, %v711_v3, %v712_v25 }
  0xc1   : > { %v780_v37 = vsel %vm746_vm2, %v717_v32, 0.0 }
  0xc5   : > { %1171 = vrot.lane.b32.xlu0 %v3847_v23, %s3580_s17  ;;  %819 = vrot.lane.b32.xlu2 %v754_v30, %s3577_s10  ;;  %v4034_v50 = vpop.f32.mrf.mxu3  ;;  %v4051_v60 = vpop.f32.mrf.mxu1 }
  0xc6   : > { %849 = vrot.lane.b32.xlu1 %v728_v29, %s3577_s10  ;;  %6494 = vst [vmem:[#allocation9_spill] sm:$0xff] %v4051_v60  ;;  %v698_v32 = vrot.slane %v4051_v60, 7 }
  0xcd   : > { %865 = vrot.lane.b32.xlu0 %v720_v33, %s3577_s10  ;;  %1004 = vrot.lane.b32.xlu2 %v3880_v34, %s3579_s16  ;;  %v689_v33 = vrot.slane %v3962_v0, 7 }
  0xce   : > { %1020 = vrot.lane.b32.xlu1 %v3882_v35, %s3579_s16 }
  0xcf   : > { %v740_v42 = vsel %vm715_vm1, %v688_v58, %v689_v33 }
  0xd5   : > { %835 = vrot.lane.b32.xlu0 %v762_v38, %s3577_s10  ;;  %974 = vrot.lane.b32.xlu2 %v3894_v39, %s3579_s16  ;;  %v764_v38 = vsel %vm746_vm2, %v733_v36, 0.0 }
  0xd6   : > { %990 = vrot.lane.b32.xlu1 %v3896_v40, %s3579_s16 }
  0xdd   : > { %1006 = vrot.lane.b32.xlu0 %v3903_v41, %s3579_s16  ;;  %1157 = vrot.lane.b32.xlu2 %v3894_v39, %s3580_s17 }
  0xde   : > { %1173 = vrot.lane.b32.xlu1 %v3896_v40, %s3580_s17  ;;  %v6506_v40 = vrot.slane %v3791_v8, 7 }
  0xe5   : > { %976 = vrot.lane.b32.xlu0 %v3917_v46, %s3579_s16  ;;  %851 = vrot.lane.b32.xlu2 %v770_v48, %s3577_s10  ;;  %v4030_v48 = vpop.f32.mrf.mxu2 }
  0xe6   : > { %867 = vrot.lane.b32.xlu1 %v778_v47, %s3577_s10  ;;  %v697_v47 = vrot.slane %v3991_v16, 7 }
  0xe8   : > { %v732_v49 = vsel %vm715_vm1, %v696_v27, %v697_v47 }
  0xed   : > { %1159 = vrot.lane.b32.xlu0 %v3917_v46, %s3580_s17  ;;  %821 = vrot.lane.b32.xlu2 %v742_v52, %s3577_s10  ;;  %v4049_v58 = vpop.f32.mrf.mxu2 }
  0xee   : > { %837 = vrot.lane.b32.xlu1 %v734_v51, %s3577_s10 }
  0xef   : > { %v3937_v53 = vpop.permute.xlu2 %968 }
  0xf5   : > { %853 = vrot.lane.b32.xlu0 %v726_v55, %s3577_s10  ;;  %1022 = vrot.lane.b32.xlu2 %v3942_v56, %s3579_s16  ;;  %v4047_v55 = vpop.f32.mrf.mxu0 }
  0xf6   : > { %1008 = vrot.lane.b32.xlu1 %v3944_v57, %s3579_s16  ;;  %v690_v14 = vrot.slane %v4047_v55, 7 }
  0xf7   : > { %v3952_v59 = vpop.permute.xlu2 %1151 }
  0xfd   : > { %823 = vrot.lane.b32.xlu0 %v756_v62, %s3577_s10  ;;  %992 = vrot.lane.b32.xlu2 %v3960_v63, %s3579_s16 }
  0xfe   : > { %978 = vrot.lane.b32.xlu1 %v3962_v0, %s3579_s16 }
  0xff   : > { %v3969_v1 = vpop.permute.xlu2 %1016 }
 0x105   : > { %1024 = vrot.lane.b32.xlu0 %v3971_v4, %s3579_s16  ;;  %1175 = vrot.lane.b32.xlu2 %v3960_v63, %s3580_s17 }
 0x106   : > { %1161 = vrot.lane.b32.xlu1 %v3962_v0, %s3580_s17 }
 0x107   : > { %v3984_v2 = vpop.permute.xlu2 %986 }
 0x108   : > { %v3982_v7 = vpop.permute.xlu1 %984 }
 0x10d   : > { %994 = vrot.lane.b32.xlu0 %v3991_v16, %s3579_s16  ;;  %869 = vrot.lane.b32.xlu2 %v718_v21, %s3577_s10  ;;  %v713_v21 = vrot.slane %v4034_v50, 7 }
 0x10e   : > { %855 = vrot.lane.b32.xlu1 %v772_v24, %s3577_s10  ;;  %v4066_v24 = vpop.f32.mrf.mxu0 }
 0x10f   : > { %v4003_v28 = vpop.permute.xlu0 %1000  ;;  %v4007_v30 = vpop.permute.xlu2 %1169  ;;  %v716_v27 = vsel %vm715_vm1, %v712_v25, %v713_v21 }
 0x110   : > { %v4005_v29 = vpop.permute.xlu1 %1167 }
 0x115   : > { %871 = vrot.lane.b32.xlu0 %v780_v37, %s3577_s10  ;;  %839 = vrot.lane.b32.xlu2 %v764_v38, %s3577_s10 }
 0x116   : > { %825 = vrot.lane.b32.xlu1 %v740_v42, %s3577_s10  ;;  %v705_v42 = vrot.slane %v4030_v48, 7 }
 0x117   : > { %v4023_v43 = vpop.permute.xlu0 %970  ;;  %v4025_v44 = vpop.permute.xlu2 %833 }
 0x118   : > { %6491 = vst [vmem:[#allocation6_spill] sm:$0xff] %v4025_v44  ;;  %v4027_v45 = vpop.permute.xlu1 %817  ;;  %v724_v21 = vsel %vm715_vm1, %v704_v5, %v705_v42  ;;  %v739_v5 = vsel %vm715_vm1, %v689_v33, %v690_v14  ;;  %v4127_v44 = vpop.f32.mrf.mxu1 }
 0x119   : > { %6492 = vst [vmem:[#allocation7_spill] sm:$0xff] %v4027_v45 }
 0x11d   : > { %841 = vrot.lane.b32.xlu0 %v732_v49, %s3577_s10  ;;  %1010 = vrot.lane.b32.xlu2 %v4030_v48, %s3579_s16  ;;  %v731_v49 = vsel %vm715_vm1, %v697_v47, %v698_v32  ;;  %v691_v47 = vrot.slane %v4066_v24, 7 }
 0x11e   : > { %1026 = vrot.lane.b32.xlu1 %v4034_v50, %s3579_s16  ;;  %v766_v25 = vsel %vm746_vm2, %v731_v49, 0.0 }
 0x11f   : > { %v4041_v51 = vpop.permute.xlu0 %1153  ;;  %v4045_v54 = vpop.permute.xlu2 %819 }
 0x120   : > { %v4043_v52 = vpop.permute.xlu1 %1002  ;;  %6493 = vst [vmem:[#allocation8_spill] sm:$0xff] %v4045_v54 }
 0x125   : > { %1012 = vrot.lane.b32.xlu0 %v4049_v58, %s3579_s16  ;;  %980 = vrot.lane.b32.xlu2 %v4047_v55, %s3579_s16 }
 0x126   : > { %996 = vrot.lane.b32.xlu1 %v4051_v60, %s3579_s16 }
 0x127   : > { %v4059_v62 = vpop.permute.xlu0 %1018  ;;  %v4063_v13 = vpop.permute.xlu2 %1004 }
 0x128   : > { %v4061_v3 = vpop.permute.xlu1 %972 }
 0x12d   : > { %982 = vrot.lane.b32.xlu0 %v4066_v24, %s3579_s16  ;;  %1163 = vrot.lane.b32.xlu2 %v4047_v55, %s3580_s17 }
 0x12e   : > { %873 = vrot.lane.b32.xlu1 %v716_v27, %s3577_s10  ;;  %v706_v27 = vrot.slane %v4049_v58, 7 }
 0x12f   : > { %v4076_v36 = vpop.permute.xlu0 %988  ;;  %v4080_v38 = vpop.permute.xlu2 %974 }
 0x130   : > { %v4078_v37 = vpop.permute.xlu1 %1155  ;;  %v723_v22 = vsel %vm715_vm1, %v705_v42, %v706_v27 }
 0x131   : > { %v774_v54 = vsel %vm746_vm2, %v723_v22, 0.0  ;;  %v738_v22 = vsel %vm715_vm1, %v690_v14, %v691_v47  ;;  %v6501_v14 = vrot.slane %v3799_v10, 7 }
 0x135   : > { %1165 = vrot.lane.b32.xlu0 %v4066_v24, %s3580_s17  ;;  %857 = vrot.lane.b32.xlu2 %v724_v21, %s3577_s10 }
 0x136   : > { %843 = vrot.lane.b32.xlu1 %v766_v25, %s3577_s10  ;;  %v6496_v25 = vrot.slane %v3793_v9, 7 }
 0x137   : > { %v4098_v31 = vpop.permute.xlu0 %1171  ;;  %v4102_v49 = vpop.permute.xlu2 %1157 }
 0x138   : > { %v4100_v26 = vpop.permute.xlu1 %849  ;;  %v737_v21 = vsel %vm715_vm1, %v691_v47, %v6496_v25 }
 0x139   : > { %6495 = vst [vmem:[#allocation10_spill] sm:$0xff] %v4100_v26  ;;  %v758_v26 = vsel %vm746_vm2, %v739_v5, 0.0  ;;  %v760_v45 = vsel %vm746_vm2, %v737_v21, 0.0  ;;  %v4143_v21 = vpop.f32.mrf.mxu3 }
 0x13d   : > { %859 = vrot.lane.b32.xlu0 %v774_v54, %s3577_s10  ;;  %827 = vrot.lane.b32.xlu2 %v758_v26, %s3577_s10  ;;  %v699_v54 = vrot.slane %v4127_v44, 7 }
 0x13e   : > { %831 = vrot.lane.b32.xlu1 %v760_v45, %s3577_s10 }
 0x13f   : > { %v4121_v33 = vpop.permute.xlu0 %865  ;;  %v4125_v25 = vpop.permute.xlu2 %851  ;;  %v729_v47 = vsel %vm715_vm1, %v699_v54, %v6501_v14 }
 0x140   : > { %6497 = vst [vmem:[#allocation11_spill] sm:$0xff] %v4121_v33  ;;  %v4123_v42 = vpop.permute.xlu1 %1020 }
 0x141   : > { %6498 = vst [vmem:[#allocation12_spill] sm:$0xff] %v4125_v25  ;;  %v4151_v25 = vpop.f32.mrf.mxu2  ;;  %v4163_v14 = vpop.f32.mrf.mxu3 }
 0x142   : > { %6502 = vst [vmem:[#allocation15_spill] sm:$0xff] %v4151_v25 }
 0x143   : > { %6503 = vst [vmem:[#allocation16_spill] sm:$0xff] %v4163_v14 }
 0x145   : > { %829 = vrot.lane.b32.xlu0 %v738_v22, %s3577_s10  ;;  %998 = vrot.lane.b32.xlu2 %v4127_v44, %s3579_s16  ;;  %v768_v22 = vsel %vm746_vm2, %v729_v47, 0.0  ;;  %v707_v47 = vrot.slane %v4151_v25, 7 }
 0x146   : > { %1179 = vrot.lane.b32.xlu1 %v4051_v60, %s3580_s17  ;;  %v6505_v60 = vrot.slane %v3814_v15, 7 }
 0x147   : > { %v4137_v26 = vpop.permute.xlu0 %835  ;;  %v4141_v5 = vpop.permute.xlu2 %821 }
 0x148   : > { %6499 = vst [vmem:[#allocation13_spill] sm:$0xff] %v4137_v26  ;;  %v4139_v45 = vpop.permute.xlu1 %990  ;;  %v730_v26 = vsel %vm715_vm1, %v698_v32, %v699_v54  ;;  %v722_v32 = vsel %vm715_vm1, %v706_v27, %v707_v47  ;;  %v714_v54 = vrot.slane %v4163_v14, 7 }
 0x149   : > { %6500 = vst [vmem:[#allocation14_spill] sm:$0xff] %v4141_v5 }
 0x14a   : > { %v745_v27 = vsel %vm715_vm1, %v714_v54, %v6506_v40 }
 0x14d   : > { %847 = vrot.lane.b32.xlu0 %v768_v22, %s3577_s10  ;;  %845 = vrot.lane.b32.xlu2 %v730_v26, %s3577_s10 }
 0x14e   : > { %1014 = vrot.lane.b32.xlu1 %v4151_v25, %s3579_s16 }
 0x14f   : > { %v1007_v5 = vpop.permute.xlu0 %1006  ;;  %v4161_v6 = vpop.permute.xlu2 %1022 }
 0x150   : > { %v4159_v33 = vpop.permute.xlu1 %1173 }
 0x155   : > { %1177 = vrot.lane.b32.xlu0 %v3991_v16, %s3580_s17  ;;  %1181 = vrot.lane.b32.xlu2 %v4127_v44, %s3580_s17  ;;  %v721_v16 = vsel %vm715_vm1, %v707_v47, %v6505_v60 }
 0x156   : > { %861 = vrot.lane.b32.xlu1 %v722_v32, %s3577_s10  ;;  %v776_v32 = vsel %vm746_vm2, %v721_v16, 0.0 }
 0x157   : > { %v977_v26 = vpop.permute.xlu0 %976  ;;  %v4176_v61 = vpop.permute.xlu2 %992 }
 0x158   : > { %v4174_v22 = vpop.permute.xlu1 %867 }
 0x159   : > { %6504 = vst [vmem:[#allocation17_spill] sm:$0xff] %v4174_v22  ;;  %v752_v22 = vsel %vm746_vm2, %v745_v27, 0.0 }
 0x15d   : > { %1183 = vrot.lane.b32.xlu0 %v3799_v10, %s3580_s17  ;;  %863 = vrot.lane.b32.xlu2 %v776_v32, %s3577_s10 }
 0x15e   : > { %815 = vrot.lane.b32.xlu1 %v752_v22, %s3577_s10 }
 0x15f   : > { %v4194_v14 = vpop.permute.xlu0 %1159  ;;  %v4198_v47 = vpop.permute.xlu2 %1175 }
 0x160   : > { %v4196_v60 = vpop.permute.xlu1 %837 }
 0x161   : > { %6507 = vst [vmem:[#allocation18_spill] sm:$0xff] %v4196_v60 }
 0x165   : > { %1189 = vrot.lane.b32.xlu0 %v3903_v41, %s3580_s17  ;;  %1187 = vrot.lane.b32.xlu2 %v3880_v34, %s3580_s17 }
 0x166   : > { %1185 = vrot.lane.b32.xlu1 %v3827_v18, %s3580_s17 }
 0x167   : > { %v4206_v40 = vpop.permute.xlu0 %853  ;;  %v4208_v54 = vpop.permute.xlu2 %869 }
 0x168   : > { %6508 = vst [vmem:[#allocation19_spill] sm:$0xff] %v4206_v40  ;;  %v1009_v16 = vpop.permute.xlu1 %1008 }
 0x169   : > { %6509 = vst [vmem:[#allocation20_spill] sm:$0xff] %v4208_v54 }
 0x16d   : > { %1195 = vrot.lane.b32.xlu0 %v4049_v58, %s3580_s17  ;;  %1193 = vrot.lane.b32.xlu2 %v4030_v48, %s3580_s17 }
 0x16e   : > { %1191 = vrot.lane.b32.xlu1 %v3944_v57, %s3580_s17 }
 0x16f   : > { %v4216_v22 = vpop.permute.xlu0 %823  ;;  %v4218_v27 = vpop.permute.xlu2 %839 }
 0x170   : > { %6510 = vst [vmem:[#allocation21_spill] sm:$0xff] %v4216_v22  ;;  %v979_v32 = vpop.permute.xlu1 %978 }
 0x171   : > { %6511 = vst [vmem:[#allocation22_spill] sm:$0xff] %v4218_v27 }
 0x175   : > { %1060 = vrot.lane.b32.xlu0 %v4003_v28, %s3577_s10  ;;  %1199 = vrot.lane.b32.xlu2 %v3814_v15, %s3580_s17 }
 0x176   : > { %1197 = vrot.lane.b32.xlu1 %v4151_v25, %s3580_s17 }
 0x177   : > { %v1025_v54 = vpop.permute.xlu0 %1024  ;;  %v1011_v40 = vpop.permute.xlu2 %1010 }
 0x178   : > { %v4226_v60 = vpop.permute.xlu1 %1161 }
 0x17d   : > { %1030 = vrot.lane.b32.xlu0 %v4023_v43, %s3577_s10  ;;  %1028 = vrot.lane.b32.xlu2 %v3937_v53, %s3577_s10 }
 0x17e   : > { %1044 = vrot.lane.b32.xlu1 %v3982_v7, %s3577_s10 }
 0x17f   : > { %v995_v28 = vpop.permute.xlu0 %994  ;;  %v981_v22 = vpop.permute.xlu2 %980 }
 0x180   : > { %v4234_v27 = vpop.permute.xlu1 %855 }
 0x185   : > { %1078 = vrot.lane.b32.xlu0 %v4059_v62, %s3577_s10  ;;  %1076 = vrot.lane.b32.xlu2 %v3969_v1, %s3577_s10 }
 0x186   : > { %1062 = vrot.lane.b32.xlu1 %v4043_v52, %s3577_s10 }
 0x187   : > { %v4242_v43 = vpop.permute.xlu0 %871  ;;  %v4246_v53 = vpop.permute.xlu2 %1163 }
 0x188   : > { %v4244_v25 = vpop.permute.xlu1 %825 }
 0x189   : > { %6512 = vst [vmem:[#allocation23_spill] sm:$0xff] %v4244_v25 }
 0x18d   : > { %1048 = vrot.lane.b32.xlu0 %v4076_v36, %s3577_s10  ;;  %1046 = vrot.lane.b32.xlu2 %v3984_v2, %s3577_s10 }
 0x18e   : > { %1032 = vrot.lane.b32.xlu1 %v4061_v3, %s3577_s10 }
 0x18f   : > { %v4254_v7 = vpop.permute.xlu0 %841  ;;  %v4256_v62 = vpop.permute.xlu2 %857 }
 0x190   : > { %v1027_v1 = vpop.permute.xlu1 %1026 }
 0x195   : > { %1066 = vrot.lane.b32.xlu0 %v1007_v5, %s3577_s10  ;;  %1064 = vrot.lane.b32.xlu2 %v4063_v13, %s3577_s10 }
 0x196   : > { %1080 = vrot.lane.b32.xlu1 %v4123_v42, %s3577_s10 }
 0x197   : > { %v1013_v52 = vpop.permute.xlu0 %1012  ;;  %v4263_v25 = vpop.permute.xlu2 %827 }
 0x198   : > { %v997_v36 = vpop.permute.xlu1 %996 }
 0x19d   : > { %1036 = vrot.lane.b32.xlu0 %v977_v26, %s3577_s10  ;;  %1034 = vrot.lane.b32.xlu2 %v4080_v38, %s3577_s10 }
 0x19e   : > { %1050 = vrot.lane.b32.xlu1 %v4139_v45, %s3577_s10 }
 0x19f   : > { %v983_v2 = vpop.permute.xlu0 %982  ;;  %v999_v5 = vpop.permute.xlu2 %998 }
 0x1a0   : > { %v4270_v3 = vpop.permute.xlu1 %873 }
 0x1a5   : > { %1084 = vrot.lane.b32.xlu0 %v1025_v54, %s3577_s10  ;;  %1082 = vrot.lane.b32.xlu2 %v4161_v6, %s3577_s10 }
 0x1a6   : > { %1068 = vrot.lane.b32.xlu1 %v1009_v16, %s3577_s10 }
 0x1a7   : > { %v4276_v13 = vpop.permute.xlu0 %1165  ;;  %v4280_v26 = vpop.permute.xlu2 %845 }
 0x1a8   : > { %v4278_v42 = vpop.permute.xlu1 %843  ;;  %6514 = vst [vmem:[#allocation25_spill] sm:$0xff] %v4280_v26  ;;  %v1250_v26 = vrot.slane %v4246_v53, 1 }
 0x1a9   : > { %6513 = vst [vmem:[#allocation24_spill] sm:$0xff] %v4278_v42 }
 0x1ad   : > { %1054 = vrot.lane.b32.xlu0 %v995_v28, %s3577_s10  ;;  %1052 = vrot.lane.b32.xlu2 %v4176_v61, %s3577_s10 }
 0x1ae   : > { %1038 = vrot.lane.b32.xlu1 %v979_v32, %s3577_s10 }
 0x1af   : > { %v4286_v38 = vpop.permute.xlu0 %859  ;;  %v4288_v45 = vpop.permute.xlu2 %1181 }
 0x1b0   : > { %6515 = vst [vmem:[#allocation26_spill] sm:$0xff] %v4286_v38  ;;  %v4290_v6 = vpop.permute.xlu1 %831 }
 0x1b1   : > { %6516 = vst [vmem:[#allocation27_spill] sm:$0xff] %v4290_v6  ;;  %v1244_v6 = vrot.slane %v3952_v59, 1  ;;  %v1247_v59 = vrot.slane %v4102_v49, 1 }
 0x1b5   : > { %1072 = vrot.lane.b32.xlu0 %v1013_v52, %s3577_s10  ;;  %1070 = vrot.lane.b32.xlu2 %v1011_v40, %s3577_s10 }
 0x1b6   : > { %1086 = vrot.lane.b32.xlu1 %v1027_v1, %s3577_s10 }
 0x1b7   : > { %v4295_v16 = vpop.permute.xlu0 %829  ;;  %v4297_v54 = vpop.permute.xlu2 %863 }
 0x1b8   : > { %6517 = vst [vmem:[#allocation28_spill] sm:$0xff] %v4295_v16  ;;  %v4299_v28 = vpop.permute.xlu1 %1179 }
 0x1b9   : > { %6518 = vst [vmem:[#allocation29_spill] sm:$0xff] %v4297_v54 }
 0x1bd   : > { %1042 = vrot.lane.b32.xlu0 %v983_v2, %s3577_s10  ;;  %1040 = vrot.lane.b32.xlu2 %v981_v22, %s3577_s10  ;;  %v1245_v2 = vrot.slane %v4041_v51, 1  ;;  %v4343_v51 = vadd.s32 8, %v3809_v12 }
 0x1be   : > { %1056 = vrot.lane.b32.xlu1 %v997_v36, %s3577_s10 }
 0x1bf   : > { %v4304_v61 = vpop.permute.xlu0 %847  ;;  %v4306_v32 = vpop.permute.xlu2 %1187  ;;  %vm1307_vm4 = vcmp.lt.s32.totalorder %v4343_v51, 15 }
 0x1c0   : > { %6519 = vst [vmem:[#allocation30_spill] sm:$0xff] %v4304_v61  ;;  %v1015_v52 = vpop.permute.xlu1 %1014  ;;  %v1248_v61 = vrot.slane %v4194_v14, 1 }
 0x1c5   : > { %1201 = vrot.lane.b32.xlu0 %v3835_v19, %s3580_s17  ;;  %1058 = vrot.lane.b32.xlu2 %v999_v5, %s3577_s10 }
 0x1c6   : > { %1203 = vrot.lane.b32.xlu1 %v3882_v35, %s3580_s17 }
 0x1c7   : > { %v4313_v40 = vpop.permute.xlu0 %1177  ;;  %v4315_v1 = vpop.permute.xlu2 %1193 }
 0x1c8   : > { %v4317_v22 = vpop.permute.xlu1 %861 }
 0x1c9   : > { %6520 = vst [vmem:[#allocation31_spill] sm:$0xff] %v4317_v22  ;;  %v1305_v22 = vsel %vm1275_vm3, %v1244_v6, %v1245_v2 }
 0x1cd   : > { %1207 = vrot.lane.b32.xlu0 %v3971_v4, %s3580_s17  ;;  %1205 = vrot.lane.b32.xlu2 %v3942_v56, %s3580_s17 }
 0x1ce   : > { %1074 = vrot.lane.b32.xlu1 %v1015_v52, %s3577_s10  ;;  %v1246_v52 = vrot.slane %v4078_v37, 1  ;;  %v1302_v37 = vsel %vm1275_vm3, %v1247_v59, %v1248_v61 }
 0x1cf   : > { %v4324_v36 = vpop.permute.xlu0 %1183  ;;  %v4327_v5 = vpop.permute.xlu2 %1199  ;;  %v1315_v38 = vsel %vm1307_vm4, %v1302_v37, 0.0  ;;  %v1251_v37 = vrot.slane %v4276_v13, 1  ;;  %v1253_v13 = vrot.slane %v4007_v30, 1 }
 0x1d0   : > { %v4329_v16 = vpop.permute.xlu1 %815  ;;  %v1303_v49 = vsel %vm1275_vm3, %v1246_v52, %v1247_v59  ;;  %v1254_v59 = vrot.slane %v4098_v31, 1 }
 0x1d1   : > { %6521 = vst [vmem:[#allocation32_spill] sm:$0xff] %v4329_v16  ;;  %v1299_v53 = vsel %vm1275_vm3, %v1250_v26, %v1251_v37 }
 0x1d5   : > { %1372 = vrot.lane.b32.xlu0 %v1305_v22, %s3577_s10  ;;  %1211 = vrot.lane.b32.xlu2 %v4143_v21, %s3580_s17  ;;  %v1304_v22 = vsel %vm1275_vm3, %v1245_v2, %v1246_v52  ;;  %v1249_v2 = vrot.slane %v4226_v60, 1 }
 0x1d6   : > { %1209 = vrot.lane.b32.xlu1 %v4034_v50, %s3580_s17 }
 0x1d7   : > { %v4346_v54 = vpop.permute.xlu0 %1189  ;;  %v4348_v6 = vpop.permute.xlu2 %1028  ;;  %v1300_v52 = vsel %vm1275_vm3, %v1249_v2, %v1250_v26  ;;  %v1301_v60 = vsel %vm1275_vm3, %v1248_v61, %v1249_v2  ;;  %v1252_v26 = vrot.slane %v4005_v29, 1 }
 0x1d8   : > { %6522 = vst [vmem:[#allocation33_spill] sm:$0xff] %v4348_v6  ;;  %v4350_v14 = vpop.permute.xlu1 %1185  ;;  %v1313_v6 = vsel %vm1307_vm4, %v1304_v22, 0.0 }
 0x1d9   : > { %v1298_v61 = vsel %vm1275_vm3, %v1251_v37, %v1252_v26  ;;  %v1297_v30 = vsel %vm1275_vm3, %v1252_v26, %v1253_v13  ;;  %v1255_v37 = vrot.slane %v4159_v33, 1  ;;  %v1260_v26 = vrot.slane %v4324_v36, 1 }
 0x1da   : > { %v1319_v29 = vsel %vm1307_vm4, %v1298_v61, 0.0 }
 0x1db   : > { %v1295_v33 = vsel %vm1275_vm3, %v1254_v59, %v1255_v37 }
 0x1dd   : > { %1378 = vrot.lane.b32.xlu0 %v1315_v38, %s3577_s10  ;;  %1376 = vrot.lane.b32.xlu2 %v1303_v49, %s3577_s10 }
 0x1de   : > { %1374 = vrot.lane.b32.xlu1 %v1313_v6, %s3577_s10  ;;  %v1317_v6 = vsel %vm1307_vm4, %v1300_v52, 0.0  ;;  %v1296_v52 = vsel %vm1275_vm3, %v1253_v13, %v1254_v59 }
 0x1df   : > { %v4367_v16 = vpop.permute.xlu0 %1195  ;;  %v4371_v42 = vpop.permute.xlu2 %1076  ;;  %v1321_v2 = vsel %vm1307_vm4, %v1296_v52, 0.0 }
 0x1e0   : > { %v4373_v38 = vpop.permute.xlu1 %1191 }
 0x1e5   : > { %1384 = vrot.lane.b32.xlu0 %v1299_v53, %s3577_s10  ;;  %1382 = vrot.lane.b32.xlu2 %v1317_v6, %s3577_s10  ;;  %v1256_v53 = vrot.slane %v4198_v47, 1 }
 0x1e6   : > { %1380 = vrot.lane.b32.xlu1 %v1301_v60, %s3577_s10  ;;  %v1257_v60 = vrot.slane %v4313_v40, 1  ;;  %v1259_v40 = vrot.slane %v4288_v45, 1 }
 0x1e7   : > { %v4388_v22 = vpop.permute.xlu0 %1060  ;;  %v4391_v49 = vpop.permute.xlu2 %1046  ;;  %v1294_v13 = vsel %vm1275_vm3, %v1255_v37, %v1256_v53 }
 0x1e8   : > { %6523 = vst [vmem:[#allocation34_spill] sm:$0xff] %v4388_v22  ;;  %v4393_v31 = vpop.permute.xlu1 %1197  ;;  %v1293_v47 = vsel %vm1275_vm3, %v1256_v53, %v1257_v60  ;;  %v1323_v61 = vsel %vm1307_vm4, %v1294_v13, 0.0  ;;  %v1290_v36 = vsel %vm1275_vm3, %v1259_v40, %v1260_v26  ;;  %v1261_v13 = vrot.slane %v4350_v14, 1 }
 0x1e9   : > { %6524 = vst [vmem:[#allocation35_spill] sm:$0xff] %v4391_v49  ;;  %v1327_v37 = vsel %vm1307_vm4, %v1290_v36, 0.0 }
 0x1ed   : > { %1390 = vrot.lane.b32.xlu0 %v1321_v2, %s3577_s10  ;;  %1388 = vrot.lane.b32.xlu2 %v1297_v30, %s3577_s10 }
 0x1ee   : > { %1386 = vrot.lane.b32.xlu1 %v1319_v29, %s3577_s10  ;;  %v1258_v29 = vrot.slane %v4299_v28, 1 }
 0x1ef   : > { %v4409_v6 = vpop.permute.xlu0 %1030  ;;  %v4413_v52 = vpop.permute.xlu2 %1064 }
 0x1f0   : > { %6525 = vst [vmem:[#allocation36_spill] sm:$0xff] %v4409_v6  ;;  %v4415_v2 = vpop.permute.xlu1 %1044  ;;  %v1292_v59 = vsel %vm1275_vm3, %v1257_v60, %v1258_v29  ;;  %v1291_v45 = vsel %vm1275_vm3, %v1258_v29, %v1259_v40  ;;  %v1262_v60 = vrot.slane %v4306_v32, 1  ;;  %v1264_v32 = vrot.slane %v4373_v38, 1 }
 0x1f1   : > { %6526 = vst [vmem:[#allocation37_spill] sm:$0xff] %v4413_v52  ;;  %v1325_v28 = vsel %vm1307_vm4, %v1292_v59, 0.0  ;;  %v1266_v59 = vrot.slane %v4367_v16, 1 }
 0x1f2   : > { %6527 = vst [vmem:[#allocation38_spill] sm:$0xff] %v4415_v2  ;;  %v1288_v40 = vsel %vm1275_vm3, %v1261_v13, %v1262_v60 }
 0x1f5   : > { %1396 = vrot.lane.b32.xlu0 %v1293_v47, %s3577_s10  ;;  %1394 = vrot.lane.b32.xlu2 %v1323_v61, %s3577_s10 }
 0x1f6   : > { %1392 = vrot.lane.b32.xlu1 %v1295_v33, %s3577_s10  ;;  %v1263_v33 = vrot.slane %v4346_v54, 1  ;;  %v1329_v54 = vsel %vm1307_vm4, %v1288_v40, 0.0  ;;  %v1267_v40 = vrot.slane %v4393_v31, 1 }
 0x1f7   : > { %v4430_v30 = vpop.permute.xlu0 %1078  ;;  %v4437_v47 = vpop.permute.xlu2 %1034 }
 0x1f8   : > { %6528 = vst [vmem:[#allocation39_spill] sm:$0xff] %v4430_v30  ;;  %v4433_v53 = vpop.permute.xlu1 %1062  ;;  %v1287_v14 = vsel %vm1275_vm3, %v1262_v60, %v1263_v33 }
 0x1f9   : > { %6529 = vst [vmem:[#allocation40_spill] sm:$0xff] %v4433_v53 }
 0x1fa   : > { %6530 = vst [vmem:[#allocation41_spill] sm:$0xff] %v4437_v47 }
 0x1fd   : > { %1402 = vrot.lane.b32.xlu0 %v1327_v37, %s3577_s10  ;;  %1400 = vrot.lane.b32.xlu2 %v1291_v45, %s3577_s10  ;;  %v1289_v37 = vsel %vm1275_vm3, %v1260_v26, %v1261_v13  ;;  %v1265_v45 = vrot.slane %v4315_v1, 1  ;;  %v1286_v26 = vsel %vm1275_vm3, %v1263_v33, %v1264_v32 }
 0x1fe   : > { %1398 = vrot.lane.b32.xlu1 %v1325_v28, %s3577_s10  ;;  %v1331_v38 = vsel %vm1307_vm4, %v1286_v26, 0.0 }
 0x1ff   : > { %v4451_v61 = vpop.permute.xlu0 %1048  ;;  %v4459_v29 = vpop.permute.xlu2 %1082  ;;  %v1284_v16 = vsel %vm1275_vm3, %v1265_v45, %v1266_v59  ;;  %v1285_v1 = vsel %vm1275_vm3, %v1264_v32, %v1265_v45  ;;  %v1283_v32 = vsel %vm1275_vm3, %v1266_v59, %v1267_v40 }
 0x200   : > { %6531 = vst [vmem:[#allocation42_spill] sm:$0xff] %v4451_v61  ;;  %v4455_v36 = vpop.permute.xlu1 %1032  ;;  %v1333_v13 = vsel %vm1307_vm4, %v1284_v16, 0.0 }
 0x201   : > { %6532 = vst [vmem:[#allocation43_spill] sm:$0xff] %v4455_v36 }
 0x202   : > { %6533 = vst [vmem:[#allocation44_spill] sm:$0xff] %v4459_v29 }
 0x205   : > { %1408 = vrot.lane.b32.xlu0 %v1287_v14, %s3577_s10  ;;  %1406 = vrot.lane.b32.xlu2 %v1329_v54, %s3577_s10 }
 0x206   : > { %1404 = vrot.lane.b32.xlu1 %v1289_v37, %s3577_s10  ;;  %v1268_v37 = vrot.slane %v4327_v5, 1 }
 0x207   : > { %v4473_v28 = vpop.permute.xlu0 %1066  ;;  %v4489_v14 = vpop.permute.xlu2 %1052 }
 0x208   : > { %6534 = vst [vmem:[#allocation45_spill] sm:$0xff] %v4473_v28  ;;  %v4475_v60 = vpop.permute.xlu1 %1080  ;;  %v1282_v16 = vsel %vm1275_vm3, %v1267_v40, %v1268_v37 }
 0x209   : > { %6535 = vst [vmem:[#allocation46_spill] sm:$0xff] %v4475_v60  ;;  %v1335_v31 = vsel %vm1307_vm4, %v1282_v16, 0.0 }
 0x20a   : > { %6536 = vst [vmem:[#allocation47_spill] sm:$0xff] %v4489_v14 }
 0x20d   : > { %1414 = vrot.lane.b32.xlu0 %v1333_v13, %s3577_s10  ;;  %1412 = vrot.lane.b32.xlu2 %v1285_v1, %s3577_s10 }
 0x20e   : > { %1410 = vrot.lane.b32.xlu1 %v1331_v38, %s3577_s10 }
 0x20f   : > { %v4493_v33 = vpop.permute.xlu0 %1036  ;;  %v4508_v26 = vpop.permute.xlu2 %1070 }
 0x210   : > { %6537 = vst [vmem:[#allocation48_spill] sm:$0xff] %v4493_v33  ;;  %v4496_v54 = vpop.permute.xlu1 %1050 }
 0x211   : > { %6538 = vst [vmem:[#allocation49_spill] sm:$0xff] %v4496_v54 }
 0x212   : > { %6540 = vst [vmem:[#allocation51_spill] sm:$0xff] %v4508_v26 }
 0x215   : > { %1418 = vrot.lane.b32.xlu2 %v1335_v31, %s3577_s10 }
 0x216   : > { %1416 = vrot.lane.b32.xlu1 %v1283_v32, %s3577_s10 }
 0x217   : > { %v4506_v45 = vpop.permute.xlu0 %1084  ;;  %v4516_v1 = vpop.permute.xlu2 %1040 }
 0x218   : > { %6539 = vst [vmem:[#allocation50_spill] sm:$0xff] %v4506_v45  ;;  %v4510_v5 = vpop.permute.xlu1 %1068 }
 0x219   : > { %6541 = vst [vmem:[#allocation52_spill] sm:$0xff] %v4510_v5 }
 0x21a   : > { %6544 = vst [vmem:[#allocation55_spill] sm:$0xff] %v4516_v1 }
 0x21f   : > { %v4512_v13 = vpop.permute.xlu0 %1054  ;;  %v4522_v16 = vpop.permute.xlu2 %1058 }
 0x220   : > { %6542 = vst [vmem:[#allocation53_spill] sm:$0xff] %v4512_v13  ;;  %v4514_v38 = vpop.permute.xlu1 %1038 }
 0x221   : > { %6543 = vst [vmem:[#allocation54_spill] sm:$0xff] %v4514_v38 }
 0x222   : > { %6547 = vst [vmem:[#allocation58_spill] sm:$0xff] %v4522_v16 }
 0x227   : > { %v4518_v59 = vpop.permute.xlu0 %1072  ;;  %v1206_v45 = vpop.permute.xlu2 %1205 }
 0x228   : > { %6545 = vst [vmem:[#allocation56_spill] sm:$0xff] %v4518_v59  ;;  %v4520_v40 = vpop.permute.xlu1 %1086  ;;  %v1271_v33 = vrot.slane %v1206_v45, 1 }
 0x229   : > { %6546 = vst [vmem:[#allocation57_spill] sm:$0xff] %v4520_v40 }
 0x22f   : > { %v4524_v32 = vpop.permute.xlu0 %1042 }
 0x230   : > { %6548 = vst [vmem:[#allocation59_spill] sm:$0xff] %v4524_v32  ;;  %v4526_v31 = vpop.permute.xlu1 %1056 }
 0x231   : > { %6549 = vst [vmem:[#allocation60_spill] sm:$0xff] %v4526_v31 }
 0x237   : > { %v1202_v54 = vpop.permute.xlu0 %1201 }
 0x238   : > { %v1269_v26 = vrot.slane %v1202_v54, 1  ;;  %v1204_v5 = vpop.permute.xlu1 %1203 }
 0x239   : > { %v1270_v13 = vrot.slane %v1204_v5, 1 }
 0x23a   : > { %v1281_v38 = vsel %vm1275_vm3, %v1268_v37, %v1269_v26 }
 0x23b   : > { %1420 = vrot.lane.b32.xlu0 %v1281_v38, %s3577_s10  ;;  %v1279_v40 = vsel %vm1275_vm3, %v1270_v13, %v1271_v33  ;;  %v1280_v59 = vsel %vm1275_vm3, %v1269_v26, %v1270_v13  ;;  %v1212_v26 = vpop.permute.xlu2 %1211 }
 0x23c   : > { %1424 = vrot.lane.b32.xlu2 %v1279_v40, %s3577_s10  ;;  %v1337_v31 = vsel %vm1307_vm4, %v1280_v59, 0.0  ;;  %v1274_v40 = vrot.slane %v1212_v26, 1 }
 0x23d   : > { %1422 = vrot.lane.b32.xlu1 %v1337_v31, %s3577_s10 }
 0x23f   : > { %v1208_v54 = vpop.permute.xlu0 %1207 }
 0x240   : > { %v1272_v45 = vrot.slane %v1208_v54, 1  ;;  %v4539_v5 = vpop.permute.xlu1 %1074 }
 0x241   : > { %6550 = vst [vmem:[#allocation61_spill] sm:$0xff] %v4539_v5 }
 0x242   : > { %v1278_v37 = vsel %vm1275_vm3, %v1271_v33, %v1272_v45 }
 0x243   : > { %v1339_v38 = vsel %vm1307_vm4, %v1278_v37, 0.0  ;;  %v4556_v54 = vpop.permute.xlu2 %1376 }
 0x244   : > { %1426 = vrot.lane.b32.xlu0 %v1339_v38, %s3577_s10  ;;  %6551 = vst [vmem:[#allocation62_spill] sm:$0xff] %v4556_v54 }
 0x248   : > { %v1210_v13 = vpop.permute.xlu1 %1209 }
 0x249   : > { %v1273_v32 = vrot.slane %v1210_v13, 1  ;;  %v6557_v13 = vld [vmem:[#allocation2_spill] sm:$0xff] }
 0x24b   : > { %v1277_v59 = vsel %vm1275_vm3, %v1272_v45, %v1273_v32  ;;  %v1276_v31 = vsel %vm1275_vm3, %v1273_v32, %v1274_v40  ;;  %v4564_v32 = vpop.permute.xlu2 %1382  ;;  %v4572_v45 = vpop.permute.xlu0 %1372 }
 0x24c   : > { %1495 = vrot.lane.b32.xlu0 %v3791_v8, %s3581_s18  ;;  %1428 = vrot.lane.b32.xlu1 %v1277_v59, %s3577_s10  ;;  %v1341_v33 = vsel %vm1307_vm4, %v1276_v31, 0.0  ;;  %6552 = vst [vmem:[#allocation63_spill] sm:$0xff] %v4564_v32  ;;  %v6578_v32 = vld [vmem:[#allocation16_spill] sm:$0xff] }
 0x24d   : > { %1430 = vrot.lane.b32.xlu2 %v1341_v33, %s3577_s10  ;;  %6553 = vst [vmem:[#allocation64_spill] sm:$0xff] %v4572_v45  ;;  %v6561_v33 = vld [vmem:[#allocation5_spill] sm:$0xff] }
 0x250   : > { %v4582_v38 = vpop.permute.xlu1 %1374 }
 0x251   : > { %6555 = vst [vmem:[#allocation66_spill] sm:$0xff] %v4582_v38 }
 0x253   : > { %v4578_v37 = vpop.permute.xlu2 %1388  ;;  %v4584_v26 = vpop.permute.xlu0 %1378 }
 0x254   : > { %1501 = vrot.lane.b32.xlu0 %v3894_v39, %s3581_s18  ;;  %1497 = vrot.lane.b32.xlu1 %v3803_v11, %s3581_s18  ;;  %6554 = vst [vmem:[#allocation65_spill] sm:$0xff] %v4578_v37 }
 0x255   : > { %1499 = vrot.lane.b32.xlu2 %v3837_v20, %s3581_s18  ;;  %6556 = vst [vmem:[#allocation67_spill] sm:$0xff] %v4584_v26  ;;  %v6562_v26 = vld [vmem:[#allocation9_spill] sm:$0xff] }
 0x258   : > { %v4594_v59 = vpop.permute.xlu1 %1380 }
 0x259   : > { %6559 = vst [vmem:[#allocation68_spill] sm:$0xff] %v4594_v59 }
 0x25b   : > { %v4592_v40 = vpop.permute.xlu2 %1394  ;;  %v4596_v31 = vpop.permute.xlu0 %1384 }
 0x25c   : > { %1507 = vrot.lane.b32.xlu0 %v4047_v55, %s3581_s18  ;;  %1503 = vrot.lane.b32.xlu1 %v3917_v46, %s3581_s18  ;;  %6558 = vst [vmem:[#allocation2_spill] sm:$0xff] %v4592_v40 }
 0x25d   : > { %1505 = vrot.lane.b32.xlu2 %v3962_v0, %s3581_s18  ;;  %6560 = vst [vmem:[#allocation69_spill] sm:$0xff] %v4596_v31 }
 0x260   : > { %v4606_v38 = vpop.permute.xlu1 %1386 }
 0x261   : > { %6564 = vst [vmem:[#allocation9_spill] sm:$0xff] %v4606_v38 }
 0x263   : > { %v4604_v37 = vpop.permute.xlu2 %1400  ;;  %v4612_v59 = vpop.permute.xlu0 %1390 }
 0x264   : > { %1513 = vrot.lane.b32.xlu0 %v3825_v17, %s3581_s18  ;;  %1509 = vrot.lane.b32.xlu1 %v4066_v24, %s3581_s18  ;;  %6563 = vst [vmem:[#allocation5_spill] sm:$0xff] %v4604_v37 }
 0x265   : > { %1511 = vrot.lane.b32.xlu2 %v3793_v9, %s3581_s18  ;;  %6565 = vst [vmem:[#allocation70_spill] sm:$0xff] %v4612_v59  ;;  %v6570_v59 = vld [vmem:[#allocation15_spill] sm:$0xff] }
 0x268   : > { %v4624_v38 = vpop.permute.xlu1 %1392 }
 0x269   : > { %6567 = vst [vmem:[#allocation72_spill] sm:$0xff] %v4624_v38 }
 0x26b   : > { %v4616_v31 = vpop.permute.xlu2 %1406  ;;  %v4626_v37 = vpop.permute.xlu0 %1396 }
 0x26c   : > { %1519 = vrot.lane.b32.xlu0 %v3960_v63, %s3581_s18  ;;  %1515 = vrot.lane.b32.xlu1 %v3847_v23, %s3581_s18  ;;  %6566 = vst [vmem:[#allocation71_spill] sm:$0xff] %v4616_v31 }
 0x26d   : > { %1517 = vrot.lane.b32.xlu2 %v6557_v13, %s3581_s18  ;;  %6568 = vst [vmem:[#allocation73_spill] sm:$0xff] %v4626_v37 }
 0x270   : > { %v4636_v40 = vpop.permute.xlu1 %1398 }
 0x271   : > { %6571 = vst [vmem:[#allocation15_spill] sm:$0xff] %v4636_v40 }
 0x273   : > { %v4632_v31 = vpop.permute.xlu2 %1412  ;;  %v4638_v5 = vpop.permute.xlu0 %1402 }
 0x274   : > { %1525 = vrot.lane.b32.xlu0 %v4127_v44, %s3581_s18  ;;  %1521 = vrot.lane.b32.xlu1 %v6561_v33, %s3581_s18  ;;  %6569 = vst [vmem:[#allocation74_spill] sm:$0xff] %v4632_v31 }
 0x275   : > { %1523 = vrot.lane.b32.xlu2 %v6562_v26, %s3581_s18  ;;  %6572 = vst [vmem:[#allocation75_spill] sm:$0xff] %v4638_v5 }
 0x278   : > { %v4648_v37 = vpop.permute.xlu1 %1404 }
 0x279   : > { %6574 = vst [vmem:[#allocation77_spill] sm:$0xff] %v4648_v37 }
 0x27b   : > { %v4646_v38 = vpop.permute.xlu2 %1418  ;;  %v4650_v31 = vpop.permute.xlu0 %1408 }
 0x27c   : > { %1531 = vrot.lane.b32.xlu0 %v3880_v34, %s3581_s18  ;;  %1527 = vrot.lane.b32.xlu1 %v3799_v10, %s3581_s18  ;;  %6573 = vst [vmem:[#allocation76_spill] sm:$0xff] %v4646_v38 }
 0x27d   : > { %1529 = vrot.lane.b32.xlu2 %v3827_v18, %s3581_s18  ;;  %6575 = vst [vmem:[#allocation78_spill] sm:$0xff] %v4650_v31 }
 0x280   : > { %v4660_v5 = vpop.permute.xlu1 %1410 }
 0x281   : > { %6577 = vst [vmem:[#allocation80_spill] sm:$0xff] %v4660_v5 }
 0x283   : > { %v4664_v38 = vpop.permute.xlu0 %1414 }
 0x284   : > { %1537 = vrot.lane.b32.xlu0 %v4030_v48, %s3581_s18  ;;  %1533 = vrot.lane.b32.xlu1 %v3903_v41, %s3581_s18  ;;  %6579 = vst [vmem:[#allocation16_spill] sm:$0xff] %v4664_v38 }
 0x285   : > { %1535 = vrot.lane.b32.xlu2 %v3944_v57, %s3581_s18 }
 0x288   : > { %v4670_v54 = vpop.permute.xlu1 %1416 }
 0x289   : > { %6582 = vst [vmem:[#allocation83_spill] sm:$0xff] %v4670_v54 }
 0x28c   : > { %1543 = vrot.lane.b32.xlu0 %v3814_v15, %s3581_s18  ;;  %1539 = vrot.lane.b32.xlu1 %v4049_v58, %s3581_s18 }
 0x28d   : > { %1541 = vrot.lane.b32.xlu2 %v6570_v59, %s3581_s18 }
 0x294   : > { %1549 = vrot.lane.b32.xlu0 %v3942_v56, %s3581_s18  ;;  %1545 = vrot.lane.b32.xlu1 %v3835_v19, %s3581_s18 }
 0x295   : > { %1547 = vrot.lane.b32.xlu2 %v3882_v35, %s3581_s18 }
 0x296   : > { %v4658_v40 = vpop.permute.xlu2 %1424 }
 0x297   : > { %6576 = vst [vmem:[#allocation79_spill] sm:$0xff] %v4658_v40 }
 0x29c   : > { %1555 = vrot.lane.b32.xlu0 %v4143_v21, %s3581_s18  ;;  %1551 = vrot.lane.b32.xlu1 %v3971_v4, %s3581_s18 }
 0x29d   : > { %1553 = vrot.lane.b32.xlu2 %v4034_v50, %s3581_s18 }
 0x2a4   : > { %1557 = vrot.lane.b32.xlu1 %v6578_v32, %s3581_s18 }
 0x2a7   : > { %v4666_v37 = vpop.permute.xlu2 %1430 }
 0x2a8   : > { %6580 = vst [vmem:[#allocation81_spill] sm:$0xff] %v4666_v37 }
 0x2ad   : > { %v4668_v31 = vpop.permute.xlu0 %1420 }
 0x2ae   : > { %6581 = vst [vmem:[#allocation82_spill] sm:$0xff] %v4668_v31 }
 0x2af   : > { %v1500_v45 = vpop.permute.xlu2 %1499  ;;  %v4672_v16 = vpop.permute.xlu1 %1422 }
 0x2b0   : > { %6583 = vst [vmem:[#allocation84_spill] sm:$0xff] %v4672_v16  ;;  %v1593_v38 = vrot.slane %v1500_v45, 7 }
 0x2b6   : > { %v4674_v1 = vpop.permute.xlu0 %1426 }
 0x2b7   : > { %6584 = vst [vmem:[#allocation85_spill] sm:$0xff] %v4674_v1  ;;  %v1506_v60 = vpop.permute.xlu2 %1505 }
 0x2be   : > { %v4676_v40 = vpop.permute.xlu0 %1495  ;;  %v4678_v5 = vpop.permute.xlu1 %1428 }
 0x2bf   : > { %6585 = vst [vmem:[#allocation86_spill] sm:$0xff] %v4678_v5  ;;  %v1512_v14 = vpop.permute.xlu2 %1511  ;;  %v6484_v37 = vrot.slane %v4676_v40, 7  ;;  %v1596_v5 = vrot.slane %v1506_v60, 7 }
 0x2c6   : > { %v1502_v28 = vpop.permute.xlu0 %1501  ;;  %v1498_v36 = vpop.permute.xlu1 %1497 }
 0x2c7   : > { %v1594_v29 = vrot.slane %v1502_v28, 7  ;;  %v1592_v31 = vrot.slane %v1498_v36, 7  ;;  %v1518_v61 = vpop.permute.xlu2 %1517 }
 0x2c9   : > { %v1653_v16 = vsel %vm715_vm1, %v6484_v37, %v1592_v31  ;;  %v1652_v1 = vsel %vm715_vm1, %v1592_v31, %v1593_v38  ;;  %v4689_v54 = vsel %vm715_vm1, %v1593_v38, %v1594_v29 }
 0x2ca   : > { %1721 = vrot.lane.b32.xlu0 %v1653_v16, %s3577_s10  ;;  %v1657_v45 = vsel %vm746_vm2, %v1652_v1, 0.0 }
 0x2cb   : > { %1723 = vrot.lane.b32.xlu1 %v1657_v45, %s3577_s10 }
 0x2ce   : > { %v1508_v36 = vpop.permute.xlu0 %1507  ;;  %v1504_v28 = vpop.permute.xlu1 %1503 }
 0x2cf   : > { %v1597_v53 = vrot.slane %v1508_v36, 7  ;;  %v1595_v37 = vrot.slane %v1504_v28, 7  ;;  %v1599_v36 = vrot.slane %v1512_v14, 7 }
 0x2d1   : > { %v1650_v31 = vsel %vm715_vm1, %v1594_v29, %v1595_v37  ;;  %v1649_v38 = vsel %vm715_vm1, %v1595_v37, %v1596_v5  ;;  %v4701_v16 = vsel %vm715_vm1, %v1596_v5, %v1597_v53  ;;  %v1524_v29 = vpop.permute.xlu2 %1523 }
 0x2d2   : > { %v1659_v1 = vsel %vm746_vm2, %v1650_v31, 0.0 }
 0x2d3   : > { %1727 = vrot.lane.b32.xlu0 %v1659_v1, %s3577_s10  ;;  %1729 = vrot.lane.b32.xlu1 %v1649_v38, %s3577_s10  ;;  %v1602_v1 = vrot.slane %v1518_v61, 7 }
 0x2d6   : > { %v1514_v60 = vpop.permute.xlu0 %1513  ;;  %v1510_v45 = vpop.permute.xlu1 %1509 }
 0x2d7   : > { %v1600_v28 = vrot.slane %v1514_v60, 7  ;;  %v1598_v47 = vrot.slane %v1510_v45, 7 }
 0x2d9   : > { %v1647_v37 = vsel %vm715_vm1, %v1597_v53, %v1598_v47  ;;  %v1646_v5 = vsel %vm715_vm1, %v1598_v47, %v1599_v36  ;;  %v4713_v30 = vsel %vm715_vm1, %v1599_v36, %v1600_v28 }
 0x2da   : > { %v1663_v31 = vsel %vm746_vm2, %v1646_v5, 0.0  ;;  %v1530_v5 = vpop.permute.xlu2 %1529 }
 0x2db   : > { %1733 = vrot.lane.b32.xlu0 %v1647_v37, %s3577_s10  ;;  %1735 = vrot.lane.b32.xlu1 %v1663_v31, %s3577_s10 }
 0x2de   : > { %v1520_v14 = vpop.permute.xlu0 %1519  ;;  %v1516_v38 = vpop.permute.xlu1 %1515 }
 0x2df   : > { %v1603_v60 = vrot.slane %v1520_v14, 7  ;;  %v1601_v45 = vrot.slane %v1516_v38, 7  ;;  %v1605_v14 = vrot.slane %v1524_v29, 7 }
 0x2e1   : > { %v1644_v53 = vsel %vm715_vm1, %v1600_v28, %v1601_v45  ;;  %v1643_v47 = vsel %vm715_vm1, %v1601_v45, %v1602_v1  ;;  %v4725_v36 = vsel %vm715_vm1, %v1602_v1, %v1603_v60 }
 0x2e2   : > { %v1665_v37 = vsel %vm746_vm2, %v1644_v53, 0.0  ;;  %v1536_v29 = vpop.permute.xlu2 %1535 }
 0x2e3   : > { %1739 = vrot.lane.b32.xlu0 %v1665_v37, %s3577_s10  ;;  %1741 = vrot.lane.b32.xlu1 %v1643_v47, %s3577_s10 }
 0x2e6   : > { %v1526_v61 = vpop.permute.xlu0 %1525  ;;  %v1522_v31 = vpop.permute.xlu1 %1521 }
 0x2e7   : > { %v1606_v38 = vrot.slane %v1526_v61, 7  ;;  %v1604_v28 = vrot.slane %v1522_v31, 7  ;;  %v1608_v61 = vrot.slane %v1530_v5, 7 }
 0x2e9   : > { %v1641_v45 = vsel %vm715_vm1, %v1603_v60, %v1604_v28  ;;  %v1640_v1 = vsel %vm715_vm1, %v1604_v28, %v1605_v14  ;;  %v4737_v2 = vsel %vm715_vm1, %v1605_v14, %v1606_v38 }
 0x2ea   : > { %v1669_v53 = vsel %vm746_vm2, %v1640_v1, 0.0 }
 0x2eb   : > { %1745 = vrot.lane.b32.xlu0 %v1641_v45, %s3577_s10  ;;  %1747 = vrot.lane.b32.xlu1 %v1669_v53, %s3577_s10  ;;  %v1611_v53 = vrot.slane %v1536_v29, 7 }
 0x2ee   : > { %v1532_v47 = vpop.permute.xlu0 %1531  ;;  %v1528_v37 = vpop.permute.xlu1 %1527 }
 0x2ef   : > { %v1609_v31 = vrot.slane %v1532_v47, 7  ;;  %v1607_v60 = vrot.slane %v1528_v37, 7 }
 0x2f1   : > { %v1638_v28 = vsel %vm715_vm1, %v1606_v38, %v1607_v60  ;;  %v1637_v14 = vsel %vm715_vm1, %v1607_v60, %v1608_v61  ;;  %v4749_v52 = vsel %vm715_vm1, %v1608_v61, %v1609_v31  ;;  %v1542_v38 = vpop.permute.xlu2 %1541 }
 0x2f2   : > { %v1671_v45 = vsel %vm746_vm2, %v1638_v28, 0.0 }
 0x2f3   : > { %1751 = vrot.lane.b32.xlu0 %v1671_v45, %s3577_s10  ;;  %1753 = vrot.lane.b32.xlu1 %v1637_v14, %s3577_s10  ;;  %v1614_v45 = vrot.slane %v1542_v38, 7 }
 0x2f6   : > { %v1538_v5 = vpop.permute.xlu0 %1537  ;;  %v1534_v1 = vpop.permute.xlu1 %1533 }
 0x2f7   : > { %v1612_v47 = vrot.slane %v1538_v5, 7  ;;  %v1610_v37 = vrot.slane %v1534_v1, 7 }
 0x2f9   : > { %v1635_v60 = vsel %vm715_vm1, %v1609_v31, %v1610_v37  ;;  %v1634_v61 = vsel %vm715_vm1, %v1610_v37, %v1611_v53  ;;  %v4761_v6 = vsel %vm715_vm1, %v1611_v53, %v1612_v47 }
 0x2fa   : > { %v1675_v28 = vsel %vm746_vm2, %v1634_v61, 0.0  ;;  %v1548_v61 = vpop.permute.xlu2 %1547 }
 0x2fb   : > { %1757 = vrot.lane.b32.xlu0 %v1635_v60, %s3577_s10  ;;  %1759 = vrot.lane.b32.xlu1 %v1675_v28, %s3577_s10 }
 0x2fe   : > { %v1544_v29 = vpop.permute.xlu0 %1543  ;;  %v1540_v14 = vpop.permute.xlu1 %1539 }
 0x2ff   : > { %v1615_v5 = vrot.slane %v1544_v29, 7  ;;  %v1613_v1 = vrot.slane %v1540_v14, 7  ;;  %v1617_v29 = vrot.slane %v1548_v61, 7 }
 0x301   : > { %v1632_v31 = vsel %vm715_vm1, %v1612_v47, %v1613_v1  ;;  %v1631_v37 = vsel %vm715_vm1, %v1613_v1, %v1614_v45  ;;  %v4773_v53 = vsel %vm715_vm1, %v1614_v45, %v1615_v5 }
 0x302   : > { %v1677_v60 = vsel %vm746_vm2, %v1632_v31, 0.0 }
 0x303   : > { %1763 = vrot.lane.b32.xlu0 %v1677_v60, %s3577_s10  ;;  %1765 = vrot.lane.b32.xlu1 %v1631_v37, %s3577_s10  ;;  %v1554_v37 = vpop.permute.xlu2 %1553 }
 0x306   : > { %v1550_v38 = vpop.permute.xlu0 %1549  ;;  %v1546_v28 = vpop.permute.xlu1 %1545 }
 0x307   : > { %v1618_v14 = vrot.slane %v1550_v38, 7  ;;  %v1616_v47 = vrot.slane %v1546_v28, 7  ;;  %v1620_v38 = vrot.slane %v1554_v37, 7  ;;  %v6586_v37 = vrot.slane %v4676_v40, 7 }
 0x308   : > { %v1661_v40 = vsel %vm746_vm2, %v4701_v16, 0.0 }
 0x309   : > { %v1629_v1 = vsel %vm715_vm1, %v1615_v5, %v1616_v47  ;;  %v1628_v45 = vsel %vm715_vm1, %v1616_v47, %v1617_v29  ;;  %v1627_v49 = vsel %vm715_vm1, %v1617_v29, %v1618_v14 }
 0x30a   : > { %v1681_v31 = vsel %vm746_vm2, %v1628_v45, 0.0 }
 0x30b   : > { %1769 = vrot.lane.b32.xlu0 %v1629_v1, %s3577_s10  ;;  %1771 = vrot.lane.b32.xlu1 %v1681_v31, %s3577_s10 }
 0x30e   : > { %v1556_v61 = vpop.permute.xlu0 %1555  ;;  %v1552_v60 = vpop.permute.xlu1 %1551 }
 0x30f   : > { %v1621_v28 = vrot.slane %v1556_v61, 7  ;;  %v1619_v22 = vrot.slane %v1552_v60, 7 }
 0x311   : > { %v1626_v5 = vsel %vm715_vm1, %v1618_v14, %v1619_v22  ;;  %v1625_v47 = vsel %vm715_vm1, %v1619_v22, %v1620_v38  ;;  %v1624_v29 = vsel %vm715_vm1, %v1620_v38, %v1621_v28  ;;  %v1673_v38 = vsel %vm746_vm2, %v4749_v52, 0.0 }
 0x312   : > { %v1683_v1 = vsel %vm746_vm2, %v1626_v5, 0.0  ;;  %v1679_v52 = vsel %vm746_vm2, %v4773_v53, 0.0 }
 0x313   : > { %1775 = vrot.lane.b32.xlu0 %v1683_v1, %s3577_s10  ;;  %1777 = vrot.lane.b32.xlu1 %v1625_v47, %s3577_s10  ;;  %v1685_v1 = vsel %vm746_vm2, %v1624_v29, 0.0 }
 0x316   : > { %v1558_v45 = vpop.permute.xlu1 %1557 }
 0x317   : > { %v1622_v31 = vrot.slane %v1558_v45, 7 }
 0x319   : > { %v1654_v14 = vsel %vm715_vm1, %v1622_v31, %v6586_v37  ;;  %v1623_v22 = vsel %vm715_vm1, %v1621_v28, %v1622_v31 }
 0x31a   : > { %v1655_v61 = vsel %vm746_vm2, %v1654_v14, 0.0 }
 0x31b   : > { %1847 = vrot.lane.b32.xlu1 %v3791_v8, %s3582_s19  ;;  %1719 = vrot.lane.b32.xlu2 %v1655_v61, %s3577_s10 }
 0x31c   : > { %1781 = vrot.lane.b32.xlu0 %v1623_v22, %s3577_s10 }
 0x323   : > { %1853 = vrot.lane.b32.xlu1 %v3894_v39, %s3582_s19  ;;  %1725 = vrot.lane.b32.xlu2 %v4689_v54, %s3577_s10  ;;  %v1667_v54 = vsel %vm746_vm2, %v4725_v36, 0.0 }
 0x324   : > { %1851 = vrot.lane.b32.xlu0 %v3837_v20, %s3582_s19 }
 0x32b   : > { %1859 = vrot.lane.b32.xlu1 %v4047_v55, %s3582_s19  ;;  %1731 = vrot.lane.b32.xlu2 %v1661_v40, %s3577_s10 }
 0x32c   : > { %1857 = vrot.lane.b32.xlu0 %v3962_v0, %s3582_s19 }
 0x333   : > { %1865 = vrot.lane.b32.xlu1 %v3825_v17, %s3582_s19  ;;  %1737 = vrot.lane.b32.xlu2 %v4713_v30, %s3577_s10 }
 0x334   : > { %1863 = vrot.lane.b32.xlu0 %v3793_v9, %s3582_s19 }
 0x33b   : > { %1871 = vrot.lane.b32.xlu1 %v3960_v63, %s3582_s19  ;;  %1743 = vrot.lane.b32.xlu2 %v1667_v54, %s3577_s10 }
 0x33c   : > { %1869 = vrot.lane.b32.xlu0 %v6557_v13, %s3582_s19  ;;  %v4839_v16 = vpop.permute.xlu0 %1721 }
 0x33d   : > { %v4841_v60 = vpop.permute.xlu1 %1723 }
 0x33e   : > { %6587 = vst [vmem:[#allocation87_spill] sm:$0xff] %v4841_v60 }
 0x343   : > { %1877 = vrot.lane.b32.xlu1 %v4127_v44, %s3582_s19  ;;  %1749 = vrot.lane.b32.xlu2 %v4737_v2, %s3577_s10 }
 0x344   : > { %1875 = vrot.lane.b32.xlu0 %v6562_v26, %s3582_s19 }
 0x345   : > { %v4849_v30 = vpop.permute.xlu0 %1727  ;;  %v4851_v36 = vpop.permute.xlu1 %1729 }
 0x346   : > { %6588 = vst [vmem:[#allocation88_spill] sm:$0xff] %v4849_v30 }
 0x347   : > { %6589 = vst [vmem:[#allocation89_spill] sm:$0xff] %v4851_v36 }
 0x34b   : > { %1883 = vrot.lane.b32.xlu1 %v3880_v34, %s3582_s19  ;;  %1755 = vrot.lane.b32.xlu2 %v1673_v38, %s3577_s10 }
 0x34c   : > { %1881 = vrot.lane.b32.xlu0 %v3827_v18, %s3582_s19 }
 0x34d   : > { %v4865_v2 = vpop.permute.xlu0 %1733  ;;  %v4867_v28 = vpop.permute.xlu1 %1735 }
 0x34e   : > { %6590 = vst [vmem:[#allocation90_spill] sm:$0xff] %v4865_v2 }
 0x34f   : > { %6591 = vst [vmem:[#allocation91_spill] sm:$0xff] %v4867_v28 }
 0x353   : > { %1889 = vrot.lane.b32.xlu1 %v4030_v48, %s3582_s19  ;;  %1761 = vrot.lane.b32.xlu2 %v4761_v6, %s3577_s10 }
 0x354   : > { %1887 = vrot.lane.b32.xlu0 %v3944_v57, %s3582_s19 }
 0x355   : > { %v4879_v6 = vpop.permute.xlu0 %1739  ;;  %v4881_v5 = vpop.permute.xlu1 %1741 }
 0x356   : > { %6592 = vst [vmem:[#allocation92_spill] sm:$0xff] %v4879_v6 }
 0x357   : > { %6593 = vst [vmem:[#allocation93_spill] sm:$0xff] %v4881_v5 }
 0x35b   : > { %1895 = vrot.lane.b32.xlu1 %v3814_v15, %s3582_s19  ;;  %1767 = vrot.lane.b32.xlu2 %v1679_v52, %s3577_s10 }
 0x35c   : > { %1893 = vrot.lane.b32.xlu0 %v6570_v59, %s3582_s19 }
 0x35d   : > { %v4888_v53 = vpop.permute.xlu0 %1745  ;;  %v4890_v47 = vpop.permute.xlu1 %1747 }
 0x35e   : > { %6594 = vst [vmem:[#allocation94_spill] sm:$0xff] %v4888_v53 }
 0x35f   : > { %6595 = vst [vmem:[#allocation95_spill] sm:$0xff] %v4890_v47 }
 0x363   : > { %1901 = vrot.lane.b32.xlu1 %v3942_v56, %s3582_s19  ;;  %1773 = vrot.lane.b32.xlu2 %v1627_v49, %s3577_s10 }
 0x364   : > { %1899 = vrot.lane.b32.xlu0 %v3882_v35, %s3582_s19 }
 0x365   : > { %v4899_v45 = vpop.permute.xlu0 %1751  ;;  %v4901_v49 = vpop.permute.xlu1 %1753 }
 0x366   : > { %6596 = vst [vmem:[#allocation96_spill] sm:$0xff] %v4899_v45 }
 0x367   : > { %6597 = vst [vmem:[#allocation97_spill] sm:$0xff] %v4901_v49 }
 0x36b   : > { %1907 = vrot.lane.b32.xlu1 %v4143_v21, %s3582_s19  ;;  %1779 = vrot.lane.b32.xlu2 %v1685_v1, %s3577_s10 }
 0x36c   : > { %1905 = vrot.lane.b32.xlu0 %v4034_v50, %s3582_s19 }
 0x36d   : > { %v4909_v29 = vpop.permute.xlu0 %1757  ;;  %v4911_v37 = vpop.permute.xlu1 %1759 }
 0x36e   : > { %6598 = vst [vmem:[#allocation98_spill] sm:$0xff] %v4909_v29 }
 0x36f   : > { %6599 = vst [vmem:[#allocation99_spill] sm:$0xff] %v4911_v37 }
 0x373   : > { %1849 = vrot.lane.b32.xlu2 %v3803_v11, %s3582_s19 }
 0x375   : > { %v4905_v31 = vpop.permute.xlu2 %1719  ;;  %v4919_v61 = vpop.permute.xlu0 %1763 }
 0x376   : > { %6602 = vst [vmem:[#allocation102_spill] sm:$0xff] %v4919_v61  ;;  %v4921_v40 = vpop.permute.xlu1 %1765 }
 0x377   : > { %6603 = vst [vmem:[#allocation103_spill] sm:$0xff] %v4921_v40 }
 0x37b   : > { %1855 = vrot.lane.b32.xlu2 %v3917_v46, %s3582_s19 }
 0x37d   : > { %v4913_v14 = vpop.permute.xlu2 %1725  ;;  %v4927_v38 = vpop.permute.xlu0 %1769 }
 0x37e   : > { %6600 = vst [vmem:[#allocation100_spill] sm:$0xff] %v4913_v14  ;;  %v4929_v52 = vpop.permute.xlu1 %1771 }
 0x37f   : > { %6605 = vst [vmem:[#allocation105_spill] sm:$0xff] %v4927_v38 }
 0x380   : > { %6606 = vst [vmem:[#allocation106_spill] sm:$0xff] %v4929_v52 }
 0x383   : > { %1861 = vrot.lane.b32.xlu2 %v4066_v24, %s3582_s19 }
 0x385   : > { %v4917_v22 = vpop.permute.xlu2 %1731  ;;  %v4935_v37 = vpop.permute.xlu0 %1775 }
 0x386   : > { %6601 = vst [vmem:[#allocation101_spill] sm:$0xff] %v4917_v22  ;;  %v4937_v29 = vpop.permute.xlu1 %1777 }
 0x387   : > { %6608 = vst [vmem:[#allocation108_spill] sm:$0xff] %v4935_v37 }
 0x388   : > { %6609 = vst [vmem:[#allocation109_spill] sm:$0xff] %v4937_v29 }
 0x38b   : > { %1867 = vrot.lane.b32.xlu2 %v3847_v23, %s3582_s19 }
 0x38d   : > { %v4925_v54 = vpop.permute.xlu2 %1737 }
 0x38e   : > { %6604 = vst [vmem:[#allocation104_spill] sm:$0xff] %v4925_v54  ;;  %v4945_v38 = vpop.permute.xlu0 %1781  ;;  %v4947_v52 = vpop.permute.xlu1 %1847 }
 0x38f   : > { %6611 = vst [vmem:[#allocation111_spill] sm:$0xff] %v4945_v38 }
 0x393   : > { %1873 = vrot.lane.b32.xlu2 %v6561_v33, %s3582_s19 }
 0x395   : > { %v4933_v1 = vpop.permute.xlu2 %1743 }
 0x396   : > { %6607 = vst [vmem:[#allocation107_spill] sm:$0xff] %v4933_v1  ;;  %v1852_v29 = vpop.permute.xlu0 %1851  ;;  %v1854_v49 = vpop.permute.xlu1 %1853 }
 0x397   : > { %v1945_v53 = vrot.slane %v1852_v29, 1  ;;  %v1946_v5 = vrot.slane %v1854_v49, 1 }
 0x399   : > { %v2003_v54 = vsel %vm1275_vm3, %v1945_v53, %v1946_v5 }
 0x39b   : > { %1879 = vrot.lane.b32.xlu2 %v3799_v10, %s3582_s19 }
 0x39d   : > { %v4941_v40 = vpop.permute.xlu2 %1749 }
 0x39e   : > { %6610 = vst [vmem:[#allocation110_spill] sm:$0xff] %v4941_v40  ;;  %v1858_v45 = vpop.permute.xlu0 %1857  ;;  %v1860_v47 = vpop.permute.xlu1 %1859 }
 0x39f   : > { %v1949_v6 = vrot.slane %v1860_v47, 1 }
 0x3a3   : > { %1885 = vrot.lane.b32.xlu2 %v3903_v41, %s3582_s19 }
 0x3a5   : > { %v4949_v61 = vpop.permute.xlu2 %1755 }
 0x3a6   : > { %6612 = vst [vmem:[#allocation112_spill] sm:$0xff] %v4949_v61  ;;  %v1864_v61 = vpop.permute.xlu0 %1863  ;;  %v1866_v1 = vpop.permute.xlu1 %1865 }
 0x3ab   : > { %1891 = vrot.lane.b32.xlu2 %v4049_v58, %s3582_s19 }
 0x3ad   : > { %v4953_v37 = vpop.permute.xlu2 %1761 }
 0x3ae   : > { %6613 = vst [vmem:[#allocation113_spill] sm:$0xff] %v4953_v37  ;;  %v1870_v28 = vpop.permute.xlu0 %1869  ;;  %v1872_v22 = vpop.permute.xlu1 %1871 }
 0x3b3   : > { %1897 = vrot.lane.b32.xlu2 %v3835_v19, %s3582_s19 }
 0x3b5   : > { %v4957_v40 = vpop.permute.xlu2 %1767 }
 0x3b6   : > { %6614 = vst [vmem:[#allocation114_spill] sm:$0xff] %v4957_v40  ;;  %v1948_v40 = vrot.slane %v1858_v45, 1  ;;  %v1876_v14 = vpop.permute.xlu0 %1875 }
 0x3b8   : > { %v2000_v30 = vsel %vm1275_vm3, %v1948_v40, %v1949_v6 }
 0x3bb   : > { %1903 = vrot.lane.b32.xlu2 %v3971_v4, %s3582_s19 }
 0x3bd   : > { %v4961_v38 = vpop.permute.xlu2 %1773 }
 0x3be   : > { %6615 = vst [vmem:[#allocation115_spill] sm:$0xff] %v4961_v38  ;;  %v6485_v38 = vrot.slane %v4947_v52, 1 }
 0x3c3   : > { %1909 = vrot.lane.b32.xlu2 %v6578_v32, %s3582_s19 }
 0x3c5   : > { %v4965_v37 = vpop.permute.xlu2 %1779 }
 0x3c6   : > { %6616 = vst [vmem:[#allocation116_spill] sm:$0xff] %v4965_v37  ;;  %v1952_v37 = vrot.slane %v1866_v1, 1  ;;  %v1955_v1 = vrot.slane %v1872_v22, 1 }
 0x3cb   : > { %2075 = vrot.lane.b32.xlu2 %v2003_v54, %s3577_s10  ;;  %v1951_v54 = vrot.slane %v1864_v61, 1  ;;  %v1954_v61 = vrot.slane %v1870_v28, 1 }
 0x3cd   : > { %v1850_v2 = vpop.permute.xlu2 %1849 }
 0x3ce   : > { %v1944_v36 = vrot.slane %v1850_v2, 1  ;;  %v2012_v2 = vsel %vm1307_vm4, %v2000_v30, 0.0  ;;  %v1997_v30 = vsel %vm1275_vm3, %v1951_v54, %v1952_v37 }
 0x3d0   : > { %v2005_v49 = vsel %vm1275_vm3, %v6485_v38, %v1944_v36  ;;  %v2004_v45 = vsel %vm1275_vm3, %v1944_v36, %v1945_v53  ;;  %v1878_v38 = vpop.permute.xlu1 %1877 }
 0x3d1   : > { %2071 = vrot.lane.b32.xlu0 %v2005_v49, %s3577_s10  ;;  %v2008_v47 = vsel %vm1307_vm4, %v2004_v45, 0.0 }
 0x3d2   : > { %2073 = vrot.lane.b32.xlu1 %v2008_v47, %s3577_s10 }
 0x3d3   : > { %2081 = vrot.lane.b32.xlu2 %v2012_v2, %s3577_s10 }
 0x3d5   : > { %v1856_v29 = vpop.permute.xlu2 %1855 }
 0x3d6   : > { %v1947_v60 = vrot.slane %v1856_v29, 1 }
 0x3d8   : > { %v2001_v36 = vsel %vm1275_vm3, %v1947_v60, %v1948_v40  ;;  %v2002_v53 = vsel %vm1275_vm3, %v1946_v5, %v1947_v60  ;;  %v1994_v40 = vsel %vm1275_vm3, %v1954_v61, %v1955_v1  ;;  %v1882_v60 = vpop.permute.xlu0 %1881  ;;  %v1884_v5 = vpop.permute.xlu1 %1883 }
 0x3d9   : > { %v2010_v49 = vsel %vm1307_vm4, %v2002_v53, 0.0  ;;  %v2018_v28 = vsel %vm1307_vm4, %v1994_v40, 0.0  ;;  %v1957_v53 = vrot.slane %v1876_v14, 1  ;;  %v1961_v40 = vrot.slane %v1884_v5, 1 }
 0x3da   : > { %2079 = vrot.lane.b32.xlu1 %v2001_v36, %s3577_s10  ;;  %2077 = vrot.lane.b32.xlu0 %v2010_v49, %s3577_s10  ;;  %v1958_v49 = vrot.slane %v1878_v38, 1  ;;  %v1960_v38 = vrot.slane %v1882_v60, 1 }
 0x3db   : > { %2087 = vrot.lane.b32.xlu2 %v1997_v30, %s3577_s10 }
 0x3dc   : > { %v1991_v14 = vsel %vm1275_vm3, %v1957_v53, %v1958_v49 }
 0x3dd   : > { %v1862_v45 = vpop.permute.xlu2 %1861 }
 0x3de   : > { %v1950_v47 = vrot.slane %v1862_v45, 1 }
 0x3e0   : > { %v1998_v2 = vsel %vm1275_vm3, %v1950_v47, %v1951_v54  ;;  %v1999_v29 = vsel %vm1275_vm3, %v1949_v6, %v1950_v47  ;;  %v1888_v47 = vpop.permute.xlu0 %1887 }
 0x3e1   : > { %v2014_v36 = vsel %vm1307_vm4, %v1998_v2, 0.0  ;;  %v1890_v2 = vpop.permute.xlu1 %1889 }
 0x3e2   : > { %2085 = vrot.lane.b32.xlu1 %v2014_v36, %s3577_s10  ;;  %2083 = vrot.lane.b32.xlu0 %v1999_v29, %s3577_s10 }
 0x3e3   : > { %2093 = vrot.lane.b32.xlu2 %v2018_v28, %s3577_s10 }
 0x3e5   : > { %v1868_v22 = vpop.permute.xlu2 %1867 }
 0x3e6   : > { %v1953_v30 = vrot.slane %v1868_v22, 1 }
 0x3e8   : > { %v1995_v54 = vsel %vm1275_vm3, %v1953_v30, %v1954_v61  ;;  %v1996_v6 = vsel %vm1275_vm3, %v1952_v37, %v1953_v30  ;;  %v1988_v37 = vsel %vm1275_vm3, %v1960_v38, %v1961_v40  ;;  %v1894_v5 = vpop.permute.xlu0 %1893 }
 0x3e9   : > { %v2016_v45 = vsel %vm1307_vm4, %v1996_v6, 0.0  ;;  %v2024_v60 = vsel %vm1307_vm4, %v1988_v37, 0.0  ;;  %v1896_v30 = vpop.permute.xlu1 %1895  ;;  %v1963_v6 = vrot.slane %v1888_v47, 1  ;;  %v1966_v37 = vrot.slane %v1894_v5, 1 }
 0x3ea   : > { %2091 = vrot.lane.b32.xlu1 %v1995_v54, %s3577_s10  ;;  %2089 = vrot.lane.b32.xlu0 %v2016_v45, %s3577_s10  ;;  %v1967_v47 = vrot.slane %v1896_v30, 1 }
 0x3eb   : > { %2099 = vrot.lane.b32.xlu2 %v1991_v14, %s3577_s10 }
 0x3ed   : > { %v1874_v61 = vpop.permute.xlu2 %1873 }
 0x3ee   : > { %v1956_v29 = vrot.slane %v1874_v61, 1 }
 0x3f0   : > { %v1992_v36 = vsel %vm1275_vm3, %v1956_v29, %v1957_v53  ;;  %v1993_v28 = vsel %vm1275_vm3, %v1955_v1, %v1956_v29  ;;  %v1964_v53 = vrot.slane %v1890_v2, 1 }
 0x3f1   : > { %v2020_v22 = vsel %vm1307_vm4, %v1992_v36, 0.0  ;;  %v1900_v36 = vpop.permute.xlu0 %1899 }
 0x3f2   : > { %2097 = vrot.lane.b32.xlu1 %v2020_v22, %s3577_s10  ;;  %2095 = vrot.lane.b32.xlu0 %v1993_v28, %s3577_s10  ;;  %v1985_v29 = vsel %vm1275_vm3, %v1963_v6, %v1964_v53 }
 0x3f3   : > { %2105 = vrot.lane.b32.xlu2 %v2024_v60, %s3577_s10 }
 0x3f5   : > { %v1880_v54 = vpop.permute.xlu2 %1879 }
 0x3f6   : > { %v1959_v45 = vrot.slane %v1880_v54, 1 }
 0x3f8   : > { %v1989_v1 = vsel %vm1275_vm3, %v1959_v45, %v1960_v38  ;;  %v1990_v14 = vsel %vm1275_vm3, %v1958_v49, %v1959_v45  ;;  %v1902_v38 = vpop.permute.xlu1 %1901  ;;  %v1982_v49 = vsel %vm1275_vm3, %v1966_v37, %v1967_v47  ;;  %v1969_v45 = vrot.slane %v1900_v36, 1 }
 0x3f9   : > { %v2022_v61 = vsel %vm1307_vm4, %v1990_v14, 0.0  ;;  %v2030_v5 = vsel %vm1307_vm4, %v1982_v49, 0.0 }
 0x3fa   : > { %2103 = vrot.lane.b32.xlu1 %v1989_v1, %s3577_s10  ;;  %2101 = vrot.lane.b32.xlu0 %v2022_v61, %s3577_s10  ;;  %v1970_v1 = vrot.slane %v1902_v38, 1 }
 0x3fb   : > { %2111 = vrot.lane.b32.xlu2 %v1985_v29, %s3577_s10 }
 0x3fc   : > { %v1979_v36 = vsel %vm1275_vm3, %v1969_v45, %v1970_v1 }
 0x3fd   : > { %v1886_v2 = vpop.permute.xlu2 %1885 }
 0x3fe   : > { %v1962_v28 = vrot.slane %v1886_v2, 1 }
 0x400   : > { %v1986_v22 = vsel %vm1275_vm3, %v1962_v28, %v1963_v6  ;;  %v1987_v60 = vsel %vm1275_vm3, %v1961_v40, %v1962_v28  ;;  %v1906_v6 = vpop.permute.xlu0 %1905  ;;  %v1908_v61 = vpop.permute.xlu1 %1907 }
 0x401   : > { %v2026_v54 = vsel %vm1307_vm4, %v1986_v22, 0.0  ;;  %v1972_v38 = vrot.slane %v1906_v6, 1  ;;  %v1973_v28 = vrot.slane %v1908_v61, 1 }
 0x402   : > { %2109 = vrot.lane.b32.xlu1 %v2026_v54, %s3577_s10  ;;  %2107 = vrot.lane.b32.xlu0 %v1987_v60, %s3577_s10 }
 0x403   : > { %2117 = vrot.lane.b32.xlu2 %v2030_v5, %s3577_s10 }
 0x405   : > { %v1892_v30 = vpop.permute.xlu2 %1891 }
 0x406   : > { %v1965_v14 = vrot.slane %v1892_v30, 1 }
 0x408   : > { %v1983_v40 = vsel %vm1275_vm3, %v1965_v14, %v1966_v37  ;;  %v1984_v29 = vsel %vm1275_vm3, %v1964_v53, %v1965_v14  ;;  %v1976_v37 = vsel %vm1275_vm3, %v1972_v38, %v1973_v28 }
 0x409   : > { %v2028_v2 = vsel %vm1307_vm4, %v1984_v29, 0.0  ;;  %v2036_v5 = vsel %vm1307_vm4, %v1976_v37, 0.0  ;;  %v6617_v29 = vrot.slane %v4947_v52, 1 }
 0x40a   : > { %2115 = vrot.lane.b32.xlu1 %v1983_v40, %s3577_s10  ;;  %2113 = vrot.lane.b32.xlu0 %v2028_v2, %s3577_s10 }
 0x40b   : > { %2123 = vrot.lane.b32.xlu2 %v1979_v36, %s3577_s10 }
 0x40d   : > { %v1898_v49 = vpop.permute.xlu2 %1897 }
 0x40e   : > { %v1968_v22 = vrot.slane %v1898_v49, 1 }
 0x410   : > { %v1980_v53 = vsel %vm1275_vm3, %v1968_v22, %v1969_v45  ;;  %v1981_v60 = vsel %vm1275_vm3, %v1967_v47, %v1968_v22 }
 0x411   : > { %v2032_v54 = vsel %vm1307_vm4, %v1980_v53, 0.0 }
 0x412   : > { %2121 = vrot.lane.b32.xlu1 %v2032_v54, %s3577_s10  ;;  %2119 = vrot.lane.b32.xlu0 %v1981_v60, %s3577_s10 }
 0x413   : > { %2129 = vrot.lane.b32.xlu2 %v2036_v5, %s3577_s10 }
 0x415   : > { %v1904_v30 = vpop.permute.xlu2 %1903 }
 0x416   : > { %v1971_v14 = vrot.slane %v1904_v30, 1 }
 0x418   : > { %v1977_v45 = vsel %vm1275_vm3, %v1971_v14, %v1972_v38  ;;  %v1978_v47 = vsel %vm1275_vm3, %v1970_v1, %v1971_v14 }
 0x419   : > { %v2034_v6 = vsel %vm1307_vm4, %v1978_v47, 0.0 }
 0x41a   : > { %2127 = vrot.lane.b32.xlu1 %v1977_v45, %s3577_s10  ;;  %2125 = vrot.lane.b32.xlu0 %v2034_v6, %s3577_s10 }
 0x41b   : > { %2199 = vrot.lane.b32.xlu2 %v3803_v11, %s3583_s20 }
 0x41d   : > { %v1910_v61 = vpop.permute.xlu2 %1909 }
 0x41e   : > { %v1974_v40 = vrot.slane %v1910_v61, 1 }
 0x420   : > { %v2006_v2 = vsel %vm1275_vm3, %v1974_v40, %v6617_v29  ;;  %v1975_v1 = vsel %vm1275_vm3, %v1973_v28, %v1974_v40 }
 0x421   : > { %v2038_v36 = vsel %vm1307_vm4, %v2006_v2, 0.0 }
 0x422   : > { %2133 = vrot.lane.b32.xlu1 %v2038_v36, %s3577_s10  ;;  %2131 = vrot.lane.b32.xlu0 %v1975_v1, %s3577_s10 }
 0x423   : > { %2205 = vrot.lane.b32.xlu2 %v3917_v46, %s3583_s20 }
 0x425   : > { %v5104_v38 = vpop.permute.xlu2 %2075 }
 0x426   : > { %6618 = vst [vmem:[#allocation117_spill] sm:$0xff] %v5104_v38 }
 0x42a   : > { %2203 = vrot.lane.b32.xlu1 %v3894_v39, %s3583_s20  ;;  %2201 = vrot.lane.b32.xlu0 %v3837_v20, %s3583_s20 }
 0x42b   : > { %2211 = vrot.lane.b32.xlu2 %v4066_v24, %s3583_s20 }
 0x42d   : > { %v5112_v52 = vpop.permute.xlu2 %2081 }
 0x42e   : > { %6619 = vst [vmem:[#allocation118_spill] sm:$0xff] %v5112_v52 }
 0x432   : > { %2209 = vrot.lane.b32.xlu1 %v4047_v55, %s3583_s20  ;;  %2207 = vrot.lane.b32.xlu0 %v3962_v0, %s3583_s20 }
 0x433   : > { %2217 = vrot.lane.b32.xlu2 %v3847_v23, %s3583_s20 }
 0x435   : > { %v5120_v28 = vpop.permute.xlu2 %2087 }
 0x436   : > { %6620 = vst [vmem:[#allocation119_spill] sm:$0xff] %v5120_v28 }
 0x43a   : > { %2215 = vrot.lane.b32.xlu1 %v3825_v17, %s3583_s20  ;;  %2213 = vrot.lane.b32.xlu0 %v3793_v9, %s3583_s20 }
 0x43b   : > { %2223 = vrot.lane.b32.xlu2 %v6561_v33, %s3583_s20 }
 0x43d   : > { %v5128_v49 = vpop.permute.xlu2 %2093 }
 0x43e   : > { %6621 = vst [vmem:[#allocation120_spill] sm:$0xff] %v5128_v49 }
 0x442   : > { %2221 = vrot.lane.b32.xlu1 %v3960_v63, %s3583_s20  ;;  %2219 = vrot.lane.b32.xlu0 %v6557_v13, %s3583_s20 }
 0x443   : > { %v5134_v22 = vpop.permute.xlu0 %2071  ;;  %2229 = vrot.lane.b32.xlu2 %v3799_v10, %s3583_s20 }
 0x444   : > { %v5138_v37 = vpop.permute.xlu1 %2073 }
 0x445   : > { %v5140_v53 = vpop.permute.xlu2 %2099 }
 0x446   : > { %6622 = vst [vmem:[#allocation121_spill] sm:$0xff] %v5140_v53 }
 0x44a   : > { %2227 = vrot.lane.b32.xlu1 %v4127_v44, %s3583_s20  ;;  %2225 = vrot.lane.b32.xlu0 %v6562_v26, %s3583_s20 }
 0x44b   : > { %2235 = vrot.lane.b32.xlu2 %v3903_v41, %s3583_s20 }
 0x44c   : > { %v5148_v60 = vpop.permute.xlu0 %2077  ;;  %v5150_v54 = vpop.permute.xlu1 %2079 }
 0x44d   : > { %6623 = vst [vmem:[#allocation122_spill] sm:$0xff] %v5148_v60  ;;  %v5152_v5 = vpop.permute.xlu2 %2105 }
 0x44e   : > { %6624 = vst [vmem:[#allocation123_spill] sm:$0xff] %v5150_v54 }
 0x44f   : > { %6625 = vst [vmem:[#allocation124_spill] sm:$0xff] %v5152_v5 }
 0x452   : > { %2233 = vrot.lane.b32.xlu1 %v3880_v34, %s3583_s20  ;;  %2231 = vrot.lane.b32.xlu0 %v3827_v18, %s3583_s20 }
 0x453   : > { %2241 = vrot.lane.b32.xlu2 %v4049_v58, %s3583_s20 }
 0x454   : > { %v5160_v30 = vpop.permute.xlu0 %2083  ;;  %v5162_v14 = vpop.permute.xlu1 %2085 }
 0x455   : > { %6626 = vst [vmem:[#allocation125_spill] sm:$0xff] %v5160_v30  ;;  %v5164_v45 = vpop.permute.xlu2 %2111 }
 0x456   : > { %6627 = vst [vmem:[#allocation126_spill] sm:$0xff] %v5162_v14 }
 0x457   : > { %6628 = vst [vmem:[#allocation127_spill] sm:$0xff] %v5164_v45 }
 0x45a   : > { %2239 = vrot.lane.b32.xlu1 %v4030_v48, %s3583_s20  ;;  %2237 = vrot.lane.b32.xlu0 %v3944_v57, %s3583_s20 }
 0x45b   : > { %2247 = vrot.lane.b32.xlu2 %v3835_v19, %s3583_s20 }
 0x45c   : > { %v5172_v47 = vpop.permute.xlu0 %2089  ;;  %v5174_v6 = vpop.permute.xlu1 %2091 }
 0x45d   : > { %6629 = vst [vmem:[#allocation128_spill] sm:$0xff] %v5172_v47  ;;  %v5176_v61 = vpop.permute.xlu2 %2117 }
 0x45e   : > { %6630 = vst [vmem:[#allocation129_spill] sm:$0xff] %v5174_v6 }
 0x45f   : > { %6631 = vst [vmem:[#allocation130_spill] sm:$0xff] %v5176_v61 }
 0x462   : > { %2245 = vrot.lane.b32.xlu1 %v3814_v15, %s3583_s20  ;;  %2243 = vrot.lane.b32.xlu0 %v6570_v59, %s3583_s20 }
 0x463   : > { %2253 = vrot.lane.b32.xlu2 %v3971_v4, %s3583_s20 }
 0x464   : > { %v5184_v40 = vpop.permute.xlu0 %2095  ;;  %v5186_v29 = vpop.permute.xlu1 %2097 }
 0x465   : > { %6632 = vst [vmem:[#allocation131_spill] sm:$0xff] %v5184_v40  ;;  %v5188_v2 = vpop.permute.xlu2 %2123 }
 0x466   : > { %6633 = vst [vmem:[#allocation132_spill] sm:$0xff] %v5186_v29 }
 0x467   : > { %6634 = vst [vmem:[#allocation133_spill] sm:$0xff] %v5188_v2 }
 0x46a   : > { %2251 = vrot.lane.b32.xlu1 %v3942_v56, %s3583_s20  ;;  %2249 = vrot.lane.b32.xlu0 %v3882_v35, %s3583_s20 }
 0x46b   : > { %2259 = vrot.lane.b32.xlu2 %v6578_v32, %s3583_s20 }
 0x46c   : > { %v5196_v1 = vpop.permute.xlu0 %2101  ;;  %v5198_v36 = vpop.permute.xlu1 %2103 }
 0x46d   : > { %6635 = vst [vmem:[#allocation134_spill] sm:$0xff] %v5196_v1  ;;  %v5204_v2 = vpop.permute.xlu2 %2129 }
 0x46e   : > { %6636 = vst [vmem:[#allocation135_spill] sm:$0xff] %v5198_v36 }
 0x46f   : > { %6637 = vst [vmem:[#allocation136_spill] sm:$0xff] %v5204_v2 }
 0x472   : > { %2257 = vrot.lane.b32.xlu1 %v4143_v21, %s3583_s20  ;;  %2255 = vrot.lane.b32.xlu0 %v4034_v50, %s3583_s20 }
 0x474   : > { %v5206_v61 = vpop.permute.xlu0 %2107  ;;  %v5208_v45 = vpop.permute.xlu1 %2109 }
 0x475   : > { %6638 = vst [vmem:[#allocation137_spill] sm:$0xff] %v5206_v61  ;;  %v2200_v29 = vpop.permute.xlu2 %2199 }
 0x476   : > { %6639 = vst [vmem:[#allocation138_spill] sm:$0xff] %v5208_v45  ;;  %v2292_v14 = vrot.slane %v2200_v29, 7 }
 0x47c   : > { %v5210_v5 = vpop.permute.xlu0 %2113  ;;  %v5212_v53 = vpop.permute.xlu1 %2115 }
 0x47d   : > { %6640 = vst [vmem:[#allocation139_spill] sm:$0xff] %v5210_v5  ;;  %v2206_v40 = vpop.permute.xlu2 %2205 }
 0x47e   : > { %6641 = vst [vmem:[#allocation140_spill] sm:$0xff] %v5212_v53  ;;  %v2295_v53 = vrot.slane %v2206_v40, 7 }
 0x484   : > { %v5214_v1 = vpop.permute.xlu0 %2119  ;;  %v5216_v36 = vpop.permute.xlu1 %2121 }
 0x485   : > { %6642 = vst [vmem:[#allocation141_spill] sm:$0xff] %v5214_v1  ;;  %v2212_v47 = vpop.permute.xlu2 %2211 }
 0x486   : > { %6643 = vst [vmem:[#allocation142_spill] sm:$0xff] %v5216_v36  ;;  %v2298_v40 = vrot.slane %v2212_v47, 7 }
 0x48c   : > { %v5218_v49 = vpop.permute.xlu0 %2125  ;;  %v5220_v6 = vpop.permute.xlu1 %2127 }
 0x48d   : > { %6644 = vst [vmem:[#allocation143_spill] sm:$0xff] %v5218_v49  ;;  %v2218_v45 = vpop.permute.xlu2 %2217 }
 0x48e   : > { %6645 = vst [vmem:[#allocation144_spill] sm:$0xff] %v5220_v6 }
 0x494   : > { %v5222_v2 = vpop.permute.xlu0 %2131  ;;  %v5224_v61 = vpop.permute.xlu1 %2133 }
 0x495   : > { %6646 = vst [vmem:[#allocation145_spill] sm:$0xff] %v5222_v2  ;;  %v2224_v2 = vpop.permute.xlu2 %2223 }
 0x496   : > { %6647 = vst [vmem:[#allocation146_spill] sm:$0xff] %v5224_v61 }
 0x49c   : > { %v2202_v28 = vpop.permute.xlu0 %2201  ;;  %v2204_v5 = vpop.permute.xlu1 %2203 }
 0x49d   : > { %v2293_v30 = vrot.slane %v2202_v28, 7  ;;  %v2294_v52 = vrot.slane %v2204_v5, 7 }
 0x49f   : > { %v2351_v36 = vsel %vm715_vm1, %v2293_v30, %v2294_v52  ;;  %v2352_v49 = vsel %vm715_vm1, %v2292_v14, %v2293_v30  ;;  %v2350_v6 = vsel %vm715_vm1, %v2294_v52, %v2295_v53 }
 0x4a0   : > { %2415 = vrot.lane.b32.xlu1 %v2351_v36, %s3577_s10  ;;  %v2353_v61 = vsel %vm746_vm2, %v2352_v49, 0.0  ;;  %v2355_v29 = vsel %vm746_vm2, %v2350_v6, 0.0 }
 0x4a1   : > { %2413 = vrot.lane.b32.xlu0 %v2353_v61, %s3577_s10  ;;  %2417 = vrot.lane.b32.xlu2 %v2355_v29, %s3577_s10  ;;  %v2301_v29 = vrot.slane %v2218_v45, 7 }
 0x4a4   : > { %v2208_v28 = vpop.permute.xlu0 %2207  ;;  %v2210_v5 = vpop.permute.xlu1 %2209 }
 0x4a5   : > { %v2296_v30 = vrot.slane %v2208_v28, 7  ;;  %v2297_v14 = vrot.slane %v2210_v5, 7  ;;  %v2230_v5 = vpop.permute.xlu2 %2229 }
 0x4a7   : > { %v2349_v52 = vsel %vm715_vm1, %v2295_v53, %v2296_v30  ;;  %v2348_v36 = vsel %vm715_vm1, %v2296_v30, %v2297_v14  ;;  %v2347_v49 = vsel %vm715_vm1, %v2297_v14, %v2298_v40 }
 0x4a8   : > { %v2357_v6 = vsel %vm746_vm2, %v2348_v36, 0.0 }
 0x4a9   : > { %2419 = vrot.lane.b32.xlu0 %v2349_v52, %s3577_s10  ;;  %2421 = vrot.lane.b32.xlu1 %v2357_v6, %s3577_s10  ;;  %v2304_v6 = vrot.slane %v2224_v2, 7 }
 0x4aa   : > { %2423 = vrot.lane.b32.xlu2 %v2347_v49, %s3577_s10 }
 0x4ac   : > { %v2214_v47 = vpop.permute.xlu0 %2213  ;;  %v2216_v61 = vpop.permute.xlu1 %2215 }
 0x4ad   : > { %v2299_v28 = vrot.slane %v2214_v47, 7  ;;  %v2300_v53 = vrot.slane %v2216_v61, 7 }
 0x4af   : > { %v2346_v30 = vsel %vm715_vm1, %v2298_v40, %v2299_v28  ;;  %v2345_v14 = vsel %vm715_vm1, %v2299_v28, %v2300_v53  ;;  %v2344_v36 = vsel %vm715_vm1, %v2300_v53, %v2301_v29 }
 0x4b0   : > { %v2359_v52 = vsel %vm746_vm2, %v2346_v30, 0.0  ;;  %v2361_v49 = vsel %vm746_vm2, %v2344_v36, 0.0 }
 0x4b1   : > { %2425 = vrot.lane.b32.xlu0 %v2359_v52, %s3577_s10  ;;  %2427 = vrot.lane.b32.xlu1 %v2345_v14, %s3577_s10  ;;  %v2236_v14 = vpop.permute.xlu2 %2235 }
 0x4b2   : > { %2429 = vrot.lane.b32.xlu2 %v2361_v49, %s3577_s10  ;;  %v2307_v49 = vrot.slane %v2230_v5, 7 }
 0x4b4   : > { %v2220_v45 = vpop.permute.xlu0 %2219  ;;  %v2222_v40 = vpop.permute.xlu1 %2221 }
 0x4b5   : > { %v2302_v47 = vrot.slane %v2220_v45, 7  ;;  %v2303_v61 = vrot.slane %v2222_v40, 7 }
 0x4b7   : > { %v2343_v28 = vsel %vm715_vm1, %v2301_v29, %v2302_v47  ;;  %v2342_v53 = vsel %vm715_vm1, %v2302_v47, %v2303_v61  ;;  %v2341_v30 = vsel %vm715_vm1, %v2303_v61, %v2304_v6 }
 0x4b8   : > { %v2363_v36 = vsel %vm746_vm2, %v2342_v53, 0.0 }
 0x4b9   : > { %2431 = vrot.lane.b32.xlu0 %v2343_v28, %s3577_s10  ;;  %2433 = vrot.lane.b32.xlu1 %v2363_v36, %s3577_s10  ;;  %v2242_v5 = vpop.permute.xlu2 %2241  ;;  %v2310_v36 = vrot.slane %v2236_v14, 7 }
 0x4ba   : > { %2435 = vrot.lane.b32.xlu2 %v2341_v30, %s3577_s10 }
 0x4bc   : > { %v2226_v2 = vpop.permute.xlu0 %2225  ;;  %v2228_v52 = vpop.permute.xlu1 %2227 }
 0x4bd   : > { %v2305_v29 = vrot.slane %v2226_v2, 7  ;;  %v2306_v45 = vrot.slane %v2228_v52, 7 }
 0x4bf   : > { %v2340_v40 = vsel %vm715_vm1, %v2304_v6, %v2305_v29  ;;  %v2339_v47 = vsel %vm715_vm1, %v2305_v29, %v2306_v45  ;;  %v2338_v61 = vsel %vm715_vm1, %v2306_v45, %v2307_v49 }
 0x4c0   : > { %v2365_v28 = vsel %vm746_vm2, %v2340_v40, 0.0  ;;  %v2367_v53 = vsel %vm746_vm2, %v2338_v61, 0.0 }
 0x4c1   : > { %2437 = vrot.lane.b32.xlu0 %v2365_v28, %s3577_s10  ;;  %2439 = vrot.lane.b32.xlu1 %v2339_v47, %s3577_s10  ;;  %v2313_v28 = vrot.slane %v2242_v5, 7 }
 0x4c2   : > { %2441 = vrot.lane.b32.xlu2 %v2367_v53, %s3577_s10 }
 0x4c4   : > { %v2232_v6 = vpop.permute.xlu0 %2231  ;;  %v2234_v30 = vpop.permute.xlu1 %2233 }
 0x4c5   : > { %v2308_v2 = vrot.slane %v2232_v6, 7  ;;  %v2309_v52 = vrot.slane %v2234_v30, 7  ;;  %v2248_v6 = vpop.permute.xlu2 %2247 }
 0x4c7   : > { %v2337_v29 = vsel %vm715_vm1, %v2307_v49, %v2308_v2  ;;  %v2336_v45 = vsel %vm715_vm1, %v2308_v2, %v2309_v52  ;;  %v2335_v40 = vsel %vm715_vm1, %v2309_v52, %v2310_v36 }
 0x4c8   : > { %v2369_v47 = vsel %vm746_vm2, %v2336_v45, 0.0 }
 0x4c9   : > { %2443 = vrot.lane.b32.xlu0 %v2337_v29, %s3577_s10  ;;  %2445 = vrot.lane.b32.xlu1 %v2369_v47, %s3577_s10 }
 0x4ca   : > { %2447 = vrot.lane.b32.xlu2 %v2335_v40, %s3577_s10  ;;  %v2316_v40 = vrot.slane %v2248_v6, 7 }
 0x4cc   : > { %v2238_v14 = vpop.permute.xlu0 %2237  ;;  %v2240_v61 = vpop.permute.xlu1 %2239 }
 0x4cd   : > { %v2311_v53 = vrot.slane %v2238_v14, 7  ;;  %v2312_v49 = vrot.slane %v2240_v61, 7 }
 0x4cf   : > { %v2334_v30 = vsel %vm715_vm1, %v2310_v36, %v2311_v53  ;;  %v2333_v2 = vsel %vm715_vm1, %v2311_v53, %v2312_v49  ;;  %v2332_v52 = vsel %vm715_vm1, %v2312_v49, %v2313_v28 }
 0x4d0   : > { %v2371_v29 = vsel %vm746_vm2, %v2334_v30, 0.0  ;;  %v2373_v45 = vsel %vm746_vm2, %v2332_v52, 0.0  ;;  %v2254_v30 = vpop.permute.xlu2 %2253 }
 0x4d1   : > { %2449 = vrot.lane.b32.xlu0 %v2371_v29, %s3577_s10  ;;  %2451 = vrot.lane.b32.xlu1 %v2333_v2, %s3577_s10  ;;  %v2319_v29 = vrot.slane %v2254_v30, 7 }
 0x4d2   : > { %2453 = vrot.lane.b32.xlu2 %v2373_v45, %s3577_s10 }
 0x4d4   : > { %v2244_v5 = vpop.permute.xlu0 %2243  ;;  %v2246_v36 = vpop.permute.xlu1 %2245 }
 0x4d5   : > { %v2314_v47 = vrot.slane %v2244_v5, 7  ;;  %v2315_v14 = vrot.slane %v2246_v36, 7 }
 0x4d7   : > { %v2331_v61 = vsel %vm715_vm1, %v2313_v28, %v2314_v47  ;;  %v2330_v53 = vsel %vm715_vm1, %v2314_v47, %v2315_v14  ;;  %v2329_v49 = vsel %vm715_vm1, %v2315_v14, %v2316_v40 }
 0x4d8   : > { %v2375_v2 = vsel %vm746_vm2, %v2330_v53, 0.0  ;;  %v2260_v53 = vpop.permute.xlu2 %2259 }
 0x4d9   : > { %2455 = vrot.lane.b32.xlu0 %v2331_v61, %s3577_s10  ;;  %2457 = vrot.lane.b32.xlu1 %v2375_v2, %s3577_s10  ;;  %v2322_v30 = vrot.slane %v2260_v53, 7 }
 0x4da   : > { %2459 = vrot.lane.b32.xlu2 %v2329_v49, %s3577_s10 }
 0x4dc   : > { %v2250_v6 = vpop.permute.xlu0 %2249  ;;  %v2252_v52 = vpop.permute.xlu1 %2251 }
 0x4dd   : > { %v2317_v28 = vrot.slane %v2250_v6, 7  ;;  %v2318_v45 = vrot.slane %v2252_v52, 7 }
 0x4df   : > { %v2328_v5 = vsel %vm715_vm1, %v2316_v40, %v2317_v28  ;;  %v2327_v36 = vsel %vm715_vm1, %v2317_v28, %v2318_v45  ;;  %v2326_v47 = vsel %vm715_vm1, %v2318_v45, %v2319_v29 }
 0x4e0   : > { %v2377_v14 = vsel %vm746_vm2, %v2328_v5, 0.0  ;;  %v2379_v61 = vsel %vm746_vm2, %v2326_v47, 0.0 }
 0x4e1   : > { %2461 = vrot.lane.b32.xlu0 %v2377_v14, %s3577_s10  ;;  %2463 = vrot.lane.b32.xlu1 %v2327_v36, %s3577_s10 }
 0x4e2   : > { %2465 = vrot.lane.b32.xlu2 %v2379_v61, %s3577_s10 }
 0x4e4   : > { %v2256_v40 = vpop.permute.xlu0 %2255  ;;  %v2258_v49 = vpop.permute.xlu1 %2257 }
 0x4e5   : > { %v2320_v2 = vrot.slane %v2256_v40, 7  ;;  %v2321_v6 = vrot.slane %v2258_v49, 7 }
 0x4e7   : > { %v2325_v52 = vsel %vm715_vm1, %v2319_v29, %v2320_v2  ;;  %v2324_v28 = vsel %vm715_vm1, %v2320_v2, %v2321_v6  ;;  %v2323_v45 = vsel %vm715_vm1, %v2321_v6, %v2322_v30 }
 0x4e8   : > { %v2381_v5 = vsel %vm746_vm2, %v2324_v28, 0.0 }
 0x4e9   : > { %2467 = vrot.lane.b32.xlu0 %v2325_v52, %s3577_s10  ;;  %2469 = vrot.lane.b32.xlu1 %v2381_v5, %s3577_s10 }
 0x4ea   : > { %2471 = vrot.lane.b32.xlu2 %v2323_v45, %s3577_s10 }
 0x4f1   : > { %2535 = vrot.lane.b32.xlu0 %v3837_v20, %s3584_s21  ;;  %2537 = vrot.lane.b32.xlu1 %v3894_v39, %s3584_s21 }
 0x4f2   : > { %2539 = vrot.lane.b32.xlu2 %v3917_v46, %s3584_s21 }
 0x4f9   : > { %2541 = vrot.lane.b32.xlu0 %v3962_v0, %s3584_s21  ;;  %2543 = vrot.lane.b32.xlu1 %v4047_v55, %s3584_s21 }
 0x4fa   : > { %2545 = vrot.lane.b32.xlu2 %v4066_v24, %s3584_s21 }
 0x4fb   : > { %v5358_v29 = vpop.permute.xlu2 %2417 }
 0x4fc   : > { %6648 = vst [vmem:[#allocation147_spill] sm:$0xff] %v5358_v29 }
 0x501   : > { %2547 = vrot.lane.b32.xlu0 %v3793_v9, %s3584_s21  ;;  %2549 = vrot.lane.b32.xlu1 %v3825_v17, %s3584_s21 }
 0x502   : > { %2551 = vrot.lane.b32.xlu2 %v3847_v23, %s3584_s21 }
 0x504   : > { %v5366_v36 = vpop.permute.xlu2 %2423 }
 0x505   : > { %6649 = vst [vmem:[#allocation148_spill] sm:$0xff] %v5366_v36 }
 0x509   : > { %2553 = vrot.lane.b32.xlu0 %v6557_v13, %s3584_s21  ;;  %2555 = vrot.lane.b32.xlu1 %v3960_v63, %s3584_s21 }
 0x50a   : > { %2557 = vrot.lane.b32.xlu2 %v6561_v33, %s3584_s21 }
 0x50c   : > { %v5374_v47 = vpop.permute.xlu2 %2429 }
 0x50d   : > { %6650 = vst [vmem:[#allocation149_spill] sm:$0xff] %v5374_v47 }
 0x511   : > { %2559 = vrot.lane.b32.xlu0 %v6562_v26, %s3584_s21  ;;  %2561 = vrot.lane.b32.xlu1 %v4127_v44, %s3584_s21 }
 0x512   : > { %2563 = vrot.lane.b32.xlu2 %v3799_v10, %s3584_s21  ;;  %v5382_v14 = vpop.permute.xlu1 %2415 }
 0x513   : > { %6651 = vst [vmem:[#allocation150_spill] sm:$0xff] %v5382_v14  ;;  %v5384_v61 = vpop.permute.xlu0 %2413 }
 0x514   : > { %v5386_v53 = vpop.permute.xlu2 %2435 }
 0x515   : > { %6652 = vst [vmem:[#allocation151_spill] sm:$0xff] %v5386_v53 }
 0x519   : > { %2565 = vrot.lane.b32.xlu0 %v3827_v18, %s3584_s21  ;;  %2567 = vrot.lane.b32.xlu1 %v3880_v34, %s3584_s21 }
 0x51a   : > { %2569 = vrot.lane.b32.xlu2 %v3903_v41, %s3584_s21 }
 0x51b   : > { %v5394_v40 = vpop.permute.xlu0 %2419  ;;  %v5396_v49 = vpop.permute.xlu1 %2421 }
 0x51c   : > { %6653 = vst [vmem:[#allocation152_spill] sm:$0xff] %v5394_v40  ;;  %v5398_v30 = vpop.permute.xlu2 %2441 }
 0x51d   : > { %6654 = vst [vmem:[#allocation153_spill] sm:$0xff] %v5396_v49 }
 0x51e   : > { %6655 = vst [vmem:[#allocation154_spill] sm:$0xff] %v5398_v30 }
 0x521   : > { %2571 = vrot.lane.b32.xlu0 %v3944_v57, %s3584_s21  ;;  %2573 = vrot.lane.b32.xlu1 %v4030_v48, %s3584_s21 }
 0x522   : > { %2575 = vrot.lane.b32.xlu2 %v4049_v58, %s3584_s21 }
 0x523   : > { %v5406_v2 = vpop.permute.xlu0 %2425  ;;  %v5408_v6 = vpop.permute.xlu1 %2427 }
 0x524   : > { %6656 = vst [vmem:[#allocation155_spill] sm:$0xff] %v5406_v2  ;;  %v5410_v52 = vpop.permute.xlu2 %2447 }
 0x525   : > { %6657 = vst [vmem:[#allocation156_spill] sm:$0xff] %v5408_v6 }
 0x526   : > { %6658 = vst [vmem:[#allocation157_spill] sm:$0xff] %v5410_v52 }
 0x529   : > { %2577 = vrot.lane.b32.xlu0 %v6570_v59, %s3584_s21  ;;  %2579 = vrot.lane.b32.xlu1 %v3814_v15, %s3584_s21 }
 0x52a   : > { %2581 = vrot.lane.b32.xlu2 %v3835_v19, %s3584_s21 }
 0x52b   : > { %v5418_v28 = vpop.permute.xlu0 %2431  ;;  %v5420_v45 = vpop.permute.xlu1 %2433 }
 0x52c   : > { %6659 = vst [vmem:[#allocation158_spill] sm:$0xff] %v5418_v28  ;;  %v5422_v5 = vpop.permute.xlu2 %2453 }
 0x52d   : > { %6660 = vst [vmem:[#allocation159_spill] sm:$0xff] %v5420_v45 }
 0x52e   : > { %6661 = vst [vmem:[#allocation160_spill] sm:$0xff] %v5422_v5 }
 0x531   : > { %2583 = vrot.lane.b32.xlu0 %v3882_v35, %s3584_s21  ;;  %2585 = vrot.lane.b32.xlu1 %v3942_v56, %s3584_s21 }
 0x532   : > { %2587 = vrot.lane.b32.xlu2 %v3971_v4, %s3584_s21 }
 0x533   : > { %v5430_v1 = vpop.permute.xlu0 %2437  ;;  %v5432_v52 = vpop.permute.xlu1 %2439 }
 0x534   : > { %6662 = vst [vmem:[#allocation161_spill] sm:$0xff] %v5430_v1  ;;  %v5434_v30 = vpop.permute.xlu2 %2459 }
 0x535   : > { %6663 = vst [vmem:[#allocation162_spill] sm:$0xff] %v5432_v52 }
 0x536   : > { %6664 = vst [vmem:[#allocation163_spill] sm:$0xff] %v5434_v30 }
 0x539   : > { %2589 = vrot.lane.b32.xlu0 %v4034_v50, %s3584_s21  ;;  %2591 = vrot.lane.b32.xlu1 %v4143_v21, %s3584_s21 }
 0x53a   : > { %2593 = vrot.lane.b32.xlu2 %v6578_v32, %s3584_s21 }
 0x53b   : > { %v5442_v5 = vpop.permute.xlu0 %2443  ;;  %v5444_v53 = vpop.permute.xlu1 %2445 }
 0x53c   : > { %6665 = vst [vmem:[#allocation164_spill] sm:$0xff] %v5442_v5  ;;  %v5446_v45 = vpop.permute.xlu2 %2465 }
 0x53d   : > { %6666 = vst [vmem:[#allocation165_spill] sm:$0xff] %v5444_v53 }
 0x53e   : > { %6667 = vst [vmem:[#allocation166_spill] sm:$0xff] %v5446_v45 }
 0x543   : > { %v5448_v1 = vpop.permute.xlu0 %2449  ;;  %v5450_v52 = vpop.permute.xlu1 %2451 }
 0x544   : > { %6668 = vst [vmem:[#allocation167_spill] sm:$0xff] %v5448_v1  ;;  %v5452_v30 = vpop.permute.xlu2 %2471 }
 0x545   : > { %6669 = vst [vmem:[#allocation168_spill] sm:$0xff] %v5450_v52 }
 0x546   : > { %6670 = vst [vmem:[#allocation169_spill] sm:$0xff] %v5452_v30 }
 0x54b   : > { %v5454_v28 = vpop.permute.xlu0 %2455  ;;  %v5456_v47 = vpop.permute.xlu1 %2457 }
 0x54c   : > { %6671 = vst [vmem:[#allocation170_spill] sm:$0xff] %v5454_v28  ;;  %v2540_v6 = vpop.permute.xlu2 %2539 }
 0x54d   : > { %6672 = vst [vmem:[#allocation171_spill] sm:$0xff] %v5456_v47  ;;  %2599 = vrot.lane.b32.xlu2 %v2540_v6, %s3577_s10 }
 0x553   : > { %v5459_v2 = vpop.permute.xlu0 %2461  ;;  %v5461_v5 = vpop.permute.xlu1 %2463 }
 0x554   : > { %6673 = vst [vmem:[#allocation172_spill] sm:$0xff] %v5459_v2  ;;  %v2546_v53 = vpop.permute.xlu2 %2545 }
 0x555   : > { %6674 = vst [vmem:[#allocation173_spill] sm:$0xff] %v5461_v5  ;;  %2605 = vrot.lane.b32.xlu2 %v2546_v53, %s3577_s10 }
 0x55b   : > { %v5464_v45 = vpop.permute.xlu0 %2467  ;;  %v5466_v1 = vpop.permute.xlu1 %2469 }
 0x55c   : > { %6675 = vst [vmem:[#allocation174_spill] sm:$0xff] %v5464_v45  ;;  %v2552_v52 = vpop.permute.xlu2 %2551 }
 0x55d   : > { %6676 = vst [vmem:[#allocation175_spill] sm:$0xff] %v5466_v1  ;;  %2611 = vrot.lane.b32.xlu2 %v2552_v52, %s3577_s10 }
 0x563   : > { %v2536_v30 = vpop.permute.xlu0 %2535  ;;  %v2538_v28 = vpop.permute.xlu1 %2537 }
 0x564   : > { %v2558_v47 = vpop.permute.xlu2 %2557  ;;  %2595 = vrot.lane.b32.xlu0 %v2536_v30, %s3577_s10  ;;  %2597 = vrot.lane.b32.xlu1 %v2538_v28, %s3577_s10 }
 0x565   : > { %2617 = vrot.lane.b32.xlu2 %v2558_v47, %s3577_s10 }
 0x56b   : > { %v2542_v6 = vpop.permute.xlu0 %2541  ;;  %v2544_v5 = vpop.permute.xlu1 %2543 }
 0x56c   : > { %v2564_v2 = vpop.permute.xlu2 %2563  ;;  %2601 = vrot.lane.b32.xlu0 %v2542_v6, %s3577_s10  ;;  %2603 = vrot.lane.b32.xlu1 %v2544_v5, %s3577_s10 }
 0x56d   : > { %2623 = vrot.lane.b32.xlu2 %v2564_v2, %s3577_s10 }
 0x573   : > { %v2548_v53 = vpop.permute.xlu0 %2547  ;;  %v2550_v52 = vpop.permute.xlu1 %2549 }
 0x574   : > { %v2570_v1 = vpop.permute.xlu2 %2569  ;;  %2607 = vrot.lane.b32.xlu0 %v2548_v53, %s3577_s10  ;;  %2609 = vrot.lane.b32.xlu1 %v2550_v52, %s3577_s10 }
 0x575   : > { %2629 = vrot.lane.b32.xlu2 %v2570_v1, %s3577_s10 }
 0x57b   : > { %v2554_v30 = vpop.permute.xlu0 %2553  ;;  %v2556_v47 = vpop.permute.xlu1 %2555 }
 0x57c   : > { %v2576_v28 = vpop.permute.xlu2 %2575  ;;  %2613 = vrot.lane.b32.xlu0 %v2554_v30, %s3577_s10  ;;  %2615 = vrot.lane.b32.xlu1 %v2556_v47, %s3577_s10 }
 0x57d   : > { %2635 = vrot.lane.b32.xlu2 %v2576_v28, %s3577_s10 }
 0x583   : > { %v2560_v5 = vpop.permute.xlu0 %2559  ;;  %v2562_v2 = vpop.permute.xlu1 %2561 }
 0x584   : > { %v2582_v6 = vpop.permute.xlu2 %2581  ;;  %2619 = vrot.lane.b32.xlu0 %v2560_v5, %s3577_s10  ;;  %2621 = vrot.lane.b32.xlu1 %v2562_v2, %s3577_s10 }
 0x585   : > { %2641 = vrot.lane.b32.xlu2 %v2582_v6, %s3577_s10 }
 0x58b   : > { %v2566_v53 = vpop.permute.xlu0 %2565  ;;  %v2568_v1 = vpop.permute.xlu1 %2567 }
 0x58c   : > { %v2588_v52 = vpop.permute.xlu2 %2587  ;;  %2625 = vrot.lane.b32.xlu0 %v2566_v53, %s3577_s10  ;;  %2627 = vrot.lane.b32.xlu1 %v2568_v1, %s3577_s10 }
 0x58d   : > { %2647 = vrot.lane.b32.xlu2 %v2588_v52, %s3577_s10 }
 0x593   : > { %v2572_v30 = vpop.permute.xlu0 %2571  ;;  %v2574_v47 = vpop.permute.xlu1 %2573 }
 0x594   : > { %v2594_v28 = vpop.permute.xlu2 %2593  ;;  %2631 = vrot.lane.b32.xlu0 %v2572_v30, %s3577_s10  ;;  %2633 = vrot.lane.b32.xlu1 %v2574_v47, %s3577_s10 }
 0x595   : > { %2653 = vrot.lane.b32.xlu2 %v2594_v28, %s3577_s10 }
 0x59b   : > { %v2578_v5 = vpop.permute.xlu0 %2577  ;;  %v2580_v2 = vpop.permute.xlu1 %2579 }
 0x59c   : > { %2637 = vrot.lane.b32.xlu0 %v2578_v5, %s3577_s10  ;;  %2639 = vrot.lane.b32.xlu1 %v2580_v2, %s3577_s10 }
 0x59d   : > { %2721 = vrot.lane.b32.xlu2 %v3894_v39, %s3585_s22 }
 0x5a3   : > { %v2584_v6 = vpop.permute.xlu0 %2583  ;;  %v2586_v53 = vpop.permute.xlu1 %2585 }
 0x5a4   : > { %2643 = vrot.lane.b32.xlu0 %v2584_v6, %s3577_s10  ;;  %2645 = vrot.lane.b32.xlu1 %v2586_v53, %s3577_s10 }
 0x5a5   : > { %2727 = vrot.lane.b32.xlu2 %v4047_v55, %s3585_s22 }
 0x5a7   : > { %v5500_v30 = vpop.permute.xlu2 %2599 }
 0x5a8   : > { %6677 = vst [vmem:[#allocation176_spill] sm:$0xff] %v5500_v30 }
 0x5ab   : > { %v2590_v1 = vpop.permute.xlu0 %2589  ;;  %v2592_v52 = vpop.permute.xlu1 %2591 }
 0x5ac   : > { %2649 = vrot.lane.b32.xlu0 %v2590_v1, %s3577_s10  ;;  %2651 = vrot.lane.b32.xlu1 %v2592_v52, %s3577_s10 }
 0x5ad   : > { %2733 = vrot.lane.b32.xlu2 %v3825_v17, %s3585_s22 }
 0x5af   : > { %v5510_v47 = vpop.permute.xlu2 %2605 }
 0x5b0   : > { %6678 = vst [vmem:[#allocation177_spill] sm:$0xff] %v5510_v47 }
 0x5b4   : > { %2717 = vrot.lane.b32.xlu0 %v3791_v8, %s3585_s22  ;;  %2719 = vrot.lane.b32.xlu1 %v3837_v20, %s3585_s22 }
 0x5b5   : > { %2739 = vrot.lane.b32.xlu2 %v3960_v63, %s3585_s22 }
 0x5b7   : > { %v5518_v28 = vpop.permute.xlu2 %2611 }
 0x5b8   : > { %6679 = vst [vmem:[#allocation178_spill] sm:$0xff] %v5518_v28 }
 0x5bc   : > { %2723 = vrot.lane.b32.xlu0 %v3917_v46, %s3585_s22  ;;  %2725 = vrot.lane.b32.xlu1 %v3962_v0, %s3585_s22 }
 0x5bd   : > { %2745 = vrot.lane.b32.xlu2 %v4127_v44, %s3585_s22 }
 0x5bf   : > { %v5526_v5 = vpop.permute.xlu2 %2617 }
 0x5c0   : > { %6680 = vst [vmem:[#allocation179_spill] sm:$0xff] %v5526_v5 }
 0x5c4   : > { %2729 = vrot.lane.b32.xlu0 %v4066_v24, %s3585_s22  ;;  %2731 = vrot.lane.b32.xlu1 %v3793_v9, %s3585_s22 }
 0x5c5   : > { %2751 = vrot.lane.b32.xlu2 %v3880_v34, %s3585_s22 }
 0x5c7   : > { %v5538_v2 = vpop.permute.xlu2 %2623 }
 0x5c8   : > { %6681 = vst [vmem:[#allocation180_spill] sm:$0xff] %v5538_v2 }
 0x5cc   : > { %2735 = vrot.lane.b32.xlu0 %v3847_v23, %s3585_s22  ;;  %2737 = vrot.lane.b32.xlu1 %v6557_v13, %s3585_s22 }
 0x5cd   : > { %2757 = vrot.lane.b32.xlu2 %v4030_v48, %s3585_s22 }
 0x5cf   : > { %v5556_v45 = vpop.permute.xlu2 %2629 }
 0x5d0   : > { %6686 = vst [vmem:[#allocation185_spill] sm:$0xff] %v5556_v45 }
 0x5d4   : > { %2741 = vrot.lane.b32.xlu0 %v6561_v33, %s3585_s22  ;;  %2743 = vrot.lane.b32.xlu1 %v6562_v26, %s3585_s22 }
 0x5d5   : > { %2763 = vrot.lane.b32.xlu2 %v3814_v15, %s3585_s22 }
 0x5d6   : > { %v5542_v6 = vpop.permute.xlu0 %2595  ;;  %v5544_v53 = vpop.permute.xlu1 %2597 }
 0x5d7   : > { %6682 = vst [vmem:[#allocation181_spill] sm:$0xff] %v5542_v6  ;;  %v5568_v28 = vpop.permute.xlu2 %2635 }
 0x5d8   : > { %6683 = vst [vmem:[#allocation182_spill] sm:$0xff] %v5544_v53 }
 0x5d9   : > { %6689 = vst [vmem:[#allocation188_spill] sm:$0xff] %v5568_v28 }
 0x5dc   : > { %2747 = vrot.lane.b32.xlu0 %v3799_v10, %s3585_s22  ;;  %2749 = vrot.lane.b32.xlu1 %v3827_v18, %s3585_s22 }
 0x5dd   : > { %2769 = vrot.lane.b32.xlu2 %v3942_v56, %s3585_s22 }
 0x5de   : > { %v5552_v1 = vpop.permute.xlu0 %2601  ;;  %v5554_v52 = vpop.permute.xlu1 %2603 }
 0x5df   : > { %6684 = vst [vmem:[#allocation183_spill] sm:$0xff] %v5552_v1  ;;  %v5578_v36 = vpop.permute.xlu2 %2641 }
 0x5e0   : > { %6685 = vst [vmem:[#allocation184_spill] sm:$0xff] %v5554_v52 }
 0x5e1   : > { %6692 = vst [vmem:[#allocation191_spill] sm:$0xff] %v5578_v36 }
 0x5e4   : > { %2753 = vrot.lane.b32.xlu0 %v3903_v41, %s3585_s22  ;;  %2755 = vrot.lane.b32.xlu1 %v3944_v57, %s3585_s22 }
 0x5e5   : > { %2775 = vrot.lane.b32.xlu2 %v4143_v21, %s3585_s22 }
 0x5e6   : > { %v5564_v2 = vpop.permute.xlu0 %2607  ;;  %v5566_v5 = vpop.permute.xlu1 %2609 }
 0x5e7   : > { %6687 = vst [vmem:[#allocation186_spill] sm:$0xff] %v5564_v2 }
 0x5e8   : > { %6688 = vst [vmem:[#allocation187_spill] sm:$0xff] %v5566_v5 }
 0x5ec   : > { %2759 = vrot.lane.b32.xlu0 %v4049_v58, %s3585_s22  ;;  %2761 = vrot.lane.b32.xlu1 %v6570_v59, %s3585_s22 }
 0x5ee   : > { %v5574_v45 = vpop.permute.xlu0 %2613  ;;  %v5576_v47 = vpop.permute.xlu1 %2615 }
 0x5ef   : > { %6690 = vst [vmem:[#allocation189_spill] sm:$0xff] %v5574_v45  ;;  %v5592_v45 = vpop.permute.xlu2 %2647 }
 0x5f0   : > { %6691 = vst [vmem:[#allocation190_spill] sm:$0xff] %v5576_v47 }
 0x5f1   : > { %6695 = vst [vmem:[#allocation194_spill] sm:$0xff] %v5592_v45 }
 0x5f4   : > { %2765 = vrot.lane.b32.xlu0 %v3835_v19, %s3585_s22  ;;  %2767 = vrot.lane.b32.xlu1 %v3882_v35, %s3585_s22 }
 0x5f6   : > { %v5584_v5 = vpop.permute.xlu0 %2619  ;;  %v5586_v28 = vpop.permute.xlu1 %2621 }
 0x5f7   : > { %6693 = vst [vmem:[#allocation192_spill] sm:$0xff] %v5584_v5 }
 0x5f8   : > { %6694 = vst [vmem:[#allocation193_spill] sm:$0xff] %v5586_v28  ;;  %v5604_v28 = vpop.permute.xlu2 %2653 }
 0x5f9   : > { %6700 = vst [vmem:[#allocation199_spill] sm:$0xff] %v5604_v28 }
 0x5fc   : > { %2771 = vrot.lane.b32.xlu0 %v3971_v4, %s3585_s22  ;;  %2773 = vrot.lane.b32.xlu1 %v4034_v50, %s3585_s22 }
 0x5fe   : > { %v5594_v47 = vpop.permute.xlu0 %2625  ;;  %v5596_v36 = vpop.permute.xlu1 %2627 }
 0x5ff   : > { %6696 = vst [vmem:[#allocation195_spill] sm:$0xff] %v5594_v47 }
 0x600   : > { %6697 = vst [vmem:[#allocation196_spill] sm:$0xff] %v5596_v36  ;;  %v2722_v49 = vpop.permute.xlu2 %2721 }
 0x601   : > { %v2812_v29 = vrot.slane %v2722_v49, 1 }
 0x604   : > { %2777 = vrot.lane.b32.xlu0 %v6578_v32, %s3585_s22 }
 0x606   : > { %v5600_v2 = vpop.permute.xlu0 %2631  ;;  %v5602_v5 = vpop.permute.xlu1 %2633 }
 0x607   : > { %6698 = vst [vmem:[#allocation197_spill] sm:$0xff] %v5600_v2 }
 0x608   : > { %6699 = vst [vmem:[#allocation198_spill] sm:$0xff] %v5602_v5  ;;  %v2728_v47 = vpop.permute.xlu2 %2727 }
 0x609   : > { %v2815_v60 = vrot.slane %v2728_v47, 1 }
 0x60e   : > { %v5606_v52 = vpop.permute.xlu0 %2637  ;;  %v5608_v1 = vpop.permute.xlu1 %2639 }
 0x60f   : > { %6701 = vst [vmem:[#allocation200_spill] sm:$0xff] %v5606_v52 }
 0x610   : > { %6702 = vst [vmem:[#allocation201_spill] sm:$0xff] %v5608_v1  ;;  %v2734_v54 = vpop.permute.xlu2 %2733 }
 0x616   : > { %v5610_v30 = vpop.permute.xlu0 %2643  ;;  %v5612_v45 = vpop.permute.xlu1 %2645 }
 0x617   : > { %6703 = vst [vmem:[#allocation202_spill] sm:$0xff] %v5610_v30 }
 0x618   : > { %6704 = vst [vmem:[#allocation203_spill] sm:$0xff] %v5612_v45  ;;  %v2740_v45 = vpop.permute.xlu2 %2739 }
 0x61e   : > { %v5614_v36 = vpop.permute.xlu0 %2649  ;;  %v5616_v40 = vpop.permute.xlu1 %2651 }
 0x61f   : > { %6705 = vst [vmem:[#allocation204_spill] sm:$0xff] %v5614_v36 }
 0x620   : > { %6706 = vst [vmem:[#allocation205_spill] sm:$0xff] %v5616_v40 }
 0x626   : > { %v5618_v2 = vpop.permute.xlu0 %2717  ;;  %v2720_v5 = vpop.permute.xlu1 %2719 }
 0x627   : > { %v2811_v28 = vrot.slane %v2720_v5, 1 }
 0x629   : > { %v2869_v52 = vsel %vm1275_vm3, %v2811_v28, %v2812_v29 }
 0x62a   : > { %2931 = vrot.lane.b32.xlu1 %v2869_v52, %s3577_s10 }
 0x62e   : > { %v2724_v1 = vpop.permute.xlu0 %2723  ;;  %v2726_v30 = vpop.permute.xlu1 %2725 }
 0x62f   : > { %v2813_v38 = vrot.slane %v2724_v1, 1  ;;  %v2814_v53 = vrot.slane %v2726_v30, 1  ;;  %v2818_v1 = vrot.slane %v2734_v54, 1 }
 0x631   : > { %v2867_v40 = vsel %vm1275_vm3, %v2813_v38, %v2814_v53  ;;  %v2868_v36 = vsel %vm1275_vm3, %v2812_v29, %v2813_v38  ;;  %v2866_v49 = vsel %vm1275_vm3, %v2814_v53, %v2815_v60  ;;  %v2746_v29 = vpop.permute.xlu2 %2745 }
 0x632   : > { %2935 = vrot.lane.b32.xlu0 %v2867_v40, %s3577_s10  ;;  %v2872_v28 = vsel %vm1307_vm4, %v2868_v36, 0.0  ;;  %v2874_v47 = vsel %vm1307_vm4, %v2866_v49, 0.0 }
 0x633   : > { %2933 = vrot.lane.b32.xlu2 %v2872_v28, %s3577_s10  ;;  %2937 = vrot.lane.b32.xlu1 %v2874_v47, %s3577_s10  ;;  %v2821_v47 = vrot.slane %v2740_v45, 1 }
 0x636   : > { %v2730_v30 = vpop.permute.xlu0 %2729  ;;  %v2732_v5 = vpop.permute.xlu1 %2731 }
 0x637   : > { %v2816_v52 = vrot.slane %v2730_v30, 1  ;;  %v2817_v38 = vrot.slane %v2732_v5, 1 }
 0x639   : > { %v2865_v53 = vsel %vm1275_vm3, %v2815_v60, %v2816_v52  ;;  %v2864_v40 = vsel %vm1275_vm3, %v2816_v52, %v2817_v38  ;;  %v2863_v36 = vsel %vm1275_vm3, %v2817_v38, %v2818_v1 }
 0x63a   : > { %v2876_v49 = vsel %vm1307_vm4, %v2864_v40, 0.0 }
 0x63b   : > { %2939 = vrot.lane.b32.xlu2 %v2865_v53, %s3577_s10  ;;  %2941 = vrot.lane.b32.xlu0 %v2876_v49, %s3577_s10  ;;  %v2824_v49 = vrot.slane %v2746_v29, 1 }
 0x63c   : > { %2943 = vrot.lane.b32.xlu1 %v2863_v36, %s3577_s10  ;;  %v2752_v36 = vpop.permute.xlu2 %2751 }
 0x63e   : > { %v2736_v54 = vpop.permute.xlu0 %2735  ;;  %v2738_v28 = vpop.permute.xlu1 %2737 }
 0x63f   : > { %v2819_v30 = vrot.slane %v2736_v54, 1  ;;  %v2820_v60 = vrot.slane %v2738_v28, 1 }
 0x641   : > { %v2862_v5 = vsel %vm1275_vm3, %v2818_v1, %v2819_v30  ;;  %v2861_v52 = vsel %vm1275_vm3, %v2819_v30, %v2820_v60  ;;  %v2860_v38 = vsel %vm1275_vm3, %v2820_v60, %v2821_v47 }
 0x642   : > { %v2878_v53 = vsel %vm1307_vm4, %v2862_v5, 0.0  ;;  %v2880_v40 = vsel %vm1307_vm4, %v2860_v38, 0.0 }
 0x643   : > { %2945 = vrot.lane.b32.xlu2 %v2878_v53, %s3577_s10  ;;  %2947 = vrot.lane.b32.xlu0 %v2861_v52, %s3577_s10 }
 0x644   : > { %2949 = vrot.lane.b32.xlu1 %v2880_v40, %s3577_s10  ;;  %v2758_v29 = vpop.permute.xlu2 %2757  ;;  %v2827_v40 = vrot.slane %v2752_v36, 1 }
 0x646   : > { %v2742_v45 = vpop.permute.xlu0 %2741  ;;  %v2744_v1 = vpop.permute.xlu1 %2743 }
 0x647   : > { %v2822_v54 = vrot.slane %v2742_v45, 1  ;;  %v2823_v28 = vrot.slane %v2744_v1, 1 }
 0x649   : > { %v2859_v30 = vsel %vm1275_vm3, %v2821_v47, %v2822_v54  ;;  %v2858_v60 = vsel %vm1275_vm3, %v2822_v54, %v2823_v28  ;;  %v2857_v5 = vsel %vm1275_vm3, %v2823_v28, %v2824_v49 }
 0x64a   : > { %v2882_v38 = vsel %vm1307_vm4, %v2858_v60, 0.0 }
 0x64b   : > { %2951 = vrot.lane.b32.xlu2 %v2859_v30, %s3577_s10  ;;  %2953 = vrot.lane.b32.xlu0 %v2882_v38, %s3577_s10 }
 0x64c   : > { %2955 = vrot.lane.b32.xlu1 %v2857_v5, %s3577_s10  ;;  %v2830_v5 = vrot.slane %v2758_v29, 1 }
 0x64e   : > { %v2748_v52 = vpop.permute.xlu0 %2747  ;;  %v2750_v53 = vpop.permute.xlu1 %2749 }
 0x64f   : > { %v2825_v47 = vrot.slane %v2748_v52, 1  ;;  %v2826_v45 = vrot.slane %v2750_v53, 1  ;;  %v2764_v53 = vpop.permute.xlu2 %2763 }
 0x651   : > { %v2856_v1 = vsel %vm1275_vm3, %v2824_v49, %v2825_v47  ;;  %v2855_v54 = vsel %vm1275_vm3, %v2825_v47, %v2826_v45  ;;  %v2854_v28 = vsel %vm1275_vm3, %v2826_v45, %v2827_v40 }
 0x652   : > { %v2884_v30 = vsel %vm1307_vm4, %v2856_v1, 0.0  ;;  %v2886_v60 = vsel %vm1307_vm4, %v2854_v28, 0.0 }
 0x653   : > { %2957 = vrot.lane.b32.xlu2 %v2884_v30, %s3577_s10  ;;  %2959 = vrot.lane.b32.xlu0 %v2855_v54, %s3577_s10  ;;  %v2833_v30 = vrot.slane %v2764_v53, 1 }
 0x654   : > { %2961 = vrot.lane.b32.xlu1 %v2886_v60, %s3577_s10 }
 0x656   : > { %v2754_v36 = vpop.permute.xlu0 %2753  ;;  %v2756_v49 = vpop.permute.xlu1 %2755 }
 0x657   : > { %v2828_v38 = vrot.slane %v2754_v36, 1  ;;  %v2829_v52 = vrot.slane %v2756_v49, 1 }
 0x659   : > { %v2853_v47 = vsel %vm1275_vm3, %v2827_v40, %v2828_v38  ;;  %v2852_v45 = vsel %vm1275_vm3, %v2828_v38, %v2829_v52  ;;  %v2851_v1 = vsel %vm1275_vm3, %v2829_v52, %v2830_v5  ;;  %v2770_v52 = vpop.permute.xlu2 %2769 }
 0x65a   : > { %v2888_v54 = vsel %vm1307_vm4, %v2852_v45, 0.0 }
 0x65b   : > { %2963 = vrot.lane.b32.xlu2 %v2853_v47, %s3577_s10  ;;  %2965 = vrot.lane.b32.xlu0 %v2888_v54, %s3577_s10 }
 0x65c   : > { %2967 = vrot.lane.b32.xlu1 %v2851_v1, %s3577_s10  ;;  %v2836_v1 = vrot.slane %v2770_v52, 1 }
 0x65e   : > { %v2760_v29 = vpop.permute.xlu0 %2759  ;;  %v2762_v28 = vpop.permute.xlu1 %2761 }
 0x65f   : > { %v2831_v60 = vrot.slane %v2760_v29, 1  ;;  %v2832_v40 = vrot.slane %v2762_v28, 1 }
 0x661   : > { %v2850_v36 = vsel %vm1275_vm3, %v2830_v5, %v2831_v60  ;;  %v2849_v49 = vsel %vm1275_vm3, %v2831_v60, %v2832_v40  ;;  %v2848_v38 = vsel %vm1275_vm3, %v2832_v40, %v2833_v30 }
 0x662   : > { %v2890_v47 = vsel %vm1307_vm4, %v2850_v36, 0.0  ;;  %v2892_v45 = vsel %vm1307_vm4, %v2848_v38, 0.0 }
 0x663   : > { %2969 = vrot.lane.b32.xlu2 %v2890_v47, %s3577_s10  ;;  %2971 = vrot.lane.b32.xlu0 %v2849_v49, %s3577_s10  ;;  %v2776_v49 = vpop.permute.xlu2 %2775 }
 0x664   : > { %2973 = vrot.lane.b32.xlu1 %v2892_v45, %s3577_s10  ;;  %v2839_v47 = vrot.slane %v2776_v49, 1 }
 0x666   : > { %v2766_v5 = vpop.permute.xlu0 %2765  ;;  %v2768_v53 = vpop.permute.xlu1 %2767 }
 0x667   : > { %v2834_v54 = vrot.slane %v2766_v5, 1  ;;  %v2835_v29 = vrot.slane %v2768_v53, 1 }
 0x669   : > { %v2847_v28 = vsel %vm1275_vm3, %v2833_v30, %v2834_v54  ;;  %v2846_v60 = vsel %vm1275_vm3, %v2834_v54, %v2835_v29  ;;  %v2845_v40 = vsel %vm1275_vm3, %v2835_v29, %v2836_v1 }
 0x66a   : > { %v2894_v36 = vsel %vm1307_vm4, %v2846_v60, 0.0 }
 0x66b   : > { %2975 = vrot.lane.b32.xlu2 %v2847_v28, %s3577_s10  ;;  %2977 = vrot.lane.b32.xlu0 %v2894_v36, %s3577_s10  ;;  %v2810_v36 = vrot.slane %v5618_v2, 1 }
 0x66c   : > { %2979 = vrot.lane.b32.xlu1 %v2845_v40, %s3577_s10 }
 0x66e   : > { %v2772_v38 = vpop.permute.xlu0 %2771  ;;  %v2774_v52 = vpop.permute.xlu1 %2773 }
 0x66f   : > { %v2837_v30 = vrot.slane %v2772_v38, 1  ;;  %v2838_v45 = vrot.slane %v2774_v52, 1 }
 0x671   : > { %v2844_v5 = vsel %vm1275_vm3, %v2836_v1, %v2837_v30  ;;  %v2843_v53 = vsel %vm1275_vm3, %v2837_v30, %v2838_v45  ;;  %v2842_v54 = vsel %vm1275_vm3, %v2838_v45, %v2839_v47  ;;  %v6707_v1 = vld [vmem:[#allocation3_spill] sm:$0xff] }
 0x672   : > { %v2896_v29 = vsel %vm1307_vm4, %v2844_v5, 0.0  ;;  %v2898_v28 = vsel %vm1307_vm4, %v2842_v54, 0.0  ;;  %v652_v40 = vadd.f32 %v6707_v1, %v3791_v8  ;;  %v653_v38 = vadd.f32 %v6707_v1, %v3803_v11  ;;  %v6708_v5 = vld [vmem:[#allocation4_spill] sm:$0xff] }
 0x673   : > { %2981 = vrot.lane.b32.xlu2 %v2896_v29, %s3577_s10  ;;  %2983 = vrot.lane.b32.xlu0 %v2843_v53, %s3577_s10  ;;  %v668_v12 = vadd.f32 %v6707_v1, %v3799_v10  ;;  %v669_v54 = vadd.f32 %v6707_v1, %v3827_v18  ;;  %v676_v29 = vadd.f32 %v6707_v1, %v3814_v15 }
 0x674   : > { %2985 = vrot.lane.b32.xlu1 %v2898_v28, %s3577_s10  ;;  %v906_v53 = vadd.f32 %v6708_v5, %v652_v40  ;;  %v907_v8 = vadd.f32 %v6708_v5, %v653_v38  ;;  %v661_v28 = vadd.f32 %v6707_v1, %v3825_v17  ;;  %v678_v10 = vadd.f32 %v6707_v1, %v3882_v35  ;;  %v6710_v38 = vld [vmem:[#allocation7_spill] sm:$0xff] }
 0x675   : > { %v677_v40 = vadd.f32 %v6707_v1, %v3835_v19  ;;  %v654_v18 = vadd.f32 %v6707_v1, %v3837_v20  ;;  %v663_v15 = vadd.f32 %v6707_v1, %v6557_v13  ;;  %v655_v17 = vadd.f32 %v6707_v1, %v3894_v39 }
 0x676   : > { %v2778_v60 = vpop.permute.xlu0 %2777  ;;  %v1118_v2 = vadd.f32 %v906_v53, %v6708_v5  ;;  %v1119_v11 = vadd.f32 %v907_v8, %v6708_v5  ;;  %v656_v35 = vadd.f32 %v6707_v1, %v3917_v46  ;;  %v679_v19 = vadd.f32 %v6707_v1, %v3942_v56  ;;  %v6713_v53 = vld [vmem:[#allocation11_spill] sm:$0xff] }
 0x677   : > { %v2840_v49 = vrot.slane %v2778_v60, 1  ;;  %v672_v20 = vadd.f32 %v6707_v1, %v3944_v57  ;;  %v657_v13 = vadd.f32 %v6707_v1, %v3962_v0  ;;  %v664_v39 = vadd.f32 %v6707_v1, %v3960_v63 }
 0x678   : > { %v5754_v51 = vadd.f32 %v1118_v2, %v6708_v5  ;;  %v5763_v60 = vadd.f32 %v1119_v11, %v6708_v5  ;;  %v673_v46 = vadd.f32 %v6707_v1, %v4030_v48  ;;  %v681_v56 = vadd.f32 %v6707_v1, %v4034_v50  ;;  %v6715_v11 = vld [vmem:[#allocation13_spill] sm:$0xff]  ;;  %v6716_v5 = vld [vmem:[#allocation14_spill] sm:$0xff] }
 0x679   : > { %v2841_v52 = vsel %vm1275_vm3, %v2839_v47, %v2840_v49  ;;  %v2870_v30 = vsel %vm1275_vm3, %v2840_v49, %v2810_v36  ;;  %v660_v47 = vadd.f32 %v6707_v1, %v3793_v9  ;;  %v662_v9 = vadd.f32 %v6707_v1, %v3847_v23  ;;  %v6709_v49 = vld [vmem:[#allocation6_spill] sm:$0xff] }
 0x67a   : > { %v2900_v45 = vsel %vm1307_vm4, %v2870_v30, 0.0  ;;  %v671_v36 = vadd.f32 %v6707_v1, %v3903_v41  ;;  %v670_v23 = vadd.f32 %v6707_v1, %v3880_v34  ;;  %v680_v41 = vadd.f32 %v6707_v1, %v3971_v4 }
 0x67b   : > { %2987 = vrot.lane.b32.xlu2 %v2841_v52, %s3577_s10  ;;  %2989 = vrot.lane.b32.xlu0 %v2900_v45, %s3577_s10  ;;  %v665_v34 = vadd.f32 %v6707_v1, %v6561_v33  ;;  %v658_v57 = vadd.f32 %v6707_v1, %v4047_v55  ;;  %v666_v0 = vadd.f32 %v6707_v1, %v6562_v26  ;;  %v6711_v26 = vld [vmem:[#allocation8_spill] sm:$0xff]  ;;  %v6712_v45 = vld [vmem:[#allocation10_spill] sm:$0xff] }
 0x67c   : > { %v674_v63 = vadd.f32 %v6707_v1, %v4049_v58  ;;  %v682_v4 = vadd.f32 %v6707_v1, %v4143_v21  ;;  %v659_v33 = vadd.f32 %v6707_v1, %v4066_v24  ;;  %v667_v48 = vadd.f32 %v6707_v1, %v4127_v44  ;;  %v6714_v24 = vld [vmem:[#allocation12_spill] sm:$0xff] }
 0x67d   : > { %v675_v50 = vadd.f32 %v6707_v1, %v6570_v59  ;;  %v917_v55 = vadd.f32 %v6709_v49, %v663_v15  ;;  %v909_v52 = vadd.f32 %v6710_v38, %v655_v17  ;;  %v910_v30 = vadd.f32 %v6711_v26, %v656_v35  ;;  %v6717_v59 = vld [vmem:[#allocation17_spill] sm:$0xff]  ;;  %v6718_v15 = vld [vmem:[#allocation18_spill] sm:$0xff]  ;;  %v6719_v17 = vld [vmem:[#allocation19_spill] sm:$0xff] }
 0x67e   : > { %v683_v58 = vadd.f32 %v6707_v1, %v6578_v32  ;;  %v925_v21 = vadd.f32 %v6712_v45, %v671_v36  ;;  %v933_v8 = vadd.f32 %v6713_v53, %v679_v19  ;;  %v926_v2 = vadd.f32 %v6714_v24, %v672_v20  ;;  %v6720_v26 = vld [vmem:[#allocation20_spill] sm:$0xff]  ;;  %v6721_v1 = vld [vmem:[#allocation21_spill] sm:$0xff]  ;;  %v6722_v45 = vld [vmem:[#allocation22_spill] sm:$0xff] }
 0x67f   : > { %v918_v44 = vadd.f32 %v6715_v11, %v664_v39  ;;  %v911_v6 = vadd.f32 %v6716_v5, %v657_v13  ;;  %v934_v14 = vadd.f32 %v6717_v59, %v680_v41  ;;  %v919_v49 = vadd.f32 %v6718_v15, %v665_v34  ;;  %v6723_v53 = vld [vmem:[#allocation23_spill] sm:$0xff]  ;;  %v6724_v24 = vld [vmem:[#allocation24_spill] sm:$0xff]  ;;  %v6726_v59 = vld [vmem:[#allocation25_spill] sm:$0xff] }
 0x680   : > { %v927_v38 = vadd.f32 %v6719_v17, %v673_v46  ;;  %v935_v32 = vadd.f32 %v6720_v26, %v681_v56  ;;  %v912_v36 = vadd.f32 %v6721_v1, %v658_v57  ;;  %v920_v19 = vadd.f32 %v6722_v45, %v666_v0  ;;  %v6725_v11 = vld [vmem:[#allocation32_spill] sm:$0xff]  ;;  %v6727_v15 = vld [vmem:[#allocation26_spill] sm:$0xff]  ;;  %v6730_v17 = vld [vmem:[#allocation27_spill] sm:$0xff] }
 0x681   : > { %v928_v20 = vadd.f32 %v4234_v27, %v674_v63  ;;  %v936_v39 = vadd.f32 %v4242_v43, %v682_v4  ;;  %v913_v5 = vadd.f32 %v6723_v53, %v659_v33  ;;  %v921_v13 = vadd.f32 %v4254_v7, %v667_v48  ;;  %v6728_v63 = vld [vmem:[#allocation29_spill] sm:$0xff]  ;;  %v6729_v4 = vld [vmem:[#allocation30_spill] sm:$0xff]  ;;  %v6731_v48 = vld [vmem:[#allocation28_spill] sm:$0xff] }
 0x682   : > { %v929_v41 = vadd.f32 %v4256_v62, %v675_v50  ;;  %v914_v34 = vadd.f32 %v4263_v25, %v660_v47  ;;  %v937_v46 = vadd.f32 %v4270_v3, %v683_v58  ;;  %v922_v56 = vadd.f32 %v6724_v24, %v668_v12  ;;  %v6732_v50 = vld [vmem:[#allocation31_spill] sm:$0xff]  ;;  %v6733_v47 = vld [vmem:[#allocation33_spill] sm:$0xff]  ;;  %v6736_v26 = vld [vmem:[#allocation36_spill] sm:$0xff] }
 0x683   : > { %v908_v57 = vadd.f32 %v6725_v11, %v654_v18  ;;  %v923_v0 = vadd.f32 %v6726_v59, %v669_v54  ;;  %v930_v27 = vadd.f32 %v6727_v15, %v676_v29  ;;  %v932_v43 = vadd.f32 %v6728_v63, %v678_v10  ;;  %v6734_v18 = vld [vmem:[#allocation34_spill] sm:$0xff]  ;;  %v6735_v54 = vld [vmem:[#allocation35_spill] sm:$0xff]  ;;  %v6737_v1 = vld [vmem:[#allocation37_spill] sm:$0xff] }
 0x684   : > { %v924_v33 = vadd.f32 %v6729_v4, %v670_v23  ;;  %v916_v7 = vadd.f32 %v6730_v17, %v662_v9  ;;  %v915_v62 = vadd.f32 %v6731_v48, %v661_v28  ;;  %v931_v25 = vadd.f32 %v6732_v50, %v677_v40  ;;  %v6738_v9 = vld [vmem:[#allocation38_spill] sm:$0xff]  ;;  %v6739_v28 = vld [vmem:[#allocation39_spill] sm:$0xff]  ;;  %v6740_v40 = vld [vmem:[#allocation41_spill] sm:$0xff] }
 0x685   : > { %v1120_v3 = vadd.f32 %v6733_v47, %v908_v57  ;;  %v5849_v12 = vadd.f32 %v4371_v42, %v932_v43  ;;  %v1129_v29 = vadd.f32 %v6735_v54, %v917_v55  ;;  %v1121_v10 = vadd.f32 %v6736_v26, %v909_v52  ;;  %v6741_v11 = vld [vmem:[#allocation40_spill] sm:$0xff]  ;;  %v6742_v57 = vld [vmem:[#allocation42_spill] sm:$0xff]  ;;  %v6745_v4 = vld [vmem:[#allocation45_spill] sm:$0xff] }
 0x686   : > { %v5852_v58 = vadd.f32 %v6734_v18, %v924_v33  ;;  %v5857_v23 = vadd.f32 %v6737_v1, %v926_v2  ;;  %v1128_v45 = vadd.f32 %v6738_v9, %v916_v7  ;;  %v5861_v53 = vadd.f32 %v6739_v28, %v933_v8  ;;  %v6743_v15 = vld [vmem:[#allocation44_spill] sm:$0xff]  ;;  %v6744_v2 = vld [vmem:[#allocation43_spill] sm:$0xff]  ;;  %v6750_v50 = vld [vmem:[#allocation49_spill] sm:$0xff] }
 0x687   : > { %v1123_v24 = vadd.f32 %v6740_v40, %v911_v6  ;;  %v1137_v42 = vadd.f32 %v6741_v11, %v925_v21  ;;  %v1130_v59 = vadd.f32 %v6742_v57, %v918_v44  ;;  %v5867_v63 = vadd.f32 %v6743_v15, %v935_v32  ;;  %v6746_v8 = vld [vmem:[#allocation47_spill] sm:$0xff]  ;;  %v6747_v6 = vld [vmem:[#allocation46_spill] sm:$0xff]  ;;  %v6748_v21 = vld [vmem:[#allocation48_spill] sm:$0xff] }
 0x688   : > { %v1815_v55 = vadd.f32 %v4905_v31, %v5754_v51  ;;  %v1122_v43 = vadd.f32 %v6744_v2, %v910_v30  ;;  %v5875_v33 = vadd.f32 %v6745_v4, %v927_v38  ;;  %v1132_v17 = vadd.f32 %v6746_v8, %v920_v19  ;;  %v6749_v48 = vld [vmem:[#allocation51_spill] sm:$0xff]  ;;  %v6751_v47 = vld [vmem:[#allocation50_spill] sm:$0xff]  ;;  %v6753_v54 = vld [vmem:[#allocation52_spill] sm:$0xff] }
 0x689   : > { %v5879_v7 = vadd.f32 %v6747_v6, %v934_v14  ;;  %v1124_v44 = vadd.f32 %v6748_v21, %v912_v36  ;;  %v5883_v32 = vadd.f32 %v6749_v48, %v929_v41  ;;  %v1816_v31 = vadd.f32 %v4839_v16, %v5763_v60  ;;  %v6752_v18 = vld [vmem:[#allocation55_spill] sm:$0xff]  ;;  %v6754_v26 = vld [vmem:[#allocation53_spill] sm:$0xff]  ;;  %v6755_v36 = vld [vmem:[#allocation58_spill] sm:$0xff] }
 0x68a   : > { %v2167_v51 = vadd.f32 %v5134_v22, %v1815_v55  ;;  %v1131_v30 = vadd.f32 %v6750_v50, %v919_v49  ;;  %v5890_v38 = vadd.f32 %v6751_v47, %v936_v39  ;;  %v1126_v19 = vadd.f32 %v6752_v18, %v914_v34  ;;  %v6756_v60 = vld [vmem:[#allocation54_spill] sm:$0xff]  ;;  %v6757_v28 = vld [vmem:[#allocation56_spill] sm:$0xff]  ;;  %v6758_v39 = vld [vmem:[#allocation57_spill] sm:$0xff] }
 0x68b   : > { %v1140_v14 = vadd.f32 %v6753_v54, %v928_v20  ;;  %v5895_v1 = vadd.f32 %v6754_v26, %v921_v13  ;;  %v1135_v41 = vadd.f32 %v6755_v36, %v923_v0  ;;  %v2168_v9 = vadd.f32 %v5138_v37, %v1816_v31  ;;  %v6759_v34 = vld [vmem:[#allocation59_spill] sm:$0xff]  ;;  %v6760_v20 = vld [vmem:[#allocation60_spill] sm:$0xff]  ;;  %v6762_v55 = vld [vmem:[#allocation150_spill] sm:$0xff] }
 0x68c   : > { %v2503_v16 = vadd.f32 %v5384_v61, %v2167_v51  ;;  %v1125_v22 = vadd.f32 %v6756_v60, %v913_v5  ;;  %v5902_v49 = vadd.f32 %v6757_v28, %v930_v27  ;;  %v5905_v40 = vadd.f32 %v6758_v39, %v937_v46  ;;  %v6761_v13 = vld [vmem:[#allocation64_spill] sm:$0xff]  ;;  %v6763_v2 = vld [vmem:[#allocation181_spill] sm:$0xff]  ;;  %v6764_v4 = vld [vmem:[#allocation62_spill] sm:$0xff] }
 0x68d   : > { %v5826_v35 = vpop.permute.xlu2 %2933  ;;  %v1127_v11 = vadd.f32 %v6759_v34, %v915_v62  ;;  %v1134_v57 = vadd.f32 %v6760_v20, %v922_v56  ;;  %v1464_v15 = vadd.f32 %v6761_v13, %v1120_v3  ;;  %v2504_v0 = vadd.f32 %v6762_v55, %v2168_v9  ;;  %v6765_v8 = vld [vmem:[#allocation63_spill] sm:$0xff]  ;;  %v6766_v6 = vld [vmem:[#allocation61_spill] sm:$0xff]  ;;  %v6767_v21 = vld [vmem:[#allocation66_spill] sm:$0xff] }
 0x68e   : > { %v2685_v37 = vadd.f32 %v6763_v2, %v2503_v16  ;;  %v1466_v61 = vadd.f32 %v6764_v4, %v1122_v43  ;;  %v1469_v5 = vadd.f32 %v6765_v8, %v1125_v22  ;;  %v1143_v27 = vadd.f32 %v6766_v6, %v931_v25  ;;  %v6768_v31 = vld [vmem:[#allocation65_spill] sm:$0xff]  ;;  %v6769_v62 = vld [vmem:[#allocation87_spill] sm:$0xff]  ;;  %v6770_v50 = vld [vmem:[#allocation182_spill] sm:$0xff] }
 0x68f   : > { %v1465_v48 = vadd.f32 %v6767_v21, %v1121_v10  ;;  %v5917_v51 = vadd.f32 %v6768_v31, %v1128_v45  ;;  %v1817_v56 = vadd.f32 %v6769_v62, %v1464_v15  ;;  %v2686_v3 = vadd.f32 %v6770_v50, %v2504_v0  ;;  %v6771_v18 = vld [vmem:[#allocation67_spill] sm:$0xff]  ;;  %v6772_v26 = vld [vmem:[#allocation2_spill] sm:$0xff]  ;;  %v6773_v43 = vld [vmem:[#allocation69_spill] sm:$0xff] }
 0x690   : > { %v1467_v54 = vadd.f32 %v6771_v18, %v1123_v24  ;;  %v5923_v36 = vadd.f32 %v6772_v26, %v1131_v30  ;;  %v5926_v9 = vadd.f32 %v6773_v43, %v1126_v19  ;;  %v6774_v25 = vld [vmem:[#allocation100_spill] sm:$0xff]  ;;  %v6775_v10 = vld [vmem:[#allocation5_spill] sm:$0xff]  ;;  %v6778_v24 = vld [vmem:[#allocation70_spill] sm:$0xff] }
 0x691   : > { %v1818_v16 = vadd.f32 %v6774_v25, %v1465_v48  ;;  %v5930_v60 = vadd.f32 %v6775_v10, %v1134_v57  ;;  %v6776_v45 = vld [vmem:[#allocation68_spill] sm:$0xff]  ;;  %v6777_v28 = vld [vmem:[#allocation117_spill] sm:$0xff]  ;;  %v5935_v34 = vadd.f32 %v5826_v35, %v2686_v3  ;;  %v5941_v30 = vadd.f32 %v6778_v24, %v1129_v29  ;;  %v6779_v19 = vld [vmem:[#allocation71_spill] sm:$0xff] }
 0x692   : > { %v1468_v22 = vadd.f32 %v6776_v45, %v1124_v44  ;;  %v2169_v39 = vadd.f32 %v6777_v28, %v1817_v56  ;;  %v5944_v13 = vadd.f32 %v6779_v19, %v1137_v42  ;;  %v6780_v57 = vld [vmem:[#allocation88_spill] sm:$0xff]  ;;  %v6781_v55 = vld [vmem:[#allocation122_spill] sm:$0xff]  ;;  %v6782_v0 = vld [vmem:[#allocation9_spill] sm:$0xff] }
 0x693   : > { %v1819_v15 = vadd.f32 %v6780_v57, %v1466_v61  ;;  %v2170_v44 = vadd.f32 %v6781_v55, %v1818_v16  ;;  %v1471_v2 = vadd.f32 %v6782_v0, %v1127_v11  ;;  %v6784_v4 = vld [vmem:[#allocation147_spill] sm:$0xff]  ;;  %v6785_v21 = vld [vmem:[#allocation74_spill] sm:$0xff]  ;;  %v6787_v42 = vld [vmem:[#allocation152_spill] sm:$0xff] }
 0x694   : > { %v2505_v8 = vadd.f32 %v6784_v4, %v2169_v39  ;;  %v5954_v48 = vadd.f32 %v6785_v21, %v1140_v14  ;;  %v6786_v29 = vld [vmem:[#allocation123_spill] sm:$0xff]  ;;  %v6788_v62 = vld [vmem:[#allocation72_spill] sm:$0xff]  ;;  %v6791_v14 = vld [vmem:[#allocation89_spill] sm:$0xff]  ;;  %v3055_v39 = vsel %vm3053_vm5, %v5935_v34, 0.0 }
 0x695   : > { %v5871_v52 = vpop.permute.xlu2 %2939  ;;  %v2506_v31 = vadd.f32 %v6787_v42, %v2170_v44  ;;  %v5959_v61 = vadd.f32 %v6788_v62, %v1130_v59  ;;  %v6789_v56 = vld [vmem:[#allocation176_spill] sm:$0xff]  ;;  %v6790_v3 = vld [vmem:[#allocation75_spill] sm:$0xff]  ;;  %v1820_v26 = vadd.f32 %v6791_v14, %v1467_v54  ;;  %v6792_v43 = vld [vmem:[#allocation153_spill] sm:$0xff] }
 0x696   : > { %v2687_v50 = vadd.f32 %v6789_v56, %v2505_v8  ;;  %v5966_v18 = vadd.f32 %v6790_v3, %v1135_v41  ;;  %v6793_v16 = vld [vmem:[#allocation183_spill] sm:$0xff]  ;;  %v6794_v28 = vld [vmem:[#allocation90_spill] sm:$0xff]  ;;  %v6795_v57 = vld [vmem:[#allocation101_spill] sm:$0xff] }
 0x697   : > { %v2688_v10 = vadd.f32 %v6793_v16, %v2506_v31  ;;  %v1822_v59 = vadd.f32 %v6794_v28, %v1469_v5  ;;  %v1821_v41 = vadd.f32 %v6795_v57, %v1468_v22  ;;  %v6797_v0 = vld [vmem:[#allocation118_spill] sm:$0xff]  ;;  %v6799_v31 = vld [vmem:[#allocation125_spill] sm:$0xff] }
 0x698   : > { %v6806_v57 = vld [vmem:[#allocation177_spill] sm:$0xff] }
 0x699   : > { %v2173_v62 = vadd.f32 %v6799_v31, %v1821_v41 }
 0x69c   : > { %v2932_v46 = vpop.permute.xlu1 %2931 }
 0x69d   : > { %v3021_v47 = vadd.f32 %v2932_v46, %v2685_v37  ;;  %v5937_v20 = vpop.permute.xlu2 %2945  ;;  %v6783_v37 = vld [vmem:[#allocation73_spill] sm:$0xff]  ;;  %v2171_v46 = vadd.f32 %v6786_v29, %v1819_v15  ;;  %v6796_v15 = vld [vmem:[#allocation184_spill] sm:$0xff] }
 0x69e   : > { %v5950_v35 = vadd.f32 %v6783_v37, %v1132_v17  ;;  %v3130_v17 = vmul.f32 %v5935_v34, %v5935_v34  ;;  %v2172_v37 = vadd.f32 %v6797_v0, %v1820_v26 }
 0x69f   : > { %3267 = vrot.lane.b32.xlu0 %v3021_v47, %s3586_s23  ;;  %v3129_v6 = vmul.f32 %v3021_v47, %v3021_v47  ;;  %v3054_v11 = vsel %vm3053_vm5, %v3021_v47, 0.0  ;;  %v2507_v25 = vadd.f32 %v6792_v43, %v2171_v46  ;;  %v6798_v46 = vld [vmem:[#allocation76_spill] sm:$0xff] }
 0x6a0   : > { %v3056_v54 = vadd.f32 %v3055_v39, %v3054_v11  ;;  %v3162_v4 = vsel %vm3053_vm5, %v3130_v17, 0.0  ;;  %v5991_v42 = vadd.f32 %v6798_v46, %v1143_v27  ;;  %v6800_v11 = vld [vmem:[#allocation126_spill] sm:$0xff] }
 0x6a1   : > { %v3161_v24 = vsel %vm3053_vm5, %v3129_v6, 0.0  ;;  %v2689_v55 = vadd.f32 %v6796_v15, %v2507_v25  ;;  %v2174_v3 = vadd.f32 %v6800_v11, %v1822_v59  ;;  %v6802_v25 = vld [vmem:[#allocation15_spill] sm:$0xff]  ;;  %v6803_v27 = vld [vmem:[#allocation78_spill] sm:$0xff] }
 0x6a2   : > { %v3163_v21 = vadd.f32 %v3162_v4, %v3161_v24  ;;  %v6001_v16 = vadd.f32 %v6802_v25, %v5895_v1  ;;  %v6805_v24 = vld [vmem:[#allocation156_spill] sm:$0xff] }
 0x6a3   : > { %v5986_v6 = vadd.f32 %v5871_v52, %v2689_v55  ;;  %v6801_v52 = vld [vmem:[#allocation148_spill] sm:$0xff]  ;;  %v6807_v55 = vld [vmem:[#allocation77_spill] sm:$0xff] }
 0x6a4   : > { %v2936_v45 = vpop.permute.xlu0 %2935  ;;  %v2508_v14 = vadd.f32 %v6801_v52, %v2172_v37  ;;  %v6015_v1 = vadd.f32 %v6807_v55, %v5852_v58  ;;  %v6810_v37 = vld [vmem:[#allocation186_spill] sm:$0xff] }
 0x6a5   : > { %v5975_v19 = vadd.f32 %v2936_v45, %v2687_v50  ;;  %v2938_v47 = vpop.permute.xlu1 %2937  ;;  %v5995_v50 = vpop.permute.xlu2 %2951  ;;  %v6804_v45 = vld [vmem:[#allocation155_spill] sm:$0xff]  ;;  %v3133_v41 = vmul.f32 %v5986_v6, %v5986_v6  ;;  %v3061_v46 = vsel %vm3053_vm5, %v5986_v6, 0.0 }
 0x6a6   : > { %v3024_v44 = vadd.f32 %v2938_v47, %v2688_v10  ;;  %v6005_v10 = vadd.f32 %v6803_v27, %v5857_v23  ;;  %v2509_v28 = vadd.f32 %v6804_v45, %v2173_v62  ;;  %v2510_v47 = vadd.f32 %v6805_v24, %v2174_v3  ;;  %v6813_v62 = vld [vmem:[#allocation104_spill] sm:$0xff] }
 0x6a7   : > { %v3057_v5 = vsel %vm3053_vm5, %v5975_v19, 0.0  ;;  %v3131_v8 = vmul.f32 %v5975_v19, %v5975_v19  ;;  %v2690_v59 = vadd.f32 %v6806_v57, %v2508_v14  ;;  %v3168_v3 = vsel %vm3053_vm5, %v3133_v41, 0.0  ;;  %v6818_v57 = vld [vmem:[#allocation80_spill] sm:$0xff]  ;;  %v6819_v41 = vld [vmem:[#allocation158_spill] sm:$0xff] }
 0x6a8   : > { %v3058_v29 = vadd.f32 %v3057_v5, %v3056_v54  ;;  %v3059_v22 = vsel %vm3053_vm5, %v3024_v44, 0.0  ;;  %3273 = vrot.lane.b32.xlu0 %v3024_v44, %s3586_s23  ;;  %v3132_v17 = vmul.f32 %v3024_v44, %v3024_v44  ;;  %v6808_v54 = vld [vmem:[#allocation16_spill] sm:$0xff]  ;;  %v6809_v44 = vld [vmem:[#allocation91_spill] sm:$0xff]  ;;  %v2691_v4 = vadd.f32 %v6810_v37, %v2509_v28 }
 0x6a9   : > { %v3164_v56 = vsel %vm3053_vm5, %v3131_v8, 0.0  ;;  %v6019_v23 = vadd.f32 %v6808_v54, %v5883_v32  ;;  %v1823_v0 = vadd.f32 %v6809_v44, %v5926_v9  ;;  %v6811_v8 = vld [vmem:[#allocation92_spill] sm:$0xff]  ;;  %v1824_v32 = vadd.f32 %v6813_v62, %v1471_v2 }
 0x6aa   : > { %v3165_v26 = vadd.f32 %v3164_v56, %v3163_v21  ;;  %v3060_v43 = vadd.f32 %v3059_v22, %v3058_v29  ;;  %v3166_v39 = vsel %vm3053_vm5, %v3132_v17, 0.0  ;;  %v1825_v21 = vadd.f32 %v6811_v8, %v5917_v51  ;;  %v6812_v29 = vld [vmem:[#allocation187_spill] sm:$0xff] }
 0x6ab   : > { %v2692_v22 = vadd.f32 %v6812_v29, %v2510_v47  ;;  %v6814_v56 = vld [vmem:[#allocation119_spill] sm:$0xff] }
 0x6ac   : > { %v3167_v15 = vadd.f32 %v3166_v39, %v3165_v26  ;;  %v2175_v17 = vadd.f32 %v6814_v56, %v1823_v0  ;;  %v3062_v11 = vadd.f32 %v3061_v46, %v3060_v43  ;;  %v6815_v26 = vld [vmem:[#allocation128_spill] sm:$0xff]  ;;  %v6816_v43 = vld [vmem:[#allocation129_spill] sm:$0xff]  ;;  %v6820_v0 = vld [vmem:[#allocation159_spill] sm:$0xff] }
 0x6ad   : > { %v2942_v5 = vpop.permute.xlu0 %2941  ;;  %v6035_v52 = vadd.f32 %v5937_v20, %v2692_v22  ;;  %v2176_v25 = vadd.f32 %v6815_v26, %v1824_v32  ;;  %v2177_v28 = vadd.f32 %v6816_v43, %v1825_v21  ;;  %v6817_v39 = vld [vmem:[#allocation149_spill] sm:$0xff]  ;;  %v2958_v54 = vpop.permute.xlu2 %2957  ;;  %v6822_v29 = vld [vmem:[#allocation83_spill] sm:$0xff] }
 0x6ae   : > { %v6029_v58 = vadd.f32 %v2942_v5, %v2690_v59  ;;  %v2944_v31 = vpop.permute.xlu1 %2943  ;;  %v3169_v45 = vadd.f32 %v3168_v3, %v3167_v15  ;;  %v2511_v24 = vadd.f32 %v6817_v39, %v2175_v17  ;;  %v6049_v59 = vadd.f32 %v6818_v57, %v5875_v33  ;;  %v6823_v33 = vld [vmem:[#allocation93_spill] sm:$0xff]  ;;  %v6825_v17 = vld [vmem:[#allocation94_spill] sm:$0xff] }
 0x6af   : > { %v3027_v9 = vadd.f32 %v2944_v31, %v2691_v4  ;;  %v2512_v55 = vadd.f32 %v6819_v41, %v2176_v25  ;;  %v2513_v37 = vadd.f32 %v6820_v0, %v2177_v28  ;;  %v6821_v4 = vld [vmem:[#allocation178_spill] sm:$0xff]  ;;  %v3136_v8 = vmul.f32 %v6035_v52, %v6035_v52  ;;  %v6824_v31 = vld [vmem:[#allocation189_spill] sm:$0xff]  ;;  %v6830_v41 = vld [vmem:[#allocation132_spill] sm:$0xff] }
 0x6b0   : > { %v3063_v51 = vsel %vm3053_vm5, %v6029_v58, 0.0  ;;  %v3134_v14 = vmul.f32 %v6029_v58, %v6029_v58  ;;  %v2693_v5 = vadd.f32 %v6821_v4, %v2511_v24  ;;  %v6059_v22 = vadd.f32 %v6822_v29, %v5902_v49  ;;  %v6827_v49 = vld [vmem:[#allocation107_spill] sm:$0xff] }
 0x6b1   : > { %v3064_v27 = vadd.f32 %v3063_v51, %v3062_v11  ;;  %v3135_v2 = vmul.f32 %v3027_v9, %v3027_v9  ;;  %3279 = vrot.lane.b32.xlu0 %v3027_v9, %s3586_s23  ;;  %v3065_v47 = vsel %vm3053_vm5, %v3027_v9, 0.0  ;;  %v1826_v46 = vadd.f32 %v6823_v33, %v5941_v30  ;;  %v6826_v9 = vld [vmem:[#allocation190_spill] sm:$0xff]  ;;  %v6829_v24 = vld [vmem:[#allocation131_spill] sm:$0xff] }
 0x6b2   : > { %v3170_v20 = vsel %vm3053_vm5, %v3134_v14, 0.0  ;;  %v2694_v62 = vadd.f32 %v6824_v31, %v2512_v55  ;;  %v1828_v11 = vadd.f32 %v6825_v17, %v5923_v36  ;;  %v2695_v3 = vadd.f32 %v6826_v9, %v2513_v37  ;;  %v6832_v37 = vld [vmem:[#allocation79_spill] sm:$0xff]  ;;  %v6834_v33 = vld [vmem:[#allocation162_spill] sm:$0xff]  ;;  %v6836_v17 = vld [vmem:[#allocation81_spill] sm:$0xff] }
 0x6b3   : > { %v3171_v44 = vadd.f32 %v3170_v20, %v3169_v45  ;;  %v3066_v15 = vadd.f32 %v3065_v47, %v3064_v27  ;;  %v3172_v21 = vsel %vm3053_vm5, %v3135_v2, 0.0  ;;  %v3067_v51 = vsel %vm3053_vm5, %v6035_v52, 0.0  ;;  %v6828_v27 = vld [vmem:[#allocation120_spill] sm:$0xff]  ;;  %v6835_v31 = vld [vmem:[#allocation179_spill] sm:$0xff] }
 0x6b4   : > { %v1827_v25 = vadd.f32 %v6827_v49, %v5959_v61  ;;  %v2178_v30 = vadd.f32 %v6828_v27, %v1826_v46  ;;  %v3174_v43 = vsel %vm3053_vm5, %v3136_v8, 0.0  ;;  %v6076_v28 = vadd.f32 %v5995_v50, %v2695_v3  ;;  %v6838_v3 = vld [vmem:[#allocation192_spill] sm:$0xff] }
 0x6b5   : > { %v3173_v32 = vadd.f32 %v3172_v21, %v3171_v44  ;;  %v2948_v56 = vpop.permute.xlu0 %2947  ;;  %v3068_v45 = vadd.f32 %v3067_v51, %v3066_v15  ;;  %v2180_v55 = vadd.f32 %v6830_v41, %v1828_v11  ;;  %v6831_v44 = vld [vmem:[#allocation151_spill] sm:$0xff]  ;;  %v6090_v4 = vadd.f32 %v6832_v37, %v5879_v7  ;;  %v6839_v27 = vld [vmem:[#allocation96_spill] sm:$0xff] }
 0x6b6   : > { %v6069_v14 = vadd.f32 %v2948_v56, %v2693_v5  ;;  %v2950_v26 = vpop.permute.xlu1 %2949  ;;  %v2179_v20 = vadd.f32 %v6829_v24, %v1827_v25  ;;  %v2514_v15 = vadd.f32 %v6831_v44, %v2178_v30  ;;  %v6833_v5 = vld [vmem:[#allocation161_spill] sm:$0xff]  ;;  %v6100_v11 = vadd.f32 %v6836_v17, %v5905_v40  ;;  %v6837_v7 = vld [vmem:[#allocation95_spill] sm:$0xff]  ;;  %v6843_v44 = vld [vmem:[#allocation134_spill] sm:$0xff] }
 0x6b7   : > { %v3030_v2 = vadd.f32 %v2950_v26, %v2694_v62  ;;  %v3175_v57 = vadd.f32 %v3174_v43, %v3173_v32  ;;  %v2516_v46 = vadd.f32 %v6834_v33, %v2180_v55  ;;  %v3139_v32 = vmul.f32 %v6076_v28, %v6076_v28  ;;  %v2964_v26 = vpop.permute.xlu2 %2963  ;;  %v6846_v33 = vld [vmem:[#allocation82_spill] sm:$0xff]  ;;  %v6848_v17 = vld [vmem:[#allocation165_spill] sm:$0xff] }
 0x6b8   : > { %v3069_v36 = vsel %vm3053_vm5, %v6069_v14, 0.0  ;;  %v3137_v39 = vmul.f32 %v6069_v14, %v6069_v14  ;;  %v2515_v8 = vadd.f32 %v6833_v5, %v2179_v20  ;;  %v2696_v62 = vadd.f32 %v6835_v31, %v2514_v15  ;;  %v6847_v31 = vld [vmem:[#allocation164_spill] sm:$0xff] }
 0x6b9   : > { %v3070_v47 = vadd.f32 %v3069_v36, %v3068_v45  ;;  %v3138_v61 = vmul.f32 %v3030_v2, %v3030_v2  ;;  %3285 = vrot.lane.b32.xlu0 %v3030_v2, %s3586_s23  ;;  %v3071_v0 = vsel %vm3053_vm5, %v3030_v2, 0.0  ;;  %v1829_v9 = vadd.f32 %v6837_v7, %v5950_v35  ;;  %v6840_v45 = vld [vmem:[#allocation193_spill] sm:$0xff] }
 0x6ba   : > { %v3176_v50 = vsel %vm3053_vm5, %v3137_v39, 0.0  ;;  %v2697_v51 = vadd.f32 %v6838_v3, %v2515_v8  ;;  %v1831_v30 = vadd.f32 %v6839_v27, %v5930_v60  ;;  %v2698_v2 = vadd.f32 %v6840_v45, %v2516_v46  ;;  %v6841_v39 = vld [vmem:[#allocation110_spill] sm:$0xff]  ;;  %v6842_v35 = vld [vmem:[#allocation121_spill] sm:$0xff]  ;;  %v6852_v45 = vld [vmem:[#allocation195_spill] sm:$0xff] }
 0x6bb   : > { %v3177_v21 = vadd.f32 %v3176_v50, %v3175_v57  ;;  %v3072_v29 = vadd.f32 %v3071_v0, %v3070_v47  ;;  %v3178_v56 = vsel %vm3053_vm5, %v3138_v61, 0.0  ;;  %v3073_v43 = vsel %vm3053_vm5, %v6076_v28, 0.0  ;;  %v6845_v8 = vld [vmem:[#allocation154_spill] sm:$0xff] }
 0x6bc   : > { %v1830_v24 = vadd.f32 %v6841_v39, %v6001_v16  ;;  %v2181_v20 = vadd.f32 %v6842_v35, %v1829_v9  ;;  %v3180_v61 = vsel %vm3053_vm5, %v3139_v32, 0.0  ;;  %v6116_v41 = vadd.f32 %v2958_v54, %v2698_v2  ;;  %v6844_v16 = vld [vmem:[#allocation135_spill] sm:$0xff]  ;;  %v6849_v9 = vld [vmem:[#allocation180_spill] sm:$0xff]  ;;  %v6853_v39 = vld [vmem:[#allocation98_spill] sm:$0xff] }
 0x6bd   : > { %v3179_v49 = vadd.f32 %v3178_v56, %v3177_v21  ;;  %v2954_v25 = vpop.permute.xlu0 %2953  ;;  %v3074_v47 = vadd.f32 %v3073_v43, %v3072_v29  ;;  %v2183_v5 = vadd.f32 %v6844_v16, %v1831_v30  ;;  %v6130_v46 = vadd.f32 %v6846_v33, %v5849_v12  ;;  %v6851_v12 = vld [vmem:[#allocation97_spill] sm:$0xff]  ;;  %v6854_v35 = vld [vmem:[#allocation196_spill] sm:$0xff] }
 0x6be   : > { %v6110_v36 = vadd.f32 %v2954_v25, %v2696_v62  ;;  %v2956_v40 = vpop.permute.xlu1 %2955  ;;  %v2182_v15 = vadd.f32 %v6843_v44, %v1830_v24  ;;  %v2517_v21 = vadd.f32 %v6845_v8, %v2181_v20  ;;  %v6850_v25 = vld [vmem:[#allocation84_spill] sm:$0xff]  ;;  %v1832_v30 = vadd.f32 %v6851_v12, %v5966_v18  ;;  %v6863_v12 = vld [vmem:[#allocation185_spill] sm:$0xff] }
 0x6bf   : > { %v3033_v57 = vadd.f32 %v2956_v40, %v2697_v51  ;;  %v3181_v0 = vadd.f32 %v3180_v61, %v3179_v49  ;;  %v2519_v7 = vadd.f32 %v6848_v17, %v2183_v5  ;;  %v3142_v51 = vmul.f32 %v6116_v41, %v6116_v41  ;;  %v2970_v44 = vpop.permute.xlu2 %2969  ;;  %v6857_v5 = vld [vmem:[#allocation137_spill] sm:$0xff] }
 0x6c0   : > { %v3075_v60 = vsel %vm3053_vm5, %v6110_v36, 0.0  ;;  %v3140_v55 = vmul.f32 %v6110_v36, %v6110_v36  ;;  %v2518_v62 = vadd.f32 %v6847_v31, %v2182_v15  ;;  %v2699_v3 = vadd.f32 %v6849_v9, %v2517_v21  ;;  %v6859_v31 = vld [vmem:[#allocation157_spill] sm:$0xff] }
 0x6c1   : > { %v3076_v50 = vadd.f32 %v3075_v60, %v3074_v47  ;;  %v3141_v37 = vmul.f32 %v3033_v57, %v3033_v57  ;;  %3291 = vrot.lane.b32.xlu0 %v3033_v57, %s3586_s23  ;;  %v3077_v29 = vsel %vm3053_vm5, %v3033_v57, 0.0  ;;  %v6140_v27 = vadd.f32 %v6850_v25, %v5861_v53  ;;  %v6855_v53 = vld [vmem:[#allocation112_spill] sm:$0xff] }
 0x6c2   : > { %v3182_v54 = vsel %vm3053_vm5, %v3140_v55, 0.0  ;;  %v2700_v2 = vadd.f32 %v6852_v45, %v2518_v62  ;;  %v1834_v24 = vadd.f32 %v6853_v39, %v5944_v13  ;;  %v2701_v20 = vadd.f32 %v6854_v35, %v2519_v7  ;;  %v6856_v55 = vld [vmem:[#allocation124_spill] sm:$0xff]  ;;  %v6861_v7 = vld [vmem:[#allocation167_spill] sm:$0xff] }
 0x6c3   : > { %v3183_v32 = vadd.f32 %v3182_v54, %v3181_v0  ;;  %v3078_v56 = vadd.f32 %v3077_v29, %v3076_v50  ;;  %v3184_v49 = vsel %vm3053_vm5, %v3141_v37, 0.0  ;;  %v3079_v47 = vsel %vm3053_vm5, %v6116_v41, 0.0  ;;  %v6858_v29 = vld [vmem:[#allocation138_spill] sm:$0xff] }
 0x6c4   : > { %v1833_v60 = vadd.f32 %v6855_v53, %v6015_v1  ;;  %v2184_v18 = vadd.f32 %v6856_v55, %v1832_v30  ;;  %v3186_v0 = vsel %vm3053_vm5, %v3142_v51, 0.0  ;;  %v6156_v37 = vadd.f32 %v2964_v26, %v2701_v20 }
 0x6c5   : > { %v3185_v43 = vadd.f32 %v3184_v49, %v3183_v32  ;;  %v2960_v40 = vpop.permute.xlu0 %2959  ;;  %v3080_v15 = vadd.f32 %v3079_v47, %v3078_v56  ;;  %v2186_v33 = vadd.f32 %v6858_v29, %v1834_v24  ;;  %v6860_v56 = vld [vmem:[#allocation85_spill] sm:$0xff]  ;;  %v6862_v49 = vld [vmem:[#allocation168_spill] sm:$0xff] }
 0x6c6   : > { %v6150_v57 = vadd.f32 %v2960_v40, %v2699_v3  ;;  %v2962_v61 = vpop.permute.xlu1 %2961  ;;  %v2185_v8 = vadd.f32 %v6857_v5, %v1833_v60  ;;  %v2520_v62 = vadd.f32 %v6859_v31, %v2184_v18  ;;  %v6170_v17 = vadd.f32 %v6860_v56, %v5867_v63  ;;  %v6865_v63 = vld [vmem:[#allocation99_spill] sm:$0xff]  ;;  %v6866_v24 = vld [vmem:[#allocation197_spill] sm:$0xff]  ;;  %v6868_v60 = vld [vmem:[#allocation198_spill] sm:$0xff] }
 0x6c7   : > { %v3036_v50 = vadd.f32 %v2962_v61, %v2700_v2  ;;  %v3187_v54 = vadd.f32 %v3186_v0, %v3185_v43  ;;  %v2522_v25 = vadd.f32 %v6862_v49, %v2186_v33  ;;  %v3145_v45 = vmul.f32 %v6156_v37, %v6156_v37  ;;  %v6864_v43 = vld [vmem:[#allocation86_spill] sm:$0xff]  ;;  %v2976_v33 = vpop.permute.xlu2 %2975  ;;  %v6873_v56 = vld [vmem:[#allocation160_spill] sm:$0xff] }
 0x6c8   : > { %v3081_v13 = vsel %vm3053_vm5, %v6150_v57, 0.0  ;;  %v3143_v16 = vmul.f32 %v6150_v57, %v6150_v57  ;;  %v2521_v9 = vadd.f32 %v6861_v7, %v2185_v8  ;;  %v2702_v30 = vadd.f32 %v6863_v12, %v2520_v62  ;;  %v6867_v61 = vld [vmem:[#allocation102_spill] sm:$0xff] }
 0x6c9   : > { %v3082_v21 = vadd.f32 %v3081_v13, %v3080_v15  ;;  %v3144_v1 = vmul.f32 %v3036_v50, %v3036_v50  ;;  %3297 = vrot.lane.b32.xlu0 %v3036_v50, %s3586_s23  ;;  %v3083_v32 = vsel %vm3053_vm5, %v3036_v50, 0.0  ;;  %v6180_v40 = vadd.f32 %v6864_v43, %v5890_v38  ;;  %v6869_v38 = vld [vmem:[#allocation113_spill] sm:$0xff]  ;;  %v6870_v13 = vld [vmem:[#allocation127_spill] sm:$0xff]  ;;  %v6875_v49 = vld [vmem:[#allocation170_spill] sm:$0xff] }
 0x6ca   : > { %v3188_v26 = vsel %vm3053_vm5, %v3143_v16, 0.0  ;;  %v1835_v39 = vadd.f32 %v6865_v63, %v6005_v10  ;;  %v2703_v35 = vadd.f32 %v6866_v24, %v2521_v9  ;;  %v1837_v53 = vadd.f32 %v6867_v61, %v5954_v48  ;;  %v6877_v43 = vld [vmem:[#allocation188_spill] sm:$0xff] }
 0x6cb   : > { %v3189_v3 = vadd.f32 %v3188_v26, %v3187_v54  ;;  %v3084_v51 = vadd.f32 %v3083_v32, %v3082_v21  ;;  %v3190_v2 = vsel %vm3053_vm5, %v3144_v1, 0.0  ;;  %v2704_v55 = vadd.f32 %v6868_v60, %v2522_v25  ;;  %v6871_v1 = vld [vmem:[#allocation139_spill] sm:$0xff]  ;;  %v6872_v26 = vld [vmem:[#allocation140_spill] sm:$0xff] }
 0x6cc   : > { %v3085_v18 = vsel %vm3053_vm5, %v6156_v37, 0.0  ;;  %v1836_v0 = vadd.f32 %v6869_v38, %v6049_v59  ;;  %v2187_v10 = vadd.f32 %v6870_v13, %v1835_v39  ;;  %v3192_v8 = vsel %vm3053_vm5, %v3145_v45, 0.0  ;;  %v6876_v45 = vld [vmem:[#allocation171_spill] sm:$0xff]  ;;  %v6882_v38 = vld [vmem:[#allocation201_spill] sm:$0xff] }
 0x6cd   : > { %v3191_v20 = vadd.f32 %v3190_v2, %v3189_v3  ;;  %v2966_v47 = vpop.permute.xlu0 %2965  ;;  %v3086_v16 = vadd.f32 %v3085_v18, %v3084_v51  ;;  %v6196_v21 = vadd.f32 %v2970_v44, %v2704_v55  ;;  %v2189_v32 = vadd.f32 %v6872_v26, %v1837_v53  ;;  %v6874_v3 = vld [vmem:[#allocation103_spill] sm:$0xff]  ;;  %v6881_v18 = vld [vmem:[#allocation108_spill] sm:$0xff] }
 0x6ce   : > { %v6190_v15 = vadd.f32 %v2966_v47, %v2702_v30  ;;  %v2968_v50 = vpop.permute.xlu1 %2967  ;;  %v2188_v29 = vadd.f32 %v6871_v1, %v1836_v0  ;;  %v2523_v7 = vadd.f32 %v6873_v56, %v2187_v10  ;;  %v1838_v51 = vadd.f32 %v6874_v3, %v6019_v23  ;;  %v6879_v47 = vld [vmem:[#allocation106_spill] sm:$0xff]  ;;  %v6880_v23 = vld [vmem:[#allocation200_spill] sm:$0xff] }
 0x6cf   : > { %v3039_v5 = vadd.f32 %v2968_v50, %v2703_v35  ;;  %v3193_v62 = vadd.f32 %v3192_v8, %v3191_v20  ;;  %v2525_v2 = vadd.f32 %v6876_v45, %v2189_v32  ;;  %v3148_v39 = vmul.f32 %v6196_v21, %v6196_v21  ;;  %v6878_v35 = vld [vmem:[#allocation105_spill] sm:$0xff]  ;;  %v6884_v8 = vld [vmem:[#allocation130_spill] sm:$0xff] }
 0x6d0   : > { %v3087_v48 = vsel %vm3053_vm5, %v6190_v15, 0.0  ;;  %v3146_v54 = vmul.f32 %v6190_v15, %v6190_v15  ;;  %v2524_v25 = vadd.f32 %v6875_v49, %v2188_v29  ;;  %v2705_v63 = vadd.f32 %v6877_v43, %v2523_v7  ;;  %v6890_v43 = vld [vmem:[#allocation173_spill] sm:$0xff] }
 0x6d1   : > { %v3088_v31 = vadd.f32 %v3087_v48, %v3086_v16  ;;  %v3147_v59 = vmul.f32 %v3039_v5, %v3039_v5  ;;  %3303 = vrot.lane.b32.xlu0 %v3039_v5, %s3586_s23  ;;  %v3089_v9 = vsel %vm3053_vm5, %v3039_v5, 0.0  ;;  %v1840_v20 = vadd.f32 %v6878_v35, %v5991_v42  ;;  %v6883_v42 = vld [vmem:[#allocation114_spill] sm:$0xff] }
 0x6d2   : > { %v3194_v44 = vsel %vm3053_vm5, %v3146_v54, 0.0  ;;  %v1841_v61 = vadd.f32 %v6879_v47, %v6130_v46  ;;  %v2706_v53 = vadd.f32 %v6880_v23, %v2524_v25  ;;  %v1843_v50 = vadd.f32 %v6881_v18, %v6090_v4  ;;  %v6889_v25 = vld [vmem:[#allocation172_spill] sm:$0xff]  ;;  %v6892_v47 = vld [vmem:[#allocation115_spill] sm:$0xff] }
 0x6d3   : > { %v3195_v12 = vadd.f32 %v3194_v44, %v3193_v62  ;;  %v3090_v30 = vadd.f32 %v3089_v9, %v3088_v31  ;;  %v3196_v24 = vsel %vm3053_vm5, %v3147_v59, 0.0  ;;  %v2707_v0 = vadd.f32 %v6882_v38, %v2525_v2  ;;  %v6885_v62 = vld [vmem:[#allocation141_spill] sm:$0xff]  ;;  %v6887_v44 = vld [vmem:[#allocation163_spill] sm:$0xff] }
 0x6d4   : > { %v3091_v13 = vsel %vm3053_vm5, %v6196_v21, 0.0  ;;  %v1839_v5 = vadd.f32 %v6883_v42, %v6059_v22  ;;  %v2190_v46 = vadd.f32 %v6884_v8, %v1838_v51  ;;  %v3198_v1 = vsel %vm3053_vm5, %v3148_v39, 0.0  ;;  %v6886_v22 = vld [vmem:[#allocation142_spill] sm:$0xff]  ;;  %v6888_v51 = vld [vmem:[#allocation111_spill] sm:$0xff] }
 0x6d5   : > { %v3197_v60 = vadd.f32 %v3196_v24, %v3195_v12  ;;  %v2972_v55 = vpop.permute.xlu0 %2971  ;;  %v3092_v48 = vadd.f32 %v3091_v13, %v3090_v30  ;;  %v6232_v29 = vadd.f32 %v2976_v33, %v2707_v0  ;;  %v2192_v7 = vadd.f32 %v6886_v22, %v1840_v20  ;;  %v2982_v30 = vpop.permute.xlu2 %2981  ;;  %v6891_v39 = vld [vmem:[#allocation191_spill] sm:$0xff]  ;;  %v6895_v0 = vld [vmem:[#allocation133_spill] sm:$0xff] }
 0x6d6   : > { %v6226_v10 = vadd.f32 %v2972_v55, %v2705_v63  ;;  %v2974_v16 = vpop.permute.xlu1 %2973  ;;  %v2191_v59 = vadd.f32 %v6885_v62, %v1839_v5  ;;  %v2526_v9 = vadd.f32 %v6887_v44, %v2190_v46  ;;  %v1846_v49 = vadd.f32 %v6888_v51, %v6100_v11  ;;  %v6900_v44 = vld [vmem:[#allocation146_spill] sm:$0xff] }
 0x6d7   : > { %v3042_v54 = vadd.f32 %v2974_v16, %v2706_v53  ;;  %v3199_v32 = vadd.f32 %v3198_v1, %v3197_v60  ;;  %v2528_v63 = vadd.f32 %v6890_v43, %v2192_v7  ;;  %v3151_v35 = vmul.f32 %v6232_v29, %v6232_v29  ;;  %v6893_v53 = vld [vmem:[#allocation116_spill] sm:$0xff]  ;;  %v6894_v60 = vld [vmem:[#allocation202_spill] sm:$0xff]  ;;  %v6896_v16 = vld [vmem:[#allocation203_spill] sm:$0xff] }
 0x6d8   : > { %v3093_v4 = vsel %vm3053_vm5, %v6226_v10, 0.0  ;;  %v3149_v31 = vmul.f32 %v6226_v10, %v6226_v10  ;;  %v2527_v12 = vadd.f32 %v6889_v25, %v2191_v59  ;;  %v2708_v24 = vadd.f32 %v6891_v39, %v2526_v9 }
 0x6d9   : > { %v3094_v26 = vadd.f32 %v3093_v4, %v3092_v48  ;;  %v3150_v56 = vmul.f32 %v3042_v54, %v3042_v54  ;;  %3309 = vrot.lane.b32.xlu0 %v3042_v54, %s3586_s23  ;;  %v3095_v3 = vsel %vm3053_vm5, %v3042_v54, 0.0  ;;  %v1842_v23 = vadd.f32 %v6892_v47, %v6140_v27  ;;  %v6897_v48 = vld [vmem:[#allocation143_spill] sm:$0xff]  ;;  %v6898_v27 = vld [vmem:[#allocation145_spill] sm:$0xff] }
 0x6da   : > { %v3200_v33 = vsel %vm3053_vm5, %v3149_v31, 0.0  ;;  %v1845_v11 = vadd.f32 %v6893_v53, %v6180_v40  ;;  %v2709_v55 = vadd.f32 %v6894_v60, %v2527_v12  ;;  %v2193_v13 = vadd.f32 %v6895_v0, %v1841_v61  ;;  %v6902_v12 = vld [vmem:[#allocation4_spill] sm:$0xff]  ;;  %v6906_v47 = vld [vmem:[#allocation109_spill] sm:$0xff] }
 0x6db   : > { %v3201_v45 = vadd.f32 %v3200_v33, %v3199_v32  ;;  %v3096_v2 = vadd.f32 %v3095_v3, %v3094_v26  ;;  %v3202_v20 = vsel %vm3053_vm5, %v3150_v56, 0.0  ;;  %v2710_v42 = vadd.f32 %v6896_v16, %v2528_v63  ;;  %v6899_v26 = vld [vmem:[#allocation144_spill] sm:$0xff]  ;;  %v6901_v33 = vld [vmem:[#allocation166_spill] sm:$0xff]  ;;  %v6908_v0 = vld [vmem:[#allocation205_spill] sm:$0xff] }
 0x6dc   : > { %v3097_v5 = vsel %vm3053_vm5, %v6232_v29, 0.0  ;;  %v2194_v54 = vadd.f32 %v6897_v48, %v1842_v23  ;;  %v2197_v1 = vadd.f32 %v6898_v27, %v1845_v11  ;;  %v3204_v31 = vsel %vm3053_vm5, %v3151_v35, 0.0  ;;  %v6907_v53 = vld [vmem:[#allocation204_spill] sm:$0xff] }
 0x6dd   : > { %v3203_v18 = vadd.f32 %v3202_v20, %v3201_v45  ;;  %v2978_v38 = vpop.permute.xlu0 %2977  ;;  %v3098_v4 = vadd.f32 %v3097_v5, %v3096_v2  ;;  %v6266_v62 = vadd.f32 %v2982_v30, %v2710_v42  ;;  %v2195_v32 = vadd.f32 %v6899_v26, %v1843_v50  ;;  %v6903_v45 = vld [vmem:[#allocation174_spill] sm:$0xff]  ;;  %v6904_v50 = vld [vmem:[#allocation175_spill] sm:$0xff]  ;;  %v2988_v60 = vpop.permute.xlu2 %2987 }
 0x6de   : > { %v6261_v8 = vadd.f32 %v2978_v38, %v2708_v24  ;;  %v2980_v46 = vpop.permute.xlu1 %2979  ;;  %v2198_v9 = vadd.f32 %v6900_v44, %v1846_v49  ;;  %v2529_v3 = vadd.f32 %v6901_v33, %v2193_v13  ;;  %v2533_v30 = vadd.f32 %v2197_v1, %v6902_v12  ;;  %v6905_v24 = vld [vmem:[#allocation194_spill] sm:$0xff] }
 0x6df   : > { %v3045_v40 = vadd.f32 %v2980_v46, %v2709_v55  ;;  %v3205_v22 = vadd.f32 %v3204_v31, %v3203_v18  ;;  %v2530_v2 = vadd.f32 %v6903_v45, %v2194_v54  ;;  %v2531_v39 = vadd.f32 %v6904_v50, %v2195_v32  ;;  %v6909_v46 = vld [vmem:[#allocation136_spill] sm:$0xff] }
 0x6e0   : > { %v3099_v61 = vsel %vm3053_vm5, %v6261_v8, 0.0  ;;  %v3152_v59 = vmul.f32 %v6261_v8, %v6261_v8  ;;  %v2711_v35 = vadd.f32 %v6905_v24, %v2529_v3  ;;  %v3154_v20 = vmul.f32 %v6266_v62, %v6266_v62  ;;  %v6911_v3 = vld [vmem:[#allocation199_spill] sm:$0xff] }
 0x6e1   : > { %v3100_v56 = vadd.f32 %v3099_v61, %v3098_v4  ;;  %v3153_v7 = vmul.f32 %v3045_v40, %v3045_v40  ;;  %3315 = vrot.lane.b32.xlu0 %v3045_v40, %s3586_s23  ;;  %v3101_v25 = vsel %vm3053_vm5, %v3045_v40, 0.0  ;;  %v1844_v23 = vadd.f32 %v6906_v47, %v6170_v17 }
 0x6e2   : > { %v3206_v51 = vsel %vm3053_vm5, %v3152_v59, 0.0  ;;  %v2712_v11 = vadd.f32 %v6907_v53, %v2530_v2  ;;  %v2534_v38 = vadd.f32 %v2198_v9, %v6902_v12  ;;  %v2713_v13 = vadd.f32 %v6908_v0, %v2531_v39 }
 0x6e3   : > { %v3207_v43 = vadd.f32 %v3206_v51, %v3205_v22  ;;  %v3102_v63 = vadd.f32 %v3101_v25, %v3100_v56  ;;  %v3208_v49 = vsel %vm3053_vm5, %v3153_v7, 0.0  ;;  %v3103_v16 = vsel %vm3053_vm5, %v6266_v62, 0.0  ;;  %v6910_v56 = vld [vmem:[#allocation169_spill] sm:$0xff] }
 0x6e4   : > { %v2196_v48 = vadd.f32 %v6909_v46, %v1844_v23  ;;  %v2715_v54 = vadd.f32 %v2533_v30, %v6902_v12  ;;  %v3210_v1 = vsel %vm3053_vm5, %v3154_v20, 0.0  ;;  %v6297_v4 = vadd.f32 %v2988_v60, %v2713_v13 }
 0x6e5   : > { %v3209_v55 = vadd.f32 %v3208_v49, %v3207_v43  ;;  %v2984_v18 = vpop.permute.xlu0 %2983  ;;  %v3104_v17 = vadd.f32 %v3103_v16, %v3102_v63  ;;  %v2716_v32 = vadd.f32 %v2534_v38, %v6902_v12 }
 0x6e6   : > { %v6292_v42 = vadd.f32 %v2984_v18, %v2711_v35  ;;  %v2986_v5 = vpop.permute.xlu1 %2985  ;;  %v2532_v22 = vadd.f32 %v6910_v56, %v2196_v48  ;;  %v3157_v25 = vmul.f32 %v6297_v4, %v6297_v4  ;;  %v3051_v45 = vadd.f32 %v2715_v54, %v6902_v12 }
 0x6e7   : > { %v3048_v27 = vadd.f32 %v2986_v5, %v2712_v11  ;;  %v3211_v59 = vadd.f32 %v3210_v1, %v3209_v55  ;;  %v6314_v63 = vadd.f32 %v2716_v32, %v6902_v12  ;;  %v3109_v50 = vsel %vm3053_vm5, %v6297_v4, 0.0 }
 0x6e8   : > { %v3105_v40 = vsel %vm3053_vm5, %v6292_v42, 0.0  ;;  %v3155_v31 = vmul.f32 %v6292_v42, %v6292_v42  ;;  %v2714_v51 = vadd.f32 %v6911_v3, %v2532_v22  ;;  %v3216_v35 = vsel %vm3053_vm5, %v3157_v25, 0.0 }
 0x6e9   : > { %v3106_v61 = vadd.f32 %v3105_v40, %v3104_v17  ;;  %v3156_v26 = vmul.f32 %v3048_v27, %v3048_v27  ;;  %3321 = vrot.lane.b32.xlu0 %v3048_v27, %s3586_s23  ;;  %v3107_v44 = vsel %vm3053_vm5, %v3048_v27, 0.0  ;;  %v3159_v47 = vmul.f32 %v3051_v45, %v3051_v45 }
 0x6ea   : > { %v3212_v7 = vsel %vm3053_vm5, %v3155_v31, 0.0  ;;  %v3160_v12 = vmul.f32 %v6314_v63, %v6314_v63  ;;  %v3113_v60 = vsel %vm3053_vm5, %v3051_v45, 0.0  ;;  %v3115_v38 = vsel %vm3053_vm5, %v6314_v63, 0.0 }
 0x6eb   : > { %v3213_v9 = vadd.f32 %v3212_v7, %v3211_v59  ;;  %v3108_v33 = vadd.f32 %v3107_v44, %v3106_v61  ;;  %v3214_v30 = vsel %vm3053_vm5, %v3156_v26, 0.0  ;;  %v3220_v0 = vsel %vm3053_vm5, %v3159_v47, 0.0 }
 0x6ec   : > { %v3222_v5 = vsel %vm3053_vm5, %v3160_v12, 0.0 }
 0x6ed   : > { %v3215_v2 = vadd.f32 %v3214_v30, %v3213_v9  ;;  %v2990_v43 = vpop.permute.xlu0 %2989  ;;  %v3110_v24 = vadd.f32 %v3109_v50, %v3108_v33 }
 0x6ee   : > { %v6318_v39 = vadd.f32 %v2990_v43, %v2714_v51 }
 0x6ef   : > { %v3217_v53 = vadd.f32 %v3216_v35, %v3215_v2 }
 0x6f0   : > { %v3111_v20 = vsel %vm3053_vm5, %v6318_v39, 0.0  ;;  %v3158_v49 = vmul.f32 %v6318_v39, %v6318_v39 }
 0x6f1   : > { %v3112_v23 = vadd.f32 %v3111_v20, %v3110_v24  ;;  %3327 = vrot.lane.b32.xlu0 %v3051_v45, %s3586_s23 }
 0x6f2   : > { %v3218_v11 = vsel %vm3053_vm5, %v3158_v49, 0.0 }
 0x6f3   : > { %v3219_v55 = vadd.f32 %v3218_v11, %v3217_v53  ;;  %v3114_v18 = vadd.f32 %v3113_v60, %v3112_v23 }
 0x6f5   : > { %v3221_v13 = vadd.f32 %v3220_v0, %v3219_v55  ;;  %v3116_v16 = vadd.f32 %v3115_v38, %v3114_v18 }
 0x6f7   : > { %v3117_v46 = vrot.slane %v3116_v16, 4  ;;  %v3223_v48 = vadd.f32 %v3222_v5, %v3221_v13 }
 0x6f9   : > { %v3118_v54 = vadd.f32 %v3117_v46, %v3116_v16  ;;  %v3224_v17 = vrot.slane %v3223_v48, 4 }
 0x6fb   : > { %v3119_v27 = vrot.slane %v3118_v54, 2  ;;  %v3225_v1 = vadd.f32 %v3224_v17, %v3223_v48 }
 0x6fd   : > { %v3120_v40 = vadd.f32 %v3119_v27, %v3118_v54  ;;  %v3226_v31 = vrot.slane %v3225_v1, 2 }
 0x6ff   : > { %v3121_v61 = vrot.slane %v3120_v40, 1  ;;  %v3227_v59 = vadd.f32 %v3226_v31, %v3225_v1 }
 0x701   : > { %v3122_v26 = vadd.f32 %v3121_v61, %v3120_v40  ;;  %v3228_v32 = vrot.slane %v3227_v59, 1 }
 0x703   : > { %3124 = vrot.lane.b32.xlu1 %v3122_v26, %s3586_s23  ;;  %v3229_v56 = vadd.f32 %v3228_v32, %v3227_v59 }
 0x705   : > { %3231 = vrot.lane.b32.xlu2 %v3229_v56, %s3586_s23 }
 0x70b   : > { %3269 = vrot.lane.b32.xlu1 %v5935_v34, %s3586_s23 }
 0x70d   : > { %3271 = vrot.lane.b32.xlu2 %v5975_v19, %s3586_s23 }
 0x711   : > { %v3268_v22 = vpop.permute.xlu0 %3267 }
 0x712   : > { %3363 = vst.msk [vmem:[%s6345_s28] sm:$0xff] %vm433_vm0, %v3268_v22 }
 0x713   : > { %3275 = vrot.lane.b32.xlu1 %v5986_v6, %s3586_s23 }
 0x715   : > { %3277 = vrot.lane.b32.xlu2 %v6029_v58, %s3586_s23 }
 0x71a   : > { %v3274_v34 = vpop.permute.xlu0 %3273 }
 0x71b   : > { %3366 = vst.msk [vmem:[%s6345_s28 + $0x18] sm:$0xff] %vm433_vm0, %v3274_v34  ;;  %3281 = vrot.lane.b32.xlu1 %v6035_v52, %s3586_s23 }
 0x71d   : > { %3283 = vrot.lane.b32.xlu2 %v6069_v14, %s3586_s23 }
 0x723   : > { %v3280_v19 = vpop.permute.xlu0 %3279  ;;  %3287 = vrot.lane.b32.xlu1 %v6076_v28, %s3586_s23 }
 0x724   : > { %3369 = vst.msk [vmem:[%s6345_s28 + $0x30] sm:$0xff] %vm433_vm0, %v3280_v19 }
 0x725   : > { %3289 = vrot.lane.b32.xlu2 %v6110_v36, %s3586_s23 }
 0x72b   : > { %v3286_v6 = vpop.permute.xlu0 %3285  ;;  %3293 = vrot.lane.b32.xlu1 %v6116_v41, %s3586_s23 }
 0x72c   : > { %3372 = vst.msk [vmem:[%s6345_s28 + $0x48] sm:$0xff] %vm433_vm0, %v3286_v6 }
 0x72d   : > { %3295 = vrot.lane.b32.xlu2 %v6150_v57, %s3586_s23 }
 0x733   : > { %v3292_v58 = vpop.permute.xlu0 %3291  ;;  %3299 = vrot.lane.b32.xlu1 %v6156_v37, %s3586_s23 }
 0x734   : > { %3375 = vst.msk [vmem:[%s6345_s28 + $0x60] sm:$0xff] %vm433_vm0, %v3292_v58 }
 0x735   : > { %3301 = vrot.lane.b32.xlu2 %v6190_v15, %s3586_s23 }
 0x73b   : > { %v3298_v52 = vpop.permute.xlu0 %3297  ;;  %3305 = vrot.lane.b32.xlu1 %v6196_v21, %s3586_s23 }
 0x73c   : > { %3378 = vst.msk [vmem:[%s6345_s28 + $0x78] sm:$0xff] %vm433_vm0, %v3298_v52 }
 0x73d   : > { %3307 = vrot.lane.b32.xlu2 %v6226_v10, %s3586_s23 }
 0x743   : > { %v3304_v14 = vpop.permute.xlu0 %3303  ;;  %3311 = vrot.lane.b32.xlu1 %v6232_v29, %s3586_s23 }
 0x744   : > { %3381 = vst.msk [vmem:[%s6345_s28 + $0x90] sm:$0xff] %vm433_vm0, %v3304_v14 }
 0x745   : > { %3313 = vrot.lane.b32.xlu2 %v6261_v8, %s3586_s23 }
 0x74b   : > { %v3310_v28 = vpop.permute.xlu0 %3309  ;;  %3317 = vrot.lane.b32.xlu1 %v6266_v62, %s3586_s23 }
 0x74c   : > { %3384 = vst.msk [vmem:[%s6345_s28 + $0xa8] sm:$0xff] %vm433_vm0, %v3310_v28 }
 0x74d   : > { %3319 = vrot.lane.b32.xlu2 %v6292_v42, %s3586_s23 }
 0x753   : > { %v3316_v36 = vpop.permute.xlu0 %3315  ;;  %3323 = vrot.lane.b32.xlu1 %v6297_v4, %s3586_s23 }
 0x754   : > { %3387 = vst.msk [vmem:[%s6345_s28 + $0xc0] sm:$0xff] %vm433_vm0, %v3316_v36 }
 0x755   : > { %3325 = vrot.lane.b32.xlu2 %v6318_v39, %s3586_s23 }
 0x75b   : > { %v3322_v41 = vpop.permute.xlu0 %3321  ;;  %3329 = vrot.lane.b32.xlu1 %v6314_v63, %s3586_s23 }
 0x75c   : > { %3390 = vst.msk [vmem:[%s6345_s28 + $0xd8] sm:$0xff] %vm433_vm0, %v3322_v41 }
 0x75f   : > { %v3232_v57 = vpop.permute.xlu2 %3231 }
 0x760   : > { %3234 = vst.msk [vmem:[%s295_s8] sm:$0x1] %vm3127_vm6, %v3232_v57 }
 0x763   : > { %v3328_v37 = vpop.permute.xlu0 %3327 }
 0x764   : > { %3393 = vst.msk [vmem:[%s6345_s28 + $0xf0] sm:$0xff] %vm433_vm0, %v3328_v37 }
 0x767   : > { %v3272_v15 = vpop.permute.xlu2 %3271 }
 0x768   : > { %3365 = vst.msk [vmem:[%s6345_s28 + $0x10] sm:$0xff] %vm433_vm0, %v3272_v15 }
 0x76f   : > { %v3278_v21 = vpop.permute.xlu2 %3277 }
 0x770   : > { %3368 = vst.msk [vmem:[%s6345_s28 + $0x28] sm:$0xff] %vm433_vm0, %v3278_v21 }
 0x775   : > { %v3125_v10 = vpop.permute.xlu1 %3124 }
 0x776   : > { %3128 = vst.msk [vmem:[%s292_s11] sm:$0x1] %vm3127_vm6, %v3125_v10 }
 0x777   : > { %v3284_v29 = vpop.permute.xlu2 %3283 }
 0x778   : > { %3371 = vst.msk [vmem:[%s6345_s28 + $0x40] sm:$0xff] %vm433_vm0, %v3284_v29 }
 0x77d   : > { %v3270_v8 = vpop.permute.xlu1 %3269 }
 0x77e   : > { %3364 = vst.msk [vmem:[%s6345_s28 + $0x8] sm:$0xff] %vm433_vm0, %v3270_v8 }
 0x77f   : > { %v3290_v62 = vpop.permute.xlu2 %3289 }
 0x780   : > { %3374 = vst.msk [vmem:[%s6345_s28 + $0x58] sm:$0xff] %vm433_vm0, %v3290_v62 }
 0x785   : > { %v3276_v42 = vpop.permute.xlu1 %3275 }
 0x786   : > { %3367 = vst.msk [vmem:[%s6345_s28 + $0x20] sm:$0xff] %vm433_vm0, %v3276_v42 }
 0x787   : > { %v3296_v4 = vpop.permute.xlu2 %3295 }
 0x788   : > { %3377 = vst.msk [vmem:[%s6345_s28 + $0x70] sm:$0xff] %vm433_vm0, %v3296_v4 }
 0x78d   : > { %v3282_v7 = vpop.permute.xlu1 %3281 }
 0x78e   : > { %3370 = vst.msk [vmem:[%s6345_s28 + $0x38] sm:$0xff] %vm433_vm0, %v3282_v7 }
 0x78f   : > { %v3302_v44 = vpop.permute.xlu2 %3301 }
 0x790   : > { %3380 = vst.msk [vmem:[%s6345_s28 + $0x88] sm:$0xff] %vm433_vm0, %v3302_v44 }
 0x795   : > { %v3288_v9 = vpop.permute.xlu1 %3287 }
 0x796   : > { %3373 = vst.msk [vmem:[%s6345_s28 + $0x50] sm:$0xff] %vm433_vm0, %v3288_v9 }
 0x797   : > { %v3308_v33 = vpop.permute.xlu2 %3307 }
 0x798   : > { %3383 = vst.msk [vmem:[%s6345_s28 + $0xa0] sm:$0xff] %vm433_vm0, %v3308_v33 }
 0x79d   : > { %v3294_v3 = vpop.permute.xlu1 %3293 }
 0x79e   : > { %3376 = vst.msk [vmem:[%s6345_s28 + $0x68] sm:$0xff] %vm433_vm0, %v3294_v3 }
 0x79f   : > { %v3314_v51 = vpop.permute.xlu2 %3313 }
 0x7a0   : > { %3386 = vst.msk [vmem:[%s6345_s28 + $0xb8] sm:$0xff] %vm433_vm0, %v3314_v51 }
 0x7a5   : > { %v3300_v25 = vpop.permute.xlu1 %3299 }
 0x7a6   : > { %3379 = vst.msk [vmem:[%s6345_s28 + $0x80] sm:$0xff] %vm433_vm0, %v3300_v25 }
 0x7a7   : > { %v3320_v30 = vpop.permute.xlu2 %3319 }
 0x7a8   : > { %3389 = vst.msk [vmem:[%s6345_s28 + $0xd0] sm:$0xff] %vm433_vm0, %v3320_v30 }
 0x7ad   : > { %v3306_v45 = vpop.permute.xlu1 %3305 }
 0x7ae   : > { %3382 = vst.msk [vmem:[%s6345_s28 + $0x98] sm:$0xff] %vm433_vm0, %v3306_v45 }
 0x7af   : > { %v3326_v2 = vpop.permute.xlu2 %3325 }
 0x7b0   : > { %3392 = vst.msk [vmem:[%s6345_s28 + $0xe8] sm:$0xff] %vm433_vm0, %v3326_v2 }
 0x7b5   : > { %v3312_v43 = vpop.permute.xlu1 %3311 }
 0x7b6   : > { %3385 = vst.msk [vmem:[%s6345_s28 + $0xb0] sm:$0xff] %vm433_vm0, %v3312_v43 }
 0x7bd   : > { %v3318_v63 = vpop.permute.xlu1 %3317 }
 0x7be   : > { %3388 = vst.msk [vmem:[%s6345_s28 + $0xc8] sm:$0xff] %vm433_vm0, %v3318_v63 }
 0x7c5   : > { %v3324_v50 = vpop.permute.xlu1 %3323 }
 0x7c6   : > { %3391 = vst.msk [vmem:[%s6345_s28 + $0xe0] sm:$0xff] %vm433_vm0, %v3324_v50 }
 0x7cd   : > { %v3330_v39 = vpop.permute.xlu1 %3329 }
 0x7ce   : > { %3394 = vst.msk [vmem:[%s6345_s28 + $0xf8] sm:$0xff] %vm433_vm0, %v3330_v39 }
 0x7cf PF: > { %s18_s24 = sadd.s32 1, %s3575_s24  }
 0x7d0   : > { %p15_p4 = scmp.ge.s32.totalorder %s18_s24, 4  }
 0x7d2   :  { %17 = sbr.rel (!%p15_p4) target bundleno = 1 (0x1), region = 94 }

</bundles_post_ra>
